<compile_context>
chip_gen: v5e
topology: v5e:2x2
jax: 0.10.0
libtpu: 0.0.40
codegen_flags: <defaults>
</compile_context>

<pallas_src>
import functools

import jax
import jax.numpy as jnp
from jax.experimental import pallas as pl
from jax.experimental.pallas import tpu as pltpu


# ----------------------------------------------------------------------------
# Kernel 1: Conv2d(3x3, s=1, p=1) + bias + ReLU, with the input-channel concat
# fused (n_in input tensors, each with its own weight segment).
# One grid step = one batch sample; taps are read as shifted windows of the
# spatially padded NHWC block (no im2col materialization anywhere).
# ----------------------------------------------------------------------------
def _conv3x3_kernel(*refs, H, W, n_in, relu):
    x_refs = refs[:n_in]                  # each (1, H+2, W+2, C_i)   bf16
    w_refs = refs[n_in:2 * n_in]          # each (9, C_i, Cout)       bf16
    b_ref = refs[2 * n_in]                # (1, Cout)                 f32
    o_ref = refs[2 * n_in + 1]            # (1, H*W, Cout)            bf16
    cout = o_ref.shape[-1]

    acc = jnp.zeros((H * W, cout), jnp.float32)
    for i in range(n_in):
        ci = x_refs[i].shape[-1]
        for dh in range(3):
            for dw in range(3):
                a = x_refs[i][0, dh:dh + H, dw:dw + W, :]
                a = a.astype(jnp.float32).reshape(H * W, ci)
                w_tap = w_refs[i][dh * 3 + dw].astype(jnp.float32)
                acc = acc + jnp.dot(a, w_tap,
                                    preferred_element_type=jnp.float32)
    r = acc + b_ref[...]
    if relu:
        r = jnp.maximum(r, 0.0)
    o_ref[0] = r.astype(o_ref.dtype)


def conv3x3_relu(xs, w, b):
    """Conv2d(k=3,s=1,p=1)+ReLU over the channel concatenation of `xs`.

    xs: list of NHWC tensors (N,H,W,C_i) whose channels concatenate (in order)
        to the conv input.  w: (Cout, sum C_i, 3, 3) PyTorch layout.  b: (Cout,).
    Returns (N, H, W, Cout) bf16.
    """
    n, h, wd = xs[0].shape[:3]
    cout = int(w.shape[0])
    csz = [int(x.shape[-1]) for x in xs]
    n_in = len(xs)

    # Pad once, spatially, in bf16 (no im2col, no per-matrix pads).
    xps = [jnp.pad(x.astype(jnp.bfloat16), ((0, 0), (1, 1), (1, 1), (0, 0)))
           for x in xs]
    # (Cout, Ctot, 3, 3) -> (3, 3, Ctot, Cout) -> per-input (9, C_i, Cout)
    wt = jnp.transpose(w, (2, 3, 1, 0)).astype(jnp.bfloat16)
    offs = [0]
    for c in csz:
        offs.append(offs[-1] + c)
    wsegs = [wt[:, :, offs[i]:offs[i + 1], :].reshape(9, csz[i], cout)
             for i in range(n_in)]
    b2 = b.astype(jnp.float32).reshape(1, cout)

    in_specs = (
        [pl.BlockSpec((1, h + 2, wd + 2, c), lambda bi: (bi, 0, 0, 0))
         for c in csz]
        + [pl.BlockSpec((9, c, cout), lambda bi: (0, 0, 0)) for c in csz]
        + [pl.BlockSpec((1, cout), lambda bi: (0, 0))]
    )
    out = pl.pallas_call(
        functools.partial(_conv3x3_kernel, H=h, W=wd, n_in=n_in, relu=True),
        out_shape=jax.ShapeDtypeStruct((n, h * wd, cout), jnp.bfloat16),
        grid_spec=pltpu.PrefetchScalarGridSpec(
            num_scalar_prefetch=0,
            grid=(n,),
            in_specs=in_specs,
            out_specs=pl.BlockSpec((1, h * wd, cout), lambda bi: (bi, 0, 0)),
        ),
        compiler_params=pltpu.CompilerParams(
            dimension_semantics=("parallel",)),
    )(*xps, *wsegs, b2)
    return out.reshape(n, h, wd, cout)


# ----------------------------------------------------------------------------
# Kernel 2: ConvTranspose2d(k=4, s=2, p=1) via sub-pixel decomposition.
# Each of the 4 output phases (rh, rw) is an exact stride-1 2x2 conv with taps
# kh = 3 - rh - 2*dh, kw = 3 - rw - 2*dw on the once-padded input.  All phases
# are computed in one kernel invocation per batch sample from a single input
# block -> no zero-dilated im2col, ~1x input read amplification.
# ----------------------------------------------------------------------------
def _convt_kernel(x_ref, w_ref, b_ref, o_ref, *, H, W):
    # x_ref: (1, H+2, W+2, Cin) bf16; w_ref: (2, 2, 4, Cin, Cout) bf16
    # b_ref: (1, Cout) f32;            o_ref: (1, 2, 2, H*W, Cout) bf16
    cin = x_ref.shape[-1]
    cout = o_ref.shape[-1]
    for rh in range(2):
        for rw in range(2):
            acc = jnp.zeros((H * W, cout), jnp.float32)
            for t in range(4):
                dh, dw = divmod(t, 2)
                a = x_ref[0, rh + dh:rh + dh + H, rw + dw:rw + dw + W, :]
                a = a.astype(jnp.float32).reshape(H * W, cin)
                w_tap = w_ref[rh, rw, t].astype(jnp.float32)
                acc = acc + jnp.dot(a, w_tap,
                                    preferred_element_type=jnp.float32)
            o_ref[0, rh, rw] = (acc + b_ref[...]).astype(o_ref.dtype)


def convT4x4s2(x, w, b):
    """ConvTranspose2d(k=4, s=2, p=1).  x NHWC (N,H,W,Cin); w (Cin,Cout,4,4)."""
    n, h, wd, cin = x.shape
    cout = int(w.shape[1])
    xp = jnp.pad(x.astype(jnp.bfloat16), ((0, 0), (1, 1), (1, 1), (0, 0)))
    # Phase/tap weight table: wp[rh, rw, dh*2+dw] = w[:, :, 3-rh-2dh, 3-rw-2dw]
    wp = jnp.stack(
        [jnp.stack(
            [jnp.stack([w[:, :, 3 - rh - 2 * dh, 3 - rw - 2 * dw]
                        for dh in range(2) for dw in range(2)], axis=0)
             for rw in range(2)], axis=0)
         for rh in range(2)], axis=0).astype(jnp.bfloat16)   # (2,2,4,Cin,Cout)
    b2 = b.astype(jnp.float32).reshape(1, cout)

    out = pl.pallas_call(
        functools.partial(_convt_kernel, H=h, W=wd),
        out_shape=jax.ShapeDtypeStruct((n, 2, 2, h * wd, cout), jnp.bfloat16),
        grid_spec=pltpu.PrefetchScalarGridSpec(
            num_scalar_prefetch=0,
            grid=(n,),
            in_specs=[
                pl.BlockSpec((1, h + 2, wd + 2, cin), lambda bi: (bi, 0, 0, 0)),
                pl.BlockSpec((2, 2, 4, cin, cout),
                             lambda bi: (0, 0, 0, 0, 0)),
                pl.BlockSpec((1, cout), lambda bi: (0, 0)),
            ],
            out_specs=pl.BlockSpec((1, 2, 2, h * wd, cout),
                                   lambda bi: (bi, 0, 0, 0, 0)),
        ),
        compiler_params=pltpu.CompilerParams(
            dimension_semantics=("parallel",)),
    )(xp, wp, b2)

    # Phase-blocked (N, rh, rw, H*W, C) -> interleaved NHWC (N, 2H, 2W, C).
    # TODO(synk): fold this phase interleave into the consumer conv's read path
    # to avoid one extra (small) HBM round trip of the upsampled tensor.
    y = out.reshape(n, 2, 2, h, wd, cout)
    y = jnp.transpose(y, (0, 3, 1, 4, 2, 5)).reshape(n, 2 * h, 2 * wd, cout)
    return y


# ----------------------------------------------------------------------------
# UpsamplingBilinear2d(scale_factor=2), align_corners=True  (is_deconv=False)
# ----------------------------------------------------------------------------
def upsample_bilinear2x(x):
    # TODO(synk): gather-heavy bilinear resample kept as plain-JAX glue
    # (separable 1-D interp matmuls through the Pallas kernel would be faster).
    n, h, w, c = x.shape
    oh, ow = 2 * h, 2 * w

    def coords(o, i):
        if i == 1:
            z = jnp.zeros((o,), jnp.int32)
            return jnp.zeros((o,), jnp.float32), z, z
        src = jnp.arange(o, dtype=jnp.float32) * (i - 1) / (o - 1)
        lo = jnp.clip(jnp.floor(src).astype(jnp.int32), 0, i - 2)
        return src - lo.astype(jnp.float32), lo, lo + 1

    fh, h0, h1 = coords(oh, h)
    fw, w0, w1 = coords(ow, w)
    xf = x.astype(jnp.float32)
    fw_b = fw[None, None, :, None]
    top = xf[:, h0][:, :, w0] * (1 - fw_b) + xf[:, h0][:, :, w1] * fw_b
    bot = xf[:, h1][:, :, w0] * (1 - fw_b) + xf[:, h1][:, :, w1] * fw_b
    fh_b = fh[None, :, None, None]
    return (top * (1 - fh_b) + bot * fh_b).astype(x.dtype)


# ----------------------------------------------------------------------------
# unetUp_origin: parameters + forward (NCHW external interface)
# ----------------------------------------------------------------------------
def _kaiming(key, shape, fan_in):
    return jax.random.normal(key, shape, jnp.float32) * jnp.sqrt(2.0 / fan_in)


def init_unetup_origin(key, in_size, out_size, is_deconv=True, n_concat=2):
    conv_in = in_size + (n_concat - 2) * out_size
    ks = jax.random.split(key, 4)
    p = {}
    if is_deconv:
        # nn.ConvTranspose2d(in_size, out_size, 4, 2, 1): weight (Cin,Cout,4,4)
        p["up_w"] = _kaiming(ks[0], (in_size, out_size, 4, 4), out_size * 16)
        p["up_b"] = jnp.zeros((out_size,), jnp.float32)
    # unetConv2_2(conv_in, out_size, is_batchnorm=False): 2 x (Conv3x3 + ReLU)
    c_in = conv_in
    for i in (1, 2):
        p[f"conv{i}_w"] = _kaiming(ks[i], (out_size, c_in, 3, 3), c_in * 9)
        p[f"conv{i}_b"] = jnp.zeros((out_size,), jnp.float32)
        c_in = out_size
    return p


def unetup_origin_forward(params, inputs0, skips, is_deconv=True):
    """inputs0: (N, in_size, H, W) NCHW; skips: list of NCHW tensors."""
    x = jnp.transpose(inputs0, (0, 2, 3, 1)).astype(jnp.bfloat16)     # -> NHWC
    if is_deconv:
        up = convT4x4s2(x, params["up_w"], params["up_b"])
    else:
        up = upsample_bilinear2x(x)
    feats = [up] + [jnp.transpose(s, (0, 2, 3, 1)).astype(jnp.bfloat16)
                    for s in skips]
    # conv1 with the channel concat fused into the kernel (no jnp.concatenate)
    y = conv3x3_relu(feats, params["conv1_w"], params["conv1_b"])
    y = conv3x3_relu([y], params["conv2_w"], params["conv2_b"])
    return jnp.transpose(y, (0, 3, 1, 2)).astype(jnp.float32)         # -> NCHW


# ----------------------------------------------------------------------------
# Pure-JAX reference (same bf16 rounding points) for a numerical sanity check.
# ----------------------------------------------------------------------------
def _ref_forward(params, inputs0, skips):
    def rb(t):  # round-trip through bf16, like the kernel pipeline
        return t.astype(jnp.bfloat16).astype(jnp.float32)

    dn = ("NCHW", "OIHW", "NCHW")
    x = rb(inputs0)
    wt = jnp.flip(rb(params["up_w"]), (2, 3)).transpose(1, 0, 2, 3)
    y = jax.lax.conv_general_dilated(
        x, wt, window_strides=(1, 1), padding=((2, 2), (2, 2)),
        lhs_dilation=(2, 2), dimension_numbers=dn,
        precision=jax.lax.Precision.HIGHEST)
    y = rb(y + params["up_b"].reshape(1, -1, 1, 1))
    y = jnp.concatenate([y] + [rb(s) for s in skips], axis=1)
    for i in (1, 2):
        w = rb(params[f"conv{i}_w"])
        y = jax.lax.conv_general_dilated(
            y, w, window_strides=(1, 1), padding=((1, 1), (1, 1)),
            dimension_numbers=dn, precision=jax.lax.Precision.HIGHEST)
        y = rb(jnp.maximum(y + params[f"conv{i}_b"].reshape(1, -1, 1, 1), 0.0))
    return y


# ----------------------------------------------------------------------------
if __name__ == "__main__":
    key = jax.random.PRNGKey(0)
    k0, k1, kp = jax.random.split(key, 3)

    # unetUp_origin(in_size=8, out_size=4, is_deconv=True, n_concat=2)
    # inputs0: (2, 8, 8, 8) -> up -> (2, 4, 16, 16); skip: (2, 4, 16, 16)
    # -> (fused) concat (2, 8, 16, 16) -> two Conv3x3+ReLU -> (2, 4, 16, 16)
    IN_SIZE, OUT_SIZE = 8, 4
    inputs0 = jax.random.normal(k0, (2, IN_SIZE, 8, 8), jnp.float32)
    skip = jax.random.normal(k1, (2, IN_SIZE - OUT_SIZE, 16, 16), jnp.float32)

    params = init_unetup_origin(kp, IN_SIZE, OUT_SIZE, is_deconv=True,
                                n_concat=2)
    fwd = jax.jit(functools.partial(unetup_origin_forward, is_deconv=True))
    y = jax.block_until_ready(fwd(params, inputs0, [skip]))

    assert y.shape == (2, OUT_SIZE, 16, 16), y.shape
    assert bool(jnp.all(jnp.isfinite(y)))
    assert bool(jnp.all(y >= 0))  # final ReLU

    y_ref = jax.block_until_ready(jax.jit(_ref_forward)(params, inputs0, [skip]))
    max_err = float(jnp.max(jnp.abs(y - y_ref)))
    assert bool(jnp.allclose(y, y_ref, atol=5e-2, rtol=5e-2)), max_err

    print("KERNEL_OK")
</pallas_src>

<mosaic_0001>
module attributes {stable_mosaic.version = 11 : i64} {
  func.func @_convt_kernel(%arg0: i32, %arg1: memref<1x10x10x8xbf16, #tpu.memory_space<vmem>>, %arg2: memref<2x2x4x8x4xbf16, #tpu.memory_space<vmem>>, %arg3: memref<1x4xf32, #tpu.memory_space<vmem>>, %arg4: memref<1x2x2x64x4xbf16, #tpu.memory_space<vmem>>) attributes {dimension_semantics = [#tpu.dimension_semantics<parallel>], iteration_bounds = array<i64: 2>, scalar_prefetch = 0 : i64, scratch_operands = 0 : i64, tpu.core_type = #tpu.core_type<tc>, window_params = [{transform_indices = @transform_0, window_bounds = array<i64: 1, 10, 10, 8>}, {pipeline_mode = #tpu.pipeline_mode<synchronous>, transform_indices = @transform_1, window_bounds = array<i64: 2, 2, 4, 8, 4>}, {pipeline_mode = #tpu.pipeline_mode<synchronous>, transform_indices = @transform_2, window_bounds = array<i64: 1, 4>}, {transform_indices = @transform_3, window_bounds = array<i64: 1, 2, 2, 64, 4>}]} {
    %cst = arith.constant 0.000000e+00 : f32
    %0 = vector.broadcast %cst : f32 to vector<64x4xf32>
    %c0 = arith.constant 0 : index
    %c0_0 = arith.constant 0 : index
    %c0_1 = arith.constant 0 : index
    %c0_2 = arith.constant 0 : index
    %1 = vector.load %arg1[%c0, %c0_0, %c0_1, %c0_2] : memref<1x10x10x8xbf16, #tpu.memory_space<vmem>>, vector<1x8x8x8xbf16>
    %2 = vector.shape_cast %1 : vector<1x8x8x8xbf16> to vector<8x8x8xbf16>
    %3 = arith.extf %2 : vector<8x8x8xbf16> to vector<8x8x8xf32>
    %4 = vector.shape_cast %3 : vector<8x8x8xf32> to vector<64x8xf32>
    %c0_3 = arith.constant 0 : index
    %c0_4 = arith.constant 0 : index
    %c0_5 = arith.constant 0 : index
    %c0_6 = arith.constant 0 : index
    %c0_7 = arith.constant 0 : index
    %5 = vector.load %arg2[%c0_3, %c0_4, %c0_5, %c0_6, %c0_7] : memref<2x2x4x8x4xbf16, #tpu.memory_space<vmem>>, vector<1x1x1x8x4xbf16>
    %6 = vector.shape_cast %5 : vector<1x1x1x8x4xbf16> to vector<8x4xbf16>
    %7 = arith.extf %6 : vector<8x4xbf16> to vector<8x4xf32>
    %cst_8 = arith.constant dense<0.000000e+00> : vector<64x4xf32>
    %8 = tpu.matmul %4, %7, %cst_8 {dimension_numbers = #tpu.dot_dimension_numbers<[1], [0], [0], [1], [0, 0, 1, 1], [], []>} : vector<64x8xf32>, vector<8x4xf32>, vector<64x4xf32> -> vector<64x4xf32>
    %9 = arith.addf %0, %8 : vector<64x4xf32>
    %c0_9 = arith.constant 0 : index
    %c0_10 = arith.constant 0 : index
    %c1 = arith.constant 1 : index
    %c0_11 = arith.constant 0 : index
    %10 = vector.load %arg1[%c0_9, %c0_10, %c1, %c0_11] : memref<1x10x10x8xbf16, #tpu.memory_space<vmem>>, vector<1x8x8x8xbf16>
    %11 = vector.shape_cast %10 : vector<1x8x8x8xbf16> to vector<8x8x8xbf16>
    %12 = arith.extf %11 : vector<8x8x8xbf16> to vector<8x8x8xf32>
    %13 = vector.shape_cast %12 : vector<8x8x8xf32> to vector<64x8xf32>
    %c0_12 = arith.constant 0 : index
    %c0_13 = arith.constant 0 : index
    %c1_14 = arith.constant 1 : index
    %c0_15 = arith.constant 0 : index
    %c0_16 = arith.constant 0 : index
    %14 = vector.load %arg2[%c0_12, %c0_13, %c1_14, %c0_15, %c0_16] : memref<2x2x4x8x4xbf16, #tpu.memory_space<vmem>>, vector<1x1x1x8x4xbf16>
    %15 = vector.shape_cast %14 : vector<1x1x1x8x4xbf16> to vector<8x4xbf16>
    %16 = arith.extf %15 : vector<8x4xbf16> to vector<8x4xf32>
    %cst_17 = arith.constant dense<0.000000e+00> : vector<64x4xf32>
    %17 = tpu.matmul %13, %16, %cst_17 {dimension_numbers = #tpu.dot_dimension_numbers<[1], [0], [0], [1], [0, 0, 1, 1], [], []>} : vector<64x8xf32>, vector<8x4xf32>, vector<64x4xf32> -> vector<64x4xf32>
    %18 = arith.addf %9, %17 : vector<64x4xf32>
    %c0_18 = arith.constant 0 : index
    %c1_19 = arith.constant 1 : index
    %c0_20 = arith.constant 0 : index
    %c0_21 = arith.constant 0 : index
    %19 = vector.load %arg1[%c0_18, %c1_19, %c0_20, %c0_21] : memref<1x10x10x8xbf16, #tpu.memory_space<vmem>>, vector<1x8x8x8xbf16>
    %20 = vector.shape_cast %19 : vector<1x8x8x8xbf16> to vector<8x8x8xbf16>
    %21 = arith.extf %20 : vector<8x8x8xbf16> to vector<8x8x8xf32>
    %22 = vector.shape_cast %21 : vector<8x8x8xf32> to vector<64x8xf32>
    %c0_22 = arith.constant 0 : index
    %c0_23 = arith.constant 0 : index
    %c2 = arith.constant 2 : index
    %c0_24 = arith.constant 0 : index
    %c0_25 = arith.constant 0 : index
    %23 = vector.load %arg2[%c0_22, %c0_23, %c2, %c0_24, %c0_25] : memref<2x2x4x8x4xbf16, #tpu.memory_space<vmem>>, vector<1x1x1x8x4xbf16>
    %24 = vector.shape_cast %23 : vector<1x1x1x8x4xbf16> to vector<8x4xbf16>
    %25 = arith.extf %24 : vector<8x4xbf16> to vector<8x4xf32>
    %cst_26 = arith.constant dense<0.000000e+00> : vector<64x4xf32>
    %26 = tpu.matmul %22, %25, %cst_26 {dimension_numbers = #tpu.dot_dimension_numbers<[1], [0], [0], [1], [0, 0, 1, 1], [], []>} : vector<64x8xf32>, vector<8x4xf32>, vector<64x4xf32> -> vector<64x4xf32>
    %27 = arith.addf %18, %26 : vector<64x4xf32>
    %c0_27 = arith.constant 0 : index
    %c1_28 = arith.constant 1 : index
    %c1_29 = arith.constant 1 : index
    %c0_30 = arith.constant 0 : index
    %28 = vector.load %arg1[%c0_27, %c1_28, %c1_29, %c0_30] : memref<1x10x10x8xbf16, #tpu.memory_space<vmem>>, vector<1x8x8x8xbf16>
    %29 = vector.shape_cast %28 : vector<1x8x8x8xbf16> to vector<8x8x8xbf16>
    %30 = arith.extf %29 : vector<8x8x8xbf16> to vector<8x8x8xf32>
    %31 = vector.shape_cast %30 : vector<8x8x8xf32> to vector<64x8xf32>
    %c0_31 = arith.constant 0 : index
    %c0_32 = arith.constant 0 : index
    %c3 = arith.constant 3 : index
    %c0_33 = arith.constant 0 : index
    %c0_34 = arith.constant 0 : index
    %32 = vector.load %arg2[%c0_31, %c0_32, %c3, %c0_33, %c0_34] : memref<2x2x4x8x4xbf16, #tpu.memory_space<vmem>>, vector<1x1x1x8x4xbf16>
    %33 = vector.shape_cast %32 : vector<1x1x1x8x4xbf16> to vector<8x4xbf16>
    %34 = arith.extf %33 : vector<8x4xbf16> to vector<8x4xf32>
    %cst_35 = arith.constant dense<0.000000e+00> : vector<64x4xf32>
    %35 = tpu.matmul %31, %34, %cst_35 {dimension_numbers = #tpu.dot_dimension_numbers<[1], [0], [0], [1], [0, 0, 1, 1], [], []>} : vector<64x8xf32>, vector<8x4xf32>, vector<64x4xf32> -> vector<64x4xf32>
    %36 = arith.addf %27, %35 : vector<64x4xf32>
    %c0_36 = arith.constant 0 : index
    %c0_37 = arith.constant 0 : index
    %37 = vector.load %arg3[%c0_36, %c0_37] : memref<1x4xf32, #tpu.memory_space<vmem>>, vector<1x4xf32>
    %38 = vector.broadcast %37 : vector<1x4xf32> to vector<64x4xf32>
    %39 = arith.addf %36, %38 : vector<64x4xf32>
    %40 = arith.truncf %39 : vector<64x4xf32> to vector<64x4xbf16>
    %c0_38 = arith.constant 0 : index
    %c0_39 = arith.constant 0 : index
    %c0_40 = arith.constant 0 : index
    %c0_41 = arith.constant 0 : index
    %c0_42 = arith.constant 0 : index
    %41 = vector.load %arg4[%c0_38, %c0_39, %c0_40, %c0_41, %c0_42] : memref<1x2x2x64x4xbf16, #tpu.memory_space<vmem>>, vector<1x1x1x64x4xbf16>
    %42 = vector.shape_cast %41 : vector<1x1x1x64x4xbf16> to vector<64x4xbf16>
    %43 = vector.shape_cast %40 : vector<64x4xbf16> to vector<1x1x1x64x4xbf16>
    tpu.vector_store %arg4[%c0_38, %c0_39, %c0_40, %c0_41, %c0_42], %43 {strides = array<i32>} : memref<1x2x2x64x4xbf16, #tpu.memory_space<vmem>>, vector<1x1x1x64x4xbf16>,
    %cst_43 = arith.constant 0.000000e+00 : f32
    %44 = vector.broadcast %cst_43 : f32 to vector<64x4xf32>
    %c0_44 = arith.constant 0 : index
    %c0_45 = arith.constant 0 : index
    %c1_46 = arith.constant 1 : index
    %c0_47 = arith.constant 0 : index
    %45 = vector.load %arg1[%c0_44, %c0_45, %c1_46, %c0_47] : memref<1x10x10x8xbf16, #tpu.memory_space<vmem>>, vector<1x8x8x8xbf16>
    %46 = vector.shape_cast %45 : vector<1x8x8x8xbf16> to vector<8x8x8xbf16>
    %47 = arith.extf %46 : vector<8x8x8xbf16> to vector<8x8x8xf32>
    %48 = vector.shape_cast %47 : vector<8x8x8xf32> to vector<64x8xf32>
    %c0_48 = arith.constant 0 : index
    %c1_49 = arith.constant 1 : index
    %c0_50 = arith.constant 0 : index
    %c0_51 = arith.constant 0 : index
    %c0_52 = arith.constant 0 : index
    %49 = vector.load %arg2[%c0_48, %c1_49, %c0_50, %c0_51, %c0_52] : memref<2x2x4x8x4xbf16, #tpu.memory_space<vmem>>, vector<1x1x1x8x4xbf16>
    %50 = vector.shape_cast %49 : vector<1x1x1x8x4xbf16> to vector<8x4xbf16>
    %51 = arith.extf %50 : vector<8x4xbf16> to vector<8x4xf32>
    %cst_53 = arith.constant dense<0.000000e+00> : vector<64x4xf32>
    %52 = tpu.matmul %48, %51, %cst_53 {dimension_numbers = #tpu.dot_dimension_numbers<[1], [0], [0], [1], [0, 0, 1, 1], [], []>} : vector<64x8xf32>, vector<8x4xf32>, vector<64x4xf32> -> vector<64x4xf32>
    %53 = arith.addf %44, %52 : vector<64x4xf32>
    %c0_54 = arith.constant 0 : index
    %c0_55 = arith.constant 0 : index
    %c2_56 = arith.constant 2 : index
    %c0_57 = arith.constant 0 : index
    %54 = vector.load %arg1[%c0_54, %c0_55, %c2_56, %c0_57] : memref<1x10x10x8xbf16, #tpu.memory_space<vmem>>, vector<1x8x8x8xbf16>
    %55 = vector.shape_cast %54 : vector<1x8x8x8xbf16> to vector<8x8x8xbf16>
    %56 = arith.extf %55 : vector<8x8x8xbf16> to vector<8x8x8xf32>
    %57 = vector.shape_cast %56 : vector<8x8x8xf32> to vector<64x8xf32>
    %c0_58 = arith.constant 0 : index
    %c1_59 = arith.constant 1 : index
    %c1_60 = arith.constant 1 : index
    %c0_61 = arith.constant 0 : index
    %c0_62 = arith.constant 0 : index
    %58 = vector.load %arg2[%c0_58, %c1_59, %c1_60, %c0_61, %c0_62] : memref<2x2x4x8x4xbf16, #tpu.memory_space<vmem>>, vector<1x1x1x8x4xbf16>
    %59 = vector.shape_cast %58 : vector<1x1x1x8x4xbf16> to vector<8x4xbf16>
    %60 = arith.extf %59 : vector<8x4xbf16> to vector<8x4xf32>
    %cst_63 = arith.constant dense<0.000000e+00> : vector<64x4xf32>
    %61 = tpu.matmul %57, %60, %cst_63 {dimension_numbers = #tpu.dot_dimension_numbers<[1], [0], [0], [1], [0, 0, 1, 1], [], []>} : vector<64x8xf32>, vector<8x4xf32>, vector<64x4xf32> -> vector<64x4xf32>
    %62 = arith.addf %53, %61 : vector<64x4xf32>
    %c0_64 = arith.constant 0 : index
    %c1_65 = arith.constant 1 : index
    %c1_66 = arith.constant 1 : index
    %c0_67 = arith.constant 0 : index
    %63 = vector.load %arg1[%c0_64, %c1_65, %c1_66, %c0_67] : memref<1x10x10x8xbf16, #tpu.memory_space<vmem>>, vector<1x8x8x8xbf16>
    %64 = vector.shape_cast %63 : vector<1x8x8x8xbf16> to vector<8x8x8xbf16>
    %65 = arith.extf %64 : vector<8x8x8xbf16> to vector<8x8x8xf32>
    %66 = vector.shape_cast %65 : vector<8x8x8xf32> to vector<64x8xf32>
    %c0_68 = arith.constant 0 : index
    %c1_69 = arith.constant 1 : index
    %c2_70 = arith.constant 2 : index
    %c0_71 = arith.constant 0 : index
    %c0_72 = arith.constant 0 : index
    %67 = vector.load %arg2[%c0_68, %c1_69, %c2_70, %c0_71, %c0_72] : memref<2x2x4x8x4xbf16, #tpu.memory_space<vmem>>, vector<1x1x1x8x4xbf16>
    %68 = vector.shape_cast %67 : vector<1x1x1x8x4xbf16> to vector<8x4xbf16>
    %69 = arith.extf %68 : vector<8x4xbf16> to vector<8x4xf32>
    %cst_73 = arith.constant dense<0.000000e+00> : vector<64x4xf32>
    %70 = tpu.matmul %66, %69, %cst_73 {dimension_numbers = #tpu.dot_dimension_numbers<[1], [0], [0], [1], [0, 0, 1, 1], [], []>} : vector<64x8xf32>, vector<8x4xf32>, vector<64x4xf32> -> vector<64x4xf32>
    %71 = arith.addf %62, %70 : vector<64x4xf32>
    %c0_74 = arith.constant 0 : index
    %c1_75 = arith.constant 1 : index
    %c2_76 = arith.constant 2 : index
    %c0_77 = arith.constant 0 : index
    %72 = vector.load %arg1[%c0_74, %c1_75, %c2_76, %c0_77] : memref<1x10x10x8xbf16, #tpu.memory_space<vmem>>, vector<1x8x8x8xbf16>
    %73 = vector.shape_cast %72 : vector<1x8x8x8xbf16> to vector<8x8x8xbf16>
    %74 = arith.extf %73 : vector<8x8x8xbf16> to vector<8x8x8xf32>
    %75 = vector.shape_cast %74 : vector<8x8x8xf32> to vector<64x8xf32>
    %c0_78 = arith.constant 0 : index
    %c1_79 = arith.constant 1 : index
    %c3_80 = arith.constant 3 : index
    %c0_81 = arith.constant 0 : index
    %c0_82 = arith.constant 0 : index
    %76 = vector.load %arg2[%c0_78, %c1_79, %c3_80, %c0_81, %c0_82] : memref<2x2x4x8x4xbf16, #tpu.memory_space<vmem>>, vector<1x1x1x8x4xbf16>
    %77 = vector.shape_cast %76 : vector<1x1x1x8x4xbf16> to vector<8x4xbf16>
    %78 = arith.extf %77 : vector<8x4xbf16> to vector<8x4xf32>
    %cst_83 = arith.constant dense<0.000000e+00> : vector<64x4xf32>
    %79 = tpu.matmul %75, %78, %cst_83 {dimension_numbers = #tpu.dot_dimension_numbers<[1], [0], [0], [1], [0, 0, 1, 1], [], []>} : vector<64x8xf32>, vector<8x4xf32>, vector<64x4xf32> -> vector<64x4xf32>
    %80 = arith.addf %71, %79 : vector<64x4xf32>
    %c0_84 = arith.constant 0 : index
    %c0_85 = arith.constant 0 : index
    %81 = vector.load %arg3[%c0_84, %c0_85] : memref<1x4xf32, #tpu.memory_space<vmem>>, vector<1x4xf32>
    %82 = vector.broadcast %81 : vector<1x4xf32> to vector<64x4xf32>
    %83 = arith.addf %80, %82 : vector<64x4xf32>
    %84 = arith.truncf %83 : vector<64x4xf32> to vector<64x4xbf16>
    %c0_86 = arith.constant 0 : index
    %c0_87 = arith.constant 0 : index
    %c1_88 = arith.constant 1 : index
    %c0_89 = arith.constant 0 : index
    %c0_90 = arith.constant 0 : index
    %85 = vector.load %arg4[%c0_86, %c0_87, %c1_88, %c0_89, %c0_90] : memref<1x2x2x64x4xbf16, #tpu.memory_space<vmem>>, vector<1x1x1x64x4xbf16>
    %86 = vector.shape_cast %85 : vector<1x1x1x64x4xbf16> to vector<64x4xbf16>
    %87 = vector.shape_cast %84 : vector<64x4xbf16> to vector<1x1x1x64x4xbf16>
    tpu.vector_store %arg4[%c0_86, %c0_87, %c1_88, %c0_89, %c0_90], %87 {strides = array<i32>} : memref<1x2x2x64x4xbf16, #tpu.memory_space<vmem>>, vector<1x1x1x64x4xbf16>,
    %cst_91 = arith.constant 0.000000e+00 : f32
    %88 = vector.broadcast %cst_91 : f32 to vector<64x4xf32>
    %c0_92 = arith.constant 0 : index
    %c1_93 = arith.constant 1 : index
    %c0_94 = arith.constant 0 : index
    %c0_95 = arith.constant 0 : index
    %89 = vector.load %arg1[%c0_92, %c1_93, %c0_94, %c0_95] : memref<1x10x10x8xbf16, #tpu.memory_space<vmem>>, vector<1x8x8x8xbf16>
    %90 = vector.shape_cast %89 : vector<1x8x8x8xbf16> to vector<8x8x8xbf16>
    %91 = arith.extf %90 : vector<8x8x8xbf16> to vector<8x8x8xf32>
    %92 = vector.shape_cast %91 : vector<8x8x8xf32> to vector<64x8xf32>
    %c1_96 = arith.constant 1 : index
    %c0_97 = arith.constant 0 : index
    %c0_98 = arith.constant 0 : index
    %c0_99 = arith.constant 0 : index
    %c0_100 = arith.constant 0 : index
    %93 = vector.load %arg2[%c1_96, %c0_97, %c0_98, %c0_99, %c0_100] : memref<2x2x4x8x4xbf16, #tpu.memory_space<vmem>>, vector<1x1x1x8x4xbf16>
    %94 = vector.shape_cast %93 : vector<1x1x1x8x4xbf16> to vector<8x4xbf16>
    %95 = arith.extf %94 : vector<8x4xbf16> to vector<8x4xf32>
    %cst_101 = arith.constant dense<0.000000e+00> : vector<64x4xf32>
    %96 = tpu.matmul %92, %95, %cst_101 {dimension_numbers = #tpu.dot_dimension_numbers<[1], [0], [0], [1], [0, 0, 1, 1], [], []>} : vector<64x8xf32>, vector<8x4xf32>, vector<64x4xf32> -> vector<64x4xf32>
    %97 = arith.addf %88, %96 : vector<64x4xf32>
    %c0_102 = arith.constant 0 : index
    %c1_103 = arith.constant 1 : index
    %c1_104 = arith.constant 1 : index
    %c0_105 = arith.constant 0 : index
    %98 = vector.load %arg1[%c0_102, %c1_103, %c1_104, %c0_105] : memref<1x10x10x8xbf16, #tpu.memory_space<vmem>>, vector<1x8x8x8xbf16>
    %99 = vector.shape_cast %98 : vector<1x8x8x8xbf16> to vector<8x8x8xbf16>
    %100 = arith.extf %99 : vector<8x8x8xbf16> to vector<8x8x8xf32>
    %101 = vector.shape_cast %100 : vector<8x8x8xf32> to vector<64x8xf32>
    %c1_106 = arith.constant 1 : index
    %c0_107 = arith.constant 0 : index
    %c1_108 = arith.constant 1 : index
    %c0_109 = arith.constant 0 : index
    %c0_110 = arith.constant 0 : index
    %102 = vector.load %arg2[%c1_106, %c0_107, %c1_108, %c0_109, %c0_110] : memref<2x2x4x8x4xbf16, #tpu.memory_space<vmem>>, vector<1x1x1x8x4xbf16>
    %103 = vector.shape_cast %102 : vector<1x1x1x8x4xbf16> to vector<8x4xbf16>
    %104 = arith.extf %103 : vector<8x4xbf16> to vector<8x4xf32>
    %cst_111 = arith.constant dense<0.000000e+00> : vector<64x4xf32>
    %105 = tpu.matmul %101, %104, %cst_111 {dimension_numbers = #tpu.dot_dimension_numbers<[1], [0], [0], [1], [0, 0, 1, 1], [], []>} : vector<64x8xf32>, vector<8x4xf32>, vector<64x4xf32> -> vector<64x4xf32>
    %106 = arith.addf %97, %105 : vector<64x4xf32>
    %c0_112 = arith.constant 0 : index
    %c2_113 = arith.constant 2 : index
    %c0_114 = arith.constant 0 : index
    %c0_115 = arith.constant 0 : index
    %107 = vector.load %arg1[%c0_112, %c2_113, %c0_114, %c0_115] : memref<1x10x10x8xbf16, #tpu.memory_space<vmem>>, vector<1x8x8x8xbf16>
    %108 = vector.shape_cast %107 : vector<1x8x8x8xbf16> to vector<8x8x8xbf16>
    %109 = arith.extf %108 : vector<8x8x8xbf16> to vector<8x8x8xf32>
    %110 = vector.shape_cast %109 : vector<8x8x8xf32> to vector<64x8xf32>
    %c1_116 = arith.constant 1 : index
    %c0_117 = arith.constant 0 : index
    %c2_118 = arith.constant 2 : index
    %c0_119 = arith.constant 0 : index
    %c0_120 = arith.constant 0 : index
    %111 = vector.load %arg2[%c1_116, %c0_117, %c2_118, %c0_119, %c0_120] : memref<2x2x4x8x4xbf16, #tpu.memory_space<vmem>>, vector<1x1x1x8x4xbf16>
    %112 = vector.shape_cast %111 : vector<1x1x1x8x4xbf16> to vector<8x4xbf16>
    %113 = arith.extf %112 : vector<8x4xbf16> to vector<8x4xf32>
    %cst_121 = arith.constant dense<0.000000e+00> : vector<64x4xf32>
    %114 = tpu.matmul %110, %113, %cst_121 {dimension_numbers = #tpu.dot_dimension_numbers<[1], [0], [0], [1], [0, 0, 1, 1], [], []>} : vector<64x8xf32>, vector<8x4xf32>, vector<64x4xf32> -> vector<64x4xf32>
    %115 = arith.addf %106, %114 : vector<64x4xf32>
    %c0_122 = arith.constant 0 : index
    %c2_123 = arith.constant 2 : index
    %c1_124 = arith.constant 1 : index
    %c0_125 = arith.constant 0 : index
    %116 = vector.load %arg1[%c0_122, %c2_123, %c1_124, %c0_125] : memref<1x10x10x8xbf16, #tpu.memory_space<vmem>>, vector<1x8x8x8xbf16>
    %117 = vector.shape_cast %116 : vector<1x8x8x8xbf16> to vector<8x8x8xbf16>
    %118 = arith.extf %117 : vector<8x8x8xbf16> to vector<8x8x8xf32>
    %119 = vector.shape_cast %118 : vector<8x8x8xf32> to vector<64x8xf32>
    %c1_126 = arith.constant 1 : index
    %c0_127 = arith.constant 0 : index
    %c3_128 = arith.constant 3 : index
    %c0_129 = arith.constant 0 : index
    %c0_130 = arith.constant 0 : index
    %120 = vector.load %arg2[%c1_126, %c0_127, %c3_128, %c0_129, %c0_130] : memref<2x2x4x8x4xbf16, #tpu.memory_space<vmem>>, vector<1x1x1x8x4xbf16>
    %121 = vector.shape_cast %120 : vector<1x1x1x8x4xbf16> to vector<8x4xbf16>
    %122 = arith.extf %121 : vector<8x4xbf16> to vector<8x4xf32>
    %cst_131 = arith.constant dense<0.000000e+00> : vector<64x4xf32>
    %123 = tpu.matmul %119, %122, %cst_131 {dimension_numbers = #tpu.dot_dimension_numbers<[1], [0], [0], [1], [0, 0, 1, 1], [], []>} : vector<64x8xf32>, vector<8x4xf32>, vector<64x4xf32> -> vector<64x4xf32>
    %124 = arith.addf %115, %123 : vector<64x4xf32>
    %c0_132 = arith.constant 0 : index
    %c0_133 = arith.constant 0 : index
    %125 = vector.load %arg3[%c0_132, %c0_133] : memref<1x4xf32, #tpu.memory_space<vmem>>, vector<1x4xf32>
    %126 = vector.broadcast %125 : vector<1x4xf32> to vector<64x4xf32>
    %127 = arith.addf %124, %126 : vector<64x4xf32>
    %128 = arith.truncf %127 : vector<64x4xf32> to vector<64x4xbf16>
    %c0_134 = arith.constant 0 : index
    %c1_135 = arith.constant 1 : index
    %c0_136 = arith.constant 0 : index
    %c0_137 = arith.constant 0 : index
    %c0_138 = arith.constant 0 : index
    %129 = vector.load %arg4[%c0_134, %c1_135, %c0_136, %c0_137, %c0_138] : memref<1x2x2x64x4xbf16, #tpu.memory_space<vmem>>, vector<1x1x1x64x4xbf16>
    %130 = vector.shape_cast %129 : vector<1x1x1x64x4xbf16> to vector<64x4xbf16>
    %131 = vector.shape_cast %128 : vector<64x4xbf16> to vector<1x1x1x64x4xbf16>
    tpu.vector_store %arg4[%c0_134, %c1_135, %c0_136, %c0_137, %c0_138], %131 {strides = array<i32>} : memref<1x2x2x64x4xbf16, #tpu.memory_space<vmem>>, vector<1x1x1x64x4xbf16>,
    %cst_139 = arith.constant 0.000000e+00 : f32
    %132 = vector.broadcast %cst_139 : f32 to vector<64x4xf32>
    %c0_140 = arith.constant 0 : index
    %c1_141 = arith.constant 1 : index
    %c1_142 = arith.constant 1 : index
    %c0_143 = arith.constant 0 : index
    %133 = vector.load %arg1[%c0_140, %c1_141, %c1_142, %c0_143] : memref<1x10x10x8xbf16, #tpu.memory_space<vmem>>, vector<1x8x8x8xbf16>
    %134 = vector.shape_cast %133 : vector<1x8x8x8xbf16> to vector<8x8x8xbf16>
    %135 = arith.extf %134 : vector<8x8x8xbf16> to vector<8x8x8xf32>
    %136 = vector.shape_cast %135 : vector<8x8x8xf32> to vector<64x8xf32>
    %c1_144 = arith.constant 1 : index
    %c1_145 = arith.constant 1 : index
    %c0_146 = arith.constant 0 : index
    %c0_147 = arith.constant 0 : index
    %c0_148 = arith.constant 0 : index
    %137 = vector.load %arg2[%c1_144, %c1_145, %c0_146, %c0_147, %c0_148] : memref<2x2x4x8x4xbf16, #tpu.memory_space<vmem>>, vector<1x1x1x8x4xbf16>
    %138 = vector.shape_cast %137 : vector<1x1x1x8x4xbf16> to vector<8x4xbf16>
    %139 = arith.extf %138 : vector<8x4xbf16> to vector<8x4xf32>
    %cst_149 = arith.constant dense<0.000000e+00> : vector<64x4xf32>
    %140 = tpu.matmul %136, %139, %cst_149 {dimension_numbers = #tpu.dot_dimension_numbers<[1], [0], [0], [1], [0, 0, 1, 1], [], []>} : vector<64x8xf32>, vector<8x4xf32>, vector<64x4xf32> -> vector<64x4xf32>
    %141 = arith.addf %132, %140 : vector<64x4xf32>
    %c0_150 = arith.constant 0 : index
    %c1_151 = arith.constant 1 : index
    %c2_152 = arith.constant 2 : index
    %c0_153 = arith.constant 0 : index
    %142 = vector.load %arg1[%c0_150, %c1_151, %c2_152, %c0_153] : memref<1x10x10x8xbf16, #tpu.memory_space<vmem>>, vector<1x8x8x8xbf16>
    %143 = vector.shape_cast %142 : vector<1x8x8x8xbf16> to vector<8x8x8xbf16>
    %144 = arith.extf %143 : vector<8x8x8xbf16> to vector<8x8x8xf32>
    %145 = vector.shape_cast %144 : vector<8x8x8xf32> to vector<64x8xf32>
    %c1_154 = arith.constant 1 : index
    %c1_155 = arith.constant 1 : index
    %c1_156 = arith.constant 1 : index
    %c0_157 = arith.constant 0 : index
    %c0_158 = arith.constant 0 : index
    %146 = vector.load %arg2[%c1_154, %c1_155, %c1_156, %c0_157, %c0_158] : memref<2x2x4x8x4xbf16, #tpu.memory_space<vmem>>, vector<1x1x1x8x4xbf16>
    %147 = vector.shape_cast %146 : vector<1x1x1x8x4xbf16> to vector<8x4xbf16>
    %148 = arith.extf %147 : vector<8x4xbf16> to vector<8x4xf32>
    %cst_159 = arith.constant dense<0.000000e+00> : vector<64x4xf32>
    %149 = tpu.matmul %145, %148, %cst_159 {dimension_numbers = #tpu.dot_dimension_numbers<[1], [0], [0], [1], [0, 0, 1, 1], [], []>} : vector<64x8xf32>, vector<8x4xf32>, vector<64x4xf32> -> vector<64x4xf32>
    %150 = arith.addf %141, %149 : vector<64x4xf32>
    %c0_160 = arith.constant 0 : index
    %c2_161 = arith.constant 2 : index
    %c1_162 = arith.constant 1 : index
    %c0_163 = arith.constant 0 : index
    %151 = vector.load %arg1[%c0_160, %c2_161, %c1_162, %c0_163] : memref<1x10x10x8xbf16, #tpu.memory_space<vmem>>, vector<1x8x8x8xbf16>
    %152 = vector.shape_cast %151 : vector<1x8x8x8xbf16> to vector<8x8x8xbf16>
    %153 = arith.extf %152 : vector<8x8x8xbf16> to vector<8x8x8xf32>
    %154 = vector.shape_cast %153 : vector<8x8x8xf32> to vector<64x8xf32>
    %c1_164 = arith.constant 1 : index
    %c1_165 = arith.constant 1 : index
    %c2_166 = arith.constant 2 : index
    %c0_167 = arith.constant 0 : index
    %c0_168 = arith.constant 0 : index
    %155 = vector.load %arg2[%c1_164, %c1_165, %c2_166, %c0_167, %c0_168] : memref<2x2x4x8x4xbf16, #tpu.memory_space<vmem>>, vector<1x1x1x8x4xbf16>
    %156 = vector.shape_cast %155 : vector<1x1x1x8x4xbf16> to vector<8x4xbf16>
    %157 = arith.extf %156 : vector<8x4xbf16> to vector<8x4xf32>
    %cst_169 = arith.constant dense<0.000000e+00> : vector<64x4xf32>
    %158 = tpu.matmul %154, %157, %cst_169 {dimension_numbers = #tpu.dot_dimension_numbers<[1], [0], [0], [1], [0, 0, 1, 1], [], []>} : vector<64x8xf32>, vector<8x4xf32>, vector<64x4xf32> -> vector<64x4xf32>
    %159 = arith.addf %150, %158 : vector<64x4xf32>
    %c0_170 = arith.constant 0 : index
    %c2_171 = arith.constant 2 : index
    %c2_172 = arith.constant 2 : index
    %c0_173 = arith.constant 0 : index
    %160 = vector.load %arg1[%c0_170, %c2_171, %c2_172, %c0_173] : memref<1x10x10x8xbf16, #tpu.memory_space<vmem>>, vector<1x8x8x8xbf16>
    %161 = vector.shape_cast %160 : vector<1x8x8x8xbf16> to vector<8x8x8xbf16>
    %162 = arith.extf %161 : vector<8x8x8xbf16> to vector<8x8x8xf32>
    %163 = vector.shape_cast %162 : vector<8x8x8xf32> to vector<64x8xf32>
    %c1_174 = arith.constant 1 : index
    %c1_175 = arith.constant 1 : index
    %c3_176 = arith.constant 3 : index
    %c0_177 = arith.constant 0 : index
    %c0_178 = arith.constant 0 : index
    %164 = vector.load %arg2[%c1_174, %c1_175, %c3_176, %c0_177, %c0_178] : memref<2x2x4x8x4xbf16, #tpu.memory_space<vmem>>, vector<1x1x1x8x4xbf16>
    %165 = vector.shape_cast %164 : vector<1x1x1x8x4xbf16> to vector<8x4xbf16>
    %166 = arith.extf %165 : vector<8x4xbf16> to vector<8x4xf32>
    %cst_179 = arith.constant dense<0.000000e+00> : vector<64x4xf32>
    %167 = tpu.matmul %163, %166, %cst_179 {dimension_numbers = #tpu.dot_dimension_numbers<[1], [0], [0], [1], [0, 0, 1, 1], [], []>} : vector<64x8xf32>, vector<8x4xf32>, vector<64x4xf32> -> vector<64x4xf32>
    %168 = arith.addf %159, %167 : vector<64x4xf32>
    %c0_180 = arith.constant 0 : index
    %c0_181 = arith.constant 0 : index
    %169 = vector.load %arg3[%c0_180, %c0_181] : memref<1x4xf32, #tpu.memory_space<vmem>>, vector<1x4xf32>
    %170 = vector.broadcast %169 : vector<1x4xf32> to vector<64x4xf32>
    %171 = arith.addf %168, %170 : vector<64x4xf32>
    %172 = arith.truncf %171 : vector<64x4xf32> to vector<64x4xbf16>
    %c0_182 = arith.constant 0 : index
    %c1_183 = arith.constant 1 : index
    %c1_184 = arith.constant 1 : index
    %c0_185 = arith.constant 0 : index
    %c0_186 = arith.constant 0 : index
    %173 = vector.load %arg4[%c0_182, %c1_183, %c1_184, %c0_185, %c0_186] : memref<1x2x2x64x4xbf16, #tpu.memory_space<vmem>>, vector<1x1x1x64x4xbf16>
    %174 = vector.shape_cast %173 : vector<1x1x1x64x4xbf16> to vector<64x4xbf16>
    %175 = vector.shape_cast %172 : vector<64x4xbf16> to vector<1x1x1x64x4xbf16>
    tpu.vector_store %arg4[%c0_182, %c1_183, %c1_184, %c0_185, %c0_186], %175 {strides = array<i32>} : memref<1x2x2x64x4xbf16, #tpu.memory_space<vmem>>, vector<1x1x1x64x4xbf16>,
    return
  }
  func.func @transform_0(%arg0: i32) -> (i32, i32, i32, i32) {
    %c0_i32 = arith.constant 0 : i32
    %c0_i32_0 = arith.constant 0 : i32
    %c0_i32_1 = arith.constant 0 : i32
    %c0_i32_2 = arith.constant 0 : i32
    return %arg0, %c0_i32, %c0_i32_0, %c0_i32_1 : i32, i32, i32, i32
  }
  func.func @transform_1(%arg0: i32) -> (i32, i32, i32, i32, i32) {
    %c0_i32 = arith.constant 0 : i32
    %c0_i32_0 = arith.constant 0 : i32
    %c0_i32_1 = arith.constant 0 : i32
    %c0_i32_2 = arith.constant 0 : i32
    %c0_i32_3 = arith.constant 0 : i32
    %c0_i32_4 = arith.constant 0 : i32
    return %c0_i32, %c0_i32_0, %c0_i32_1, %c0_i32_2, %c0_i32_3 : i32, i32, i32, i32, i32
  }
  func.func @transform_2(%arg0: i32) -> (i32, i32) {
    %c0_i32 = arith.constant 0 : i32
    %c0_i32_0 = arith.constant 0 : i32
    %c0_i32_1 = arith.constant 0 : i32
    return %c0_i32, %c0_i32_0 : i32, i32
  }
  func.func @transform_3(%arg0: i32) -> (i32, i32, i32, i32, i32) {
    %c0_i32 = arith.constant 0 : i32
    %c0_i32_0 = arith.constant 0 : i32
    %c0_i32_1 = arith.constant 0 : i32
    %c0_i32_2 = arith.constant 0 : i32
    %c0_i32_3 = arith.constant 0 : i32
    return %arg0, %c0_i32, %c0_i32_0, %c0_i32_1, %c0_i32_2 : i32, i32, i32, i32, i32
  }
}

module attributes {stable_mosaic.version = 11 : i64} {
  func.func @_conv3x3_kernel(%arg0: i32, %arg1: memref<1x18x18x4xbf16, #tpu.memory_space<vmem>>, %arg2: memref<1x18x18x4xbf16, #tpu.memory_space<vmem>>, %arg3: memref<9x4x4xbf16, #tpu.memory_space<vmem>>, %arg4: memref<9x4x4xbf16, #tpu.memory_space<vmem>>, %arg5: memref<1x4xf32, #tpu.memory_space<vmem>>, %arg6: memref<1x256x4xbf16, #tpu.memory_space<vmem>>) attributes {dimension_semantics = [#tpu.dimension_semantics<parallel>], iteration_bounds = array<i64: 2>, scalar_prefetch = 0 : i64, scratch_operands = 0 : i64, tpu.core_type = #tpu.core_type<tc>, window_params = [{transform_indices = @transform_0, window_bounds = array<i64: 1, 18, 18, 4>}, {transform_indices = @transform_1, window_bounds = array<i64: 1, 18, 18, 4>}, {pipeline_mode = #tpu.pipeline_mode<synchronous>, transform_indices = @transform_2, window_bounds = array<i64: 9, 4, 4>}, {pipeline_mode = #tpu.pipeline_mode<synchronous>, transform_indices = @transform_3, window_bounds = array<i64: 9, 4, 4>}, {pipeline_mode = #tpu.pipeline_mode<synchronous>, transform_indices = @transform_4, window_bounds = array<i64: 1, 4>}, {transform_indices = @transform_5, window_bounds = array<i64: 1, 256, 4>}]} {
    %cst = arith.constant 0.000000e+00 : f32
    %0 = vector.broadcast %cst : f32 to vector<256x4xf32>
    %c0 = arith.constant 0 : index
    %c0_0 = arith.constant 0 : index
    %c0_1 = arith.constant 0 : index
    %c0_2 = arith.constant 0 : index
    %1 = vector.load %arg1[%c0, %c0_0, %c0_1, %c0_2] : memref<1x18x18x4xbf16, #tpu.memory_space<vmem>>, vector<1x16x16x4xbf16>
    %2 = vector.shape_cast %1 : vector<1x16x16x4xbf16> to vector<16x16x4xbf16>
    %3 = arith.extf %2 : vector<16x16x4xbf16> to vector<16x16x4xf32>
    %4 = vector.shape_cast %3 : vector<16x16x4xf32> to vector<256x4xf32>
    %c0_3 = arith.constant 0 : index
    %c0_4 = arith.constant 0 : index
    %c0_5 = arith.constant 0 : index
    %5 = vector.load %arg3[%c0_3, %c0_4, %c0_5] : memref<9x4x4xbf16, #tpu.memory_space<vmem>>, vector<1x4x4xbf16>
    %6 = vector.shape_cast %5 : vector<1x4x4xbf16> to vector<4x4xbf16>
    %7 = arith.extf %6 : vector<4x4xbf16> to vector<4x4xf32>
    %cst_6 = arith.constant dense<0.000000e+00> : vector<256x4xf32>
    %8 = tpu.matmul %4, %7, %cst_6 {dimension_numbers = #tpu.dot_dimension_numbers<[1], [0], [0], [1], [0, 0, 1, 1], [], []>} : vector<256x4xf32>, vector<4x4xf32>, vector<256x4xf32> -> vector<256x4xf32>
    %9 = arith.addf %0, %8 : vector<256x4xf32>
    %c0_7 = arith.constant 0 : index
    %c0_8 = arith.constant 0 : index
    %c1 = arith.constant 1 : index
    %c0_9 = arith.constant 0 : index
    %10 = vector.load %arg1[%c0_7, %c0_8, %c1, %c0_9] : memref<1x18x18x4xbf16, #tpu.memory_space<vmem>>, vector<1x16x16x4xbf16>
    %11 = vector.shape_cast %10 : vector<1x16x16x4xbf16> to vector<16x16x4xbf16>
    %12 = arith.extf %11 : vector<16x16x4xbf16> to vector<16x16x4xf32>
    %13 = vector.shape_cast %12 : vector<16x16x4xf32> to vector<256x4xf32>
    %c1_10 = arith.constant 1 : index
    %c0_11 = arith.constant 0 : index
    %c0_12 = arith.constant 0 : index
    %14 = vector.load %arg3[%c1_10, %c0_11, %c0_12] : memref<9x4x4xbf16, #tpu.memory_space<vmem>>, vector<1x4x4xbf16>
    %15 = vector.shape_cast %14 : vector<1x4x4xbf16> to vector<4x4xbf16>
    %16 = arith.extf %15 : vector<4x4xbf16> to vector<4x4xf32>
    %cst_13 = arith.constant dense<0.000000e+00> : vector<256x4xf32>
    %17 = tpu.matmul %13, %16, %cst_13 {dimension_numbers = #tpu.dot_dimension_numbers<[1], [0], [0], [1], [0, 0, 1, 1], [], []>} : vector<256x4xf32>, vector<4x4xf32>, vector<256x4xf32> -> vector<256x4xf32>
    %18 = arith.addf %9, %17 : vector<256x4xf32>
    %c0_14 = arith.constant 0 : index
    %c0_15 = arith.constant 0 : index
    %c2 = arith.constant 2 : index
    %c0_16 = arith.constant 0 : index
    %19 = vector.load %arg1[%c0_14, %c0_15, %c2, %c0_16] : memref<1x18x18x4xbf16, #tpu.memory_space<vmem>>, vector<1x16x16x4xbf16>
    %20 = vector.shape_cast %19 : vector<1x16x16x4xbf16> to vector<16x16x4xbf16>
    %21 = arith.extf %20 : vector<16x16x4xbf16> to vector<16x16x4xf32>
    %22 = vector.shape_cast %21 : vector<16x16x4xf32> to vector<256x4xf32>
    %c2_17 = arith.constant 2 : index
    %c0_18 = arith.constant 0 : index
    %c0_19 = arith.constant 0 : index
    %23 = vector.load %arg3[%c2_17, %c0_18, %c0_19] : memref<9x4x4xbf16, #tpu.memory_space<vmem>>, vector<1x4x4xbf16>
    %24 = vector.shape_cast %23 : vector<1x4x4xbf16> to vector<4x4xbf16>
    %25 = arith.extf %24 : vector<4x4xbf16> to vector<4x4xf32>
    %cst_20 = arith.constant dense<0.000000e+00> : vector<256x4xf32>
    %26 = tpu.matmul %22, %25, %cst_20 {dimension_numbers = #tpu.dot_dimension_numbers<[1], [0], [0], [1], [0, 0, 1, 1], [], []>} : vector<256x4xf32>, vector<4x4xf32>, vector<256x4xf32> -> vector<256x4xf32>
    %27 = arith.addf %18, %26 : vector<256x4xf32>
    %c0_21 = arith.constant 0 : index
    %c1_22 = arith.constant 1 : index
    %c0_23 = arith.constant 0 : index
    %c0_24 = arith.constant 0 : index
    %28 = vector.load %arg1[%c0_21, %c1_22, %c0_23, %c0_24] : memref<1x18x18x4xbf16, #tpu.memory_space<vmem>>, vector<1x16x16x4xbf16>
    %29 = vector.shape_cast %28 : vector<1x16x16x4xbf16> to vector<16x16x4xbf16>
    %30 = arith.extf %29 : vector<16x16x4xbf16> to vector<16x16x4xf32>
    %31 = vector.shape_cast %30 : vector<16x16x4xf32> to vector<256x4xf32>
    %c3 = arith.constant 3 : index
    %c0_25 = arith.constant 0 : index
    %c0_26 = arith.constant 0 : index
    %32 = vector.load %arg3[%c3, %c0_25, %c0_26] : memref<9x4x4xbf16, #tpu.memory_space<vmem>>, vector<1x4x4xbf16>
    %33 = vector.shape_cast %32 : vector<1x4x4xbf16> to vector<4x4xbf16>
    %34 = arith.extf %33 : vector<4x4xbf16> to vector<4x4xf32>
    %cst_27 = arith.constant dense<0.000000e+00> : vector<256x4xf32>
    %35 = tpu.matmul %31, %34, %cst_27 {dimension_numbers = #tpu.dot_dimension_numbers<[1], [0], [0], [1], [0, 0, 1, 1], [], []>} : vector<256x4xf32>, vector<4x4xf32>, vector<256x4xf32> -> vector<256x4xf32>
    %36 = arith.addf %27, %35 : vector<256x4xf32>
    %c0_28 = arith.constant 0 : index
    %c1_29 = arith.constant 1 : index
    %c1_30 = arith.constant 1 : index
    %c0_31 = arith.constant 0 : index
    %37 = vector.load %arg1[%c0_28, %c1_29, %c1_30, %c0_31] : memref<1x18x18x4xbf16, #tpu.memory_space<vmem>>, vector<1x16x16x4xbf16>
    %38 = vector.shape_cast %37 : vector<1x16x16x4xbf16> to vector<16x16x4xbf16>
    %39 = arith.extf %38 : vector<16x16x4xbf16> to vector<16x16x4xf32>
    %40 = vector.shape_cast %39 : vector<16x16x4xf32> to vector<256x4xf32>
    %c4 = arith.constant 4 : index
    %c0_32 = arith.constant 0 : index
    %c0_33 = arith.constant 0 : index
    %41 = vector.load %arg3[%c4, %c0_32, %c0_33] : memref<9x4x4xbf16, #tpu.memory_space<vmem>>, vector<1x4x4xbf16>
    %42 = vector.shape_cast %41 : vector<1x4x4xbf16> to vector<4x4xbf16>
    %43 = arith.extf %42 : vector<4x4xbf16> to vector<4x4xf32>
    %cst_34 = arith.constant dense<0.000000e+00> : vector<256x4xf32>
    %44 = tpu.matmul %40, %43, %cst_34 {dimension_numbers = #tpu.dot_dimension_numbers<[1], [0], [0], [1], [0, 0, 1, 1], [], []>} : vector<256x4xf32>, vector<4x4xf32>, vector<256x4xf32> -> vector<256x4xf32>
    %45 = arith.addf %36, %44 : vector<256x4xf32>
    %c0_35 = arith.constant 0 : index
    %c1_36 = arith.constant 1 : index
    %c2_37 = arith.constant 2 : index
    %c0_38 = arith.constant 0 : index
    %46 = vector.load %arg1[%c0_35, %c1_36, %c2_37, %c0_38] : memref<1x18x18x4xbf16, #tpu.memory_space<vmem>>, vector<1x16x16x4xbf16>
    %47 = vector.shape_cast %46 : vector<1x16x16x4xbf16> to vector<16x16x4xbf16>
    %48 = arith.extf %47 : vector<16x16x4xbf16> to vector<16x16x4xf32>
    %49 = vector.shape_cast %48 : vector<16x16x4xf32> to vector<256x4xf32>
    %c5 = arith.constant 5 : index
    %c0_39 = arith.constant 0 : index
    %c0_40 = arith.constant 0 : index
    %50 = vector.load %arg3[%c5, %c0_39, %c0_40] : memref<9x4x4xbf16, #tpu.memory_space<vmem>>, vector<1x4x4xbf16>
    %51 = vector.shape_cast %50 : vector<1x4x4xbf16> to vector<4x4xbf16>
    %52 = arith.extf %51 : vector<4x4xbf16> to vector<4x4xf32>
    %cst_41 = arith.constant dense<0.000000e+00> : vector<256x4xf32>
    %53 = tpu.matmul %49, %52, %cst_41 {dimension_numbers = #tpu.dot_dimension_numbers<[1], [0], [0], [1], [0, 0, 1, 1], [], []>} : vector<256x4xf32>, vector<4x4xf32>, vector<256x4xf32> -> vector<256x4xf32>
    %54 = arith.addf %45, %53 : vector<256x4xf32>
    %c0_42 = arith.constant 0 : index
    %c2_43 = arith.constant 2 : index
    %c0_44 = arith.constant 0 : index
    %c0_45 = arith.constant 0 : index
    %55 = vector.load %arg1[%c0_42, %c2_43, %c0_44, %c0_45] : memref<1x18x18x4xbf16, #tpu.memory_space<vmem>>, vector<1x16x16x4xbf16>
    %56 = vector.shape_cast %55 : vector<1x16x16x4xbf16> to vector<16x16x4xbf16>
    %57 = arith.extf %56 : vector<16x16x4xbf16> to vector<16x16x4xf32>
    %58 = vector.shape_cast %57 : vector<16x16x4xf32> to vector<256x4xf32>
    %c6 = arith.constant 6 : index
    %c0_46 = arith.constant 0 : index
    %c0_47 = arith.constant 0 : index
    %59 = vector.load %arg3[%c6, %c0_46, %c0_47] : memref<9x4x4xbf16, #tpu.memory_space<vmem>>, vector<1x4x4xbf16>
    %60 = vector.shape_cast %59 : vector<1x4x4xbf16> to vector<4x4xbf16>
    %61 = arith.extf %60 : vector<4x4xbf16> to vector<4x4xf32>
    %cst_48 = arith.constant dense<0.000000e+00> : vector<256x4xf32>
    %62 = tpu.matmul %58, %61, %cst_48 {dimension_numbers = #tpu.dot_dimension_numbers<[1], [0], [0], [1], [0, 0, 1, 1], [], []>} : vector<256x4xf32>, vector<4x4xf32>, vector<256x4xf32> -> vector<256x4xf32>
    %63 = arith.addf %54, %62 : vector<256x4xf32>
    %c0_49 = arith.constant 0 : index
    %c2_50 = arith.constant 2 : index
    %c1_51 = arith.constant 1 : index
    %c0_52 = arith.constant 0 : index
    %64 = vector.load %arg1[%c0_49, %c2_50, %c1_51, %c0_52] : memref<1x18x18x4xbf16, #tpu.memory_space<vmem>>, vector<1x16x16x4xbf16>
    %65 = vector.shape_cast %64 : vector<1x16x16x4xbf16> to vector<16x16x4xbf16>
    %66 = arith.extf %65 : vector<16x16x4xbf16> to vector<16x16x4xf32>
    %67 = vector.shape_cast %66 : vector<16x16x4xf32> to vector<256x4xf32>
    %c7 = arith.constant 7 : index
    %c0_53 = arith.constant 0 : index
    %c0_54 = arith.constant 0 : index
    %68 = vector.load %arg3[%c7, %c0_53, %c0_54] : memref<9x4x4xbf16, #tpu.memory_space<vmem>>, vector<1x4x4xbf16>
    %69 = vector.shape_cast %68 : vector<1x4x4xbf16> to vector<4x4xbf16>
    %70 = arith.extf %69 : vector<4x4xbf16> to vector<4x4xf32>
    %cst_55 = arith.constant dense<0.000000e+00> : vector<256x4xf32>
    %71 = tpu.matmul %67, %70, %cst_55 {dimension_numbers = #tpu.dot_dimension_numbers<[1], [0], [0], [1], [0, 0, 1, 1], [], []>} : vector<256x4xf32>, vector<4x4xf32>, vector<256x4xf32> -> vector<256x4xf32>
    %72 = arith.addf %63, %71 : vector<256x4xf32>
    %c0_56 = arith.constant 0 : index
    %c2_57 = arith.constant 2 : index
    %c2_58 = arith.constant 2 : index
    %c0_59 = arith.constant 0 : index
    %73 = vector.load %arg1[%c0_56, %c2_57, %c2_58, %c0_59] : memref<1x18x18x4xbf16, #tpu.memory_space<vmem>>, vector<1x16x16x4xbf16>
    %74 = vector.shape_cast %73 : vector<1x16x16x4xbf16> to vector<16x16x4xbf16>
    %75 = arith.extf %74 : vector<16x16x4xbf16> to vector<16x16x4xf32>
    %76 = vector.shape_cast %75 : vector<16x16x4xf32> to vector<256x4xf32>
    %c8 = arith.constant 8 : index
    %c0_60 = arith.constant 0 : index
    %c0_61 = arith.constant 0 : index
    %77 = vector.load %arg3[%c8, %c0_60, %c0_61] : memref<9x4x4xbf16, #tpu.memory_space<vmem>>, vector<1x4x4xbf16>
    %78 = vector.shape_cast %77 : vector<1x4x4xbf16> to vector<4x4xbf16>
    %79 = arith.extf %78 : vector<4x4xbf16> to vector<4x4xf32>
    %cst_62 = arith.constant dense<0.000000e+00> : vector<256x4xf32>
    %80 = tpu.matmul %76, %79, %cst_62 {dimension_numbers = #tpu.dot_dimension_numbers<[1], [0], [0], [1], [0, 0, 1, 1], [], []>} : vector<256x4xf32>, vector<4x4xf32>, vector<256x4xf32> -> vector<256x4xf32>
    %81 = arith.addf %72, %80 : vector<256x4xf32>
    %c0_63 = arith.constant 0 : index
    %c0_64 = arith.constant 0 : index
    %c0_65 = arith.constant 0 : index
    %c0_66 = arith.constant 0 : index
    %82 = vector.load %arg2[%c0_63, %c0_64, %c0_65, %c0_66] : memref<1x18x18x4xbf16, #tpu.memory_space<vmem>>, vector<1x16x16x4xbf16>
    %83 = vector.shape_cast %82 : vector<1x16x16x4xbf16> to vector<16x16x4xbf16>
    %84 = arith.extf %83 : vector<16x16x4xbf16> to vector<16x16x4xf32>
    %85 = vector.shape_cast %84 : vector<16x16x4xf32> to vector<256x4xf32>
    %c0_67 = arith.constant 0 : index
    %c0_68 = arith.constant 0 : index
    %c0_69 = arith.constant 0 : index
    %86 = vector.load %arg4[%c0_67, %c0_68, %c0_69] : memref<9x4x4xbf16, #tpu.memory_space<vmem>>, vector<1x4x4xbf16>
    %87 = vector.shape_cast %86 : vector<1x4x4xbf16> to vector<4x4xbf16>
    %88 = arith.extf %87 : vector<4x4xbf16> to vector<4x4xf32>
    %cst_70 = arith.constant dense<0.000000e+00> : vector<256x4xf32>
    %89 = tpu.matmul %85, %88, %cst_70 {dimension_numbers = #tpu.dot_dimension_numbers<[1], [0], [0], [1], [0, 0, 1, 1], [], []>} : vector<256x4xf32>, vector<4x4xf32>, vector<256x4xf32> -> vector<256x4xf32>
    %90 = arith.addf %81, %89 : vector<256x4xf32>
    %c0_71 = arith.constant 0 : index
    %c0_72 = arith.constant 0 : index
    %c1_73 = arith.constant 1 : index
    %c0_74 = arith.constant 0 : index
    %91 = vector.load %arg2[%c0_71, %c0_72, %c1_73, %c0_74] : memref<1x18x18x4xbf16, #tpu.memory_space<vmem>>, vector<1x16x16x4xbf16>
    %92 = vector.shape_cast %91 : vector<1x16x16x4xbf16> to vector<16x16x4xbf16>
    %93 = arith.extf %92 : vector<16x16x4xbf16> to vector<16x16x4xf32>
    %94 = vector.shape_cast %93 : vector<16x16x4xf32> to vector<256x4xf32>
    %c1_75 = arith.constant 1 : index
    %c0_76 = arith.constant 0 : index
    %c0_77 = arith.constant 0 : index
    %95 = vector.load %arg4[%c1_75, %c0_76, %c0_77] : memref<9x4x4xbf16, #tpu.memory_space<vmem>>, vector<1x4x4xbf16>
    %96 = vector.shape_cast %95 : vector<1x4x4xbf16> to vector<4x4xbf16>
    %97 = arith.extf %96 : vector<4x4xbf16> to vector<4x4xf32>
    %cst_78 = arith.constant dense<0.000000e+00> : vector<256x4xf32>
    %98 = tpu.matmul %94, %97, %cst_78 {dimension_numbers = #tpu.dot_dimension_numbers<[1], [0], [0], [1], [0, 0, 1, 1], [], []>} : vector<256x4xf32>, vector<4x4xf32>, vector<256x4xf32> -> vector<256x4xf32>
    %99 = arith.addf %90, %98 : vector<256x4xf32>
    %c0_79 = arith.constant 0 : index
    %c0_80 = arith.constant 0 : index
    %c2_81 = arith.constant 2 : index
    %c0_82 = arith.constant 0 : index
    %100 = vector.load %arg2[%c0_79, %c0_80, %c2_81, %c0_82] : memref<1x18x18x4xbf16, #tpu.memory_space<vmem>>, vector<1x16x16x4xbf16>
    %101 = vector.shape_cast %100 : vector<1x16x16x4xbf16> to vector<16x16x4xbf16>
    %102 = arith.extf %101 : vector<16x16x4xbf16> to vector<16x16x4xf32>
    %103 = vector.shape_cast %102 : vector<16x16x4xf32> to vector<256x4xf32>
    %c2_83 = arith.constant 2 : index
    %c0_84 = arith.constant 0 : index
    %c0_85 = arith.constant 0 : index
    %104 = vector.load %arg4[%c2_83, %c0_84, %c0_85] : memref<9x4x4xbf16, #tpu.memory_space<vmem>>, vector<1x4x4xbf16>
    %105 = vector.shape_cast %104 : vector<1x4x4xbf16> to vector<4x4xbf16>
    %106 = arith.extf %105 : vector<4x4xbf16> to vector<4x4xf32>
    %cst_86 = arith.constant dense<0.000000e+00> : vector<256x4xf32>
    %107 = tpu.matmul %103, %106, %cst_86 {dimension_numbers = #tpu.dot_dimension_numbers<[1], [0], [0], [1], [0, 0, 1, 1], [], []>} : vector<256x4xf32>, vector<4x4xf32>, vector<256x4xf32> -> vector<256x4xf32>
    %108 = arith.addf %99, %107 : vector<256x4xf32>
    %c0_87 = arith.constant 0 : index
    %c1_88 = arith.constant 1 : index
    %c0_89 = arith.constant 0 : index
    %c0_90 = arith.constant 0 : index
    %109 = vector.load %arg2[%c0_87, %c1_88, %c0_89, %c0_90] : memref<1x18x18x4xbf16, #tpu.memory_space<vmem>>, vector<1x16x16x4xbf16>
    %110 = vector.shape_cast %109 : vector<1x16x16x4xbf16> to vector<16x16x4xbf16>
    %111 = arith.extf %110 : vector<16x16x4xbf16> to vector<16x16x4xf32>
    %112 = vector.shape_cast %111 : vector<16x16x4xf32> to vector<256x4xf32>
    %c3_91 = arith.constant 3 : index
    %c0_92 = arith.constant 0 : index
    %c0_93 = arith.constant 0 : index
    %113 = vector.load %arg4[%c3_91, %c0_92, %c0_93] : memref<9x4x4xbf16, #tpu.memory_space<vmem>>, vector<1x4x4xbf16>
    %114 = vector.shape_cast %113 : vector<1x4x4xbf16> to vector<4x4xbf16>
    %115 = arith.extf %114 : vector<4x4xbf16> to vector<4x4xf32>
    %cst_94 = arith.constant dense<0.000000e+00> : vector<256x4xf32>
    %116 = tpu.matmul %112, %115, %cst_94 {dimension_numbers = #tpu.dot_dimension_numbers<[1], [0], [0], [1], [0, 0, 1, 1], [], []>} : vector<256x4xf32>, vector<4x4xf32>, vector<256x4xf32> -> vector<256x4xf32>
    %117 = arith.addf %108, %116 : vector<256x4xf32>
    %c0_95 = arith.constant 0 : index
    %c1_96 = arith.constant 1 : index
    %c1_97 = arith.constant 1 : index
    %c0_98 = arith.constant 0 : index
    %118 = vector.load %arg2[%c0_95, %c1_96, %c1_97, %c0_98] : memref<1x18x18x4xbf16, #tpu.memory_space<vmem>>, vector<1x16x16x4xbf16>
    %119 = vector.shape_cast %118 : vector<1x16x16x4xbf16> to vector<16x16x4xbf16>
    %120 = arith.extf %119 : vector<16x16x4xbf16> to vector<16x16x4xf32>
    %121 = vector.shape_cast %120 : vector<16x16x4xf32> to vector<256x4xf32>
    %c4_99 = arith.constant 4 : index
    %c0_100 = arith.constant 0 : index
    %c0_101 = arith.constant 0 : index
    %122 = vector.load %arg4[%c4_99, %c0_100, %c0_101] : memref<9x4x4xbf16, #tpu.memory_space<vmem>>, vector<1x4x4xbf16>
    %123 = vector.shape_cast %122 : vector<1x4x4xbf16> to vector<4x4xbf16>
    %124 = arith.extf %123 : vector<4x4xbf16> to vector<4x4xf32>
    %cst_102 = arith.constant dense<0.000000e+00> : vector<256x4xf32>
    %125 = tpu.matmul %121, %124, %cst_102 {dimension_numbers = #tpu.dot_dimension_numbers<[1], [0], [0], [1], [0, 0, 1, 1], [], []>} : vector<256x4xf32>, vector<4x4xf32>, vector<256x4xf32> -> vector<256x4xf32>
    %126 = arith.addf %117, %125 : vector<256x4xf32>
    %c0_103 = arith.constant 0 : index
    %c1_104 = arith.constant 1 : index
    %c2_105 = arith.constant 2 : index
    %c0_106 = arith.constant 0 : index
    %127 = vector.load %arg2[%c0_103, %c1_104, %c2_105, %c0_106] : memref<1x18x18x4xbf16, #tpu.memory_space<vmem>>, vector<1x16x16x4xbf16>
    %128 = vector.shape_cast %127 : vector<1x16x16x4xbf16> to vector<16x16x4xbf16>
    %129 = arith.extf %128 : vector<16x16x4xbf16> to vector<16x16x4xf32>
    %130 = vector.shape_cast %129 : vector<16x16x4xf32> to vector<256x4xf32>
    %c5_107 = arith.constant 5 : index
    %c0_108 = arith.constant 0 : index
    %c0_109 = arith.constant 0 : index
    %131 = vector.load %arg4[%c5_107, %c0_108, %c0_109] : memref<9x4x4xbf16, #tpu.memory_space<vmem>>, vector<1x4x4xbf16>
    %132 = vector.shape_cast %131 : vector<1x4x4xbf16> to vector<4x4xbf16>
    %133 = arith.extf %132 : vector<4x4xbf16> to vector<4x4xf32>
    %cst_110 = arith.constant dense<0.000000e+00> : vector<256x4xf32>
    %134 = tpu.matmul %130, %133, %cst_110 {dimension_numbers = #tpu.dot_dimension_numbers<[1], [0], [0], [1], [0, 0, 1, 1], [], []>} : vector<256x4xf32>, vector<4x4xf32>, vector<256x4xf32> -> vector<256x4xf32>
    %135 = arith.addf %126, %134 : vector<256x4xf32>
    %c0_111 = arith.constant 0 : index
    %c2_112 = arith.constant 2 : index
    %c0_113 = arith.constant 0 : index
    %c0_114 = arith.constant 0 : index
    %136 = vector.load %arg2[%c0_111, %c2_112, %c0_113, %c0_114] : memref<1x18x18x4xbf16, #tpu.memory_space<vmem>>, vector<1x16x16x4xbf16>
    %137 = vector.shape_cast %136 : vector<1x16x16x4xbf16> to vector<16x16x4xbf16>
    %138 = arith.extf %137 : vector<16x16x4xbf16> to vector<16x16x4xf32>
    %139 = vector.shape_cast %138 : vector<16x16x4xf32> to vector<256x4xf32>
    %c6_115 = arith.constant 6 : index
    %c0_116 = arith.constant 0 : index
    %c0_117 = arith.constant 0 : index
    %140 = vector.load %arg4[%c6_115, %c0_116, %c0_117] : memref<9x4x4xbf16, #tpu.memory_space<vmem>>, vector<1x4x4xbf16>
    %141 = vector.shape_cast %140 : vector<1x4x4xbf16> to vector<4x4xbf16>
    %142 = arith.extf %141 : vector<4x4xbf16> to vector<4x4xf32>
    %cst_118 = arith.constant dense<0.000000e+00> : vector<256x4xf32>
    %143 = tpu.matmul %139, %142, %cst_118 {dimension_numbers = #tpu.dot_dimension_numbers<[1], [0], [0], [1], [0, 0, 1, 1], [], []>} : vector<256x4xf32>, vector<4x4xf32>, vector<256x4xf32> -> vector<256x4xf32>
    %144 = arith.addf %135, %143 : vector<256x4xf32>
    %c0_119 = arith.constant 0 : index
    %c2_120 = arith.constant 2 : index
    %c1_121 = arith.constant 1 : index
    %c0_122 = arith.constant 0 : index
    %145 = vector.load %arg2[%c0_119, %c2_120, %c1_121, %c0_122] : memref<1x18x18x4xbf16, #tpu.memory_space<vmem>>, vector<1x16x16x4xbf16>
    %146 = vector.shape_cast %145 : vector<1x16x16x4xbf16> to vector<16x16x4xbf16>
    %147 = arith.extf %146 : vector<16x16x4xbf16> to vector<16x16x4xf32>
    %148 = vector.shape_cast %147 : vector<16x16x4xf32> to vector<256x4xf32>
    %c7_123 = arith.constant 7 : index
    %c0_124 = arith.constant 0 : index
    %c0_125 = arith.constant 0 : index
    %149 = vector.load %arg4[%c7_123, %c0_124, %c0_125] : memref<9x4x4xbf16, #tpu.memory_space<vmem>>, vector<1x4x4xbf16>
    %150 = vector.shape_cast %149 : vector<1x4x4xbf16> to vector<4x4xbf16>
    %151 = arith.extf %150 : vector<4x4xbf16> to vector<4x4xf32>
    %cst_126 = arith.constant dense<0.000000e+00> : vector<256x4xf32>
    %152 = tpu.matmul %148, %151, %cst_126 {dimension_numbers = #tpu.dot_dimension_numbers<[1], [0], [0], [1], [0, 0, 1, 1], [], []>} : vector<256x4xf32>, vector<4x4xf32>, vector<256x4xf32> -> vector<256x4xf32>
    %153 = arith.addf %144, %152 : vector<256x4xf32>
    %c0_127 = arith.constant 0 : index
    %c2_128 = arith.constant 2 : index
    %c2_129 = arith.constant 2 : index
    %c0_130 = arith.constant 0 : index
    %154 = vector.load %arg2[%c0_127, %c2_128, %c2_129, %c0_130] : memref<1x18x18x4xbf16, #tpu.memory_space<vmem>>, vector<1x16x16x4xbf16>
    %155 = vector.shape_cast %154 : vector<1x16x16x4xbf16> to vector<16x16x4xbf16>
    %156 = arith.extf %155 : vector<16x16x4xbf16> to vector<16x16x4xf32>
    %157 = vector.shape_cast %156 : vector<16x16x4xf32> to vector<256x4xf32>
    %c8_131 = arith.constant 8 : index
    %c0_132 = arith.constant 0 : index
    %c0_133 = arith.constant 0 : index
    %158 = vector.load %arg4[%c8_131, %c0_132, %c0_133] : memref<9x4x4xbf16, #tpu.memory_space<vmem>>, vector<1x4x4xbf16>
    %159 = vector.shape_cast %158 : vector<1x4x4xbf16> to vector<4x4xbf16>
    %160 = arith.extf %159 : vector<4x4xbf16> to vector<4x4xf32>
    %cst_134 = arith.constant dense<0.000000e+00> : vector<256x4xf32>
    %161 = tpu.matmul %157, %160, %cst_134 {dimension_numbers = #tpu.dot_dimension_numbers<[1], [0], [0], [1], [0, 0, 1, 1], [], []>} : vector<256x4xf32>, vector<4x4xf32>, vector<256x4xf32> -> vector<256x4xf32>
    %162 = arith.addf %153, %161 : vector<256x4xf32>
    %c0_135 = arith.constant 0 : index
    %c0_136 = arith.constant 0 : index
    %163 = vector.load %arg5[%c0_135, %c0_136] : memref<1x4xf32, #tpu.memory_space<vmem>>, vector<1x4xf32>
    %164 = vector.broadcast %163 : vector<1x4xf32> to vector<256x4xf32>
    %165 = arith.addf %162, %164 : vector<256x4xf32>
    %cst_137 = arith.constant 0.000000e+00 : f32
    %166 = vector.broadcast %cst_137 : f32 to vector<256x4xf32>
    %167 = arith.maximumf %165, %166 : vector<256x4xf32>
    %168 = arith.truncf %167 : vector<256x4xf32> to vector<256x4xbf16>
    %c0_138 = arith.constant 0 : index
    %c0_139 = arith.constant 0 : index
    %c0_140 = arith.constant 0 : index
    %169 = vector.load %arg6[%c0_138, %c0_139, %c0_140] : memref<1x256x4xbf16, #tpu.memory_space<vmem>>, vector<1x256x4xbf16>
    %170 = vector.shape_cast %169 : vector<1x256x4xbf16> to vector<256x4xbf16>
    %171 = vector.shape_cast %168 : vector<256x4xbf16> to vector<1x256x4xbf16>
    tpu.vector_store %arg6[%c0_138, %c0_139, %c0_140], %171 {strides = array<i32>} : memref<1x256x4xbf16, #tpu.memory_space<vmem>>, vector<1x256x4xbf16>,
    return
  }
  func.func @transform_0(%arg0: i32) -> (i32, i32, i32, i32) {
    %c0_i32 = arith.constant 0 : i32
    %c0_i32_0 = arith.constant 0 : i32
    %c0_i32_1 = arith.constant 0 : i32
    %c0_i32_2 = arith.constant 0 : i32
    return %arg0, %c0_i32, %c0_i32_0, %c0_i32_1 : i32, i32, i32, i32
  }
  func.func @transform_1(%arg0: i32) -> (i32, i32, i32, i32) {
    %c0_i32 = arith.constant 0 : i32
    %c0_i32_0 = arith.constant 0 : i32
    %c0_i32_1 = arith.constant 0 : i32
    %c0_i32_2 = arith.constant 0 : i32
    return %arg0, %c0_i32, %c0_i32_0, %c0_i32_1 : i32, i32, i32, i32
  }
  func.func @transform_2(%arg0: i32) -> (i32, i32, i32) {
    %c0_i32 = arith.constant 0 : i32
    %c0_i32_0 = arith.constant 0 : i32
    %c0_i32_1 = arith.constant 0 : i32
    %c0_i32_2 = arith.constant 0 : i32
    return %c0_i32, %c0_i32_0, %c0_i32_1 : i32, i32, i32
  }
  func.func @transform_3(%arg0: i32) -> (i32, i32, i32) {
    %c0_i32 = arith.constant 0 : i32
    %c0_i32_0 = arith.constant 0 : i32
    %c0_i32_1 = arith.constant 0 : i32
    %c0_i32_2 = arith.constant 0 : i32
    return %c0_i32, %c0_i32_0, %c0_i32_1 : i32, i32, i32
  }
  func.func @transform_4(%arg0: i32) -> (i32, i32) {
    %c0_i32 = arith.constant 0 : i32
    %c0_i32_0 = arith.constant 0 : i32
    %c0_i32_1 = arith.constant 0 : i32
    return %c0_i32, %c0_i32_0 : i32, i32
  }
  func.func @transform_5(%arg0: i32) -> (i32, i32, i32) {
    %c0_i32 = arith.constant 0 : i32
    %c0_i32_0 = arith.constant 0 : i32
    %c0_i32_1 = arith.constant 0 : i32
    return %arg0, %c0_i32, %c0_i32_0 : i32, i32, i32
  }
}

module attributes {stable_mosaic.version = 11 : i64} {
  func.func @_conv3x3_kernel(%arg0: i32, %arg1: memref<1x18x18x4xbf16, #tpu.memory_space<vmem>>, %arg2: memref<9x4x4xbf16, #tpu.memory_space<vmem>>, %arg3: memref<1x4xf32, #tpu.memory_space<vmem>>, %arg4: memref<1x256x4xbf16, #tpu.memory_space<vmem>>) attributes {dimension_semantics = [#tpu.dimension_semantics<parallel>], iteration_bounds = array<i64: 2>, scalar_prefetch = 0 : i64, scratch_operands = 0 : i64, tpu.core_type = #tpu.core_type<tc>, window_params = [{transform_indices = @transform_0, window_bounds = array<i64: 1, 18, 18, 4>}, {pipeline_mode = #tpu.pipeline_mode<synchronous>, transform_indices = @transform_1, window_bounds = array<i64: 9, 4, 4>}, {pipeline_mode = #tpu.pipeline_mode<synchronous>, transform_indices = @transform_2, window_bounds = array<i64: 1, 4>}, {transform_indices = @transform_3, window_bounds = array<i64: 1, 256, 4>}]} {
    %cst = arith.constant 0.000000e+00 : f32
    %0 = vector.broadcast %cst : f32 to vector<256x4xf32>
    %c0 = arith.constant 0 : index
    %c0_0 = arith.constant 0 : index
    %c0_1 = arith.constant 0 : index
    %c0_2 = arith.constant 0 : index
    %1 = vector.load %arg1[%c0, %c0_0, %c0_1, %c0_2] : memref<1x18x18x4xbf16, #tpu.memory_space<vmem>>, vector<1x16x16x4xbf16>
    %2 = vector.shape_cast %1 : vector<1x16x16x4xbf16> to vector<16x16x4xbf16>
    %3 = arith.extf %2 : vector<16x16x4xbf16> to vector<16x16x4xf32>
    %4 = vector.shape_cast %3 : vector<16x16x4xf32> to vector<256x4xf32>
    %c0_3 = arith.constant 0 : index
    %c0_4 = arith.constant 0 : index
    %c0_5 = arith.constant 0 : index
    %5 = vector.load %arg2[%c0_3, %c0_4, %c0_5] : memref<9x4x4xbf16, #tpu.memory_space<vmem>>, vector<1x4x4xbf16>
    %6 = vector.shape_cast %5 : vector<1x4x4xbf16> to vector<4x4xbf16>
    %7 = arith.extf %6 : vector<4x4xbf16> to vector<4x4xf32>
    %cst_6 = arith.constant dense<0.000000e+00> : vector<256x4xf32>
    %8 = tpu.matmul %4, %7, %cst_6 {dimension_numbers = #tpu.dot_dimension_numbers<[1], [0], [0], [1], [0, 0, 1, 1], [], []>} : vector<256x4xf32>, vector<4x4xf32>, vector<256x4xf32> -> vector<256x4xf32>
    %9 = arith.addf %0, %8 : vector<256x4xf32>
    %c0_7 = arith.constant 0 : index
    %c0_8 = arith.constant 0 : index
    %c1 = arith.constant 1 : index
    %c0_9 = arith.constant 0 : index
    %10 = vector.load %arg1[%c0_7, %c0_8, %c1, %c0_9] : memref<1x18x18x4xbf16, #tpu.memory_space<vmem>>, vector<1x16x16x4xbf16>
    %11 = vector.shape_cast %10 : vector<1x16x16x4xbf16> to vector<16x16x4xbf16>
    %12 = arith.extf %11 : vector<16x16x4xbf16> to vector<16x16x4xf32>
    %13 = vector.shape_cast %12 : vector<16x16x4xf32> to vector<256x4xf32>
    %c1_10 = arith.constant 1 : index
    %c0_11 = arith.constant 0 : index
    %c0_12 = arith.constant 0 : index
    %14 = vector.load %arg2[%c1_10, %c0_11, %c0_12] : memref<9x4x4xbf16, #tpu.memory_space<vmem>>, vector<1x4x4xbf16>
    %15 = vector.shape_cast %14 : vector<1x4x4xbf16> to vector<4x4xbf16>
    %16 = arith.extf %15 : vector<4x4xbf16> to vector<4x4xf32>
    %cst_13 = arith.constant dense<0.000000e+00> : vector<256x4xf32>
    %17 = tpu.matmul %13, %16, %cst_13 {dimension_numbers = #tpu.dot_dimension_numbers<[1], [0], [0], [1], [0, 0, 1, 1], [], []>} : vector<256x4xf32>, vector<4x4xf32>, vector<256x4xf32> -> vector<256x4xf32>
    %18 = arith.addf %9, %17 : vector<256x4xf32>
    %c0_14 = arith.constant 0 : index
    %c0_15 = arith.constant 0 : index
    %c2 = arith.constant 2 : index
    %c0_16 = arith.constant 0 : index
    %19 = vector.load %arg1[%c0_14, %c0_15, %c2, %c0_16] : memref<1x18x18x4xbf16, #tpu.memory_space<vmem>>, vector<1x16x16x4xbf16>
    %20 = vector.shape_cast %19 : vector<1x16x16x4xbf16> to vector<16x16x4xbf16>
    %21 = arith.extf %20 : vector<16x16x4xbf16> to vector<16x16x4xf32>
    %22 = vector.shape_cast %21 : vector<16x16x4xf32> to vector<256x4xf32>
    %c2_17 = arith.constant 2 : index
    %c0_18 = arith.constant 0 : index
    %c0_19 = arith.constant 0 : index
    %23 = vector.load %arg2[%c2_17, %c0_18, %c0_19] : memref<9x4x4xbf16, #tpu.memory_space<vmem>>, vector<1x4x4xbf16>
    %24 = vector.shape_cast %23 : vector<1x4x4xbf16> to vector<4x4xbf16>
    %25 = arith.extf %24 : vector<4x4xbf16> to vector<4x4xf32>
    %cst_20 = arith.constant dense<0.000000e+00> : vector<256x4xf32>
    %26 = tpu.matmul %22, %25, %cst_20 {dimension_numbers = #tpu.dot_dimension_numbers<[1], [0], [0], [1], [0, 0, 1, 1], [], []>} : vector<256x4xf32>, vector<4x4xf32>, vector<256x4xf32> -> vector<256x4xf32>
    %27 = arith.addf %18, %26 : vector<256x4xf32>
    %c0_21 = arith.constant 0 : index
    %c1_22 = arith.constant 1 : index
    %c0_23 = arith.constant 0 : index
    %c0_24 = arith.constant 0 : index
    %28 = vector.load %arg1[%c0_21, %c1_22, %c0_23, %c0_24] : memref<1x18x18x4xbf16, #tpu.memory_space<vmem>>, vector<1x16x16x4xbf16>
    %29 = vector.shape_cast %28 : vector<1x16x16x4xbf16> to vector<16x16x4xbf16>
    %30 = arith.extf %29 : vector<16x16x4xbf16> to vector<16x16x4xf32>
    %31 = vector.shape_cast %30 : vector<16x16x4xf32> to vector<256x4xf32>
    %c3 = arith.constant 3 : index
    %c0_25 = arith.constant 0 : index
    %c0_26 = arith.constant 0 : index
    %32 = vector.load %arg2[%c3, %c0_25, %c0_26] : memref<9x4x4xbf16, #tpu.memory_space<vmem>>, vector<1x4x4xbf16>
    %33 = vector.shape_cast %32 : vector<1x4x4xbf16> to vector<4x4xbf16>
    %34 = arith.extf %33 : vector<4x4xbf16> to vector<4x4xf32>
    %cst_27 = arith.constant dense<0.000000e+00> : vector<256x4xf32>
    %35 = tpu.matmul %31, %34, %cst_27 {dimension_numbers = #tpu.dot_dimension_numbers<[1], [0], [0], [1], [0, 0, 1, 1], [], []>} : vector<256x4xf32>, vector<4x4xf32>, vector<256x4xf32> -> vector<256x4xf32>
    %36 = arith.addf %27, %35 : vector<256x4xf32>
    %c0_28 = arith.constant 0 : index
    %c1_29 = arith.constant 1 : index
    %c1_30 = arith.constant 1 : index
    %c0_31 = arith.constant 0 : index
    %37 = vector.load %arg1[%c0_28, %c1_29, %c1_30, %c0_31] : memref<1x18x18x4xbf16, #tpu.memory_space<vmem>>, vector<1x16x16x4xbf16>
    %38 = vector.shape_cast %37 : vector<1x16x16x4xbf16> to vector<16x16x4xbf16>
    %39 = arith.extf %38 : vector<16x16x4xbf16> to vector<16x16x4xf32>
    %40 = vector.shape_cast %39 : vector<16x16x4xf32> to vector<256x4xf32>
    %c4 = arith.constant 4 : index
    %c0_32 = arith.constant 0 : index
    %c0_33 = arith.constant 0 : index
    %41 = vector.load %arg2[%c4, %c0_32, %c0_33] : memref<9x4x4xbf16, #tpu.memory_space<vmem>>, vector<1x4x4xbf16>
    %42 = vector.shape_cast %41 : vector<1x4x4xbf16> to vector<4x4xbf16>
    %43 = arith.extf %42 : vector<4x4xbf16> to vector<4x4xf32>
    %cst_34 = arith.constant dense<0.000000e+00> : vector<256x4xf32>
    %44 = tpu.matmul %40, %43, %cst_34 {dimension_numbers = #tpu.dot_dimension_numbers<[1], [0], [0], [1], [0, 0, 1, 1], [], []>} : vector<256x4xf32>, vector<4x4xf32>, vector<256x4xf32> -> vector<256x4xf32>
    %45 = arith.addf %36, %44 : vector<256x4xf32>
    %c0_35 = arith.constant 0 : index
    %c1_36 = arith.constant 1 : index
    %c2_37 = arith.constant 2 : index
    %c0_38 = arith.constant 0 : index
    %46 = vector.load %arg1[%c0_35, %c1_36, %c2_37, %c0_38] : memref<1x18x18x4xbf16, #tpu.memory_space<vmem>>, vector<1x16x16x4xbf16>
    %47 = vector.shape_cast %46 : vector<1x16x16x4xbf16> to vector<16x16x4xbf16>
    %48 = arith.extf %47 : vector<16x16x4xbf16> to vector<16x16x4xf32>
    %49 = vector.shape_cast %48 : vector<16x16x4xf32> to vector<256x4xf32>
    %c5 = arith.constant 5 : index
    %c0_39 = arith.constant 0 : index
    %c0_40 = arith.constant 0 : index
    %50 = vector.load %arg2[%c5, %c0_39, %c0_40] : memref<9x4x4xbf16, #tpu.memory_space<vmem>>, vector<1x4x4xbf16>
    %51 = vector.shape_cast %50 : vector<1x4x4xbf16> to vector<4x4xbf16>
    %52 = arith.extf %51 : vector<4x4xbf16> to vector<4x4xf32>
    %cst_41 = arith.constant dense<0.000000e+00> : vector<256x4xf32>
    %53 = tpu.matmul %49, %52, %cst_41 {dimension_numbers = #tpu.dot_dimension_numbers<[1], [0], [0], [1], [0, 0, 1, 1], [], []>} : vector<256x4xf32>, vector<4x4xf32>, vector<256x4xf32> -> vector<256x4xf32>
    %54 = arith.addf %45, %53 : vector<256x4xf32>
    %c0_42 = arith.constant 0 : index
    %c2_43 = arith.constant 2 : index
    %c0_44 = arith.constant 0 : index
    %c0_45 = arith.constant 0 : index
    %55 = vector.load %arg1[%c0_42, %c2_43, %c0_44, %c0_45] : memref<1x18x18x4xbf16, #tpu.memory_space<vmem>>, vector<1x16x16x4xbf16>
    %56 = vector.shape_cast %55 : vector<1x16x16x4xbf16> to vector<16x16x4xbf16>
    %57 = arith.extf %56 : vector<16x16x4xbf16> to vector<16x16x4xf32>
    %58 = vector.shape_cast %57 : vector<16x16x4xf32> to vector<256x4xf32>
    %c6 = arith.constant 6 : index
    %c0_46 = arith.constant 0 : index
    %c0_47 = arith.constant 0 : index
    %59 = vector.load %arg2[%c6, %c0_46, %c0_47] : memref<9x4x4xbf16, #tpu.memory_space<vmem>>, vector<1x4x4xbf16>
    %60 = vector.shape_cast %59 : vector<1x4x4xbf16> to vector<4x4xbf16>
    %61 = arith.extf %60 : vector<4x4xbf16> to vector<4x4xf32>
    %cst_48 = arith.constant dense<0.000000e+00> : vector<256x4xf32>
    %62 = tpu.matmul %58, %61, %cst_48 {dimension_numbers = #tpu.dot_dimension_numbers<[1], [0], [0], [1], [0, 0, 1, 1], [], []>} : vector<256x4xf32>, vector<4x4xf32>, vector<256x4xf32> -> vector<256x4xf32>
    %63 = arith.addf %54, %62 : vector<256x4xf32>
    %c0_49 = arith.constant 0 : index
    %c2_50 = arith.constant 2 : index
    %c1_51 = arith.constant 1 : index
    %c0_52 = arith.constant 0 : index
    %64 = vector.load %arg1[%c0_49, %c2_50, %c1_51, %c0_52] : memref<1x18x18x4xbf16, #tpu.memory_space<vmem>>, vector<1x16x16x4xbf16>
    %65 = vector.shape_cast %64 : vector<1x16x16x4xbf16> to vector<16x16x4xbf16>
    %66 = arith.extf %65 : vector<16x16x4xbf16> to vector<16x16x4xf32>
    %67 = vector.shape_cast %66 : vector<16x16x4xf32> to vector<256x4xf32>
    %c7 = arith.constant 7 : index
    %c0_53 = arith.constant 0 : index
    %c0_54 = arith.constant 0 : index
    %68 = vector.load %arg2[%c7, %c0_53, %c0_54] : memref<9x4x4xbf16, #tpu.memory_space<vmem>>, vector<1x4x4xbf16>
    %69 = vector.shape_cast %68 : vector<1x4x4xbf16> to vector<4x4xbf16>
    %70 = arith.extf %69 : vector<4x4xbf16> to vector<4x4xf32>
    %cst_55 = arith.constant dense<0.000000e+00> : vector<256x4xf32>
    %71 = tpu.matmul %67, %70, %cst_55 {dimension_numbers = #tpu.dot_dimension_numbers<[1], [0], [0], [1], [0, 0, 1, 1], [], []>} : vector<256x4xf32>, vector<4x4xf32>, vector<256x4xf32> -> vector<256x4xf32>
    %72 = arith.addf %63, %71 : vector<256x4xf32>
    %c0_56 = arith.constant 0 : index
    %c2_57 = arith.constant 2 : index
    %c2_58 = arith.constant 2 : index
    %c0_59 = arith.constant 0 : index
    %73 = vector.load %arg1[%c0_56, %c2_57, %c2_58, %c0_59] : memref<1x18x18x4xbf16, #tpu.memory_space<vmem>>, vector<1x16x16x4xbf16>
    %74 = vector.shape_cast %73 : vector<1x16x16x4xbf16> to vector<16x16x4xbf16>
    %75 = arith.extf %74 : vector<16x16x4xbf16> to vector<16x16x4xf32>
    %76 = vector.shape_cast %75 : vector<16x16x4xf32> to vector<256x4xf32>
    %c8 = arith.constant 8 : index
    %c0_60 = arith.constant 0 : index
    %c0_61 = arith.constant 0 : index
    %77 = vector.load %arg2[%c8, %c0_60, %c0_61] : memref<9x4x4xbf16, #tpu.memory_space<vmem>>, vector<1x4x4xbf16>
    %78 = vector.shape_cast %77 : vector<1x4x4xbf16> to vector<4x4xbf16>
    %79 = arith.extf %78 : vector<4x4xbf16> to vector<4x4xf32>
    %cst_62 = arith.constant dense<0.000000e+00> : vector<256x4xf32>
    %80 = tpu.matmul %76, %79, %cst_62 {dimension_numbers = #tpu.dot_dimension_numbers<[1], [0], [0], [1], [0, 0, 1, 1], [], []>} : vector<256x4xf32>, vector<4x4xf32>, vector<256x4xf32> -> vector<256x4xf32>
    %81 = arith.addf %72, %80 : vector<256x4xf32>
    %c0_63 = arith.constant 0 : index
    %c0_64 = arith.constant 0 : index
    %82 = vector.load %arg3[%c0_63, %c0_64] : memref<1x4xf32, #tpu.memory_space<vmem>>, vector<1x4xf32>
    %83 = vector.broadcast %82 : vector<1x4xf32> to vector<256x4xf32>
    %84 = arith.addf %81, %83 : vector<256x4xf32>
    %cst_65 = arith.constant 0.000000e+00 : f32
    %85 = vector.broadcast %cst_65 : f32 to vector<256x4xf32>
    %86 = arith.maximumf %84, %85 : vector<256x4xf32>
    %87 = arith.truncf %86 : vector<256x4xf32> to vector<256x4xbf16>
    %c0_66 = arith.constant 0 : index
    %c0_67 = arith.constant 0 : index
    %c0_68 = arith.constant 0 : index
    %88 = vector.load %arg4[%c0_66, %c0_67, %c0_68] : memref<1x256x4xbf16, #tpu.memory_space<vmem>>, vector<1x256x4xbf16>
    %89 = vector.shape_cast %88 : vector<1x256x4xbf16> to vector<256x4xbf16>
    %90 = vector.shape_cast %87 : vector<256x4xbf16> to vector<1x256x4xbf16>
    tpu.vector_store %arg4[%c0_66, %c0_67, %c0_68], %90 {strides = array<i32>} : memref<1x256x4xbf16, #tpu.memory_space<vmem>>, vector<1x256x4xbf16>,
    return
  }
  func.func @transform_0(%arg0: i32) -> (i32, i32, i32, i32) {
    %c0_i32 = arith.constant 0 : i32
    %c0_i32_0 = arith.constant 0 : i32
    %c0_i32_1 = arith.constant 0 : i32
    %c0_i32_2 = arith.constant 0 : i32
    return %arg0, %c0_i32, %c0_i32_0, %c0_i32_1 : i32, i32, i32, i32
  }
  func.func @transform_1(%arg0: i32) -> (i32, i32, i32) {
    %c0_i32 = arith.constant 0 : i32
    %c0_i32_0 = arith.constant 0 : i32
    %c0_i32_1 = arith.constant 0 : i32
    %c0_i32_2 = arith.constant 0 : i32
    return %c0_i32, %c0_i32_0, %c0_i32_1 : i32, i32, i32
  }
  func.func @transform_2(%arg0: i32) -> (i32, i32) {
    %c0_i32 = arith.constant 0 : i32
    %c0_i32_0 = arith.constant 0 : i32
    %c0_i32_1 = arith.constant 0 : i32
    return %c0_i32, %c0_i32_0 : i32, i32
  }
  func.func @transform_3(%arg0: i32) -> (i32, i32, i32) {
    %c0_i32 = arith.constant 0 : i32
    %c0_i32_0 = arith.constant 0 : i32
    %c0_i32_1 = arith.constant 0 : i32
    return %arg0, %c0_i32, %c0_i32_0 : i32, i32, i32
  }
}

</mosaic_0001>

<bundles_post_ra>
// kernel: unetup_origin_forward.3
= control target key start
LH: loop header
LB: loop body
LE: loop exit
PB: predicated region body
PF: predicated region fallthrough
CT: control target
= control target key end

     0   :  { %s2541_s12 = smov 0   ;;  %s3106_s0 = inlined_call_operand.vmem [shape: bf16[2,10,10,8], index: 0, kind: input, shape index: {}]   ;;  %s3107_s1 = inlined_call_operand.vmem [shape: bf16[2,2,4,8,4], index: 1, kind: input, shape index: {}]   ;;  %s3108_s2 = inlined_call_operand.vmem [shape: f32[1,4], index: 2, kind: input, shape index: {}]   ;;  %s3109_s3 = inlined_call_operand.vmem [shape: bf16[2,2,2,64,4], index: 3, kind: output, shape index: {}]  }
   0x1 LB: > { %s2186_s13 = sadd.s32 4294967295, %s2519_s12   ;;  %p2190_p0 = scmp.ge.s32.totalorder %s2519_s12, 1  ;;  %s2519_s12 = sphi %s2541_s12, %s13_s12  }
   0x2   : > { %p137_p1 = scmp.lt.s32.totalorder %s2519_s12, 3 }
   0x4   : > { %p138_p2 = pnand %p2190_p0, %p137_p1 }
   0x5   : > { %p161_p3 = scmp.lt.s32.totalorder (!%p138_p2), %s2186_s13, 1 }
   0x6   : > { %141 = sbr.rel (%p138_p2) target bundleno = 409 (0x199), region = 32 }
   0xb   : > { %v2219_v0 = vld [vmem:[%s3107_s1 + $0x8] sm:$0xff]   ;;  %v2287_v1 = vld [vmem:[%s3107_s1 + $0x18] sm:$0xff]   ;;  %v2194_v2 = vld [vmem:[%s3107_s1] sm:$0xff]   ;;  %s3111_s13 = smov (!%p161_p3, %s2186_s13), 1  ;;  %vm249_vm0 = vcmask 64512   ;;  %vm221_vm1 = vcmask 1046528  }
   0xc   : > { %v383_v3 = vunpack.c.l.bf16 %v2219_v0  ;;  %v941_v4 = vunpack.c.l.bf16 %v2287_v1  ;;  %v531_v5 = vunpack.c.h.bf16 %v2219_v0  ;;  %v1057_v6 = vunpack.c.h.bf16 %v2287_v1  ;;  %v2254_v7 = vld [vmem:[%s3107_s1 + $0x10] sm:$0xff]   ;;  %s2500_s22 = smul.u32 80, %s3111_s13  ;;  %s2499_s9 = sshll.u32 %s3111_s13, 7 }
   0xd   : > { %v248_v8 = vunpack.c.h.bf16 %v2194_v2  ;;  %v188_v9 = vunpack.c.l.bf16 %v2194_v2  ;;  %v752_v10 = vunpack.c.h.bf16 %v2254_v7  ;;  %v700_v11 = vunpack.c.l.bf16 %v2254_v7  ;;  %s2816_s13 = scalar_lea.vmem %s3109_s3, %s2499_s9 }
   0xe   : > { %423 = vmatpush.msra.mxu2 %v383_v3  ;;  %563 = vmatpush.msra.mxu3 %v531_v5  ;;  %s2567_s25 = scalar_lea.vmem %s3106_s0, %s2500_s22  ;;  %vm725_vm2 = vcmask 1045504   ;;  %vm617_vm3 = vcmask 27648  }
   0xf   : > { %281 = vmatpush.msra.mxu0 %v248_v8  ;;  %338 = vmatpush.msra.mxu1 %v188_v9  ;;  %v2211_v12 = vld [vmem:[%s2567_s25 + $0x8] sm:$0xf]  ;;  %v2229_v14 = vld [vmem:[%s2567_s25 + $0xc] sm:$0x1]  ;;  %v171_v18 = vld [vmem:[%s2567_s25] sm:$0xf] }
  0x10   : > { %973 = vmatpush.msrb.mxu2 %v941_v4  ;;  %1089 = vmatpush.msrb.mxu3 %v1057_v6  ;;  %v2228_v13 = vld [vmem:[%s2567_s25 + $0x8] sm:$0xf]  ;;  %v373_v15 = vunpack.c.l.bf16 %v2211_v12  ;;  %v474_v17 = vunpack.c.l.bf16 %v2229_v14  ;;  %v189_v19 = vld [vmem:[%s2567_s25 + $0x4] sm:$0x1]  ;;  %v179_v20 = vunpack.c.l.bf16 %v171_v18  ;;  %v2230_v22 = vld [vmem:[%s2567_s25 + $0x10] sm:$0xf] }
  0x11   : > { %784 = vmatpush.msrb.mxu0 %v752_v10  ;;  %841 = vmatpush.msrb.mxu1 %v700_v11  ;;  %v473_v16 = vunpack.c.l.bf16 %v2228_v13  ;;  %v197_v21 = vunpack.c.l.bf16 %v189_v19  ;;  %v2231_v23 = vld [vmem:[%s2567_s25 + $0x14] sm:$0x1]  ;;  %v172_v24 = vld [vmem:[%s2567_s25 + $0x8] sm:$0xf]  ;;  %v475_v27 = vunpack.c.l.bf16 %v2230_v22  ;;  %v190_v29 = vld [vmem:[%s2567_s25 + $0xc] sm:$0x1] }
  0x12   : > { %2220 = vmatmul.msk.f32.vlgmr.msra.gmra.mxu2 %vm249_vm0, %v373_v15  ;;  %v506_v26 = vrot.slane %v474_v17, 1  ;;  %v476_v28 = vunpack.c.l.bf16 %v2231_v23  ;;  %v222_v30 = vrot.slane %v179_v20, 1  ;;  %2203 = vmatmul.msk.f32.vlgmr.msra.gmra.mxu1 %vm249_vm0, %v179_v20  ;;  %v2212_v32 = vld [vmem:[%s2567_s25 + $0x10] sm:$0xf]  ;;  %v180_v33 = vunpack.c.l.bf16 %v172_v24  ;;  %v2232_v42 = vld [vmem:[%s2567_s25 + $0x18] sm:$0xf] }
  0x13   : > { %v505_v25 = vrot.slane %v473_v16, 1  ;;  %v223_v31 = vrot.slane %v197_v21, 1  ;;  %v198_v34 = vunpack.c.l.bf16 %v190_v29  ;;  %v374_v37 = vunpack.c.l.bf16 %v2212_v32  ;;  %v2233_v43 = vld [vmem:[%s2567_s25 + $0x1c] sm:$0x1]  ;;  %v173_v44 = vld [vmem:[%s2567_s25 + $0x10] sm:$0xf] }
  0x14   : > { %v508_v38 = vrot.slane %v475_v27, 1  ;;  %v509_v39 = vrot.slane %v476_v28, 1  ;;  %v225_v40 = vrot.slane %v180_v33, 1  ;;  %v191_v45 = vld [vmem:[%s2567_s25 + $0x14] sm:$0x1]  ;;  %v477_v47 = vunpack.c.l.bf16 %v2232_v42 }
  0x15   : > { %v507_v35 = vsel %vm221_vm1, %v505_v25, %v506_v26  ;;  %v224_v36 = vsel %vm221_vm1, %v222_v30, %v223_v31  ;;  %v226_v41 = vrot.slane %v198_v34, 1  ;;  %v478_v48 = vunpack.c.l.bf16 %v2233_v43  ;;  %v2213_v50 = vld [vmem:[%s2567_s25 + $0x18] sm:$0xf]  ;;  %v2234_v58 = vld [vmem:[%s2567_s25 + $0x20] sm:$0xf] }
  0x16   : > { %2245 = vmatmul.msk.f32.vlgmr.msra.gmra.mxu3 %vm249_vm0, %v507_v35  ;;  %2195 = vmatmul.msk.f32.vlgmr.msra.gmra.mxu0 %vm249_vm0, %v224_v36  ;;  %v510_v46 = vsel %vm221_vm1, %v508_v38, %v509_v39  ;;  %v181_v51 = vunpack.c.l.bf16 %v173_v44  ;;  %v199_v52 = vunpack.c.l.bf16 %v191_v45  ;;  %v375_v53 = vunpack.c.l.bf16 %v2213_v50  ;;  %v2235_v59 = vld [vmem:[%s2567_s25 + $0x24] sm:$0x1]  ;;  %v174_v60 = vld [vmem:[%s2567_s25 + $0x18] sm:$0xf]  ;;  %v192_v61 = vld [vmem:[%s2567_s25 + $0x1c] sm:$0x1] }
  0x17   : > { %v227_v49 = vsel %vm221_vm1, %v225_v40, %v226_v41  ;;  %v511_v54 = vrot.slane %v477_v47, 1  ;;  %v512_v55 = vrot.slane %v478_v48, 1  ;;  %v479_v63 = vunpack.c.l.bf16 %v2234_v58  ;;  %v2214_v2 = vld [vmem:[%s2567_s25 + $0x20] sm:$0xf]  ;;  %v2236_v10 = vld [vmem:[%s2567_s25 + $0x28] sm:$0xf] }
  0x18   : > { %v228_v56 = vrot.slane %v181_v51, 1  ;;  %v229_v57 = vrot.slane %v199_v52, 1  ;;  %v480_v0 = vunpack.c.l.bf16 %v2235_v59  ;;  %v182_v3 = vunpack.c.l.bf16 %v174_v60  ;;  %v2237_v11 = vld [vmem:[%s2567_s25 + $0x2c] sm:$0x1]  ;;  %v175_v12 = vld [vmem:[%s2567_s25 + $0x20] sm:$0xf] }
  0x19   : > { %v513_v62 = vsel %vm221_vm1, %v511_v54, %v512_v55  ;;  %v200_v4 = vunpack.c.l.bf16 %v192_v61  ;;  %v376_v5 = vunpack.c.l.bf16 %v2214_v2  ;;  %v514_v6 = vrot.slane %v479_v63, 1  ;;  %v193_v13 = vld [vmem:[%s2567_s25 + $0x24] sm:$0x1]  ;;  %v2215_v18 = vld [vmem:[%s2567_s25 + $0x28] sm:$0xf] }
  0x1a   : > { %2221 = vmatmul.msk.f32.gmra.mxu2 %vm249_vm0, %v374_v37  ;;  %2204 = vmatmul.msk.f32.gmra.mxu1 %vm249_vm0, %v180_v33  ;;  %v230_v1 = vsel %vm221_vm1, %v228_v56, %v229_v57  ;;  %v515_v7 = vrot.slane %v480_v0, 1  ;;  %v231_v8 = vrot.slane %v182_v3, 1  ;;  %v481_v15 = vunpack.c.l.bf16 %v2236_v10  ;;  %v2238_v26 = vld [vmem:[%s2567_s25 + $0x30] sm:$0xf]  ;;  %v2239_v27 = vld [vmem:[%s2567_s25 + $0x34] sm:$0x1] }
  0x1b   : > { %v232_v9 = vrot.slane %v200_v4, 1  ;;  %v482_v16 = vunpack.c.l.bf16 %v2237_v11  ;;  %v183_v19 = vunpack.c.l.bf16 %v175_v12  ;;  %v201_v20 = vunpack.c.l.bf16 %v193_v13  ;;  %v176_v28 = vld [vmem:[%s2567_s25 + $0x28] sm:$0xf]  ;;  %v194_v29 = vld [vmem:[%s2567_s25 + $0x2c] sm:$0x1]  ;;  %v2338_v43 = vld [vmem:[%s3107_s1 + $0x20] sm:$0xff]  }
  0x1c   : > { %v516_v14 = vsel %vm221_vm1, %v514_v6, %v515_v7  ;;  %v377_v21 = vunpack.c.l.bf16 %v2215_v18  ;;  %v517_v22 = vrot.slane %v481_v15, 1  ;;  %v483_v31 = vunpack.c.l.bf16 %v2238_v26  ;;  %v2363_v33 = vld [vmem:[%s3107_s1 + $0x28] sm:$0xff]   ;;  %v2216_v35 = vld [vmem:[%s2567_s25 + $0x30] sm:$0xf]  ;;  %v2241_v47 = vld [vmem:[%s2567_s25 + $0x3c] sm:$0x1] }
  0x1d   : > { %v233_v17 = vsel %vm221_vm1, %v231_v8, %v232_v9  ;;  %v518_v23 = vrot.slane %v482_v16, 1  ;;  %v234_v24 = vrot.slane %v183_v19, 1  ;;  %v235_v25 = vrot.slane %v201_v20, 1  ;;  %v177_v50 = vld [vmem:[%s2567_s25 + $0x30] sm:$0xf] }
  0x1e   : > { %2246 = vmatmul.msk.f32.gmra.mxu3 %vm249_vm0, %v510_v46  ;;  %2196 = vmatmul.msk.f32.gmra.mxu0 %vm249_vm0, %v227_v49  ;;  %v484_v32 = vunpack.c.l.bf16 %v2239_v27  ;;  %v184_v36 = vunpack.c.l.bf16 %v176_v28  ;;  %v202_v37 = vunpack.c.l.bf16 %v194_v29  ;;  %v1363_v38 = vunpack.c.l.bf16 %v2363_v33  ;;  %v2240_v46 = vld [vmem:[%s2567_s25 + $0x38] sm:$0xf]  ;;  %v2242_v0 = vld [vmem:[%s2567_s25 + $0x40] sm:$0xf]  ;;  %v2271_v11 = vld [vmem:[%s2567_s25 + $0x8] sm:$0xf] }
  0x1f   : > { %v519_v30 = vsel %vm221_vm1, %v517_v22, %v518_v23  ;;  %v236_v34 = vsel %vm221_vm1, %v234_v24, %v235_v25  ;;  %v1511_v39 = vunpack.c.h.bf16 %v2363_v33  ;;  %v378_v40 = vunpack.c.l.bf16 %v2216_v35  ;;  %v2217_v56 = vld [vmem:[%s2567_s25 + $0x38] sm:$0xf]  ;;  %v2218_v8 = vld [vmem:[%s2567_s25 + $0x40] sm:$0xf]  ;;  %v2272_v12 = vld [vmem:[%s2567_s25 + $0xc] sm:$0x1] }
  0x20   : > { %1403 = vmatpush.msra.mxu2 %v1363_v38  ;;  %v520_v41 = vrot.slane %v483_v31, 1  ;;  %v521_v42 = vrot.slane %v484_v32, 1  ;;  %v237_v44 = vrot.slane %v184_v36, 1  ;;  %v238_v45 = vrot.slane %v202_v37, 1  ;;  %v178_v2 = vld [vmem:[%s2567_s25 + $0x38] sm:$0xf] }
  0x21   : > { %1543 = vmatpush.msra.mxu3 %v1511_v39  ;;  %v1229_v48 = vunpack.c.h.bf16 %v2338_v43  ;;  %v1170_v49 = vunpack.c.l.bf16 %v2338_v43  ;;  %v486_v54 = vunpack.c.l.bf16 %v2241_v47  ;;  %v185_v57 = vunpack.c.l.bf16 %v177_v50  ;;  %v627_v13 = vld [vmem:[%s2567_s25 + $0x4] sm:$0x1]  ;;  %v2296_v22 = vld [vmem:[%s2567_s25 + $0x8] sm:$0xe]  ;;  %v701_v24 = vld [vmem:[%s2567_s25] sm:$0xe] }
  0x22   : > { %2222 = vmatmul.msk.f32.gmra.mxu2 %vm249_vm0, %v375_v53  ;;  %2205 = vmatmul.msk.f32.gmra.mxu1 %vm249_vm0, %v181_v51  ;;  %v195_v51 = vld [vmem:[%s2567_s25 + $0x34] sm:$0x1]  ;;  %v522_v52 = vsel %vm221_vm1, %v520_v41, %v521_v42  ;;  %v485_v53 = vunpack.c.l.bf16 %v2240_v46  ;;  %v239_v55 = vsel %vm221_vm1, %v237_v44, %v238_v45  ;;  %v379_v59 = vunpack.c.l.bf16 %v2217_v56  ;;  %v2273_v32 = vld [vmem:[%s2567_s25 + $0x10] sm:$0xf]  ;;  %v628_v37 = vld [vmem:[%s2567_s25 + $0x8] sm:$0xf] }
  0x23   : > { %1261 = vmatpush.msra.mxu0 %v1229_v48  ;;  %1318 = vmatpush.msra.mxu1 %v1170_v49  ;;  %v203_v58 = vunpack.c.l.bf16 %v195_v51  ;;  %v524_v61 = vrot.slane %v486_v54, 1  ;;  %v186_v9 = vunpack.c.l.bf16 %v178_v2  ;;  %v380_v15 = vunpack.c.l.bf16 %v2218_v8  ;;  %v2274_v33 = vld [vmem:[%s2567_s25 + $0x14] sm:$0x1]  ;;  %v2297_v45 = vld [vmem:[%s2567_s25 + $0x10] sm:$0xe] }
  0x24   : > { %v523_v60 = vrot.slane %v485_v53, 1  ;;  %v883_v20 = vunpack.c.l.bf16 %v2271_v11  ;;  %v643_v23 = vunpack.c.l.bf16 %v627_v13  ;;  %v1015_v27 = vunpack.c.l.bf16 %v2296_v22  ;;  %v702_v48 = vld [vmem:[%s2567_s25 + $0x8] sm:$0xe]  ;;  %v703_v8 = vld [vmem:[%s2567_s25 + $0x10] sm:$0xe] }
  0x25   : > { %v241_v63 = vrot.slane %v203_v58, 1  ;;  %v243_v18 = vrot.slane %v186_v9, 1  ;;  %v709_v31 = vunpack.c.l.bf16 %v701_v24  ;;  %v886_v41 = vunpack.c.l.bf16 %v2274_v33  ;;  %v2275_v58 = vld [vmem:[%s2567_s25 + $0x18] sm:$0xf] }
  0x26   : > { %2247 = vmatmul.msk.f32.gmra.mxu3 %vm249_vm0, %v513_v62  ;;  %2197 = vmatmul.msk.f32.gmra.mxu0 %vm249_vm0, %v230_v1  ;;  %v240_v62 = vrot.slane %v185_v57, 1  ;;  %v2243_v1 = vld [vmem:[%s2567_s25 + $0x44] sm:$0x1]  ;;  %v525_v4 = vsel %vm221_vm1, %v523_v60, %v524_v61  ;;  %v915_v29 = vrot.slane %v883_v20, 1  ;;  %v675_v35 = vrot.slane %v643_v23, 1 }
  0x27   : > { %v488_v6 = vunpack.c.l.bf16 %v2243_v1  ;;  %v1031_v38 = vrot.slane %v1015_v27, 2  ;;  %v726_v43 = vrot.slane %v709_v31, 2  ;;  %v727_v44 = vrot.slane %v643_v23, 2  ;;  %v631_v60 = vld [vmem:[%s2567_s25 + $0x14] sm:$0x1] }
  0x28   : > { %v242_v7 = vsel %vm221_vm1, %v240_v62, %v241_v63  ;;  %v644_v49 = vunpack.c.l.bf16 %v628_v37  ;;  %v1016_v53 = vunpack.c.l.bf16 %v2297_v45  ;;  %v630_v61 = vld [vmem:[%s2567_s25 + $0x10] sm:$0xf]  ;;  %v633_v20 = vld [vmem:[%s2567_s25 + $0x1c] sm:$0x1]  ;;  %v634_v45 = vld [vmem:[%s2567_s25 + $0x20] sm:$0xf] }
  0x29   : > { %v728_v54 = vsel %vm725_vm2, %v726_v43, %v727_v44  ;;  %v649_v31 = vunpack.c.l.bf16 %v633_v20  ;;  %v2280_v43 = vld [vmem:[%s2567_s25 + $0x2c] sm:$0x1]  ;;  %v635_v44 = vld [vmem:[%s2567_s25 + $0x24] sm:$0x1] }
  0x2a   : > { %2223 = vmatmul.msk.f32.gmra.mxu2 %vm249_vm0, %v376_v5  ;;  %2206 = vmatmul.msk.f32.gmra.mxu1 %vm249_vm0, %v182_v3  ;;  %v196_v3 = vld [vmem:[%s2567_s25 + $0x3c] sm:$0x1]  ;;  %v487_v5 = vunpack.c.l.bf16 %v2242_v0  ;;  %v677_v56 = vrot.slane %v644_v49, 1  ;;  %v1034_v63 = vrot.slane %v1016_v53, 2  ;;  %v1035_v0 = vrot.slane %v886_v41, 2 }
  0x2b   : > { %v204_v10 = vunpack.c.l.bf16 %v196_v3  ;;  %v887_v3 = vunpack.c.l.bf16 %v2275_v58  ;;  %v2300_v53 = vld [vmem:[%s2567_s25 + $0x28] sm:$0xe] }
  0x2c   : > { %v526_v16 = vrot.slane %v487_v5, 1  ;;  %v2298_v5 = vld [vmem:[%s2567_s25 + $0x18] sm:$0xe] }
  0x2d   : > { %v1017_v11 = vunpack.c.l.bf16 %v2298_v5  ;;  %v921_v13 = vrot.slane %v887_v3, 1 }
  0x2e   : > { %2248 = vmatmul.msk.f32.gmra.mxu3 %vm249_vm0, %v516_v14  ;;  %2198 = vmatmul.msk.f32.gmra.mxu0 %vm249_vm0, %v233_v17  ;;  %v626_v14 = vld [vmem:[%s2567_s25] sm:$0xf]  ;;  %v527_v17 = vrot.slane %v488_v6, 1 }
  0x2f   : > { %v642_v25 = vunpack.c.l.bf16 %v626_v14  ;;  %v1037_v22 = vrot.slane %v1017_v11, 2 }
  0x30   : > { %v528_v26 = vsel %vm221_vm1, %v526_v16, %v527_v17  ;;  %v2277_v16 = vld [vmem:[%s2567_s25 + $0x20] sm:$0xf]  ;;  %v2278_v17 = vld [vmem:[%s2567_s25 + $0x24] sm:$0x1] }
  0x31   : > { %v889_v24 = vunpack.c.l.bf16 %v2277_v16  ;;  %v706_v16 = vld [vmem:[%s2567_s25 + $0x28] sm:$0xe] }
  0x32   : > { %2224 = vmatmul.msk.f32.gmra.mxu2 %vm249_vm0, %v377_v21  ;;  %2207 = vmatmul.msk.f32.gmra.mxu1 %vm249_vm0, %v183_v19  ;;  %v244_v19 = vrot.slane %v204_v10, 1  ;;  %v884_v21 = vunpack.c.l.bf16 %v2272_v12  ;;  %v1036_v10 = vsel %vm725_vm2, %v1034_v63, %v1035_v0 }
  0x34   : > { %v245_v28 = vsel %vm221_vm1, %v243_v18, %v244_v19  ;;  %v1032_v39 = vrot.slane %v884_v21, 2 }
  0x36   : > { %2249 = vmatmul.msk.f32.gmra.mxu3 %vm249_vm0, %v519_v30  ;;  %2199 = vmatmul.msk.f32.gmra.mxu0 %vm249_vm0, %v236_v34  ;;  %v916_v30 = vrot.slane %v884_v21, 1  ;;  %v674_v34 = vrot.slane %v642_v25, 1  ;;  %v1033_v50 = vsel %vm725_vm2, %v1031_v38, %v1032_v39  ;;  %v632_v21 = vld [vmem:[%s2567_s25 + $0x18] sm:$0xf]  ;;  %v890_v25 = vunpack.c.l.bf16 %v2278_v17 }
  0x37   : > { %v648_v33 = vunpack.c.l.bf16 %v632_v21 }
  0x38   : > { %v917_v42 = vsel %vm221_vm1, %v915_v29, %v916_v30  ;;  %v676_v46 = vsel %vm221_vm1, %v674_v34, %v675_v35  ;;  %v2299_v29 = vld [vmem:[%s2567_s25 + $0x20] sm:$0xe]  ;;  %v924_v35 = vrot.slane %v889_v24, 1  ;;  %v714_v24 = vunpack.c.l.bf16 %v706_v16 }
  0x39   : > { %v1018_v37 = vunpack.c.l.bf16 %v2299_v29 }
  0x3a   : > { %2225 = vmatmul.msk.f32.gmra.mxu2 %vm249_vm0, %v378_v40  ;;  %2208 = vmatmul.msk.f32.gmra.mxu1 %vm249_vm0, %v184_v36  ;;  %v629_v36 = vld [vmem:[%s2567_s25 + $0xc] sm:$0x1]  ;;  %v885_v40 = vunpack.c.l.bf16 %v2273_v32  ;;  %v704_v32 = vld [vmem:[%s2567_s25 + $0x18] sm:$0xe] }
  0x3b   : > { %v645_v47 = vunpack.c.l.bf16 %v629_v36  ;;  %v925_v36 = vrot.slane %v890_v25, 1  ;;  %v712_v39 = vunpack.c.l.bf16 %v704_v32  ;;  %v638_v32 = vld [vmem:[%s2567_s25 + $0x30] sm:$0xf] }
  0x3c   : > { %v918_v51 = vrot.slane %v885_v40, 1  ;;  %v683_v40 = vrot.slane %v648_v33, 1 }
  0x3d   : > { %v730_v2 = vrot.slane %v645_v47, 2  ;;  %v735_v49 = vrot.slane %v712_v39, 2  ;;  %v741_v39 = vrot.slane %v714_v24, 2  ;;  %v2321_v24 = vld [vmem:[%s2567_s25 + $0x8] sm:$0xf] }
  0x3e   : > { %2250 = vmatmul.msk.f32.gmra.mxu3 %vm249_vm0, %v522_v52  ;;  %2200 = vmatmul.msk.f32.gmra.mxu0 %vm249_vm0, %v239_v55  ;;  %v919_v52 = vrot.slane %v886_v41, 1  ;;  %v710_v55 = vunpack.c.l.bf16 %v702_v48  ;;  %v684_v41 = vrot.slane %v649_v31, 1  ;;  %v1041_v48 = vrot.slane %v890_v25, 2  ;;  %v2283_v25 = vld [vmem:[%s2567_s25 + $0x38] sm:$0xf] }
  0x40   : > { %v920_v62 = vsel %vm221_vm1, %v918_v51, %v919_v52  ;;  %v729_v1 = vrot.slane %v710_v55, 2  ;;  %v892_v52 = vunpack.c.l.bf16 %v2280_v43  ;;  %v651_v55 = vunpack.c.l.bf16 %v635_v44 }
  0x42   : > { %2226 = vmatmul.msk.f32.gmra.mxu2 %vm249_vm0, %v379_v59  ;;  %2209 = vmatmul.msk.f32.gmra.mxu1 %vm249_vm0, %v185_v57  ;;  %v678_v57 = vrot.slane %v645_v47, 1  ;;  %v2276_v59 = vld [vmem:[%s2567_s25 + $0x1c] sm:$0x1]  ;;  %v731_v12 = vsel %vm725_vm2, %v729_v1, %v730_v2  ;;  %v1040_v47 = vrot.slane %v1018_v37, 2  ;;  %v928_v0 = vrot.slane %v892_v52, 1 }
  0x43   : > { %v687_v3 = vrot.slane %v651_v55, 1 }
  0x44   : > { %v679_v6 = vsel %vm221_vm1, %v677_v56, %v678_v57  ;;  %v705_v56 = vld [vmem:[%s2567_s25 + $0x20] sm:$0xe]  ;;  %v650_v57 = vunpack.c.l.bf16 %v634_v45  ;;  %v1042_v58 = vsel %vm725_vm2, %v1040_v47, %v1041_v48  ;;  %v654_v47 = vunpack.c.l.bf16 %v638_v32 }
  0x45   : > { %v713_v1 = vunpack.c.l.bf16 %v705_v56  ;;  %v2285_v56 = vld [vmem:[%s2567_s25 + $0x40] sm:$0xf] }
  0x46   : > { %2251 = vmatmul.msk.f32.gmra.mxu3 %vm249_vm0, %v525_v4  ;;  %2201 = vmatmul.msk.f32.gmra.mxu0 %vm249_vm0, %v242_v7  ;;  %v888_v4 = vunpack.c.l.bf16 %v2276_v59  ;;  %v647_v7 = vunpack.c.l.bf16 %v631_v60  ;;  %v1019_v59 = vunpack.c.l.bf16 %v2300_v53  ;;  %v2281_v60 = vld [vmem:[%s2567_s25 + $0x30] sm:$0xf]  ;;  %v686_v2 = vrot.slane %v650_v57, 1  ;;  %v2286_v57 = vld [vmem:[%s2567_s25 + $0x44] sm:$0x1] }
  0x47   : > { %v738_v11 = vrot.slane %v713_v1, 2  ;;  %v897_v1 = vunpack.c.l.bf16 %v2285_v56 }
  0x48   : > { %v922_v14 = vrot.slane %v888_v4, 1  ;;  %v681_v19 = vrot.slane %v647_v7, 1  ;;  %v1038_v23 = vrot.slane %v888_v4, 2  ;;  %v893_v4 = vunpack.c.l.bf16 %v2281_v60 }
  0x4a   : > { %2227 = vmatmul.msk.f32.gmra.mxu2 %vm249_vm0, %v380_v15  ;;  %2210 = vmatmul.msk.f32.gmra.mxu1 %vm249_vm0, %v186_v9  ;;  %v646_v9 = vunpack.c.l.bf16 %v630_v61  ;;  %v711_v15 = vunpack.c.l.bf16 %v703_v8  ;;  %v1039_v34 = vsel %vm725_vm2, %v1037_v22, %v1038_v23  ;;  %v2282_v61 = vld [vmem:[%s2567_s25 + $0x34] sm:$0x1]  ;;  %v1043_v8 = vrot.slane %v1019_v59, 2  ;;  %v2463_v22 = vld [vmem:[%s3107_s1 + $0x38] sm:$0xff]  }
  0x4b   : > { %v894_v5 = vunpack.c.l.bf16 %v2282_v61  ;;  %v2036_v33 = vunpack.c.h.bf16 %v2463_v22  ;;  %v640_v59 = vld [vmem:[%s2567_s25 + $0x38] sm:$0xf] }
  0x4c   : > { %v680_v18 = vrot.slane %v646_v9, 1  ;;  %v732_v27 = vrot.slane %v711_v15, 2  ;;  %v1044_v9 = vrot.slane %v892_v52, 2 }
  0x4e   : > { %2252 = vmatmul.msk.f32.gmra.mxu3 %vm249_vm0, %v528_v26  ;;  %2202 = vmatmul.msk.f32.gmra.mxu0 %vm249_vm0, %v245_v28  ;;  %v923_v26 = vsel %vm221_vm1, %v921_v13, %v922_v14  ;;  %v733_v28 = vrot.slane %v647_v7, 2  ;;  %v682_v30 = vsel %vm221_vm1, %v680_v18, %v681_v19  ;;  %v636_v7 = vld [vmem:[%s2567_s25 + $0x28] sm:$0xf]  ;;  %v2301_v13 = vld [vmem:[%s2567_s25 + $0x30] sm:$0xe]  ;;  %v688_v14 = vsel %vm221_vm1, %v686_v2, %v687_v3 }
  0x4f   : > { %v652_v17 = vunpack.c.l.bf16 %v636_v7  ;;  %v930_v18 = vrot.slane %v893_v4, 1  ;;  %v931_v19 = vrot.slane %v894_v5, 1  ;;  %v1045_v20 = vsel %vm725_vm2, %v1043_v8, %v1044_v9  ;;  %v2303_v3 = vld [vmem:[%s2567_s25 + $0x40] sm:$0xe] }
  0x50   : > { %v734_v38 = vsel %vm725_vm2, %v732_v27, %v733_v28  ;;  %v1020_v21 = vunpack.c.l.bf16 %v2301_v13  ;;  %v1920_v27 = vunpack.c.l.bf16 %v2463_v22  ;;  %v898_v2 = vunpack.c.l.bf16 %v2286_v57  ;;  %v2373_v22 = vld [vmem:[%s2567_s25 + $0x14] sm:$0x1] }
  0x51   : > { %v689_v28 = vrot.slane %v652_v17, 1  ;;  %v656_v7 = vunpack.c.l.bf16 %v640_v59  ;;  %v1022_v9 = vunpack.c.l.bf16 %v2303_v3  ;;  %v2377_v59 = vld [vmem:[%s2567_s25 + $0x24] sm:$0x1] }
  0x52   : > { %2288 = vmatmul.msk.f32.vlgmr.msrb.gmra.mxu2 %vm249_vm0, %v917_v42  ;;  %2263 = vmatmul.msk.f32.vlgmr.msrb.gmra.mxu1 %vm249_vm0, %v676_v46  ;;  %v2279_v42 = vld [vmem:[%s2567_s25 + $0x28] sm:$0xf]  ;;  %v926_v46 = vsel %vm221_vm1, %v924_v35, %v925_v36  ;;  %v1047_v35 = vrot.slane %v894_v5, 2  ;;  %v895_v36 = vunpack.c.l.bf16 %v2283_v25  ;;  %v1053_v17 = vrot.slane %v898_v2, 2  ;;  %v2330_v25 = vld [vmem:[%s2567_s25 + $0xc] sm:$0x1] }
  0x53   : > { %v891_v51 = vunpack.c.l.bf16 %v2279_v42  ;;  %1952 = vmatpush.msrb.mxu2 %v1920_v27  ;;  %v1052_v16 = vrot.slane %v1022_v9, 2  ;;  %v1179_v32 = vunpack.c.l.bf16 %v2330_v25 }
  0x55   : > { %v927_v63 = vrot.slane %v891_v51, 1 }
  0x56   : > { %2305 = vmatmul.msk.f32.vlgmr.msrb.gmra.mxu3 %vm249_vm0, %v1033_v50  ;;  %2255 = vmatmul.msk.f32.vlgmr.msrb.gmra.mxu0 %vm249_vm0, %v728_v54  ;;  %v736_v50 = vrot.slane %v649_v31, 2  ;;  %v685_v54 = vsel %vm221_vm1, %v683_v40, %v684_v41  ;;  %v639_v31 = vld [vmem:[%s2567_s25 + $0x34] sm:$0x1]  ;;  %v2302_v41 = vld [vmem:[%s2567_s25 + $0x38] sm:$0xe] }
  0x57   : > { %2068 = vmatpush.msrb.mxu3 %v2036_v33  ;;  %v655_v45 = vunpack.c.l.bf16 %v639_v31  ;;  %v1021_v51 = vunpack.c.l.bf16 %v2302_v41  ;;  %v1160_v31 = vunpack.c.l.bf16 %v2321_v24  ;;  %v2322_v41 = vld [vmem:[%s2567_s25 + $0x10] sm:$0xf]  ;;  %v2333_v24 = vld [vmem:[%s2567_s25 + $0x24] sm:$0x1] }
  0x59   : > { %v1049_v61 = vrot.slane %v1021_v51, 2 }
  0x5a   : > { %2289 = vmatmul.msk.f32.gmra.mxu2 %vm249_vm0, %v920_v62  ;;  %2264 = vmatmul.msk.f32.gmra.mxu1 %vm249_vm0, %v679_v6  ;;  %v737_v62 = vsel %vm725_vm2, %v735_v49, %v736_v50  ;;  %v637_v6 = vld [vmem:[%s2567_s25 + $0x2c] sm:$0x1]  ;;  %v933_v49 = vrot.slane %v895_v36, 1  ;;  %v1203_v36 = vrot.slane %v1160_v31, 1 }
  0x5b   : > { %v653_v15 = vunpack.c.l.bf16 %v637_v6  ;;  %v708_v6 = vld [vmem:[%s2567_s25 + $0x38] sm:$0xe] }
  0x5c   : > { %v716_v13 = vunpack.c.l.bf16 %v708_v6 }
  0x5d   : > { %v690_v29 = vrot.slane %v653_v15, 1  ;;  %v742_v40 = vrot.slane %v653_v15, 2 }
  0x5e   : > { %2306 = vmatmul.msk.f32.gmra.mxu3 %vm249_vm0, %v1036_v10  ;;  %2256 = vmatmul.msk.f32.gmra.mxu0 %vm249_vm0, %v731_v12  ;;  %v929_v10 = vsel %vm221_vm1, %v927_v63, %v928_v0  ;;  %v739_v12 = vrot.slane %v651_v55, 2  ;;  %v693_v55 = vrot.slane %v655_v45, 1  ;;  %v745_v0 = vrot.slane %v655_v45, 2 }
  0x5f   : > { %v691_v44 = vsel %vm221_vm1, %v689_v28, %v690_v29  ;;  %v743_v52 = vsel %vm725_vm2, %v741_v39, %v742_v40  ;;  %v1454_v28 = vunpack.c.l.bf16 %v2373_v22  ;;  %v2375_v39 = vld [vmem:[%s2567_s25 + $0x1c] sm:$0x1]  ;;  %v2379_v22 = vld [vmem:[%s2567_s25 + $0x2c] sm:$0x1] }
  0x60   : > { %v740_v23 = vsel %vm725_vm2, %v738_v11, %v739_v12  ;;  %v936_v11 = vrot.slane %v897_v1, 1  ;;  %v937_v12 = vrot.slane %v898_v2, 1  ;;  %v1456_v45 = vunpack.c.l.bf16 %v2375_v39 }
  0x62   : > { %2290 = vmatmul.msk.f32.gmra.mxu2 %vm249_vm0, %v923_v26  ;;  %2265 = vmatmul.msk.f32.gmra.mxu1 %vm249_vm0, %v682_v30  ;;  %v2284_v26 = vld [vmem:[%s2567_s25 + $0x3c] sm:$0x1]  ;;  %v932_v30 = vsel %vm221_vm1, %v930_v18, %v931_v19  ;;  %v938_v18 = vsel %vm221_vm1, %v936_v11, %v937_v12  ;;  %v747_v19 = vrot.slane %v716_v13, 2  ;;  %v1489_v57 = vrot.slane %v1456_v45, 1  ;;  %v2357_v11 = vld [vmem:[%s2567_s25 + $0x20] sm:$0xf] }
  0x63   : > { %v896_v37 = vunpack.c.l.bf16 %v2284_v26  ;;  %v1054_v26 = vsel %vm725_vm2, %v1052_v16, %v1053_v17 }
  0x65   : > { %v934_v50 = vrot.slane %v896_v37, 1 }
  0x66   : > { %2307 = vmatmul.msk.f32.gmra.mxu3 %vm249_vm0, %v1039_v34  ;;  %2257 = vmatmul.msk.f32.gmra.mxu0 %vm249_vm0, %v734_v38  ;;  %v1046_v34 = vrot.slane %v1020_v21, 2  ;;  %v2430_v38 = vld [vmem:[%s3107_s1 + $0x30] sm:$0xff]  }
  0x67   : > { %v1731_v42 = vunpack.c.h.bf16 %v2430_v38  ;;  %v1680_v43 = vunpack.c.l.bf16 %v2430_v38  ;;  %v935_v60 = vsel %vm221_vm1, %v933_v49, %v934_v50  ;;  %v2372_v21 = vld [vmem:[%s2567_s25 + $0x10] sm:$0xf]  ;;  %v2374_v38 = vld [vmem:[%s2567_s25 + $0x18] sm:$0xf]  ;;  %v1161_v49 = vunpack.c.l.bf16 %v2322_v41 }
  0x68   : > { %v1048_v48 = vsel %vm725_vm2, %v1046_v34, %v1047_v35  ;;  %v1453_v27 = vunpack.c.l.bf16 %v2372_v21  ;;  %v1486_v35 = vrot.slane %v1454_v28, 1  ;;  %v2378_v21 = vld [vmem:[%s2567_s25 + $0x28] sm:$0xf] }
  0x69   : > { %1763 = vmatpush.msrb.mxu0 %v1731_v42  ;;  %1820 = vmatpush.msrb.mxu1 %v1680_v43  ;;  %v2331_v42 = vld [vmem:[%s2567_s25 + $0x14] sm:$0x1]  ;;  %v1459_v28 = vunpack.c.l.bf16 %v2378_v21 }
  0x6a   : > { %2291 = vmatmul.msk.f32.gmra.mxu2 %vm249_vm0, %v926_v46  ;;  %2266 = vmatmul.msk.f32.gmra.mxu1 %vm249_vm0, %v685_v54  ;;  %v707_v46 = vld [vmem:[%s2567_s25 + $0x30] sm:$0xe]  ;;  %v692_v54 = vrot.slane %v654_v47, 1  ;;  %v1485_v34 = vrot.slane %v1453_v27, 1  ;;  %v1180_v50 = vunpack.c.l.bf16 %v2331_v42 }
  0x6b   : > { %v715_v53 = vunpack.c.l.bf16 %v707_v46 }
  0x6c   : > { %v694_v4 = vsel %vm221_vm1, %v692_v54, %v693_v55  ;;  %v1487_v43 = vsel %vm221_vm1, %v1485_v34, %v1486_v35 }
  0x6d   : > { %v744_v63 = vrot.slane %v715_v53, 2  ;;  %v2799_v53 = vld [vmem:[%s3108_s2] ss:$0 sm:$0xff] }
  0x6e   : > { %2308 = vmatmul.msk.f32.gmra.mxu3 %vm249_vm0, %v1042_v58  ;;  %2258 = vmatmul.msk.f32.gmra.mxu0 %vm249_vm0, %v737_v62  ;;  %v641_v58 = vld [vmem:[%s2567_s25 + $0x3c] sm:$0x1]  ;;  %v1050_v62 = vrot.slane %v896_v37, 2  ;;  %v1204_v37 = vrot.slane %v1179_v32, 1  ;;  %v1182_v32 = vunpack.c.l.bf16 %v2333_v24 }
  0x6f   : > { %v657_v5 = vunpack.c.l.bf16 %v641_v58  ;;  %v2376_v58 = vld [vmem:[%s2567_s25 + $0x20] sm:$0xf] }
  0x70   : > { %v1051_v8 = vsel %vm725_vm2, %v1049_v61, %v1050_v62  ;;  %v1205_v47 = vsel %vm221_vm1, %v1203_v36, %v1204_v37  ;;  %v1207_v61 = vrot.slane %v1180_v50, 1  ;;  %v2323_v62 = vld [vmem:[%s2567_s25 + $0x18] sm:$0xf]  ;;  %v1457_v3 = vunpack.c.l.bf16 %v2376_v58  ;;  %v2358_v36 = vld [vmem:[%s2567_s25 + $0x28] sm:$0xf] }
  0x71   : > { %v696_v15 = vrot.slane %v657_v5, 1  ;;  %v1162_v6 = vunpack.c.l.bf16 %v2323_v62  ;;  %v1213_v45 = vrot.slane %v1182_v32, 1  ;;  %v2359_v62 = vld [vmem:[%s2567_s25 + $0x30] sm:$0xf] }
  0x72   : > { %2292 = vmatmul.msk.f32.gmra.mxu2 %vm249_vm0, %v929_v10  ;;  %2267 = vmatmul.msk.f32.gmra.mxu1 %vm249_vm0, %v688_v14  ;;  %v746_v10 = vsel %vm725_vm2, %v744_v63, %v745_v0  ;;  %v695_v14 = vrot.slane %v656_v7, 1  ;;  %v2332_v63 = vld [vmem:[%s2567_s25 + $0x1c] sm:$0x1] }
  0x73   : > { %v1181_v7 = vunpack.c.l.bf16 %v2332_v63 }
  0x76   : > { %2309 = vmatmul.msk.f32.gmra.mxu3 %vm249_vm0, %v1045_v20  ;;  %2259 = vmatmul.msk.f32.gmra.mxu0 %vm249_vm0, %v740_v23  ;;  %v748_v20 = vrot.slane %v657_v5, 2  ;;  %v697_v23 = vsel %vm221_vm1, %v695_v14, %v696_v15  ;;  %v1491_v15 = vrot.slane %v1457_v3, 1 }
  0x78   : > { %v749_v29 = vsel %vm725_vm2, %v747_v19, %v748_v20  ;;  %v1209_v19 = vrot.slane %v1162_v6, 1  ;;  %v1210_v20 = vrot.slane %v1181_v7, 1 }
  0x7a   : > { %2293 = vmatmul.msk.f32.gmra.mxu2 %vm249_vm0, %v932_v30  ;;  %2268 = vmatmul.msk.f32.gmra.mxu1 %vm249_vm0, %v691_v44  ;;  %v2355_v30 = vld [vmem:[%s2567_s25 + $0x10] sm:$0xf]  ;;  %v1455_v44 = vunpack.c.l.bf16 %v2374_v38  ;;  %v1211_v35 = vsel %vm221_vm1, %v1209_v19, %v1210_v20 }
  0x7b   : > { %v1353_v33 = vunpack.c.l.bf16 %v2355_v30 }
  0x7c   : > { %v1488_v56 = vrot.slane %v1455_v44, 1 }
  0x7e   : > { %2310 = vmatmul.msk.f32.gmra.mxu3 %vm249_vm0, %v1048_v48  ;;  %2260 = vmatmul.msk.f32.gmra.mxu0 %vm249_vm0, %v743_v52  ;;  %v2356_v48 = vld [vmem:[%s2567_s25 + $0x18] sm:$0xf]  ;;  %v1490_v5 = vsel %vm221_vm1, %v1488_v56, %v1489_v57 }
  0x7f   : > { %v1354_v55 = vunpack.c.l.bf16 %v2356_v48  ;;  %v2325_v48 = vld [vmem:[%s2567_s25 + $0x28] sm:$0xf] }
  0x80   : > { %v1164_v57 = vunpack.c.l.bf16 %v2325_v48 }
  0x82   : > { %2294 = vmatmul.msk.f32.gmra.mxu2 %vm249_vm0, %v935_v60  ;;  %2269 = vmatmul.msk.f32.gmra.mxu1 %vm249_vm0, %v694_v4  ;;  %v1206_v60 = vrot.slane %v1161_v49, 1  ;;  %v1458_v4 = vunpack.c.l.bf16 %v2377_v59 }
  0x84   : > { %v1492_v16 = vrot.slane %v1458_v4, 1 }
  0x86   : > { %2311 = vmatmul.msk.f32.gmra.mxu3 %vm249_vm0, %v1051_v8  ;;  %2261 = vmatmul.msk.f32.gmra.mxu0 %vm249_vm0, %v746_v10  ;;  %v1208_v10 = vsel %vm221_vm1, %v1206_v60, %v1207_v61  ;;  %v1493_v30 = vsel %vm221_vm1, %v1491_v15, %v1492_v16 }
  0x8a   : > { %2295 = vmatmul.msk.f32.gmra.mxu2 %vm249_vm0, %v938_v18  ;;  %2270 = vmatmul.msk.f32.gmra.mxu1 %vm249_vm0, %v697_v23  ;;  %v1355_v18 = vunpack.c.l.bf16 %v2357_v11  ;;  %v2324_v23 = vld [vmem:[%s2567_s25 + $0x20] sm:$0xf]  ;;  %v2335_v11 = vld [vmem:[%s2567_s25 + $0x34] sm:$0x1] }
  0x8b   : > { %v1184_v19 = vunpack.c.l.bf16 %v2335_v11 }
  0x8d   : > { %v1219_v32 = vrot.slane %v1184_v19, 1 }
  0x8e   : > { %2312 = vmatmul.msk.f32.gmra.mxu3 %vm249_vm0, %v1054_v26  ;;  %2262 = vmatmul.msk.f32.gmra.mxu0 %vm249_vm0, %v749_v29  ;;  %v1460_v29 = vunpack.c.l.bf16 %v2379_v22 }
  0x8f   : > { %v340_v40 = vpop.f32.mrf.mxu1 }
  0x90   : > { %v1495_v41 = vrot.slane %v1460_v29, 1 }
  0x92   : > { %2364 = vmatmul.msk.f32.vlgmr.msra.gmra.mxu2 %vm249_vm0, %v1353_v33  ;;  %2347 = vmatmul.msk.f32.vlgmr.msra.gmra.mxu1 %vm249_vm0, %v1160_v31  ;;  %v1163_v31 = vunpack.c.l.bf16 %v2324_v23  ;;  %v2360_v23 = vld [vmem:[%s2567_s25 + $0x38] sm:$0xf] }
  0x93   : > { %v283_v46 = vpop.f32.mrf.mxu0 }
  0x94   : > { %v341_v51 = vadd.f32 %v340_v40, %v283_v46  ;;  %v1494_v40 = vrot.slane %v1459_v28, 1  ;;  %v1212_v44 = vrot.slane %v1163_v31, 1  ;;  %v2380_v46 = vld [vmem:[%s2567_s25 + $0x30] sm:$0xf] }
  0x95   : > { %v425_v52 = vpop.f32.mrf.mxu2 }
  0x96   : > { %2389 = vmatmul.msk.f32.vlgmr.msra.gmra.mxu3 %vm249_vm0, %v1487_v43  ;;  %v449_v54 = vadd.f32 %v425_v52, %v341_v51  ;;  %2339 = vmatmul.msk.f32.vlgmr.msra.gmra.mxu0 %vm249_vm0, %v1205_v47  ;;  %v1356_v43 = vunpack.c.l.bf16 %v2358_v36  ;;  %v2381_v47 = vld [vmem:[%s2567_s25 + $0x34] sm:$0x1]  ;;  %v1496_v56 = vsel %vm221_vm1, %v1494_v40, %v1495_v41  ;;  %v1214_v61 = vsel %vm221_vm1, %v1212_v44, %v1213_v45  ;;  %v2336_v36 = vld [vmem:[%s2567_s25 + $0x3c] sm:$0x1] }
  0x97   : > { %v343_v1 = vpop.f32.mrf.mxu1  ;;  %v1185_v45 = vunpack.c.l.bf16 %v2336_v36 }
  0x99   : > { %v565_v0 = vpop.f32.mrf.mxu3 }
  0x9a   : > { %v589_v2 = vadd.f32 %v565_v0, %v449_v54  ;;  %2365 = vmatmul.msk.f32.gmra.mxu2 %vm249_vm0, %v1354_v55  ;;  %2348 = vmatmul.msk.f32.gmra.mxu1 %vm249_vm0, %v1161_v49  ;;  %v2334_v49 = vld [vmem:[%s2567_s25 + $0x2c] sm:$0x1]  ;;  %v1461_v54 = vunpack.c.l.bf16 %v2380_v46  ;;  %v1462_v55 = vunpack.c.l.bf16 %v2381_v47 }
  0x9b   : > { %v286_v9 = vpop.f32.mrf.mxu0  ;;  %v1183_v58 = vunpack.c.l.bf16 %v2334_v49 }
  0x9c   : > { %v601_v8 = vadd.f32 %v2799_v53, %v589_v2  ;;  %v344_v12 = vadd.f32 %v343_v1, %v286_v9  ;;  %v1497_v2 = vrot.slane %v1461_v54, 1  ;;  %v1498_v3 = vrot.slane %v1462_v55, 1  ;;  %v2383_v9 = vld [vmem:[%s2567_s25 + $0x3c] sm:$0x1] }
  0x9d   : > { %v428_v14 = vpop.f32.mrf.mxu2  ;;  %v1216_v7 = vrot.slane %v1183_v58, 1  ;;  %v1464_v16 = vunpack.c.l.bf16 %v2383_v9  ;;  %v1222_v58 = vrot.slane %v1185_v45, 1  ;;  %v2450_v45 = vld [vmem:[%s2567_s25 + $0x1c] sm:$0x1] }
  0x9e   : > { %v609_v13 = vpack.c.bf16 %v601_v8, %v601_v8  ;;  %2390 = vmatmul.msk.f32.gmra.mxu3 %vm249_vm0, %v1490_v5  ;;  %v450_v17 = vadd.f32 %v428_v14, %v344_v12  ;;  %2340 = vmatmul.msk.f32.gmra.mxu0 %vm249_vm0, %v1208_v10  ;;  %v1357_v5 = vunpack.c.l.bf16 %v2359_v62  ;;  %v2382_v8 = vld [vmem:[%s2567_s25 + $0x38] sm:$0xf]  ;;  %v2326_v10 = vld [vmem:[%s2567_s25 + $0x30] sm:$0xf] }
  0x9f   : > { %v346_v26 = vpop.f32.mrf.mxu1  ;;  %v1463_v15 = vunpack.c.l.bf16 %v2382_v8  ;;  %v1501_v28 = vrot.slane %v1464_v16, 1  ;;  %v2362_v8 = vld [vmem:[%s2567_s25 + $0x48] sm:$0xf]  ;;  %v2406_v16 = vld [vmem:[%s2567_s25 + $0xc] sm:$0x1] }
  0xa0   : > { %618 = vst.msk [vmem:[%s2816_s13] sm:$0xf] %vm617_vm3, %v609_v13  ;;  %v1360_v19 = vunpack.c.l.bf16 %v2362_v8 }
  0xa1   : > { %v568_v25 = vpop.f32.mrf.mxu3 }
  0xa2   : > { %v590_v27 = vadd.f32 %v568_v25, %v450_v17  ;;  %2366 = vmatmul.msk.f32.gmra.mxu2 %vm249_vm0, %v1355_v18  ;;  %2349 = vmatmul.msk.f32.gmra.mxu1 %vm249_vm0, %v1162_v6  ;;  %v1215_v6 = vrot.slane %v1164_v57, 1  ;;  %v1499_v17 = vsel %vm221_vm1, %v1497_v2, %v1498_v3  ;;  %v1165_v18 = vunpack.c.l.bf16 %v2326_v10 }
  0xa3   : > { %v289_v34 = vpop.f32.mrf.mxu0 }
  0xa4   : > { %v602_v33 = vadd.f32 %v2799_v53, %v590_v27  ;;  %v347_v37 = vadd.f32 %v346_v26, %v289_v34  ;;  %v1217_v22 = vsel %vm221_vm1, %v1215_v6, %v1216_v7  ;;  %v1500_v27 = vrot.slane %v1463_v15, 1  ;;  %v2385_v34 = vld [vmem:[%s2567_s25 + $0x44] sm:$0x1] }
  0xa5   : > { %v431_v39 = vpop.f32.mrf.mxu2 }
  0xa6   : > { %v610_v38 = vpack.c.bf16 %v602_v33, %v602_v33  ;;  %2391 = vmatmul.msk.f32.gmra.mxu3 %vm249_vm0, %v1493_v30  ;;  %v451_v42 = vadd.f32 %v431_v39, %v347_v37  ;;  %2341 = vmatmul.msk.f32.gmra.mxu0 %vm249_vm0, %v1211_v35  ;;  %v1358_v30 = vunpack.c.l.bf16 %v2360_v23  ;;  %v2384_v33 = vld [vmem:[%s2567_s25 + $0x40] sm:$0xf]  ;;  %v2327_v35 = vld [vmem:[%s2567_s25 + $0x38] sm:$0xf]  ;;  %v1502_v41 = vsel %vm221_vm1, %v1500_v27, %v1501_v28  ;;  %v2422_v27 = vld [vmem:[%s2567_s25 + $0x8] sm:$0xe] }
  0xa7   : > { %v349_v51 = vpop.f32.mrf.mxu1  ;;  %v1465_v40 = vunpack.c.l.bf16 %v2384_v33  ;;  %v1166_v44 = vunpack.c.l.bf16 %v2327_v35  ;;  %v1689_v35 = vunpack.c.l.bf16 %v2422_v27 }
  0xa8   : > { %619 = vst.msk [vmem:[%s2816_s13 + $0x4] sm:$0xf] %vm617_vm3, %v610_v38 }
  0xa9   : > { %v571_v50 = vpop.f32.mrf.mxu3  ;;  %v1503_v54 = vrot.slane %v1465_v40, 1 }
  0xaa   : > { %v591_v52 = vadd.f32 %v571_v50, %v451_v42  ;;  %2367 = vmatmul.msk.f32.gmra.mxu2 %vm249_vm0, %v1356_v43  ;;  %2350 = vmatmul.msk.f32.gmra.mxu1 %vm249_vm0, %v1163_v31  ;;  %v1218_v31 = vrot.slane %v1165_v18, 1  ;;  %v2361_v42 = vld [vmem:[%s2567_s25 + $0x40] sm:$0xf]  ;;  %v1466_v43 = vunpack.c.l.bf16 %v2385_v34 }
  0xab   : > { %v292_v60 = vpop.f32.mrf.mxu0 }
  0xac   : > { %v603_v59 = vadd.f32 %v2799_v53, %v591_v52  ;;  %v350_v63 = vadd.f32 %v349_v51, %v292_v60  ;;  %v1220_v48 = vsel %vm221_vm1, %v1218_v31, %v1219_v32  ;;  %v1359_v52 = vunpack.c.l.bf16 %v2361_v42  ;;  %v2387_v60 = vld [vmem:[%s2567_s25 + $0x4c] sm:$0x1] }
  0xad   : > { %v434_v1 = vpop.f32.mrf.mxu2 }
  0xae   : > { %v611_v0 = vpack.c.bf16 %v603_v59, %v603_v59  ;;  %2392 = vmatmul.msk.f32.gmra.mxu3 %vm249_vm0, %v1496_v56  ;;  %v452_v4 = vadd.f32 %v434_v1, %v350_v63  ;;  %2342 = vmatmul.msk.f32.gmra.mxu0 %vm249_vm0, %v1214_v61  ;;  %v1504_v56 = vrot.slane %v1466_v43, 1  ;;  %v2386_v59 = vld [vmem:[%s2567_s25 + $0x48] sm:$0xf]  ;;  %v2328_v63 = vld [vmem:[%s2567_s25 + $0x40] sm:$0xf] }
  0xaf   : > { %v352_v13 = vpop.f32.mrf.mxu1  ;;  %v1467_v3 = vunpack.c.l.bf16 %v2386_v59  ;;  %v1167_v9 = vunpack.c.l.bf16 %v2328_v63  ;;  %v1865_v59 = vunpack.c.l.bf16 %v2450_v45 }
  0xb0   : > { %620 = vst.msk [vmem:[%s2816_s13 + $0x8] sm:$0xf] %vm617_vm3, %v611_v0  ;;  %v2337_v0 = vld [vmem:[%s2567_s25 + $0x44] sm:$0x1]  ;;  %v1505_v2 = vsel %vm221_vm1, %v1503_v54, %v1504_v56  ;;  %v1705_v54 = vrot.slane %v1689_v35, 2 }
  0xb1   : > { %v574_v12 = vpop.f32.mrf.mxu3  ;;  %v1186_v10 = vunpack.c.l.bf16 %v2337_v0  ;;  %v1224_v23 = vrot.slane %v1167_v9, 1  ;;  %v2473_v56 = vld [vmem:[%s2567_s25 + $0x18] sm:$0xe]  ;;  %v2423_v0 = vld [vmem:[%s2567_s25 + $0x10] sm:$0xe] }
  0xb2   : > { %v592_v14 = vadd.f32 %v574_v12, %v452_v4  ;;  %2368 = vmatmul.msk.f32.gmra.mxu2 %vm249_vm0, %v1357_v5  ;;  %2351 = vmatmul.msk.f32.gmra.mxu1 %vm249_vm0, %v1164_v57  ;;  %v1221_v57 = vrot.slane %v1166_v44, 1  ;;  %v1468_v4 = vunpack.c.l.bf16 %v2387_v60  ;;  %v2447_v12 = vld [vmem:[%s2567_s25 + $0x10] sm:$0xf] }
  0xb3   : > { %v295_v21 = vpop.f32.mrf.mxu0 }
  0xb4   : > { %v604_v20 = vadd.f32 %v2799_v53, %v592_v14  ;;  %v353_v24 = vadd.f32 %v352_v13, %v295_v21  ;;  %v1223_v7 = vsel %vm221_vm1, %v1221_v57, %v1222_v58  ;;  %v2448_v13 = vld [vmem:[%s2567_s25 + $0x14] sm:$0x1]  ;;  %v1507_v21 = vrot.slane %v1468_v4, 1 }
  0xb5   : > { %v437_v26 = vpop.f32.mrf.mxu2 }
  0xb6   : > { %v612_v25 = vpack.c.bf16 %v604_v20, %v604_v20  ;;  %2393 = vmatmul.msk.f32.gmra.mxu3 %vm249_vm0, %v1499_v17  ;;  %v453_v29 = vadd.f32 %v437_v26, %v353_v24  ;;  %2343 = vmatmul.msk.f32.gmra.mxu0 %vm249_vm0, %v1217_v22  ;;  %v2405_v17 = vld [vmem:[%s2567_s25 + $0x8] sm:$0xf]  ;;  %v1506_v20 = vrot.slane %v1467_v3, 1  ;;  %v2472_v22 = vld [vmem:[%s2567_s25 + $0x10] sm:$0xe]  ;;  %v1225_v24 = vrot.slane %v1186_v10, 1 }
  0xb7   : > { %v355_v38 = vpop.f32.mrf.mxu1  ;;  %v1863_v26 = vunpack.c.l.bf16 %v2448_v13  ;;  %v1622_v31 = vunpack.c.l.bf16 %v2405_v17  ;;  %v1994_v33 = vunpack.c.l.bf16 %v2472_v22  ;;  %v1995_v3 = vunpack.c.l.bf16 %v2473_v56 }
  0xb8   : > { %621 = vst.msk [vmem:[%s2816_s13 + $0xc] sm:$0xf] %vm617_vm3, %v612_v25  ;;  %v1862_v25 = vunpack.c.l.bf16 %v2447_v12  ;;  %v1508_v34 = vsel %vm221_vm1, %v1506_v20, %v1507_v21  ;;  %v1690_v10 = vunpack.c.l.bf16 %v2423_v0  ;;  %v2452_v12 = vld [vmem:[%s2567_s25 + $0x24] sm:$0x1]  ;;  %v2929_v21 = vld [vmem:[%s3108_s2] ss:$0 sm:$0xff] }
  0xb9   : > { %v577_v37 = vpop.f32.mrf.mxu3  ;;  %v1895_v40 = vrot.slane %v1863_v26, 1  ;;  %v1654_v42 = vrot.slane %v1622_v31, 1  ;;  %v2014_v22 = vrot.slane %v1865_v59, 2 }
  0xba   : > { %v593_v39 = vadd.f32 %v577_v37, %v453_v29  ;;  %2369 = vmatmul.msk.f32.gmra.mxu2 %vm249_vm0, %v1358_v30  ;;  %2352 = vmatmul.msk.f32.gmra.mxu1 %vm249_vm0, %v1165_v18  ;;  %v1623_v30 = vunpack.c.l.bf16 %v2406_v16 }
  0xbb   : > { %v298_v47 = vpop.f32.mrf.mxu0 }
  0xbc   : > { %v605_v46 = vadd.f32 %v2799_v53, %v593_v39  ;;  %v356_v49 = vadd.f32 %v355_v38, %v298_v47  ;;  %v1226_v38 = vsel %vm221_vm1, %v1224_v23, %v1225_v24  ;;  %v1894_v39 = vrot.slane %v1862_v25, 1 }
  0xbd   : > { %v440_v51 = vpop.f32.mrf.mxu2  ;;  %v1655_v43 = vrot.slane %v1623_v30, 1  ;;  %v1867_v24 = vunpack.c.l.bf16 %v2452_v12 }
  0xbe   : > { %v613_v50 = vpack.c.bf16 %v605_v46, %v605_v46  ;;  %2394 = vmatmul.msk.f32.gmra.mxu3 %vm249_vm0, %v1502_v41  ;;  %v454_v55 = vadd.f32 %v440_v51, %v356_v49  ;;  %2344 = vmatmul.msk.f32.gmra.mxu0 %vm249_vm0, %v1220_v48  ;;  %v2010_v48 = vrot.slane %v1994_v33, 2  ;;  %v2408_v49 = vld [vmem:[%s2567_s25 + $0x14] sm:$0x1]  ;;  %v1896_v57 = vsel %vm221_vm1, %v1894_v39, %v1895_v40  ;;  %v2424_v33 = vld [vmem:[%s2567_s25 + $0x18] sm:$0xe] }
  0xbf   : > { %v358_v62 = vpop.f32.mrf.mxu1  ;;  %v1625_v63 = vunpack.c.l.bf16 %v2408_v49 }
  0xc0   : > { %622 = vst.msk [vmem:[%s2816_s13 + $0x10] sm:$0xf] %vm617_vm3, %v613_v50  ;;  %v2407_v50 = vld [vmem:[%s2567_s25 + $0x10] sm:$0xf] }
  0xc1   : > { %v580_v61 = vpop.f32.mrf.mxu3  ;;  %v1709_v27 = vrot.slane %v1625_v63, 2 }
  0xc2   : > { %v594_v1 = vadd.f32 %v580_v61, %v454_v55  ;;  %2370 = vmatmul.msk.f32.gmra.mxu2 %vm249_vm0, %v1359_v52  ;;  %2353 = vmatmul.msk.f32.gmra.mxu1 %vm249_vm0, %v1166_v44  ;;  %v2449_v44 = vld [vmem:[%s2567_s25 + $0x18] sm:$0xf]  ;;  %v2011_v52 = vrot.slane %v1863_v26, 2  ;;  %v1706_v55 = vrot.slane %v1623_v30, 2  ;;  %v1708_v26 = vrot.slane %v1690_v10, 2 }
  0xc3   : > { %v301_v6 = vpop.f32.mrf.mxu0  ;;  %v1864_v58 = vunpack.c.l.bf16 %v2449_v44 }
  0xc4   : > { %v606_v5 = vadd.f32 %v2799_v53, %v594_v1  ;;  %v359_v11 = vadd.f32 %v358_v62, %v301_v6  ;;  %v1656_v62 = vsel %vm221_vm1, %v1654_v42, %v1655_v43  ;;  %v1624_v1 = vunpack.c.l.bf16 %v2407_v50 }
  0xc5   : > { %v443_v15 = vpop.f32.mrf.mxu2  ;;  %v2012_v4 = vsel %vm725_vm2, %v2010_v48, %v2011_v52  ;;  %v1897_v8 = vrot.slane %v1864_v58, 1  ;;  %v1710_v42 = vsel %vm725_vm2, %v1708_v26, %v1709_v27  ;;  %v1691_v43 = vunpack.c.l.bf16 %v2424_v33  ;;  %v2454_v48 = vld [vmem:[%s2567_s25 + $0x2c] sm:$0x1]  ;;  %v2411_v52 = vld [vmem:[%s2567_s25 + $0x20] sm:$0xf] }
  0xc6   : > { %v614_v14 = vpack.c.bf16 %v606_v5, %v606_v5  ;;  %2395 = vmatmul.msk.f32.gmra.mxu3 %vm249_vm0, %v1505_v2  ;;  %v455_v18 = vadd.f32 %v443_v15, %v359_v11  ;;  %2345 = vmatmul.msk.f32.gmra.mxu0 %vm249_vm0, %v1223_v7  ;;  %v1707_v5 = vsel %vm725_vm2, %v1705_v54, %v1706_v55  ;;  %v2451_v11 = vld [vmem:[%s2567_s25 + $0x20] sm:$0xf]  ;;  %v1658_v15 = vrot.slane %v1625_v63, 1  ;;  %v2475_v58 = vld [vmem:[%s2567_s25 + $0x28] sm:$0xe] }
  0xc7   : > { %v361_v29 = vpop.f32.mrf.mxu1  ;;  %v1866_v23 = vunpack.c.l.bf16 %v2451_v11  ;;  %v2425_v63 = vld [vmem:[%s2567_s25 + $0x20] sm:$0xe] }
  0xc8   : > { %623 = vst.msk [vmem:[%s2816_s13 + $0x14] sm:$0xf] %vm617_vm3, %v614_v14  ;;  %v1657_v14 = vrot.slane %v1624_v1, 1 }
  0xc9   : > { %v583_v28 = vpop.f32.mrf.mxu3 }
  0xca   : > { %v595_v32 = vadd.f32 %v583_v28, %v455_v18  ;;  %2371 = vmatmul.msk.f32.gmra.mxu2 %vm249_vm0, %v1360_v19  ;;  %2354 = vmatmul.msk.f32.gmra.mxu1 %vm249_vm0, %v1167_v9  ;;  %v1898_v9 = vrot.slane %v1865_v59, 1  ;;  %v2013_v18 = vrot.slane %v1995_v3, 2  ;;  %v2409_v19 = vld [vmem:[%s2567_s25 + $0x18] sm:$0xf]  ;;  %v2474_v28 = vld [vmem:[%s2567_s25 + $0x20] sm:$0xe]  ;;  %v1659_v31 = vsel %vm221_vm1, %v1657_v14, %v1658_v15 }
  0xcb   : > { %v304_v37 = vpop.f32.mrf.mxu0  ;;  %v1996_v39 = vunpack.c.l.bf16 %v2474_v28  ;;  %v1711_v59 = vrot.slane %v1691_v43, 2  ;;  %v2476_v28 = vld [vmem:[%s2567_s25 + $0x30] sm:$0xe] }
  0xcc   : > { %v607_v36 = vadd.f32 %v2799_v53, %v595_v32  ;;  %v362_v41 = vadd.f32 %v361_v29, %v304_v37  ;;  %v1899_v25 = vsel %vm221_vm1, %v1897_v8, %v1898_v9  ;;  %v1900_v37 = vrot.slane %v1866_v23, 1  ;;  %v2413_v23 = vld [vmem:[%s2567_s25 + $0x28] sm:$0xf] }
  0xcd   : > { %v446_v47 = vpop.f32.mrf.mxu2  ;;  %v2016_v56 = vrot.slane %v1996_v39, 2  ;;  %v1692_v8 = vunpack.c.l.bf16 %v2425_v63  ;;  %v1998_v39 = vunpack.c.l.bf16 %v2476_v28 }
  0xce   : > { %v615_v46 = vpack.c.bf16 %v607_v36, %v607_v36  ;;  %2396 = vmatmul.msk.f32.gmra.mxu3 %vm249_vm0, %v1508_v34  ;;  %v456_v51 = vadd.f32 %v446_v47, %v362_v41  ;;  %2346 = vmatmul.msk.f32.gmra.mxu0 %vm249_vm0, %v1226_v38  ;;  %v1626_v34 = vunpack.c.l.bf16 %v2409_v19  ;;  %v2015_v36 = vsel %vm725_vm2, %v2013_v18, %v2014_v22  ;;  %v2453_v47 = vld [vmem:[%s2567_s25 + $0x28] sm:$0xf]  ;;  %v2456_v18 = vld [vmem:[%s2567_s25 + $0x34] sm:$0x1]  ;;  %v2414_v22 = vld [vmem:[%s2567_s25 + $0x2c] sm:$0x1] }
  0xcf   : > { %v843_v61 = vpop.f32.mrf.mxu1  ;;  %v1901_v38 = vrot.slane %v1867_v24, 1  ;;  %v1714_v26 = vrot.slane %v1692_v8, 2 }
  0xd0   : > { %624 = vst.msk [vmem:[%s2816_s13 + $0x18] sm:$0xf] %vm617_vm3, %v615_v46  ;;  %v1660_v45 = vrot.slane %v1626_v34, 1 }
  0xd1   : > { %v586_v60 = vpop.f32.mrf.mxu3  ;;  %v1902_v55 = vsel %vm221_vm1, %v1900_v37, %v1901_v38  ;;  %v1630_v37 = vunpack.c.l.bf16 %v2413_v23 }
  0xd2   : > { %v596_v2 = vadd.f32 %v586_v60, %v456_v51  ;;  %2464 = vmatmul.msk.f32.vlgmr.msrb.gmra.mxu2 %vm249_vm0, %v1896_v57  ;;  %2439 = vmatmul.msk.f32.vlgmr.msrb.gmra.mxu1 %vm249_vm0, %v1656_v62  ;;  %v2412_v51 = vld [vmem:[%s2567_s25 + $0x24] sm:$0x1]  ;;  %v2017_v57 = vrot.slane %v1867_v24, 2  ;;  %v1869_v62 = vunpack.c.l.bf16 %v2454_v48  ;;  %v2458_v48 = vld [vmem:[%s2567_s25 + $0x3c] sm:$0x1] }
  0xd3   : > { %v786_v7 = vpop.f32.mrf.mxu0  ;;  %v1629_v3 = vunpack.c.l.bf16 %v2412_v51 }
  0xd4   : > { %v608_v6 = vadd.f32 %v2799_v53, %v596_v2  ;;  %v844_v13 = vadd.f32 %v843_v61, %v786_v7  ;;  %v2410_v53 = vld [vmem:[%s2567_s25 + $0x1c] sm:$0x1]  ;;  %v1868_v61 = vunpack.c.l.bf16 %v2453_v47  ;;  %v2018_v7 = vsel %vm725_vm2, %v2016_v56, %v2017_v57  ;;  %v2457_v47 = vld [vmem:[%s2567_s25 + $0x38] sm:$0xf]  ;;  %v2416_v56 = vld [vmem:[%s2567_s25 + $0x34] sm:$0x1] }
  0xd5   : > { %v975_v17 = vpop.f32.mrf.mxu2  ;;  %v1627_v32 = vunpack.c.l.bf16 %v2410_v53  ;;  %v1715_v27 = vrot.slane %v1629_v3, 2  ;;  %v2415_v57 = vld [vmem:[%s2567_s25 + $0x30] sm:$0xf] }
  0xd6   : > { %v616_v16 = vpack.c.bf16 %v608_v6, %v608_v6  ;;  %2481 = vmatmul.msk.f32.vlgmr.msrb.gmra.mxu3 %vm249_vm0, %v2012_v4  ;;  %v999_v20 = vadd.f32 %v975_v17, %v844_v13  ;;  %2431 = vmatmul.msk.f32.vlgmr.msrb.gmra.mxu0 %vm249_vm0, %v1707_v5  ;;  %v1628_v4 = vunpack.c.l.bf16 %v2411_v52  ;;  %v1997_v6 = vunpack.c.l.bf16 %v2475_v58  ;;  %v2455_v17 = vld [vmem:[%s2567_s25 + $0x30] sm:$0xf] }
  0xd7   : > { %v846_v30 = vpop.f32.mrf.mxu1  ;;  %v1661_v46 = vrot.slane %v1627_v32, 1  ;;  %v1712_v60 = vrot.slane %v1627_v32, 2  ;;  %v1903_v12 = vrot.slane %v1868_v61, 1  ;;  %v1904_v13 = vrot.slane %v1869_v62, 1 }
  0xd8   : > { %625 = vst.msk [vmem:[%s2816_s13 + $0x1c] sm:$0xf] %vm617_vm3, %v616_v16  ;;  %v1663_v15 = vrot.slane %v1628_v4, 1  ;;  %v1664_v16 = vrot.slane %v1629_v3, 1  ;;  %v1873_v61 = vunpack.c.l.bf16 %v2458_v48 }
  0xd9   : > { %v1091_v29 = vpop.f32.mrf.mxu3  ;;  %v1662_v2 = vsel %vm221_vm1, %v1660_v45, %v1661_v46  ;;  %v1713_v11 = vsel %vm725_vm2, %v1711_v59, %v1712_v60  ;;  %v1872_v60 = vunpack.c.l.bf16 %v2457_v47 }
  0xda   : > { %v1115_v35 = vadd.f32 %v1091_v29, %v999_v20  ;;  %2465 = vmatmul.msk.f32.gmra.mxu2 %vm249_vm0, %v1899_v25  ;;  %2440 = vmatmul.msk.f32.gmra.mxu1 %vm249_vm0, %v1659_v31  ;;  %v2019_v20 = vrot.slane %v1997_v6, 2  ;;  %v2020_v25 = vrot.slane %v1869_v62, 2  ;;  %v1905_v29 = vsel %vm221_vm1, %v1903_v12, %v1904_v13  ;;  %v2427_v6 = vld [vmem:[%s2567_s25 + $0x30] sm:$0xe] }
  0xdb   : > { %v789_v41 = vpop.f32.mrf.mxu0  ;;  %v1871_v31 = vunpack.c.l.bf16 %v2456_v18  ;;  %v1665_v34 = vsel %vm221_vm1, %v1663_v15, %v1664_v16  ;;  %v1694_v16 = vunpack.c.l.bf16 %v2427_v6 }
  0xdc   : > { %v1127_v40 = vadd.f32 %v2929_v21, %v1115_v35  ;;  %v847_v44 = vadd.f32 %v846_v30, %v789_v41  ;;  %v1870_v30 = vunpack.c.l.bf16 %v2455_v17  ;;  %v1631_v35 = vunpack.c.l.bf16 %v2414_v22 }
  0xdd   : > { %v978_v50 = vpop.f32.mrf.mxu2  ;;  %v1716_v41 = vsel %vm725_vm2, %v1714_v26, %v1715_v27  ;;  %v1907_v45 = vrot.slane %v1871_v31, 1  ;;  %v2023_v59 = vrot.slane %v1871_v31, 2  ;;  %v1720_v31 = vrot.slane %v1694_v16, 2 }
  0xde   : > { %v1135_v49 = vpack.c.bf16 %v1127_v40, %v1127_v40  ;;  %2482 = vmatmul.msk.f32.gmra.mxu3 %vm249_vm0, %v2015_v36  ;;  %v1000_v54 = vadd.f32 %v978_v50, %v847_v44  ;;  %2432 = vmatmul.msk.f32.gmra.mxu0 %vm249_vm0, %v1710_v42  ;;  %v2426_v36 = vld [vmem:[%s2567_s25 + $0x28] sm:$0xe]  ;;  %v2021_v40 = vsel %vm725_vm2, %v2019_v20, %v2020_v25  ;;  %v1906_v44 = vrot.slane %v1870_v30, 1  ;;  %v2460_v20 = vld [vmem:[%s2567_s25 + $0x44] sm:$0x1] }
  0xdf   : > { %v849_v1 = vpop.f32.mrf.mxu1  ;;  %v1693_v46 = vunpack.c.l.bf16 %v2426_v36  ;;  %v1666_v50 = vrot.slane %v1630_v37, 1  ;;  %v1667_v51 = vrot.slane %v1631_v35, 1  ;;  %v2417_v25 = vld [vmem:[%s2567_s25 + $0x38] sm:$0xf]  ;;  %v2478_v30 = vld [vmem:[%s2567_s25 + $0x40] sm:$0xe] }
  0xe0   : > { %2313 = vst.msk [vmem:[%s2816_s13 + $0x20] sm:$0xf] %vm617_vm3, %v1135_v49  ;;  %v1908_v62 = vsel %vm221_vm1, %v1906_v44, %v1907_v45 }
  0xe1   : > { %v1094_v0 = vpop.f32.mrf.mxu3  ;;  %v1717_v63 = vrot.slane %v1693_v46, 2  ;;  %v1668_v4 = vsel %vm221_vm1, %v1666_v50, %v1667_v51 }
  0xe2   : > { %v1116_v5 = vadd.f32 %v1094_v0, %v1000_v54  ;;  %2466 = vmatmul.msk.f32.gmra.mxu2 %vm249_vm0, %v1902_v55  ;;  %2441 = vmatmul.msk.f32.gmra.mxu1 %vm249_vm0, %v1662_v2  ;;  %v2022_v55 = vrot.slane %v1998_v39, 2  ;;  %v1718_v0 = vrot.slane %v1631_v35, 2  ;;  %v2428_v35 = vld [vmem:[%s2567_s25 + $0x38] sm:$0xe] }
  0xe3   : > { %v792_v10 = vpop.f32.mrf.mxu0  ;;  %v1695_v44 = vunpack.c.l.bf16 %v2428_v35 }
  0xe4   : > { %v1128_v9 = vadd.f32 %v2929_v21, %v1116_v5  ;;  %v850_v14 = vadd.f32 %v849_v1, %v792_v10  ;;  %v2477_v1 = vld [vmem:[%s2567_s25 + $0x38] sm:$0xe]  ;;  %v1633_v5 = vunpack.c.l.bf16 %v2416_v56  ;;  %v1909_v10 = vrot.slane %v1872_v60, 1  ;;  %v2419_v60 = vld [vmem:[%s2567_s25 + $0x40] sm:$0xf] }
  0xe5   : > { %v981_v19 = vpop.f32.mrf.mxu2  ;;  %v1999_v12 = vunpack.c.l.bf16 %v2477_v1  ;;  %v1719_v15 = vsel %vm725_vm2, %v1717_v63, %v1718_v0  ;;  %v1723_v63 = vrot.slane %v1695_v44, 2 }
  0xe6   : > { %v1136_v53 = vpack.c.bf16 %v1128_v9, %v1128_v9  ;;  %2483 = vmatmul.msk.f32.gmra.mxu3 %vm249_vm0, %v2018_v7  ;;  %v1001_v24 = vadd.f32 %v981_v19, %v850_v14  ;;  %2433 = vmatmul.msk.f32.gmra.mxu0 %vm249_vm0, %v1713_v11  ;;  %v1632_v7 = vunpack.c.l.bf16 %v2415_v57  ;;  %v2024_v9 = vsel %vm725_vm2, %v2022_v55, %v2023_v59  ;;  %v2459_v19 = vld [vmem:[%s2567_s25 + $0x40] sm:$0xf]  ;;  %v2462_v55 = vld [vmem:[%s2567_s25 + $0x4c] sm:$0x1]  ;;  %v2420_v59 = vld [vmem:[%s2567_s25 + $0x44] sm:$0x1] }
  0xe7   : > { %v852_v33 = vpop.f32.mrf.mxu1  ;;  %v1910_v11 = vrot.slane %v1873_v61, 1  ;;  %v2025_v28 = vrot.slane %v1999_v12, 2 }
  0xe8   : > { %2314 = vst.msk [vmem:[%s2816_s13 + $0x24] sm:$0xf] %vm617_vm3, %v1136_v53  ;;  %v1669_v18 = vrot.slane %v1632_v7, 1  ;;  %v1670_v53 = vrot.slane %v1633_v5, 1 }
  0xe9   : > { %v1097_v32 = vpop.f32.mrf.mxu3  ;;  %v1911_v27 = vsel %vm221_vm1, %v1909_v10, %v1910_v11  ;;  %v1636_v10 = vunpack.c.l.bf16 %v2419_v60 }
  0xea   : > { %v1117_v38 = vadd.f32 %v1097_v32, %v1001_v24  ;;  %2467 = vmatmul.msk.f32.gmra.mxu2 %vm249_vm0, %v1905_v29  ;;  %2442 = vmatmul.msk.f32.gmra.mxu1 %vm249_vm0, %v1665_v34  ;;  %v2418_v24 = vld [vmem:[%s2567_s25 + $0x3c] sm:$0x1]  ;;  %v2026_v29 = vrot.slane %v1873_v61, 2  ;;  %v1721_v32 = vrot.slane %v1633_v5, 2  ;;  %v1875_v34 = vunpack.c.l.bf16 %v2460_v20 }
  0xeb   : > { %v795_v43 = vpop.f32.mrf.mxu0  ;;  %v1635_v39 = vunpack.c.l.bf16 %v2418_v24  ;;  %v1675_v20 = vrot.slane %v1636_v10, 1 }
  0xec   : > { %v1129_v42 = vadd.f32 %v2929_v21, %v1117_v38  ;;  %v853_v49 = vadd.f32 %v852_v33, %v795_v43  ;;  %v1874_v33 = vunpack.c.l.bf16 %v2459_v19  ;;  %v1671_v38 = vsel %vm221_vm1, %v1669_v18, %v1670_v53 }
  0xed   : > { %v984_v54 = vpop.f32.mrf.mxu2  ;;  %v2027_v43 = vsel %vm725_vm2, %v2025_v28, %v2026_v29  ;;  %v1722_v47 = vsel %vm725_vm2, %v1720_v31, %v1721_v32  ;;  %v1724_v0 = vrot.slane %v1635_v39, 2 }
  0xee   : > { %v1137_v52 = vpack.c.bf16 %v1129_v42, %v1129_v42  ;;  %2484 = vmatmul.msk.f32.gmra.mxu3 %vm249_vm0, %v2021_v40  ;;  %v1002_v58 = vadd.f32 %v984_v54, %v853_v49  ;;  %2434 = vmatmul.msk.f32.gmra.mxu0 %vm249_vm0, %v1716_v41  ;;  %v1634_v40 = vunpack.c.l.bf16 %v2417_v25  ;;  %v2000_v42 = vunpack.c.l.bf16 %v2478_v30  ;;  %v2461_v54 = vld [vmem:[%s2567_s25 + $0x48] sm:$0xf] }
  0xef   : > { %v855_v3 = vpop.f32.mrf.mxu1  ;;  %v1912_v48 = vrot.slane %v1874_v33, 1  ;;  %v1913_v49 = vrot.slane %v1875_v34, 1 }
  0xf0   : > { %2315 = vst.msk [vmem:[%s2816_s13 + $0x28] sm:$0xf] %vm617_vm3, %v1137_v52  ;;  %v1672_v51 = vrot.slane %v1634_v40, 1  ;;  %v1673_v52 = vrot.slane %v1635_v39, 1 }
  0xf1   : > { %v1100_v2 = vpop.f32.mrf.mxu3  ;;  %v1914_v1 = vsel %vm221_vm1, %v1912_v48, %v1913_v49 }
  0xf2   : > { %v1118_v8 = vadd.f32 %v1100_v2, %v1002_v58  ;;  %2468 = vmatmul.msk.f32.gmra.mxu2 %vm249_vm0, %v1908_v62  ;;  %2443 = vmatmul.msk.f32.gmra.mxu1 %vm249_vm0, %v1668_v4  ;;  %v2028_v58 = vrot.slane %v2000_v42, 2  ;;  %v2029_v62 = vrot.slane %v1875_v34, 2  ;;  %v1876_v2 = vunpack.c.l.bf16 %v2461_v54  ;;  %v2479_v4 = vld [vmem:[%s2567_s25 + $0x48] sm:$0xe] }
  0xf3   : > { %v798_v14 = vpop.f32.mrf.mxu0  ;;  %v1674_v7 = vsel %vm221_vm1, %v1672_v51, %v1673_v52  ;;  %v3048_v52 = vld [vmem:[%s3108_s2] ss:$0 sm:$0xff] }
  0xf4   : > { %v1130_v13 = vadd.f32 %v2929_v21, %v1118_v8  ;;  %v856_v17 = vadd.f32 %v855_v3, %v798_v14  ;;  %v1877_v3 = vunpack.c.l.bf16 %v2462_v55  ;;  %v1637_v8 = vunpack.c.l.bf16 %v2420_v59 }
  0xf5   : > { %v987_v23 = vpop.f32.mrf.mxu2  ;;  %v2030_v12 = vsel %vm725_vm2, %v2028_v58, %v2029_v62  ;;  %v2001_v14 = vunpack.c.l.bf16 %v2479_v4 }
  0xf6   : > { %v1138_v22 = vpack.c.bf16 %v1130_v13, %v1130_v13  ;;  %2485 = vmatmul.msk.f32.gmra.mxu3 %vm249_vm0, %v2024_v9  ;;  %v1003_v26 = vadd.f32 %v987_v23, %v856_v17  ;;  %2435 = vmatmul.msk.f32.gmra.mxu0 %vm249_vm0, %v1719_v15  ;;  %v2429_v9 = vld [vmem:[%s2567_s25 + $0x40] sm:$0xe]  ;;  %v1725_v13 = vsel %vm725_vm2, %v1723_v63, %v1724_v0  ;;  %v1915_v17 = vrot.slane %v1876_v2, 1 }
  0xf7   : > { %v858_v37 = vpop.f32.mrf.mxu1  ;;  %v1916_v18 = vrot.slane %v1877_v3, 1  ;;  %v1696_v53 = vunpack.c.l.bf16 %v2429_v9  ;;  %v1727_v30 = vrot.slane %v1637_v8, 2 }
  0xf8   : > { %2316 = vst.msk [vmem:[%s2816_s13 + $0x2c] sm:$0xf] %vm617_vm3, %v1138_v22  ;;  %v1676_v22 = vrot.slane %v1637_v8, 1 }
  0xf9   : > { %v1103_v36 = vpop.f32.mrf.mxu3  ;;  %v1917_v28 = vsel %vm221_vm1, %v1915_v17, %v1916_v18  ;;  %v1726_v29 = vrot.slane %v1696_v53, 2 }
  0xfa   : > { %v1119_v41 = vadd.f32 %v1103_v36, %v1003_v26  ;;  %2469 = vmatmul.msk.f32.gmra.mxu2 %vm249_vm0, %v1911_v27  ;;  %2444 = vmatmul.msk.f32.gmra.mxu1 %vm249_vm0, %v1671_v38  ;;  %v2031_v26 = vrot.slane %v2001_v14, 2  ;;  %v2032_v27 = vrot.slane %v1877_v3, 2  ;;  %v1677_v33 = vsel %vm221_vm1, %v1675_v20, %v1676_v22 }
  0xfb   : > { %v801_v46 = vpop.f32.mrf.mxu0  ;;  %v1728_v38 = vsel %vm725_vm2, %v1726_v29, %v1727_v30 }
  0xfc   : > { %v1131_v45 = vadd.f32 %v2929_v21, %v1119_v41  ;;  %v859_v50 = vadd.f32 %v858_v37, %v801_v46  ;;  %v2033_v35 = vsel %vm725_vm2, %v2031_v26, %v2032_v27 }
  0xfd   : > { %v990_v57 = vpop.f32.mrf.mxu2 }
  0xfe   : > { %v1139_v56 = vpack.c.bf16 %v1131_v45, %v1131_v45  ;;  %2486 = vmatmul.msk.f32.gmra.mxu3 %vm249_vm0, %v2027_v43  ;;  %v1004_v61 = vadd.f32 %v990_v57, %v859_v50  ;;  %2436 = vmatmul.msk.f32.gmra.mxu0 %vm249_vm0, %v1722_v47 }
  0xff   : > { %v861_v6 = vpop.f32.mrf.mxu1 }
 0x100   : > { %2317 = vst.msk [vmem:[%s2816_s13 + $0x30] sm:$0xf] %vm617_vm3, %v1139_v56 }
 0x101   : > { %v1106_v5 = vpop.f32.mrf.mxu3 }
 0x102   : > { %v1120_v11 = vadd.f32 %v1106_v5, %v1004_v61  ;;  %2470 = vmatmul.msk.f32.gmra.mxu2 %vm249_vm0, %v1914_v1  ;;  %2445 = vmatmul.msk.f32.gmra.mxu1 %vm249_vm0, %v1674_v7 }
 0x103   : > { %v804_v16 = vpop.f32.mrf.mxu0 }
 0x104   : > { %v1132_v15 = vadd.f32 %v2929_v21, %v1120_v11  ;;  %v862_v19 = vadd.f32 %v861_v6, %v804_v16 }
 0x105   : > { %v993_v24 = vpop.f32.mrf.mxu2 }
 0x106   : > { %v1140_v23 = vpack.c.bf16 %v1132_v15, %v1132_v15  ;;  %2487 = vmatmul.msk.f32.gmra.mxu3 %vm249_vm0, %v2030_v12  ;;  %v1005_v25 = vadd.f32 %v993_v24, %v862_v19  ;;  %2437 = vmatmul.msk.f32.gmra.mxu0 %vm249_vm0, %v1725_v13 }
 0x107   : > { %v864_v32 = vpop.f32.mrf.mxu1 }
 0x108   : > { %2318 = vst.msk [vmem:[%s2816_s13 + $0x34] sm:$0xf] %vm617_vm3, %v1140_v23 }
 0x109   : > { %v1109_v31 = vpop.f32.mrf.mxu3 }
 0x10a   : > { %v1121_v34 = vadd.f32 %v1109_v31, %v1005_v25  ;;  %2471 = vmatmul.msk.f32.gmra.mxu2 %vm249_vm0, %v1917_v28  ;;  %2446 = vmatmul.msk.f32.gmra.mxu1 %vm249_vm0, %v1677_v33 }
 0x10b   : > { %v807_v37 = vpop.f32.mrf.mxu0 }
 0x10c   : > { %v1133_v36 = vadd.f32 %v2929_v21, %v1121_v34  ;;  %v865_v39 = vadd.f32 %v864_v32, %v807_v37 }
 0x10d   : > { %v996_v41 = vpop.f32.mrf.mxu2 }
 0x10e   : > { %v1141_v40 = vpack.c.bf16 %v1133_v36, %v1133_v36  ;;  %2488 = vmatmul.msk.f32.gmra.mxu3 %vm249_vm0, %v2033_v35  ;;  %v1006_v42 = vadd.f32 %v996_v41, %v865_v39  ;;  %2438 = vmatmul.msk.f32.gmra.mxu0 %vm249_vm0, %v1728_v38 }
 0x10f   : > { %v1320_v44 = vpop.f32.mrf.mxu1 }
 0x110   : > { %2319 = vst.msk [vmem:[%s2816_s13 + $0x38] sm:$0xf] %vm617_vm3, %v1141_v40 }
 0x111   : > { %v1112_v43 = vpop.f32.mrf.mxu3 }
 0x112   : > { %v1122_v45 = vadd.f32 %v1112_v43, %v1006_v42 }
 0x113   : > { %v1263_v47 = vpop.f32.mrf.mxu0 }
 0x114   : > { %v1134_v46 = vadd.f32 %v2929_v21, %v1122_v45  ;;  %v1321_v48 = vadd.f32 %v1320_v44, %v1263_v47 }
 0x115   : > { %v1405_v50 = vpop.f32.mrf.mxu2 }
 0x116   : > { %v1142_v49 = vpack.c.bf16 %v1134_v46, %v1134_v46  ;;  %v1429_v51 = vadd.f32 %v1405_v50, %v1321_v48 }
 0x117   : > { %v1323_v55 = vpop.f32.mrf.mxu1 }
 0x118   : > { %2320 = vst.msk [vmem:[%s2816_s13 + $0x3c] sm:$0xf] %vm617_vm3, %v1142_v49 }
 0x119   : > { %v1545_v54 = vpop.f32.mrf.mxu3 }
 0x11a   : > { %v1569_v56 = vadd.f32 %v1545_v54, %v1429_v51 }
 0x11b   : > { %v1266_v21 = vpop.f32.mrf.mxu0 }
 0x11c   : > { %v1581_v57 = vadd.f32 %v3048_v52, %v1569_v56  ;;  %v1324_v58 = vadd.f32 %v1323_v55, %v1266_v21 }
 0x11d   : > { %v1408_v60 = vpop.f32.mrf.mxu2 }
 0x11e   : > { %v1589_v59 = vpack.c.bf16 %v1581_v57, %v1581_v57  ;;  %v1430_v61 = vadd.f32 %v1408_v60, %v1324_v58 }
 0x11f   : > { %v1326_v63 = vpop.f32.mrf.mxu1 }
 0x120   : > { %2397 = vst.msk [vmem:[%s2816_s13 + $0x40] sm:$0xf] %vm617_vm3, %v1589_v59 }
 0x121   : > { %v1548_v62 = vpop.f32.mrf.mxu3 }
 0x122   : > { %v1570_v0 = vadd.f32 %v1548_v62, %v1430_v61  ;;  %v3077_v62 = vld [vmem:[%s3108_s2] ss:$0 sm:$0xff] }
 0x123   : > { %v1269_v2 = vpop.f32.mrf.mxu0 }
 0x124   : > { %v1582_v1 = vadd.f32 %v3048_v52, %v1570_v0  ;;  %v1327_v3 = vadd.f32 %v1326_v63, %v1269_v2 }
 0x125   : > { %v1411_v5 = vpop.f32.mrf.mxu2 }
 0x126   : > { %v1590_v4 = vpack.c.bf16 %v1582_v1, %v1582_v1  ;;  %v1431_v6 = vadd.f32 %v1411_v5, %v1327_v3 }
 0x127   : > { %v1329_v8 = vpop.f32.mrf.mxu1 }
 0x128   : > { %2398 = vst.msk [vmem:[%s2816_s13 + $0x44] sm:$0xf] %vm617_vm3, %v1590_v4 }
 0x129   : > { %v1551_v7 = vpop.f32.mrf.mxu3 }
 0x12a   : > { %v1571_v9 = vadd.f32 %v1551_v7, %v1431_v6 }
 0x12b   : > { %v1272_v11 = vpop.f32.mrf.mxu0 }
 0x12c   : > { %v1583_v10 = vadd.f32 %v3048_v52, %v1571_v9  ;;  %v1330_v12 = vadd.f32 %v1329_v8, %v1272_v11 }
 0x12d   : > { %v1414_v14 = vpop.f32.mrf.mxu2 }
 0x12e   : > { %v1591_v13 = vpack.c.bf16 %v1583_v10, %v1583_v10  ;;  %v1432_v15 = vadd.f32 %v1414_v14, %v1330_v12 }
 0x12f   : > { %v1332_v17 = vpop.f32.mrf.mxu1 }
 0x130   : > { %2399 = vst.msk [vmem:[%s2816_s13 + $0x48] sm:$0xf] %vm617_vm3, %v1591_v13 }
 0x131   : > { %v1554_v16 = vpop.f32.mrf.mxu3 }
 0x132   : > { %v1572_v18 = vadd.f32 %v1554_v16, %v1432_v15 }
 0x133   : > { %v1275_v19 = vpop.f32.mrf.mxu0 }
 0x134   : > { %v1584_v53 = vadd.f32 %v3048_v52, %v1572_v18  ;;  %v1333_v20 = vadd.f32 %v1332_v17, %v1275_v19 }
 0x135   : > { %v1417_v23 = vpop.f32.mrf.mxu2 }
 0x136   : > { %v1592_v22 = vpack.c.bf16 %v1584_v53, %v1584_v53  ;;  %v1433_v24 = vadd.f32 %v1417_v23, %v1333_v20 }
 0x137   : > { %v1335_v26 = vpop.f32.mrf.mxu1 }
 0x138   : > { %2400 = vst.msk [vmem:[%s2816_s13 + $0x4c] sm:$0xf] %vm617_vm3, %v1592_v22 }
 0x139   : > { %v1557_v25 = vpop.f32.mrf.mxu3 }
 0x13a   : > { %v1573_v27 = vadd.f32 %v1557_v25, %v1433_v24 }
 0x13b   : > { %v1278_v29 = vpop.f32.mrf.mxu0 }
 0x13c   : > { %v1585_v28 = vadd.f32 %v3048_v52, %v1573_v27  ;;  %v1336_v30 = vadd.f32 %v1335_v26, %v1278_v29 }
 0x13d   : > { %v1420_v32 = vpop.f32.mrf.mxu2 }
 0x13e   : > { %v1593_v31 = vpack.c.bf16 %v1585_v28, %v1585_v28  ;;  %v1434_v33 = vadd.f32 %v1420_v32, %v1336_v30 }
 0x13f   : > { %v1338_v35 = vpop.f32.mrf.mxu1 }
 0x140   : > { %2401 = vst.msk [vmem:[%s2816_s13 + $0x50] sm:$0xf] %vm617_vm3, %v1593_v31 }
 0x141   : > { %v1560_v34 = vpop.f32.mrf.mxu3 }
 0x142   : > { %v1574_v36 = vadd.f32 %v1560_v34, %v1434_v33 }
 0x143   : > { %v1281_v38 = vpop.f32.mrf.mxu0 }
 0x144   : > { %v1586_v37 = vadd.f32 %v3048_v52, %v1574_v36  ;;  %v1339_v39 = vadd.f32 %v1338_v35, %v1281_v38 }
 0x145   : > { %v1423_v41 = vpop.f32.mrf.mxu2 }
 0x146   : > { %v1594_v40 = vpack.c.bf16 %v1586_v37, %v1586_v37  ;;  %v1435_v42 = vadd.f32 %v1423_v41, %v1339_v39 }
 0x147   : > { %v1341_v44 = vpop.f32.mrf.mxu1 }
 0x148   : > { %2402 = vst.msk [vmem:[%s2816_s13 + $0x54] sm:$0xf] %vm617_vm3, %v1594_v40 }
 0x149   : > { %v1563_v43 = vpop.f32.mrf.mxu3 }
 0x14a   : > { %v1575_v45 = vadd.f32 %v1563_v43, %v1435_v42 }
 0x14b   : > { %v1284_v47 = vpop.f32.mrf.mxu0 }
 0x14c   : > { %v1587_v46 = vadd.f32 %v3048_v52, %v1575_v45  ;;  %v1342_v48 = vadd.f32 %v1341_v44, %v1284_v47 }
 0x14d   : > { %v1426_v50 = vpop.f32.mrf.mxu2 }
 0x14e   : > { %v1595_v49 = vpack.c.bf16 %v1587_v46, %v1587_v46  ;;  %v1436_v51 = vadd.f32 %v1426_v50, %v1342_v48 }
 0x14f   : > { %v1822_v55 = vpop.f32.mrf.mxu1 }
 0x150   : > { %2403 = vst.msk [vmem:[%s2816_s13 + $0x58] sm:$0xf] %vm617_vm3, %v1595_v49 }
 0x151   : > { %v1566_v54 = vpop.f32.mrf.mxu3 }
 0x152   : > { %v1576_v56 = vadd.f32 %v1566_v54, %v1436_v51 }
 0x153   : > { %v1765_v21 = vpop.f32.mrf.mxu0 }
 0x154   : > { %v1588_v57 = vadd.f32 %v3048_v52, %v1576_v56  ;;  %v1823_v58 = vadd.f32 %v1822_v55, %v1765_v21 }
 0x155   : > { %v1954_v60 = vpop.f32.mrf.mxu2 }
 0x156   : > { %v1596_v59 = vpack.c.bf16 %v1588_v57, %v1588_v57  ;;  %v1978_v61 = vadd.f32 %v1954_v60, %v1823_v58 }
 0x157   : > { %v1825_v0 = vpop.f32.mrf.mxu1 }
 0x158   : > { %2404 = vst.msk [vmem:[%s2816_s13 + $0x5c] sm:$0xf] %vm617_vm3, %v1596_v59 }
 0x159   : > { %v2070_v63 = vpop.f32.mrf.mxu3 }
 0x15a   : > { %v2094_v1 = vadd.f32 %v2070_v63, %v1978_v61 }
 0x15b   : > { %v1768_v52 = vpop.f32.mrf.mxu0 }
 0x15c   : > { %v2106_v2 = vadd.f32 %v3077_v62, %v2094_v1  ;;  %v1826_v3 = vadd.f32 %v1825_v0, %v1768_v52 }
 0x15d   : > { %v1957_v5 = vpop.f32.mrf.mxu2 }
 0x15e   : > { %v2114_v4 = vpack.c.bf16 %v2106_v2, %v2106_v2  ;;  %v1979_v6 = vadd.f32 %v1957_v5, %v1826_v3 }
 0x15f   : > { %v1828_v8 = vpop.f32.mrf.mxu1 }
 0x160   : > { %2489 = vst.msk [vmem:[%s2816_s13 + $0x60] sm:$0xf] %vm617_vm3, %v2114_v4 }
 0x161   : > { %v2073_v7 = vpop.f32.mrf.mxu3 }
 0x162   : > { %v2095_v9 = vadd.f32 %v2073_v7, %v1979_v6 }
 0x163   : > { %v1771_v11 = vpop.f32.mrf.mxu0 }
 0x164   : > { %v2107_v10 = vadd.f32 %v3077_v62, %v2095_v9  ;;  %v1829_v12 = vadd.f32 %v1828_v8, %v1771_v11 }
 0x165   : > { %v1960_v14 = vpop.f32.mrf.mxu2 }
 0x166   : > { %v2115_v13 = vpack.c.bf16 %v2107_v10, %v2107_v10  ;;  %v1980_v15 = vadd.f32 %v1960_v14, %v1829_v12 }
 0x167   : > { %v1831_v17 = vpop.f32.mrf.mxu1 }
 0x168   : > { %2490 = vst.msk [vmem:[%s2816_s13 + $0x64] sm:$0xf] %vm617_vm3, %v2115_v13 }
 0x169   : > { %v2076_v16 = vpop.f32.mrf.mxu3 }
 0x16a   : > { %v2096_v18 = vadd.f32 %v2076_v16, %v1980_v15 }
 0x16b   : > { %v1774_v19 = vpop.f32.mrf.mxu0 }
 0x16c   : > { %v2108_v53 = vadd.f32 %v3077_v62, %v2096_v18  ;;  %v1832_v20 = vadd.f32 %v1831_v17, %v1774_v19 }
 0x16d   : > { %v1963_v23 = vpop.f32.mrf.mxu2 }
 0x16e   : > { %v2116_v22 = vpack.c.bf16 %v2108_v53, %v2108_v53  ;;  %v1981_v24 = vadd.f32 %v1963_v23, %v1832_v20 }
 0x16f   : > { %v1834_v26 = vpop.f32.mrf.mxu1 }
 0x170   : > { %2491 = vst.msk [vmem:[%s2816_s13 + $0x68] sm:$0xf] %vm617_vm3, %v2116_v22 }
 0x171   : > { %v2079_v25 = vpop.f32.mrf.mxu3 }
 0x172   : > { %v2097_v27 = vadd.f32 %v2079_v25, %v1981_v24 }
 0x173   : > { %v1777_v29 = vpop.f32.mrf.mxu0 }
 0x174   : > { %v2109_v28 = vadd.f32 %v3077_v62, %v2097_v27  ;;  %v1835_v30 = vadd.f32 %v1834_v26, %v1777_v29 }
 0x175   : > { %v1966_v32 = vpop.f32.mrf.mxu2 }
 0x176   : > { %v2117_v31 = vpack.c.bf16 %v2109_v28, %v2109_v28  ;;  %v1982_v33 = vadd.f32 %v1966_v32, %v1835_v30 }
 0x177   : > { %v1837_v35 = vpop.f32.mrf.mxu1 }
 0x178   : > { %2492 = vst.msk [vmem:[%s2816_s13 + $0x6c] sm:$0xf] %vm617_vm3, %v2117_v31 }
 0x179   : > { %v2082_v34 = vpop.f32.mrf.mxu3 }
 0x17a   : > { %v2098_v36 = vadd.f32 %v2082_v34, %v1982_v33 }
 0x17b   : > { %v1780_v38 = vpop.f32.mrf.mxu0 }
 0x17c   : > { %v2110_v37 = vadd.f32 %v3077_v62, %v2098_v36  ;;  %v1838_v39 = vadd.f32 %v1837_v35, %v1780_v38 }
 0x17d   : > { %v1969_v41 = vpop.f32.mrf.mxu2 }
 0x17e   : > { %v2118_v40 = vpack.c.bf16 %v2110_v37, %v2110_v37  ;;  %v1983_v42 = vadd.f32 %v1969_v41, %v1838_v39 }
 0x17f   : > { %v1840_v44 = vpop.f32.mrf.mxu1 }
 0x180   : > { %2493 = vst.msk [vmem:[%s2816_s13 + $0x70] sm:$0xf] %vm617_vm3, %v2118_v40 }
 0x181   : > { %v2085_v43 = vpop.f32.mrf.mxu3 }
 0x182   : > { %v2099_v45 = vadd.f32 %v2085_v43, %v1983_v42 }
 0x183   : > { %v1783_v47 = vpop.f32.mrf.mxu0 }
 0x184   : > { %v2111_v46 = vadd.f32 %v3077_v62, %v2099_v45  ;;  %v1841_v48 = vadd.f32 %v1840_v44, %v1783_v47 }
 0x185   : > { %v1972_v50 = vpop.f32.mrf.mxu2 }
 0x186   : > { %v2119_v49 = vpack.c.bf16 %v2111_v46, %v2111_v46  ;;  %v1984_v51 = vadd.f32 %v1972_v50, %v1841_v48 }
 0x187   : > { %v1843_v56 = vpop.f32.mrf.mxu1 }
 0x188   : > { %2494 = vst.msk [vmem:[%s2816_s13 + $0x74] sm:$0xf] %vm617_vm3, %v2119_v49 }
 0x189   : > { %v2088_v54 = vpop.f32.mrf.mxu3 }
 0x18a   : > { %v2100_v55 = vadd.f32 %v2088_v54, %v1984_v51 }
 0x18b   : > { %v1786_v21 = vpop.f32.mrf.mxu0 }
 0x18c   : > { %v2112_v57 = vadd.f32 %v3077_v62, %v2100_v55  ;;  %v1844_v58 = vadd.f32 %v1843_v56, %v1786_v21 }
 0x18d   : > { %v1975_v60 = vpop.f32.mrf.mxu2 }
 0x18e   : > { %v2120_v59 = vpack.c.bf16 %v2112_v57, %v2112_v57  ;;  %v1985_v61 = vadd.f32 %v1975_v60, %v1844_v58 }
 0x190   : > { %2495 = vst.msk [vmem:[%s2816_s13 + $0x78] sm:$0xf] %vm617_vm3, %v2120_v59 }
 0x191   : > { %v2091_v63 = vpop.f32.mrf.mxu3 }
 0x192   : > { %v2101_v0 = vadd.f32 %v2091_v63, %v1985_v61 }
 0x194   : > { %v2113_v1 = vadd.f32 %v3077_v62, %v2101_v0 }
 0x196   : > { %v2121_v2 = vpack.c.bf16 %v2113_v1, %v2113_v1 }
 0x198   : > { %2496 = vst.msk [vmem:[%s2816_s13 + $0x7c] sm:$0xf] %vm617_vm3, %v2121_v2 }
 0x199 PF: > { %s13_s12 = sadd.s32 1, %s2519_s12  }
 0x19a   : > { %p10_p4 = scmp.ge.s32.totalorder %s13_s12, 4  }
 0x19c   :  { %12 = sbr.rel (!%p10_p4) target bundleno = 1 (0x1), region = 82 }

// kernel: unetup_origin_forward.5
= control target key start
LH: loop header
LB: loop body
LE: loop exit
PB: predicated region body
PF: predicated region fallthrough
CT: control target
= control target key end

     0   :  { %s4232_s12 = smov 0   ;;  %s5847_s0 = inlined_call_operand.vmem [shape: bf16[2,18,18,4], index: 0, kind: input, shape index: {}]   ;;  %s5848_s1 = inlined_call_operand.vmem [shape: bf16[9,4,4], index: 1, kind: input, shape index: {}]   ;;  %s5849_s2 = inlined_call_operand.vmem [shape: f32[1,4], index: 2, kind: input, shape index: {}]   ;;  %s5850_s3 = inlined_call_operand.vmem [shape: bf16[2,256,4], index: 3, kind: output, shape index: {}]  }
   0x1 LB: > { %s3483_s13 = sadd.s32 4294967295, %s4210_s12   ;;  %p3487_p0 = scmp.ge.s32.totalorder %s4210_s12, 1  ;;  %s4210_s12 = sphi %s4232_s12, %s13_s12  }
   0x2   : > { %p137_p1 = scmp.lt.s32.totalorder %s4210_s12, 3 }
   0x4   : > { %p138_p2 = pnand %p3487_p0, %p137_p1 }
   0x6   : > { %141 = sbr.rel (%p138_p2) target bundleno = 736 (0x2e0), region = 32 }
   0xb   : > { %v3491_v0 = vld [vmem:[%s5848_s1 + $0x2] sm:$0x3]  ;;  %vm466_vm0 = vcmask 1043456   ;;  %p161_p3 = scmp.lt.s32.totalorder %s3483_s13, 1  ;;  %v3558_v2 = vld [vmem:[%s5848_s1 + $0x4] sm:$0x3] }
   0xc   : > { %v400_v1 = vunpack.c.l.bf16 %v3491_v0  ;;  %v3624_v3 = vld [vmem:[%s5848_s1 + $0x6] sm:$0x3]  ;;  %v235_v4 = vld [vmem:[%s5848_s1] sm:$0x3]  ;;  %v894_v5 = vunpack.c.l.bf16 %v3558_v2  ;;  %v3706_v8 = vld [vmem:[%s5848_s1 + $0x8] sm:$0x3] }
   0xd   : > { %s6048_s13 = smov (!%p161_p3, %s3483_s13), 1  ;;  %v1174_v6 = vunpack.c.l.bf16 %v3624_v3  ;;  %v236_v7 = vunpack.c.l.bf16 %v235_v4  ;;  %v1645_v9 = vunpack.c.l.bf16 %v3706_v8  ;;  %vm317_vm1 = vcmask 1046528  }
   0xe   : > { %4190 = vmatpush.msk.msra.mxu1 %vm466_vm0, %v400_v1  ;;  %4191 = vmatpush.msk.msra.mxu2 %vm466_vm0, %v400_v1  ;;  %s4193_s24 = smul.u32 216, %s6048_s13  ;;  %vm401_vm2 = vcmask 31744   ;;  %vm811_vm3 = vcmask 1045504   ;;  %s3990_s11 = sshll.u32 %s6048_s13, 7  ;;  %vm3395_vm4 = vcmask 27648  }
   0xf   : > { %4192 = vmatpush.msk.msra.mxu3 %vm466_vm0, %v400_v1  ;;  %3492 = vmatpush.msk.msra.mxu0 %vm466_vm0, %v400_v1  ;;  %s5534_s16 = scalar_lea.vmem %s5850_s3, %s3990_s11 }
  0x10   : > { %3559 = vmatpush.msk.msrb.mxu2 %vm466_vm0, %v894_v5  ;;  %3525 = vmatpush.msk.msrb.mxu1 %vm466_vm0, %v236_v7  ;;  %s4267_s27 = scalar_lea.vmem %s5847_s0, %s4193_s24 }
  0x11   : > { %3625 = vmatpush.msk.msrb.mxu3 %vm466_vm0, %v1174_v6  ;;  %v4152_v10 = vld [vmem:[%s4267_s27 + $0x30] sm:$0xff]   ;;  %v4154_v11 = vld [vmem:[%s4267_s27 + $0x60] sm:$0xff]   ;;  %3707 = vmatpush.msk.msrb.mxu0 %vm466_vm0, %v1645_v9  ;;  %v4285_v17 = vld [vmem:[%s4267_s27 + $0x38] sm:$0x1] }
  0x12   : > { %v4273_v12 = vld [vmem:[%s4267_s27 + $0x90] sm:$0xff]   ;;  %v4276_v13 = vunpack.c.l.bf16 %v4152_v10  ;;  %v4278_v14 = vunpack.c.h.bf16 %v4152_v10  ;;  %v4280_v15 = vunpack.c.l.bf16 %v4154_v11  ;;  %v4282_v16 = vunpack.c.h.bf16 %v4154_v11  ;;  %v4288_v18 = vld [vmem:[%s4267_s27 + $0x68] sm:$0x1]  ;;  %v4297_v23 = vld [vmem:[%s4267_s27] sm:$0xff]  }
  0x13   : > { %5922 = vst [vmem:[#allocation2_spill] sm:$0xff] %v4273_v12  ;;  %v5855_v19 = vunpack.c.l.bf16 %v4273_v12  ;;  %v4292_v20 = vunpack.c.h.bf16 %v4273_v12  ;;  %v5863_v21 = vunpack.c.l.bf16 %v4285_v17  ;;  %v5858_v22 = vunpack.c.l.bf16 %v4288_v18  ;;  %v4308_v28 = vld [vmem:[%s4267_s27 + $0x98] sm:$0x1]  ;;  %v4326_v35 = vld [vmem:[%s4267_s27 + $0x8] sm:$0x1]  ;;  %v4343_v42 = vld [vmem:[%s4267_s27 + $0x3c] sm:$0xff]  }
  0x14   : > { %v338_v24 = vrot.slane %v4276_v13, 1  ;;  %v4301_v25 = vrot.slane %v4278_v14, 1  ;;  %v358_v26 = vrot.slane %v4280_v15, 1  ;;  %v4305_v27 = vrot.slane %v4282_v16, 1  ;;  %5924 = vst [vmem:[#allocation4_spill] sm:$0xff] %v4308_v28  ;;  %v4346_v43 = vld [vmem:[%s4267_s27 + $0x6c] sm:$0xff]  }
  0x15   : > { %5923 = vst [vmem:[#allocation3_spill] sm:$0xff] %v4292_v20  ;;  %v378_v29 = vrot.slane %v5855_v19, 1  ;;  %v379_v30 = vrot.slane %v4292_v20, 1  ;;  %v5868_v33 = vunpack.c.l.bf16 %v4297_v23  ;;  %v4323_v34 = vunpack.c.h.bf16 %v4297_v23  ;;  %v4353_v47 = vld [vmem:[%s4267_s27 + $0x9c] sm:$0xff]   ;;  %v4376_v58 = vld [vmem:[%s4267_s27 + $0xc] sm:$0xff]  }
  0x16   : > { %v4315_v31 = vsel %vm317_vm1, %v338_v24, %v4301_v25  ;;  %v4319_v32 = vsel %vm317_vm1, %v358_v26, %v4305_v27  ;;  %v5854_v37 = vunpack.c.l.bf16 %v4308_v28  ;;  %v341_v38 = vrot.slane %v5863_v21, 1  ;;  %5925 = vst [vmem:[#allocation5_spill] sm:$0xff] %v4353_v47  ;;  %v4389_v0 = vld [vmem:[%s4267_s27 + $0x44] sm:$0x1]  ;;  %v4399_v5 = vld [vmem:[%s4267_s27 + $0x74] sm:$0x1] }
  0x17   : > { %3501 = vmatmul.msk.f32.vlgmr.msra.gmra.mxu1 %vm401_vm2, %v4315_v31  ;;  %3509 = vmatmul.msk.f32.vlgmr.msra.gmra.mxu2 %vm401_vm2, %v4319_v32  ;;  %v380_v36 = vsel %vm317_vm1, %v378_v29, %v379_v30  ;;  %v361_v39 = vrot.slane %v5858_v22, 1  ;;  %v318_v40 = vrot.slane %v5868_v33, 1  ;;  %v319_v41 = vrot.slane %v4323_v34, 1  ;;  %v4402_v6 = vld [vmem:[%s4267_s27 + $0xa4] sm:$0x1] }
  0x18   : > { %3517 = vmatmul.msk.f32.vlgmr.msra.gmra.mxu3 %vm401_vm2, %v380_v36  ;;  %v381_v44 = vrot.slane %v5854_v37, 1  ;;  %v5866_v45 = vunpack.c.l.bf16 %v4326_v35  ;;  %v5861_v48 = vunpack.c.l.bf16 %v4343_v42  ;;  %v4358_v49 = vunpack.c.h.bf16 %v4343_v42  ;;  %5927 = vst [vmem:[#allocation7_spill] sm:$0xff] %v4402_v6  ;;  %v4498_v19 = vld [vmem:[%s4267_s27 + $0x20] sm:$0x1]  ;;  %v4520_v22 = vld [vmem:[%s4267_s27 + $0x84] sm:$0xff]  }
  0x19   : > { %v320_v46 = vsel %vm317_vm1, %v318_v40, %v319_v41  ;;  %v5857_v50 = vunpack.c.l.bf16 %v4346_v43  ;;  %v342_v51 = vsel %vm317_vm1, %v4301_v25, %v341_v38  ;;  %v362_v52 = vsel %vm317_vm1, %v4305_v27, %v361_v39  ;;  %v4153_v40 = vld [vmem:[%s4267_s27 + $0x48] sm:$0xff]  }
  0x1a   : > { %3493 = vmatmul.msk.f32.vlgmr.msra.gmra.mxu0 %vm401_vm2, %v320_v46  ;;  %v4366_v53 = vunpack.c.h.bf16 %v4346_v43  ;;  %v321_v54 = vrot.slane %v5866_v45, 1  ;;  %v382_v55 = vsel %vm317_vm1, %v379_v30, %v381_v44  ;;  %v5853_v56 = vunpack.c.l.bf16 %v4353_v47  ;;  %v4415_v30 = vld [vmem:[%s4267_s27 + $0x14] sm:$0x1]  ;;  %v4603_v12 = vld [vmem:[%s4267_s27 + $0x2c] sm:$0x1] }
  0x1b   : > { %v4373_v57 = vunpack.c.h.bf16 %v4353_v47  ;;  %v343_v59 = vrot.slane %v5861_v48, 1  ;;  %v344_v60 = vrot.slane %v4358_v49, 1  ;;  %v363_v61 = vrot.slane %v5857_v50, 1  ;;  %v3904_v48 = vld [vmem:[%s5848_s1 + $0xe] sm:$0x3] }
  0x1c   : > { %v364_v62 = vrot.slane %v4366_v53, 1  ;;  %v322_v63 = vsel %vm317_vm1, %v319_v41, %v321_v54  ;;  %v5865_v1 = vunpack.c.l.bf16 %v4376_v58  ;;  %v4393_v2 = vunpack.c.h.bf16 %v4376_v58  ;;  %v4155_v41 = vld [vmem:[%s4267_s27 + $0x78] sm:$0xff]  }
  0x1d   : > { %5926 = vst [vmem:[#allocation6_spill] sm:$0xff] %v4373_v57  ;;  %v383_v3 = vrot.slane %v5853_v56, 1  ;;  %v384_v4 = vrot.slane %v4373_v57, 1  ;;  %v345_v7 = vsel %vm317_vm1, %v343_v59, %v344_v60  ;;  %v5859_v8 = vunpack.c.l.bf16 %v4389_v0 }
  0x1e   : > { %v365_v9 = vsel %vm317_vm1, %v363_v61, %v364_v62  ;;  %v5856_v10 = vunpack.c.l.bf16 %v4399_v5  ;;  %v323_v11 = vrot.slane %v5865_v1, 1  ;;  %v324_v24 = vrot.slane %v4393_v2, 1 }
  0x1f   : > { %3502 = vmatmul.msk.f32.gmra.mxu1 %vm401_vm2, %v342_v51  ;;  %3510 = vmatmul.msk.f32.gmra.mxu2 %vm401_vm2, %v362_v52  ;;  %v385_v26 = vsel %vm317_vm1, %v383_v3, %v384_v4  ;;  %v5852_v29 = vunpack.c.l.bf16 %v4402_v6  ;;  %v346_v36 = vrot.slane %v5859_v8, 1  ;;  %v5864_v44 = vunpack.c.l.bf16 %v4415_v30  ;;  %v4431_v51 = vld [vmem:[%s4267_s27 + $0xa8] sm:$0xff]   ;;  %v4589_v6 = vld [vmem:[%s4267_s27 + $0xbc] sm:$0x1] }
  0x20   : > { %3518 = vmatmul.msk.f32.gmra.mxu3 %vm401_vm2, %v382_v55  ;;  %v366_v38 = vrot.slane %v5856_v10, 1  ;;  %v325_v39 = vsel %vm317_vm1, %v323_v11, %v324_v24  ;;  %5928 = vst [vmem:[#allocation8_spill] sm:$0xff] %v4431_v51  ;;  %v4434_v52 = vunpack.c.l.bf16 %v4153_v40  ;;  %v4436_v54 = vunpack.c.h.bf16 %v4153_v40 }
  0x21   : > { %v386_v46 = vrot.slane %v5852_v29, 1  ;;  %v4438_v55 = vunpack.c.l.bf16 %v4155_v41  ;;  %v347_v59 = vsel %vm317_vm1, %v344_v60, %v346_v36  ;;  %v326_v3 = vrot.slane %v5864_v44, 1 }
  0x22   : > { %3494 = vmatmul.msk.f32.gmra.mxu0 %vm401_vm2, %v322_v63  ;;  %v367_v61 = vsel %vm317_vm1, %v364_v62, %v366_v38  ;;  %v4442_v63 = vunpack.c.h.bf16 %v4155_v41  ;;  %v4449_v11 = vunpack.c.h.bf16 %v4431_v51  ;;  %v348_v60 = vrot.slane %v4434_v52, 1 }
  0x23   : > { %v4456_v62 = vrot.slane %v4436_v54, 1  ;;  %v368_v36 = vrot.slane %v4438_v55, 1  ;;  %v327_v38 = vsel %vm317_vm1, %v324_v24, %v326_v3  ;;  %v5869_v8 = vunpack.c.l.bf16 %v4498_v19 }
  0x24   : > { %5929 = vst [vmem:[#allocation9_spill] sm:$0xff] %v4449_v11  ;;  %v2739_v21 = vunpack.c.l.bf16 %v3904_v48 }
  0x25   : > { %v4482_v24 = vsel %vm317_vm1, %v348_v60, %v4456_v62 }
  0x26   : > { %3905 = vmatpush.msk.msra.mxu3 %vm466_vm0, %v2739_v21 }
  0x27   : > { %3503 = vmatmul.msk.f32.gmra.mxu1 %vm401_vm2, %v345_v7  ;;  %3511 = vmatmul.msk.f32.gmra.mxu2 %vm401_vm2, %v365_v9  ;;  %v387_v7 = vsel %vm317_vm1, %v384_v4, %v386_v46  ;;  %v5851_v9 = vunpack.c.l.bf16 %v4431_v51  ;;  %v4461_v4 = vrot.slane %v4442_v63, 1 }
  0x28   : > { %3519 = vmatmul.msk.f32.gmra.mxu3 %vm401_vm2, %v385_v26  ;;  %v4151_v26 = vld [vmem:[%s4267_s27 + $0x18] sm:$0xff]  }
  0x29   : > { %v4467_v40 = vunpack.c.l.bf16 %v4151_v26  ;;  %v4469_v41 = vunpack.c.h.bf16 %v4151_v26  ;;  %v388_v46 = vrot.slane %v5851_v9, 1  ;;  %v4488_v26 = vsel %vm317_vm1, %v368_v36, %v4461_v4 }
  0x2a   : > { %3495 = vmatmul.msk.f32.gmra.mxu0 %vm401_vm2, %v325_v39  ;;  %v4465_v39 = vld [vmem:[%s4267_s27 + $0x50] sm:$0x1] }
  0x2b   : > { %v5860_v3 = vunpack.c.l.bf16 %v4465_v39  ;;  %v328_v29 = vrot.slane %v4467_v40, 1  ;;  %v4493_v56 = vrot.slane %v4469_v41, 1 }
  0x2d   : > { %v351_v36 = vrot.slane %v5860_v3, 1  ;;  %v4517_v50 = vsel %vm317_vm1, %v328_v29, %v4493_v56  ;;  %v4532_v29 = vld [vmem:[%s4267_s27 + $0xb4] sm:$0xff]  }
  0x2e   : > { %5931 = vst [vmem:[#allocation11_spill] sm:$0xff] %v4532_v29  ;;  %v4556_v21 = vunpack.c.h.bf16 %v4532_v29 }
  0x2f   : > { %3504 = vmatmul.msk.f32.gmra.mxu1 %vm401_vm2, %v347_v59  ;;  %3512 = vmatmul.msk.f32.gmra.mxu2 %vm401_vm2, %v367_v61  ;;  %v389_v59 = vrot.slane %v4449_v11, 1  ;;  %v4475_v61 = vld [vmem:[%s4267_s27 + $0x80] sm:$0x1]  ;;  %v352_v48 = vsel %vm317_vm1, %v4456_v62, %v351_v36  ;;  %v4559_v36 = vld [vmem:[%s4267_s27 + $0x24] sm:$0xff]   ;;  %v4586_v11 = vld [vmem:[%s4267_s27 + $0x8c] sm:$0x1] }
  0x30   : > { %3520 = vmatmul.msk.f32.gmra.mxu3 %vm401_vm2, %v387_v7  ;;  %v4478_v7 = vld [vmem:[%s4267_s27 + $0xb0] sm:$0x1]  ;;  %v5862_v9 = vunpack.c.l.bf16 %v4475_v61  ;;  %5932 = vst [vmem:[#allocation12_spill] sm:$0xff] %v4556_v21  ;;  %v394_v51 = vrot.slane %v4556_v21, 1 }
  0x31   : > { %5930 = vst [vmem:[#allocation10_spill] sm:$0xff] %v4478_v7  ;;  %v390_v37 = vsel %vm317_vm1, %v388_v46, %v389_v59  ;;  %v5867_v60 = vunpack.c.l.bf16 %v4478_v7  ;;  %v3822_v46 = vld [vmem:[%s5848_s1 + $0xc] sm:$0x3]  ;;  %v4573_v7 = vld [vmem:[%s4267_s27 + $0x5c] sm:$0x1] }
  0x32   : > { %3496 = vmatmul.msk.f32.gmra.mxu0 %vm401_vm2, %v327_v38  ;;  %v4507_v38 = vld [vmem:[%s4267_s27 + $0x54] sm:$0xff]   ;;  %v371_v10 = vrot.slane %v5862_v9, 1  ;;  %v2268_v3 = vunpack.c.l.bf16 %v3822_v46  ;;  %v5886_v47 = vunpack.c.l.bf16 %v4573_v7 }
  0x33   : > { %v391_v9 = vrot.slane %v5867_v60, 1  ;;  %v5871_v46 = vunpack.c.l.bf16 %v4507_v38  ;;  %v4539_v1 = vunpack.c.h.bf16 %v4507_v38  ;;  %v331_v60 = vrot.slane %v5869_v8, 1 }
  0x34   : > { %3823 = vmatpush.msk.msra.mxu2 %vm466_vm0, %v2268_v3  ;;  %v4548_v3 = vunpack.c.h.bf16 %v4520_v22 }
  0x35   : > { %v392_v33 = vsel %vm317_vm1, %v389_v59, %v391_v9  ;;  %v5933_v9 = vunpack.c.l.bf16 %v4520_v22  ;;  %v332_v45 = vsel %vm317_vm1, %v4493_v56, %v331_v60 }
  0x36   : > { %v374_v8 = vrot.slane %v4548_v3, 1 }
  0x37   : > { %3505 = vmatmul.msk.f32.gmra.mxu1 %vm401_vm2, %v4482_v24  ;;  %3513 = vmatmul.msk.f32.gmra.mxu2 %vm401_vm2, %v4488_v26  ;;  %v373_v59 = vrot.slane %v5933_v9, 1  ;;  %v5934_v9 = vunpack.c.l.bf16 %v4532_v29  ;;  %v5887_v29 = vunpack.c.l.bf16 %v4586_v11 }
  0x38   : > { %3521 = vmatmul.msk.f32.gmra.mxu3 %vm401_vm2, %v390_v37  ;;  %v3756_v37 = vld [vmem:[%s5848_s1 + $0xa] sm:$0x3] }
  0x39   : > { %v1988_v44 = vunpack.c.l.bf16 %v3756_v37  ;;  %v372_v37 = vsel %vm317_vm1, %v4461_v4, %v371_v10  ;;  %v353_v10 = vrot.slane %v5871_v46, 1  ;;  %v3954_v46 = vld [vmem:[%s5848_s1 + $0x10] sm:$0x3]  ;;  %v375_v57 = vsel %vm317_vm1, %v373_v59, %v374_v8 }
  0x3a   : > { %3497 = vmatmul.msk.f32.gmra.mxu0 %vm401_vm2, %v4517_v50  ;;  %v3082_v60 = vunpack.c.l.bf16 %v3954_v46  ;;  %v376_v59 = vrot.slane %v5887_v29, 1 }
  0x3b   : > { %3757 = vmatpush.msk.msra.mxu1 %vm466_vm0, %v1988_v44  ;;  %v354_v44 = vrot.slane %v4539_v1, 1 }
  0x3c   : > { %3955 = vmatpush.msk.msra.mxu0 %vm466_vm0, %v3082_v60 }
  0x3f   : > { %3506 = vmatmul.msk.f32.gmra.mxu1 %vm401_vm2, %v352_v48  ;;  %3514 = vmatmul.msk.f32.gmra.mxu2 %vm401_vm2, %v372_v37  ;;  %v4577_v37 = vunpack.c.h.bf16 %v4559_v36  ;;  %v355_v48 = vsel %vm317_vm1, %v353_v10, %v354_v44  ;;  %v5888_v10 = vunpack.c.l.bf16 %v4589_v6 }
  0x40   : > { %3522 = vmatmul.msk.f32.gmra.mxu3 %vm401_vm2, %v392_v33  ;;  %v393_v33 = vrot.slane %v5934_v9, 1  ;;  %v5935_v9 = vunpack.c.l.bf16 %v4559_v36 }
  0x41   : > { %v334_v21 = vrot.slane %v4577_v37, 1  ;;  %v396_v20 = vrot.slane %v5888_v10, 1 }
  0x42   : > { %3498 = vmatmul.msk.f32.gmra.mxu0 %vm401_vm2, %v332_v45  ;;  %v333_v28 = vrot.slane %v5935_v9, 1  ;;  %v395_v46 = vsel %vm317_vm1, %v393_v33, %v394_v51  ;;  %v356_v45 = vrot.slane %v5886_v47, 1  ;;  %v763_v33 = vld [vmem:[%s4267_s27] sm:$0xe]  ;;  %v256_v9 = vunpack.c.l.bf16 %v4603_v12 }
  0x43   : > { %v397_v29 = vsel %vm317_vm1, %v394_v51, %v396_v20  ;;  %v3592_v20 = vld [vmem:[%s4267_s27 + $0xc] sm:$0xff]  }
  0x44   : > { %v335_v60 = vsel %vm317_vm1, %v333_v28, %v334_v21  ;;  %v336_v47 = vrot.slane %v256_v9, 1  ;;  %v4624_v28 = vld [vmem:[%s4267_s27 + $0xc] sm:$0xff]  }
  0x47   : > { %3507 = vmatmul.msk.f32.gmra.mxu1 %vm401_vm2, %v355_v48  ;;  %3515 = vmatmul.msk.f32.gmra.mxu2 %vm401_vm2, %v375_v57  ;;  %v779_v57 = vunpack.c.l.bf16 %v763_v33  ;;  %v357_v48 = vsel %vm317_vm1, %v354_v44, %v356_v45  ;;  %v337_v44 = vsel %vm317_vm1, %v334_v21, %v336_v47  ;;  %v5897_v45 = vunpack.c.h.bf16 %v4624_v28 }
  0x48   : > { %3523 = vmatmul.msk.f32.gmra.mxu3 %vm401_vm2, %v395_v46  ;;  %v377_v46 = vsel %vm317_vm1, %v374_v8, %v376_v59  ;;  %v1467_v8 = vunpack.c.l.bf16 %v4624_v28  ;;  %v1140_v59 = vunpack.c.l.bf16 %v3592_v20  ;;  %v5936_v47 = vunpack.c.l.bf16 %v4297_v23 }
  0x49   : > { %v812_v10 = vrot.slane %v779_v57, 2  ;;  %v4639_v57 = vld [vmem:[%s4267_s27 + $0x14] sm:$0x1]  ;;  %v5937_v21 = vunpack.c.l.bf16 %v4326_v35  ;;  %v1141_v23 = vunpack.c.h.bf16 %v3592_v20  ;;  %v4664_v20 = vld [vmem:[%s4267_s27 + $0x20] sm:$0x1] }
  0x4a   : > { %3499 = vmatmul.msk.f32.gmra.mxu0 %vm401_vm2, %v335_v60  ;;  %v813_v60 = vrot.slane %v4323_v34, 2  ;;  %v1563_v33 = vrot.slane %v1467_v8, 1 }
  0x4c   : > { %v814_v51 = vsel %vm811_vm3, %v812_v10, %v813_v60 }
  0x4f   : > { %3508 = vmatmul.msk.f32.gmra.mxu1 %vm401_vm2, %v357_v48  ;;  %3516 = vmatmul.msk.f32.gmra.mxu2 %vm401_vm2, %v377_v46  ;;  %v815_v48 = vrot.slane %v5937_v21, 2  ;;  %v5896_v46 = vunpack.c.l.bf16 %v4639_v57  ;;  %v5938_v21 = vunpack.c.l.bf16 %v4376_v58 }
  0x50   : > { %3524 = vmatmul.msk.f32.gmra.mxu3 %vm401_vm2, %v397_v29  ;;  %v1564_v29 = vrot.slane %v5897_v45, 1  ;;  %v5955_v45 = vunpack.c.l.bf16 %v4465_v39 }
  0x51   : > { %v816_v8 = vsel %vm811_vm3, %v813_v60, %v815_v48 }
  0x52   : > { %3500 = vmatmul.msk.f32.gmra.mxu0 %vm401_vm2, %v337_v44  ;;  %v1565_v10 = vsel %vm317_vm1, %v1563_v33, %v1564_v29  ;;  %v764_v44 = vld [vmem:[%s4267_s27 + $0xc] sm:$0xe] }
  0x57   : > { %3526 = vmatmul.msk.f32.vlgmr.msrb.gmra.mxu1 %vm401_vm2, %v5936_v47  ;;  %3560 = vmatmul.msk.f32.vlgmr.msrb.gmra.mxu2 %vm401_vm2, %v814_v51  ;;  %v780_v47 = vunpack.c.l.bf16 %v764_v44  ;;  %v1566_v51 = vrot.slane %v5896_v46, 1 }
  0x58   : > { %3626 = vmatmul.msk.f32.vlgmr.msrb.gmra.mxu3 %vm401_vm2, %v1140_v59  ;;  %v818_v59 = vrot.slane %v4393_v2, 2 }
  0x59   : > { %v817_v35 = vrot.slane %v780_v47, 2  ;;  %v1567_v33 = vsel %vm317_vm1, %v1564_v29, %v1566_v51  ;;  %v765_v29 = vld [vmem:[%s4267_s27 + $0x18] sm:$0xe] }
  0x5a   : > { %3708 = vmatmul.msk.f32.vlgmr.msrb.gmra.mxu0 %vm401_vm2, %v1565_v10  ;;  %v5895_v10 = vunpack.c.l.bf16 %v4664_v20  ;;  %v781_v44 = vunpack.c.l.bf16 %v765_v29 }
  0x5b   : > { %v819_v60 = vsel %vm811_vm3, %v817_v35, %v818_v59 }
  0x5f   : > { %3527 = vmatmul.msk.f32.gmra.mxu1 %vm401_vm2, %v4323_v34  ;;  %3561 = vmatmul.msk.f32.gmra.mxu2 %vm401_vm2, %v816_v8  ;;  %v5939_v34 = vunpack.c.l.bf16 %v4415_v30  ;;  %v1571_v8 = vrot.slane %v5895_v10, 1  ;;  %v822_v30 = vrot.slane %v781_v44, 2 }
  0x60   : > { %3627 = vmatmul.msk.f32.gmra.mxu3 %vm401_vm2, %v1141_v23  ;;  %v4682_v23 = vld [vmem:[%s4267_s27 + $0x24] sm:$0xff]  }
  0x61   : > { %v820_v48 = vrot.slane %v5939_v34, 2  ;;  %v1572_v47 = vsel %vm317_vm1, %v4493_v56, %v1571_v8  ;;  %v1473_v51 = vunpack.c.l.bf16 %v4682_v23  ;;  %v5894_v35 = vunpack.c.h.bf16 %v4682_v23  ;;  %v4703_v34 = vld [vmem:[%s4267_s27 + $0x2c] sm:$0x1] }
  0x62   : > { %3709 = vmatmul.msk.f32.gmra.mxu0 %vm401_vm2, %v1567_v33  ;;  %v5940_v56 = vunpack.c.l.bf16 %v4498_v19  ;;  %v5893_v44 = vunpack.c.l.bf16 %v4703_v34 }
  0x63   : > { %v821_v58 = vsel %vm811_vm3, %v818_v59, %v820_v48  ;;  %v3596_v59 = vld [vmem:[%s4267_s27 + $0x24] sm:$0xff]  }
  0x64   : > { %v1144_v33 = vunpack.c.l.bf16 %v3596_v59  ;;  %v825_v48 = vrot.slane %v5940_v56, 2 }
  0x67   : > { %3528 = vmatmul.msk.f32.gmra.mxu1 %vm401_vm2, %v5938_v21  ;;  %3562 = vmatmul.msk.f32.gmra.mxu2 %vm401_vm2, %v819_v60  ;;  %v1573_v60 = vrot.slane %v1473_v51, 1  ;;  %v1574_v21 = vrot.slane %v5894_v35, 1  ;;  %v828_v51 = vrot.slane %v4577_v37, 2 }
  0x68   : > { %3628 = vmatmul.msk.f32.gmra.mxu3 %vm401_vm2, %v4467_v40 }
  0x69   : > { %v1575_v29 = vsel %vm317_vm1, %v1573_v60, %v1574_v21  ;;  %v5941_v60 = vunpack.c.l.bf16 %v4559_v36 }
  0x6a   : > { %3710 = vmatmul.msk.f32.gmra.mxu0 %vm401_vm2, %v4517_v50  ;;  %v4690_v50 = vrot.slane %v4469_v41, 2 }
  0x6c   : > { %v826_v8 = vsel %vm811_vm3, %v4690_v50, %v825_v48 }
  0x6f   : > { %3529 = vmatmul.msk.f32.gmra.mxu1 %vm401_vm2, %v4393_v2  ;;  %3563 = vmatmul.msk.f32.gmra.mxu2 %vm401_vm2, %v821_v58  ;;  %v824_v2 = vsel %vm811_vm3, %v822_v30, %v4690_v50  ;;  %v766_v58 = vld [vmem:[%s4267_s27 + $0x24] sm:$0xe]  ;;  %v1145_v30 = vunpack.c.h.bf16 %v3596_v59 }
  0x70   : > { %3629 = vmatmul.msk.f32.gmra.mxu3 %vm401_vm2, %v4469_v41 }
  0x72   : > { %3711 = vmatmul.msk.f32.gmra.mxu0 %vm401_vm2, %v1572_v47  ;;  %v1576_v47 = vrot.slane %v5893_v44, 1 }
  0x77   : > { %3530 = vmatmul.msk.f32.gmra.mxu1 %vm401_vm2, %v4467_v40  ;;  %3564 = vmatmul.msk.f32.gmra.mxu2 %vm401_vm2, %v824_v2  ;;  %v782_v40 = vunpack.c.l.bf16 %v766_v58  ;;  %v1577_v2 = vsel %vm317_vm1, %v1574_v21, %v1576_v47  ;;  %v767_v21 = vld [vmem:[%s4267_s27 + $0x30] sm:$0xe]  ;;  %v4746_v58 = vld [vmem:[%s4267_s27 + $0x3c] sm:$0xff]  }
  0x78   : > { %3630 = vmatmul.msk.f32.gmra.mxu3 %vm401_vm2, %v1144_v33  ;;  %v4728_v33 = vld [vmem:[%s4267_s27 + $0x38] sm:$0x1]  ;;  %v783_v48 = vunpack.c.l.bf16 %v767_v21  ;;  %5942 = vst [vmem:[#allocation13_spill] sm:$0xff] %v4746_v58 }
  0x79   : > { %v827_v19 = vrot.slane %v782_v40, 2  ;;  %v5891_v56 = vunpack.c.l.bf16 %v4728_v33  ;;  %v3600_v40 = vld [vmem:[%s4267_s27 + $0x3c] sm:$0xff]  }
  0x7a   : > { %3712 = vmatmul.msk.f32.gmra.mxu0 %vm401_vm2, %v1575_v29  ;;  %v832_v12 = vrot.slane %v783_v48, 2 }
  0x7b   : > { %v829_v59 = vsel %vm811_vm3, %v827_v19, %v828_v51  ;;  %v1581_v29 = vrot.slane %v5891_v56, 1  ;;  %v1148_v19 = vunpack.c.l.bf16 %v3600_v40 }
  0x7f   : > { %3531 = vmatmul.msk.f32.gmra.mxu1 %vm401_vm2, %v4469_v41  ;;  %3565 = vmatmul.msk.f32.gmra.mxu2 %vm401_vm2, %v826_v8  ;;  %v830_v41 = vrot.slane %v256_v9, 2  ;;  %v1582_v9 = vsel %vm317_vm1, %v4301_v25, %v1581_v29  ;;  %v1479_v8 = vunpack.c.l.bf16 %v4746_v58 }
  0x80   : > { %3631 = vmatmul.msk.f32.gmra.mxu3 %vm401_vm2, %v1145_v30  ;;  %v5890_v30 = vunpack.c.h.bf16 %v4746_v58 }
  0x81   : > { %v831_v36 = vsel %vm811_vm3, %v828_v51, %v830_v41  ;;  %v1583_v51 = vrot.slane %v1479_v8, 1  ;;  %v1149_v8 = vunpack.c.h.bf16 %v3600_v40 }
  0x82   : > { %3713 = vmatmul.msk.f32.gmra.mxu0 %vm401_vm2, %v1577_v2  ;;  %v1584_v2 = vrot.slane %v5890_v30, 1 }
  0x84   : > { %v1585_v21 = vsel %vm317_vm1, %v1583_v51, %v1584_v2 }
  0x87   : > { %3532 = vmatmul.msk.f32.gmra.mxu1 %vm401_vm2, %v5941_v60  ;;  %3566 = vmatmul.msk.f32.gmra.mxu2 %vm401_vm2, %v829_v59  ;;  %v4769_v59 = vld [vmem:[%s4267_s27 + $0x44] sm:$0x1]  ;;  %v5944_v60 = vunpack.c.l.bf16 %v4285_v17 }
  0x88   : > { %3632 = vmatmul.msk.f32.gmra.mxu3 %vm401_vm2, %v4276_v13  ;;  %5943 = vst [vmem:[#allocation14_spill] sm:$0xff] %v4769_v59  ;;  %v5889_v48 = vunpack.c.l.bf16 %v4769_v59 }
  0x89   : > { %v835_v41 = vrot.slane %v5944_v60, 2  ;;  %v838_v60 = vrot.slane %v4358_v49, 2 }
  0x8a   : > { %3714 = vmatmul.msk.f32.gmra.mxu0 %vm401_vm2, %v4315_v31  ;;  %v4754_v31 = vrot.slane %v4278_v14, 2 }
  0x8c   : > { %v834_v47 = vsel %vm811_vm3, %v832_v12, %v4754_v31 }
  0x8f   : > { %3533 = vmatmul.msk.f32.gmra.mxu1 %vm401_vm2, %v4577_v37  ;;  %3567 = vmatmul.msk.f32.gmra.mxu2 %vm401_vm2, %v831_v36  ;;  %v768_v36 = vld [vmem:[%s4267_s27 + $0x3c] sm:$0xe] }
  0x90   : > { %3633 = vmatmul.msk.f32.gmra.mxu3 %vm401_vm2, %v4278_v14  ;;  %v784_v17 = vunpack.c.l.bf16 %v768_v36 }
  0x92   : > { %3715 = vmatmul.msk.f32.gmra.mxu0 %vm401_vm2, %v1582_v9  ;;  %v836_v9 = vsel %vm811_vm3, %v4754_v31, %v835_v41  ;;  %v837_v51 = vrot.slane %v784_v17, 2  ;;  %v5949_v17 = vunpack.c.l.bf16 %v4389_v0 }
  0x94   : > { %v4762_v37 = vpop.f32.mrf.mxu1 }
  0x97   : > { %3534 = vmatmul.msk.f32.gmra.mxu1 %vm401_vm2, %v4276_v13  ;;  %3568 = vmatmul.msk.f32.gmra.mxu2 %vm401_vm2, %v834_v47  ;;  %v4775_v25 = vpop.f32.mrf.mxu0  ;;  %v1586_v47 = vrot.slane %v5889_v48, 1 }
  0x98   : > { %3634 = vmatmul.msk.f32.gmra.mxu3 %vm401_vm2, %v1148_v19 }
  0x99   : > { %v1587_v41 = vsel %vm317_vm1, %v1584_v2, %v1586_v47  ;;  %v840_v47 = vrot.slane %v5949_v17, 2  ;;  %v4836_v17 = vld [vmem:[%s4267_s27 + $0x54] sm:$0xff]  }
  0x9a   : > { %v4782_v29 = vpop.f32.mrf.mxu2  ;;  %3716 = vmatmul.msk.f32.gmra.mxu0 %vm401_vm2, %v1585_v21  ;;  %5951 = vst [vmem:[#allocation19_spill] sm:$0xff] %v4836_v17 }
  0x9b   : > { %v4784_v12 = vpop.f32.mrf.mxu3 }
  0x9c   : > { %5945 = vst [vmem:[#allocation15_spill] sm:$0xff] %v4784_v12  ;;  %v4787_v13 = vpop.f32.mrf.mxu1 }
  0x9f   : > { %3535 = vmatmul.msk.f32.gmra.mxu1 %vm401_vm2, %v4278_v14  ;;  %3569 = vmatmul.msk.f32.gmra.mxu2 %vm401_vm2, %v836_v9  ;;  %v4797_v19 = vpop.f32.mrf.mxu0  ;;  %v839_v14 = vsel %vm811_vm3, %v837_v51, %v838_v60  ;;  %v4810_v9 = vld [vmem:[%s4267_s27 + $0x50] sm:$0x1] }
  0xa0   : > { %3635 = vmatmul.msk.f32.gmra.mxu3 %vm401_vm2, %v1149_v8  ;;  %5947 = vst [vmem:[#allocation17_spill] sm:$0xff] %v4810_v9  ;;  %v5948_v8 = vunpack.c.l.bf16 %v4343_v42  ;;  %v5892_v51 = vunpack.c.l.bf16 %v4810_v9 }
  0xa2   : > { %v4801_v40 = vpop.f32.mrf.mxu2  ;;  %3717 = vmatmul.msk.f32.gmra.mxu0 %vm401_vm2, %v1587_v41  ;;  %v769_v41 = vld [vmem:[%s4267_s27 + $0x48] sm:$0xe]  ;;  %v1591_v0 = vrot.slane %v5892_v51, 1  ;;  %v5899_v51 = vunpack.c.h.bf16 %v4836_v17 }
  0xa3   : > { %v4803_v21 = vpop.f32.mrf.mxu3  ;;  %v785_v42 = vunpack.c.l.bf16 %v769_v41  ;;  %v4846_v41 = vrot.slane %v4436_v54, 2 }
  0xa4   : > { %5946 = vst [vmem:[#allocation16_spill] sm:$0xff] %v4803_v21  ;;  %v4806_v36 = vpop.f32.mrf.mxu1 }
  0xa5   : > { %v842_v56 = vrot.slane %v785_v42, 2  ;;  %5952 = vst [vmem:[#allocation20_spill] sm:$0xff] %v4846_v41 }
  0xa7   : > { %3536 = vmatmul.msk.f32.gmra.mxu1 %vm401_vm2, %v5948_v8  ;;  %3570 = vmatmul.msk.f32.gmra.mxu2 %vm401_vm2, %v839_v14  ;;  %v4818_v2 = vpop.f32.mrf.mxu0  ;;  %v841_v8 = vsel %vm811_vm3, %v838_v60, %v840_v47  ;;  %v1592_v60 = vsel %vm317_vm1, %v4456_v62, %v1591_v0  ;;  %v1485_v47 = vunpack.c.l.bf16 %v4836_v17  ;;  %v844_v35 = vsel %vm811_vm3, %v842_v56, %v4846_v41  ;;  %v4865_v0 = vld [vmem:[%s4267_s27 + $0x5c] sm:$0x1]  ;;  %v770_v17 = vld [vmem:[%s4267_s27 + $0x54] sm:$0xe] }
  0xa8   : > { %3636 = vmatmul.msk.f32.gmra.mxu3 %vm401_vm2, %v4434_v52  ;;  %v1594_v62 = vrot.slane %v5899_v51, 1  ;;  %5954 = vst [vmem:[#allocation22_spill] sm:$0xff] %v4865_v0  ;;  %v786_v39 = vunpack.c.l.bf16 %v770_v17 }
  0xa9   : > { %v1593_v46 = vrot.slane %v1485_v47, 1  ;;  %v5900_v47 = vunpack.c.l.bf16 %v4865_v0 }
  0xaa   : > { %v4824_v48 = vpop.f32.mrf.mxu2  ;;  %3718 = vmatmul.msk.f32.gmra.mxu0 %vm401_vm2, %v4482_v24 }
  0xab   : > { %v4826_v30 = vpop.f32.mrf.mxu3  ;;  %v1595_v56 = vsel %vm317_vm1, %v1593_v46, %v1594_v62 }
  0xac   : > { %5950 = vst [vmem:[#allocation18_spill] sm:$0xff] %v4826_v30  ;;  %v4830_v14 = vpop.f32.mrf.mxu1 }
  0xaf   : > { %3537 = vmatmul.msk.f32.gmra.mxu1 %vm401_vm2, %v4358_v49  ;;  %3571 = vmatmul.msk.f32.gmra.mxu2 %vm401_vm2, %v841_v8  ;;  %v4843_v24 = vpop.f32.mrf.mxu0  ;;  %v3604_v49 = vld [vmem:[%s4267_s27 + $0x54] sm:$0xff]  }
  0xb0   : > { %3637 = vmatmul.msk.f32.gmra.mxu3 %vm401_vm2, %v4436_v54  ;;  %v1152_v10 = vunpack.c.l.bf16 %v3604_v49 }
  0xb2   : > { %v4853_v44 = vpop.f32.mrf.mxu2  ;;  %3719 = vmatmul.msk.f32.gmra.mxu0 %vm401_vm2, %v1592_v60 }
  0xb3   : > { %v4855_v42 = vpop.f32.mrf.mxu3 }
  0xb4   : > { %5953 = vst [vmem:[#allocation21_spill] sm:$0xff] %v4855_v42  ;;  %v4858_v8 = vpop.f32.mrf.mxu1  ;;  %v845_v42 = vrot.slane %v5955_v45, 2  ;;  %v1596_v45 = vrot.slane %v5900_v47, 1 }
  0xb7   : > { %3538 = vmatmul.msk.f32.gmra.mxu1 %vm401_vm2, %v4434_v52  ;;  %3572 = vmatmul.msk.f32.gmra.mxu2 %vm401_vm2, %v844_v35  ;;  %v4871_v60 = vpop.f32.mrf.mxu0  ;;  %v1153_v35 = vunpack.c.h.bf16 %v3604_v49 }
  0xb8   : > { %3638 = vmatmul.msk.f32.gmra.mxu3 %vm401_vm2, %v1152_v10  ;;  %v846_v10 = vsel %vm811_vm3, %v4846_v41, %v845_v42  ;;  %v1597_v42 = vsel %vm317_vm1, %v1594_v62, %v1596_v45 }
  0xba   : > { %v4878_v51 = vpop.f32.mrf.mxu2  ;;  %3720 = vmatmul.msk.f32.gmra.mxu0 %vm401_vm2, %v1595_v56  ;;  %v847_v56 = vrot.slane %v786_v39, 2  ;;  %v5960_v39 = vunpack.c.l.bf16 %v4573_v7 }
  0xbb   : > { %v4880_v30 = vpop.f32.mrf.mxu3 }
  0xbc   : > { %5956 = vst [vmem:[#allocation23_spill] sm:$0xff] %v4880_v30  ;;  %v4883_v52 = vpop.f32.mrf.mxu1  ;;  %v848_v30 = vrot.slane %v4539_v1, 2  ;;  %v850_v45 = vrot.slane %v5960_v39, 2  ;;  %v4932_v39 = vld [vmem:[%s4267_s27 + $0x6c] sm:$0xff]  }
  0xbd   : > { %5963 = vst [vmem:[#allocation28_spill] sm:$0xff] %v4932_v39 }
  0xbf   : > { %3539 = vmatmul.msk.f32.gmra.mxu1 %vm401_vm2, %v4436_v54  ;;  %3573 = vmatmul.msk.f32.gmra.mxu2 %vm401_vm2, %v846_v10  ;;  %v4893_v46 = vpop.f32.mrf.mxu0  ;;  %v849_v54 = vsel %vm811_vm3, %v847_v56, %v848_v30  ;;  %v4906_v10 = vld [vmem:[%s4267_s27 + $0x68] sm:$0x1] }
  0xc0   : > { %3639 = vmatmul.msk.f32.gmra.mxu3 %vm401_vm2, %v1153_v35  ;;  %5958 = vst [vmem:[#allocation25_spill] sm:$0xff] %v4906_v10  ;;  %v5959_v35 = vunpack.c.l.bf16 %v4507_v38  ;;  %v5902_v56 = vunpack.c.l.bf16 %v4906_v10 }
  0xc2   : > { %v4897_v49 = vpop.f32.mrf.mxu2  ;;  %3721 = vmatmul.msk.f32.gmra.mxu0 %vm401_vm2, %v1597_v42  ;;  %v771_v42 = vld [vmem:[%s4267_s27 + $0x60] sm:$0xe]  ;;  %v1601_v7 = vrot.slane %v5902_v56, 1  ;;  %v5908_v56 = vunpack.c.h.bf16 %v4932_v39 }
  0xc3   : > { %v4899_v17 = vpop.f32.mrf.mxu3  ;;  %v787_v38 = vunpack.c.l.bf16 %v771_v42  ;;  %v4942_v42 = vrot.slane %v4282_v16, 2 }
  0xc4   : > { %5957 = vst [vmem:[#allocation24_spill] sm:$0xff] %v4899_v17  ;;  %v4902_v47 = vpop.f32.mrf.mxu1 }
  0xc7   : > { %3540 = vmatmul.msk.f32.gmra.mxu1 %vm401_vm2, %v5959_v35  ;;  %3574 = vmatmul.msk.f32.gmra.mxu2 %vm401_vm2, %v849_v54  ;;  %v4914_v62 = vpop.f32.mrf.mxu0  ;;  %v851_v35 = vsel %vm811_vm3, %v848_v30, %v850_v45  ;;  %v1602_v30 = vsel %vm317_vm1, %v4305_v27, %v1601_v7  ;;  %v1491_v45 = vunpack.c.l.bf16 %v4932_v39  ;;  %v1604_v27 = vrot.slane %v5908_v56, 1  ;;  %v4959_v7 = vld [vmem:[%s4267_s27 + $0x74] sm:$0x1]  ;;  %v772_v56 = vld [vmem:[%s4267_s27 + $0x6c] sm:$0xe] }
  0xc8   : > { %3640 = vmatmul.msk.f32.gmra.mxu3 %vm401_vm2, %v4280_v15 }
  0xc9   : > { %v1603_v21 = vrot.slane %v1491_v45, 1  ;;  %v5918_v45 = vunpack.c.l.bf16 %v4959_v7 }
  0xca   : > { %v4920_v17 = vpop.f32.mrf.mxu2  ;;  %3722 = vmatmul.msk.f32.gmra.mxu0 %vm401_vm2, %v4319_v32 }
  0xcb   : > { %5961 = vst [vmem:[#allocation26_spill] sm:$0xff] %v4920_v17  ;;  %v4922_v0 = vpop.f32.mrf.mxu3  ;;  %v788_v17 = vunpack.c.l.bf16 %v772_v56 }
  0xcc   : > { %5962 = vst [vmem:[#allocation27_spill] sm:$0xff] %v4922_v0  ;;  %v4926_v54 = vpop.f32.mrf.mxu1  ;;  %v852_v0 = vrot.slane %v787_v38, 2 }
  0xce   : > { %v854_v9 = vsel %vm811_vm3, %v852_v0, %v4942_v42  ;;  %v1605_v0 = vsel %vm317_vm1, %v1603_v21, %v1604_v27 }
  0xcf   : > { %3541 = vmatmul.msk.f32.gmra.mxu1 %vm401_vm2, %v4539_v1  ;;  %3575 = vmatmul.msk.f32.gmra.mxu2 %vm401_vm2, %v851_v35  ;;  %v4939_v32 = vpop.f32.mrf.mxu0  ;;  %v3608_v1 = vld [vmem:[%s4267_s27 + $0x6c] sm:$0xff]  }
  0xd0   : > { %3641 = vmatmul.msk.f32.gmra.mxu3 %vm401_vm2, %v4282_v16  ;;  %v1156_v41 = vunpack.c.l.bf16 %v3608_v1 }
  0xd2   : > { %v4949_v10 = vpop.f32.mrf.mxu2  ;;  %3723 = vmatmul.msk.f32.gmra.mxu0 %vm401_vm2, %v1602_v30  ;;  %v5966_v30 = vunpack.c.l.bf16 %v4288_v18  ;;  %v1606_v18 = vrot.slane %v5918_v45, 1  ;;  %v5183_v45 = vld [vmem:[%s4267_s27 + $0xbc] sm:$0x1] }
  0xd3   : > { %5964 = vst [vmem:[#allocation29_spill] sm:$0xff] %v4949_v10  ;;  %v4951_v38 = vpop.f32.mrf.mxu3 }
  0xd4   : > { %5965 = vst [vmem:[#allocation30_spill] sm:$0xff] %v4951_v38  ;;  %v667_v35 = vpop.f32.mrf.mxu1  ;;  %v855_v12 = vrot.slane %v5966_v30, 2  ;;  %v1607_v56 = vsel %vm317_vm1, %v1604_v27, %v1606_v18  ;;  %v5968_v27 = vunpack.c.l.bf16 %v4399_v5 }
  0xd5   : > { %v668_v39 = vadd.f32 %v667_v35, %v4775_v25  ;;  %v857_v25 = vrot.slane %v788_v17, 2  ;;  %v5967_v17 = vunpack.c.l.bf16 %v4346_v43 }
  0xd7   : > { %3542 = vmatmul.msk.f32.gmra.mxu1 %vm401_vm2, %v4280_v15  ;;  %3576 = vmatmul.msk.f32.gmra.mxu2 %vm401_vm2, %v854_v9  ;;  %v1730_v38 = vpop.f32.mrf.mxu0  ;;  %v856_v9 = vsel %vm811_vm3, %v4942_v42, %v855_v12  ;;  %v858_v12 = vrot.slane %v4366_v53, 2 }
  0xd8   : > { %3642 = vmatmul.msk.f32.gmra.mxu3 %vm401_vm2, %v1156_v41  ;;  %v1157_v41 = vunpack.c.h.bf16 %v3608_v1 }
  0xda   : > { %v979_v59 = vpop.f32.mrf.mxu2  ;;  %3724 = vmatmul.msk.f32.gmra.mxu0 %vm401_vm2, %v1605_v0  ;;  %v4988_v0 = vld [vmem:[%s4267_s27 + $0x80] sm:$0x1] }
  0xdb   : > { %v1075_v10 = vadd.f32 %v979_v59, %v668_v39  ;;  %v1291_v58 = vpop.f32.mrf.mxu3  ;;  %v5916_v18 = vunpack.c.l.bf16 %v4988_v0 }
  0xdc   : > { %v670_v15 = vpop.f32.mrf.mxu1 }
  0xdd   : > { %v1387_v21 = vadd.f32 %v1291_v58, %v1075_v10  ;;  %v671_v39 = vadd.f32 %v670_v15, %v4797_v19  ;;  %v860_v15 = vrot.slane %v5968_v27, 2  ;;  %v1611_v5 = vrot.slane %v5916_v18, 1 }
  0xdf   : > { %v4976_v30 = vadd.f32 %v1730_v38, %v1387_v21  ;;  %3543 = vmatmul.msk.f32.gmra.mxu1 %vm401_vm2, %v4282_v16  ;;  %3577 = vmatmul.msk.f32.gmra.mxu2 %vm401_vm2, %v856_v9  ;;  %v1733_v59 = vpop.f32.mrf.mxu0  ;;  %v859_v16 = vsel %vm811_vm3, %v857_v25, %v858_v12 }
  0xe0   : > { %3643 = vmatmul.msk.f32.gmra.mxu3 %vm401_vm2, %v1157_v41  ;;  %v773_v41 = vld [vmem:[%s4267_s27 + $0x78] sm:$0xe] }
  0xe2   : > { %v982_v58 = vpop.f32.mrf.mxu2  ;;  %3725 = vmatmul.msk.f32.gmra.mxu0 %vm401_vm2, %v1607_v56  ;;  %v789_v56 = vunpack.c.l.bf16 %v773_v41 }
  0xe3   : > { %v1076_v10 = vadd.f32 %v982_v58, %v671_v39  ;;  %v1294_v1 = vpop.f32.mrf.mxu3  ;;  %v861_v58 = vsel %vm811_vm3, %v858_v12, %v860_v15  ;;  %v5019_v12 = vrot.slane %v4442_v63, 2 }
  0xe4   : > { %v673_v38 = vpop.f32.mrf.mxu1 }
  0xe5   : > { %v1388_v35 = vadd.f32 %v1294_v1, %v1076_v10  ;;  %v674_v21 = vadd.f32 %v673_v38, %v4818_v2  ;;  %v5009_v1 = vld [vmem:[%s4267_s27 + $0x84] sm:$0xff]   ;;  %v862_v2 = vrot.slane %v789_v56, 2  ;;  %v1612_v38 = vsel %vm317_vm1, %v4461_v4, %v1611_v5 }
  0xe6   : > { %v5969_v5 = vunpack.c.l.bf16 %v4475_v61 }
  0xe7   : > { %v4990_v9 = vadd.f32 %v1733_v59, %v1388_v35  ;;  %3544 = vmatmul.msk.f32.gmra.mxu1 %vm401_vm2, %v5967_v17  ;;  %3578 = vmatmul.msk.f32.gmra.mxu2 %vm401_vm2, %v859_v16  ;;  %v1736_v19 = vpop.f32.mrf.mxu0  ;;  %v1497_v35 = vunpack.c.l.bf16 %v5009_v1  ;;  %v5914_v17 = vunpack.c.h.bf16 %v5009_v1 }
  0xe8   : > { %3644 = vmatmul.msk.f32.gmra.mxu3 %vm401_vm2, %v4438_v55 }
  0xe9   : > { %v1614_v4 = vrot.slane %v5914_v17, 1 }
  0xea   : > { %v985_v59 = vpop.f32.mrf.mxu2  ;;  %3726 = vmatmul.msk.f32.gmra.mxu0 %vm401_vm2, %v4488_v26 }
  0xeb   : > { %v1077_v25 = vadd.f32 %v985_v59, %v674_v21  ;;  %v1297_v43 = vpop.f32.mrf.mxu3  ;;  %v864_v59 = vsel %vm811_vm3, %v862_v2, %v5019_v12 }
  0xec   : > { %v676_v39 = vpop.f32.mrf.mxu1 }
  0xed   : > { %v1389_v10 = vadd.f32 %v1297_v43, %v1077_v25  ;;  %v1613_v43 = vrot.slane %v1497_v35, 1 }
  0xef   : > { %v5011_v16 = vadd.f32 %v1736_v19, %v1389_v10  ;;  %3545 = vmatmul.msk.f32.gmra.mxu1 %vm401_vm2, %v4366_v53  ;;  %3579 = vmatmul.msk.f32.gmra.mxu2 %vm401_vm2, %v861_v58  ;;  %v1739_v26 = vpop.f32.mrf.mxu0  ;;  %v677_v53 = vadd.f32 %v676_v39, %v4843_v24  ;;  %v3612_v19 = vld [vmem:[%s4267_s27 + $0x84] sm:$0xff]   ;;  %v5033_v58 = vld [vmem:[%s4267_s27 + $0x8c] sm:$0x1]  ;;  %v865_v10 = vrot.slane %v5969_v5, 2  ;;  %v1615_v2 = vsel %vm317_vm1, %v1613_v43, %v1614_v4 }
  0xf0   : > { %3645 = vmatmul.msk.f32.gmra.mxu3 %vm401_vm2, %v4442_v63  ;;  %v1160_v25 = vunpack.c.l.bf16 %v3612_v19 }
  0xf2   : > { %v988_v27 = vpop.f32.mrf.mxu2  ;;  %3727 = vmatmul.msk.f32.gmra.mxu0 %vm401_vm2, %v1612_v38  ;;  %v5912_v38 = vunpack.c.l.bf16 %v5033_v58 }
  0xf3   : > { %v1078_v15 = vadd.f32 %v988_v27, %v677_v53  ;;  %v1300_v41 = vpop.f32.mrf.mxu3 }
  0xf4   : > { %v679_v21 = vpop.f32.mrf.mxu1 }
  0xf5   : > { %v1390_v56 = vadd.f32 %v1300_v41, %v1078_v15  ;;  %v680_v35 = vadd.f32 %v679_v21, %v4871_v60  ;;  %v866_v41 = vsel %vm811_vm3, %v5019_v12, %v865_v10  ;;  %v4163_v60 = vld [vmem:[%s4267_s27 + $0x90] sm:$0xff]  }
  0xf7   : > { %v5035_v24 = vadd.f32 %v1739_v26, %v1390_v56  ;;  %3546 = vmatmul.msk.f32.gmra.mxu1 %vm401_vm2, %v4438_v55  ;;  %3580 = vmatmul.msk.f32.gmra.mxu2 %vm401_vm2, %v864_v59  ;;  %v1742_v39 = vpop.f32.mrf.mxu0  ;;  %v774_v26 = vld [vmem:[%s4267_s27 + $0x84] sm:$0xe]  ;;  %v1161_v59 = vunpack.c.h.bf16 %v3612_v19  ;;  %v868_v19 = vrot.slane %v4548_v3, 2 }
  0xf8   : > { %3646 = vmatmul.msk.f32.gmra.mxu3 %vm401_vm2, %v1160_v25  ;;  %v790_v61 = vunpack.c.l.bf16 %v774_v26  ;;  %v1616_v25 = vrot.slane %v5912_v38, 1  ;;  %v4045_v26 = vunpack.c.l.bf16 %v4163_v60 }
  0xfa   : > { %v991_v53 = vpop.f32.mrf.mxu2  ;;  %3728 = vmatmul.msk.f32.gmra.mxu0 %vm401_vm2, %v1615_v2  ;;  %v867_v5 = vrot.slane %v790_v61, 2  ;;  %v1617_v10 = vsel %vm317_vm1, %v1614_v4, %v1616_v25  ;;  %v5061_v2 = vunpack.c.h.bf16 %v4163_v60  ;;  %v5971_v25 = vunpack.c.l.bf16 %v4586_v11 }
  0xfb   : > { %v1079_v27 = vadd.f32 %v991_v53, %v680_v35  ;;  %v1303_v15 = vpop.f32.mrf.mxu3 }
  0xfc   : > { %v682_v55 = vpop.f32.mrf.mxu1  ;;  %v870_v60 = vrot.slane %v5971_v25, 2  ;;  %v5972_v25 = vld [vmem:[#allocation3_spill] sm:$0xff] }
  0xfd   : > { %v1391_v43 = vadd.f32 %v1303_v15, %v1079_v27  ;;  %v869_v15 = vsel %vm811_vm3, %v867_v5, %v868_v19 }
  0xff   : > { %v5052_v56 = vadd.f32 %v1742_v39, %v1391_v43  ;;  %3547 = vmatmul.msk.f32.gmra.mxu1 %vm401_vm2, %v4442_v63  ;;  %3581 = vmatmul.msk.f32.gmra.mxu2 %vm401_vm2, %v866_v41  ;;  %v1745_v21 = vpop.f32.mrf.mxu0  ;;  %v683_v39 = vadd.f32 %v682_v55, %v4893_v46  ;;  %v1618_v41 = vrot.slane %v4045_v26, 1  ;;  %v5068_v43 = vld [vmem:[%s4267_s27 + $0x98] sm:$0x1]  ;;  %v5970_v46 = vunpack.c.l.bf16 %v4520_v22 }
 0x100   : > { %3647 = vmatmul.msk.f32.gmra.mxu3 %vm401_vm2, %v1161_v59  ;;  %v1619_v59 = vrot.slane %v5061_v2, 1 }
 0x102   : > { %v994_v35 = vpop.f32.mrf.mxu2  ;;  %3729 = vmatmul.msk.f32.gmra.mxu0 %vm401_vm2, %v1617_v10  ;;  %v1620_v5 = vsel %vm317_vm1, %v1618_v41, %v1619_v59  ;;  %v775_v10 = vld [vmem:[%s4267_s27 + $0x90] sm:$0xe]  ;;  %v5088_v41 = vld [vmem:[%s4267_s27 + $0x9c] sm:$0xff]  }
 0x103   : > { %v1080_v53 = vadd.f32 %v994_v35, %v683_v39  ;;  %v1306_v63 = vpop.f32.mrf.mxu3  ;;  %v5911_v39 = vunpack.c.l.bf16 %v5068_v43 }
 0x104   : > { %v685_v27 = vpop.f32.mrf.mxu1 }
 0x105   : > { %v1392_v61 = vadd.f32 %v1306_v63, %v1080_v53  ;;  %v791_v63 = vunpack.c.l.bf16 %v775_v10  ;;  %v1621_v11 = vrot.slane %v5911_v39, 1  ;;  %v5108_v39 = vld [vmem:[%s4267_s27 + $0xa4] sm:$0x1] }
 0x107   : > { %v5070_v4 = vadd.f32 %v1745_v21, %v1392_v61  ;;  %3548 = vmatmul.msk.f32.gmra.mxu1 %vm401_vm2, %v5970_v46  ;;  %3582 = vmatmul.msk.f32.gmra.mxu2 %vm401_vm2, %v869_v15  ;;  %v1748_v55 = vpop.f32.mrf.mxu0  ;;  %v686_v21 = vadd.f32 %v685_v27, %v4914_v62  ;;  %v872_v62 = vrot.slane %v791_v63, 2 }
 0x108   : > { %3648 = vmatmul.msk.f32.gmra.mxu3 %vm401_vm2, %v4045_v26  ;;  %v871_v26 = vsel %vm811_vm3, %v868_v19, %v870_v60  ;;  %v873_v19 = vrot.slane %v5972_v25, 2  ;;  %v1622_v60 = vsel %vm317_vm1, %v1619_v59, %v1621_v11 }
 0x10a   : > { %v997_v35 = vpop.f32.mrf.mxu2  ;;  %3730 = vmatmul.msk.f32.gmra.mxu0 %vm401_vm2, %v1620_v5  ;;  %v1503_v5 = vunpack.c.l.bf16 %v5088_v41  ;;  %v874_v63 = vsel %vm811_vm3, %v872_v62, %v873_v19  ;;  %v5975_v62 = vld [vmem:[#allocation4_spill] sm:$0xff] }
 0x10b   : > { %v1081_v22 = vadd.f32 %v997_v35, %v686_v21  ;;  %v1309_v53 = vpop.f32.mrf.mxu3  ;;  %v3616_v21 = vld [vmem:[%s4267_s27 + $0x9c] sm:$0xff]  }
 0x10c   : > { %v688_v15 = vpop.f32.mrf.mxu1 }
 0x10d   : > { %v1393_v61 = vadd.f32 %v1309_v53, %v1081_v22  ;;  %v689_v10 = vadd.f32 %v688_v15, %v4939_v32  ;;  %v5973_v32 = vld [vmem:[#allocation2_spill] sm:$0xff] }
 0x10e   : > { %v5974_v15 = vunpack.c.l.bf16 %v5973_v32 }
 0x10f   : > { %v5090_v46 = vadd.f32 %v1748_v55, %v1393_v61  ;;  %3549 = vmatmul.msk.f32.gmra.mxu1 %vm401_vm2, %v4548_v3  ;;  %3583 = vmatmul.msk.f32.gmra.mxu2 %vm401_vm2, %v871_v26  ;;  %v1751_v27 = vpop.f32.mrf.mxu0  ;;  %v5913_v55 = vunpack.c.h.bf16 %v5088_v41  ;;  %v1164_v26 = vunpack.c.l.bf16 %v3616_v21  ;;  %v1623_v61 = vrot.slane %v1503_v5, 1 }
 0x110   : > { %3649 = vmatmul.msk.f32.gmra.mxu3 %vm401_vm2, %v5061_v2 }
 0x111   : > { %v1624_v59 = vrot.slane %v5913_v55, 1 }
 0x112   : > { %v1000_v3 = vpop.f32.mrf.mxu2  ;;  %3731 = vmatmul.msk.f32.gmra.mxu0 %vm401_vm2, %v1622_v60 }
 0x113   : > { %v1082_v35 = vadd.f32 %v1000_v3, %v689_v10  ;;  %v1312_v22 = vpop.f32.mrf.mxu3  ;;  %v5976_v10 = vunpack.c.l.bf16 %v5975_v62  ;;  %v1625_v3 = vsel %vm317_vm1, %v1623_v61, %v1624_v59 }
 0x114   : > { %v691_v53 = vpop.f32.mrf.mxu1 }
 0x115   : > { %v1394_v11 = vadd.f32 %v1312_v22, %v1082_v35  ;;  %v875_v5 = vrot.slane %v5976_v10, 2  ;;  %v5915_v35 = vunpack.c.l.bf16 %v5108_v39  ;;  %v776_v22 = vld [vmem:[%s4267_s27 + $0x9c] sm:$0xe] }
 0x116   : > { %v792_v17 = vunpack.c.l.bf16 %v776_v22 }
 0x117   : > { %v5110_v38 = vadd.f32 %v1751_v27, %v1394_v11  ;;  %3550 = vmatmul.msk.f32.gmra.mxu1 %vm401_vm2, %v5974_v15  ;;  %3584 = vmatmul.msk.f32.gmra.mxu2 %vm401_vm2, %v874_v63  ;;  %v1754_v60 = vpop.f32.mrf.mxu0  ;;  %v692_v27 = vadd.f32 %v691_v53, %v4762_v37  ;;  %v1165_v15 = vunpack.c.h.bf16 %v3616_v21  ;;  %v1626_v62 = vrot.slane %v5915_v35, 1  ;;  %v4164_v37 = vld [vmem:[%s4267_s27 + $0xa8] sm:$0xff]   ;;  %v5143_v35 = vld [vmem:[%s4267_s27 + $0xb0] sm:$0x1] }
 0x118   : > { %3650 = vmatmul.msk.f32.gmra.mxu3 %vm401_vm2, %v1164_v26  ;;  %v876_v26 = vsel %vm811_vm3, %v873_v19, %v875_v5  ;;  %v5977_v19 = vld [vmem:[#allocation6_spill] sm:$0xff]  ;;  %v4049_v22 = vunpack.c.l.bf16 %v4164_v37 }
 0x119   : > { %v878_v21 = vrot.slane %v5977_v19, 2  ;;  %v1627_v5 = vsel %vm317_vm1, %v1624_v59, %v1626_v62  ;;  %v5978_v62 = vld [vmem:[#allocation5_spill] sm:$0xff] }
 0x11a   : > { %v1003_v11 = vpop.f32.mrf.mxu2  ;;  %3732 = vmatmul.msk.f32.gmra.mxu0 %vm401_vm2, %v1625_v3  ;;  %v877_v3 = vrot.slane %v792_v17, 2 }
 0x11b   : > { %v1083_v32 = vadd.f32 %v1003_v11, %v692_v27  ;;  %v1315_v55 = vpop.f32.mrf.mxu3  ;;  %v5136_v27 = vunpack.c.h.bf16 %v4164_v37  ;;  %v5980_v37 = vld [vmem:[#allocation7_spill] sm:$0xff] }
 0x11c   : > { %v694_v63 = vpop.f32.mrf.mxu1 }
 0x11d   : > { %v1395_v61 = vadd.f32 %v1315_v55, %v1083_v32  ;;  %v695_v55 = vadd.f32 %v694_v63, %v4787_v13  ;;  %v1629_v17 = vrot.slane %v5136_v27, 1  ;;  %v5979_v13 = vunpack.c.l.bf16 %v5978_v62 }
 0x11f   : > { %v5127_v10 = vadd.f32 %v1754_v60, %v1395_v61  ;;  %3551 = vmatmul.msk.f32.gmra.mxu1 %vm401_vm2, %v5972_v25  ;;  %3585 = vmatmul.msk.f32.gmra.mxu2 %vm401_vm2, %v876_v26  ;;  %v1757_v53 = vpop.f32.mrf.mxu0  ;;  %v879_v26 = vsel %vm811_vm3, %v877_v3, %v878_v21  ;;  %v5981_v3 = vunpack.c.l.bf16 %v5980_v37 }
 0x120   : > { %3651 = vmatmul.msk.f32.gmra.mxu3 %vm401_vm2, %v1165_v15  ;;  %v1628_v15 = vrot.slane %v4049_v22, 1 }
 0x122   : > { %v1006_v60 = vpop.f32.mrf.mxu2  ;;  %3733 = vmatmul.msk.f32.gmra.mxu0 %vm401_vm2, %v1627_v5  ;;  %v880_v5 = vrot.slane %v5981_v3, 2 }
 0x123   : > { %v1084_v11 = vadd.f32 %v1006_v60, %v695_v55  ;;  %v1318_v25 = vpop.f32.mrf.mxu3  ;;  %v1630_v55 = vsel %vm317_vm1, %v1628_v15, %v1629_v17  ;;  %v777_v60 = vld [vmem:[%s4267_s27 + $0xa8] sm:$0xe]  ;;  %v5163_v15 = vld [vmem:[%s4267_s27 + $0xb4] sm:$0xff]  }
 0x124   : > { %v697_v32 = vpop.f32.mrf.mxu1 }
 0x125   : > { %v1396_v61 = vadd.f32 %v1318_v25, %v1084_v11  ;;  %v5917_v11 = vunpack.c.l.bf16 %v5143_v35 }
 0x127   : > { %v5145_v59 = vadd.f32 %v1757_v53, %v1396_v61  ;;  %3552 = vmatmul.msk.f32.gmra.mxu1 %vm401_vm2, %v5979_v13  ;;  %3586 = vmatmul.msk.f32.gmra.mxu2 %vm401_vm2, %v879_v26  ;;  %v1760_v63 = vpop.f32.mrf.mxu0  ;;  %v698_v53 = vadd.f32 %v697_v32, %v4806_v36  ;;  %v793_v26 = vunpack.c.l.bf16 %v777_v60  ;;  %v1631_v37 = vrot.slane %v5917_v11, 1 }
 0x128   : > { %3652 = vmatmul.msk.f32.gmra.mxu3 %vm401_vm2, %v4049_v22  ;;  %v881_v22 = vsel %vm811_vm3, %v878_v21, %v880_v5  ;;  %v1509_v60 = vunpack.c.l.bf16 %v5163_v15 }
 0x129   : > { %v882_v36 = vrot.slane %v793_v26, 2  ;;  %v1632_v5 = vsel %vm317_vm1, %v1629_v17, %v1631_v37 }
 0x12a   : > { %v1009_v25 = vpop.f32.mrf.mxu2  ;;  %3734 = vmatmul.msk.f32.gmra.mxu0 %vm401_vm2, %v1630_v55  ;;  %v5983_v55 = vld [vmem:[#allocation9_spill] sm:$0xff]  ;;  %v1633_v11 = vrot.slane %v1509_v60, 1 }
 0x12b   : > { %v1085_v61 = vadd.f32 %v1009_v25, %v698_v53  ;;  %v1321_v62 = vpop.f32.mrf.mxu3  ;;  %v883_v21 = vrot.slane %v5983_v55, 2  ;;  %v3620_v25 = vld [vmem:[%s4267_s27 + $0xb4] sm:$0xff]  }
 0x12c   : > { %v700_v13 = vpop.f32.mrf.mxu1 }
 0x12d   : > { %v1397_v3 = vadd.f32 %v1321_v62, %v1085_v61  ;;  %v701_v53 = vadd.f32 %v700_v13, %v4830_v14  ;;  %v5985_v14 = vld [vmem:[#allocation8_spill] sm:$0xff] }
 0x12e   : > { %v5986_v13 = vunpack.c.l.bf16 %v5985_v14 }
 0x12f   : > { %v5165_v18 = vadd.f32 %v1760_v63, %v1397_v3  ;;  %3553 = vmatmul.msk.f32.gmra.mxu1 %vm401_vm2, %v5977_v19  ;;  %3587 = vmatmul.msk.f32.gmra.mxu2 %vm401_vm2, %v881_v22  ;;  %v1763_v32 = vpop.f32.mrf.mxu0  ;;  %v5919_v63 = vunpack.c.h.bf16 %v5163_v15  ;;  %v884_v22 = vsel %vm811_vm3, %v882_v36, %v883_v21  ;;  %v1168_v3 = vunpack.c.l.bf16 %v3620_v25  ;;  %v5987_v36 = vld [vmem:[#allocation10_spill] sm:$0xff] }
 0x130   : > { %3653 = vmatmul.msk.f32.gmra.mxu3 %vm401_vm2, %v5136_v27 }
 0x131   : > { %5982 = vst [vmem:[#allocation3_spill] sm:$0xff] %v5165_v18  ;;  %v1634_v17 = vrot.slane %v5919_v63, 1 }
 0x132   : > { %v1012_v19 = vpop.f32.mrf.mxu2  ;;  %3735 = vmatmul.msk.f32.gmra.mxu0 %vm401_vm2, %v1632_v5 }
 0x133   : > { %v1086_v61 = vadd.f32 %v1012_v19, %v701_v53  ;;  %v1324_v62 = vpop.f32.mrf.mxu3  ;;  %v5988_v53 = vunpack.c.l.bf16 %v5987_v36  ;;  %v1635_v19 = vsel %vm317_vm1, %v1633_v11, %v1634_v17 }
 0x134   : > { %v703_v26 = vpop.f32.mrf.mxu1 }
 0x135   : > { %v1398_v37 = vadd.f32 %v1324_v62, %v1086_v61  ;;  %v885_v60 = vrot.slane %v5988_v53, 2  ;;  %v5920_v61 = vunpack.c.l.bf16 %v5183_v45  ;;  %v778_v62 = vld [vmem:[%s4267_s27 + $0xb4] sm:$0xe] }
 0x137   : > { %v5185_v18 = vadd.f32 %v1763_v32, %v1398_v37  ;;  %3554 = vmatmul.msk.f32.gmra.mxu1 %vm401_vm2, %v5986_v13  ;;  %3588 = vmatmul.msk.f32.gmra.mxu2 %vm401_vm2, %v884_v22  ;;  %v1766_v5 = vpop.f32.mrf.mxu0  ;;  %v704_v32 = vadd.f32 %v703_v26, %v4858_v8  ;;  %v1169_v13 = vunpack.c.h.bf16 %v3620_v25  ;;  %v1636_v36 = vrot.slane %v5920_v61, 1  ;;  %v4165_v8 = vld [vmem:[%s4267_s27 + $0xc0] sm:$0xff]  }
 0x138   : > { %3654 = vmatmul.msk.f32.gmra.mxu3 %vm401_vm2, %v1168_v3  ;;  %v886_v3 = vsel %vm811_vm3, %v883_v21, %v885_v60  ;;  %v5990_v21 = vld [vmem:[#allocation12_spill] sm:$0xff] }
 0x139   : > { %5984 = vst [vmem:[#allocation2_spill] sm:$0xff] %v5185_v18  ;;  %v794_v18 = vunpack.c.l.bf16 %v778_v62  ;;  %v888_v25 = vrot.slane %v5990_v21, 2  ;;  %v1637_v60 = vsel %vm317_vm1, %v1634_v17, %v1636_v36  ;;  %v4053_v62 = vunpack.c.l.bf16 %v4165_v8  ;;  %v5218_v17 = vld [vmem:[%s4267_s27 + $0xc8] sm:$0x1] }
 0x13a   : > { %v1015_v37 = vpop.f32.mrf.mxu2  ;;  %3736 = vmatmul.msk.f32.gmra.mxu0 %vm401_vm2, %v1635_v19 }
 0x13b   : > { %v1087_v14 = vadd.f32 %v1015_v37, %v704_v32  ;;  %v1327_v63 = vpop.f32.mrf.mxu3  ;;  %v887_v19 = vrot.slane %v794_v18, 2  ;;  %v5211_v32 = vunpack.c.h.bf16 %v4165_v8  ;;  %v1638_v18 = vrot.slane %v4053_v62, 1 }
 0x13c   : > { %v706_v22 = vpop.f32.mrf.mxu1 }
 0x13d   : > { %v1399_v11 = vadd.f32 %v1327_v63, %v1087_v14  ;;  %v707_v63 = vadd.f32 %v706_v22, %v4883_v52  ;;  %v5992_v52 = vld [vmem:[#allocation11_spill] sm:$0xff] }
 0x13e   : > { %v5993_v22 = vunpack.c.l.bf16 %v5992_v52 }
 0x13f   : > { %v5202_v53 = vadd.f32 %v1766_v5, %v1399_v11  ;;  %3555 = vmatmul.msk.f32.gmra.mxu1 %vm401_vm2, %v5983_v55  ;;  %3589 = vmatmul.msk.f32.gmra.mxu2 %vm401_vm2, %v886_v3  ;;  %v1769_v26 = vpop.f32.mrf.mxu0  ;;  %v889_v3 = vsel %vm811_vm3, %v887_v19, %v888_v25  ;;  %v5994_v19 = vunpack.c.l.bf16 %v4589_v6 }
 0x140   : > { %3655 = vmatmul.msk.f32.gmra.mxu3 %vm401_vm2, %v1169_v13  ;;  %v1639_v13 = vrot.slane %v5211_v32, 1 }
 0x141   : > { %5989 = vst [vmem:[#allocation4_spill] sm:$0xff] %v5202_v53  ;;  %v3938_v53 = vld [vmem:[%s4267_s27 + $0x18] sm:$0xe] }
 0x142   : > { %v1018_v5 = vpop.f32.mrf.mxu2  ;;  %3737 = vmatmul.msk.f32.gmra.mxu0 %vm401_vm2, %v1637_v60  ;;  %v890_v60 = vrot.slane %v5994_v19, 2 }
 0x143   : > { %v1088_v37 = vadd.f32 %v1018_v5, %v707_v63  ;;  %v1330_v55 = vpop.f32.mrf.mxu3  ;;  %v1640_v63 = vsel %vm317_vm1, %v1638_v18, %v1639_v13  ;;  %v5921_v5 = vunpack.c.l.bf16 %v5218_v17 }
 0x144   : > { %v709_v14 = vpop.f32.mrf.mxu1 }
 0x145   : > { %v1400_v11 = vadd.f32 %v1330_v55, %v1088_v37  ;;  %v3740_v37 = vld [vmem:[%s4267_s27 + $0xc] sm:$0xe]  ;;  %v1641_v6 = vrot.slane %v5921_v5, 1  ;;  %v3939_v5 = vld [vmem:[%s4267_s27 + $0x24] sm:$0xe] }
 0x146   : > { %v1874_v61 = vunpack.c.l.bf16 %v3740_v37  ;;  %v2968_v37 = vunpack.c.l.bf16 %v3938_v53 }
 0x147   : > { %v5220_v36 = vadd.f32 %v1769_v26, %v1400_v11  ;;  %3556 = vmatmul.msk.f32.gmra.mxu1 %vm401_vm2, %v5993_v22  ;;  %3590 = vmatmul.msk.f32.gmra.mxu2 %vm401_vm2, %v889_v3  ;;  %v1772_v8 = vpop.f32.mrf.mxu0  ;;  %v710_v26 = vadd.f32 %v709_v14, %v4902_v47  ;;  %v4174_v11 = vld [vmem:[%s4267_s27 + $0x18] sm:$0xff]   ;;  %v5995_v14 = vunpack.c.h.bf16 %v4624_v28 }
 0x148   : > { %3656 = vmatmul.msk.f32.gmra.mxu3 %vm401_vm2, %v4053_v62  ;;  %v891_v62 = vsel %vm811_vm3, %v888_v25, %v890_v60  ;;  %v4089_v19 = vunpack.c.l.bf16 %v4174_v11  ;;  %v1906_v60 = vrot.slane %v1874_v61, 2 }
 0x149   : > { %5991 = vst [vmem:[#allocation6_spill] sm:$0xff] %v5220_v36  ;;  %v4122_v36 = vunpack.c.h.bf16 %v4174_v11 }
 0x14a   : > { %v1021_v55 = vpop.f32.mrf.mxu2  ;;  %3738 = vmatmul.msk.f32.gmra.mxu0 %vm401_vm2, %v1640_v63  ;;  %v1907_v63 = vrot.slane %v5995_v14, 2  ;;  %v3000_v14 = vrot.slane %v2968_v37, 2 }
 0x14b   : > { %v1089_v52 = vadd.f32 %v1021_v55, %v710_v26  ;;  %v1333_v22 = vpop.f32.mrf.mxu3  ;;  %v1642_v26 = vsel %vm317_vm1, %v1639_v13, %v1641_v6  ;;  %v2658_v11 = vrot.slane %v4122_v36, 1  ;;  %v3001_v61 = vrot.slane %v4122_v36, 2 }
 0x14c   : > { %v712_v3 = vpop.f32.mrf.mxu1 }
 0x14d   : > { %v1401_v18 = vadd.f32 %v1333_v22, %v1089_v52  ;;  %v713_v55 = vadd.f32 %v712_v3, %v4926_v54  ;;  %v3858_v22 = vld [vmem:[%s4267_s27 + $0x20] sm:$0x1]  ;;  %v3002_v37 = vsel %vm811_vm3, %v3000_v14, %v3001_v61 }
 0x14e   : > { %v2563_v54 = vunpack.c.l.bf16 %v3858_v22 }
 0x14f   : > { %v5239_v47 = vadd.f32 %v1772_v8, %v1401_v18  ;;  %3557 = vmatmul.msk.f32.gmra.mxu1 %vm401_vm2, %v5990_v21  ;;  %3591 = vmatmul.msk.f32.gmra.mxu2 %vm401_vm2, %v891_v62  ;;  %v1775_v25 = vpop.f32.mrf.mxu0  ;;  %v2657_v8 = vrot.slane %v4089_v19, 1  ;;  %v1908_v62 = vsel %vm811_vm3, %v1906_v60, %v1907_v63 }
 0x150   : > { %3657 = vmatmul.msk.f32.gmra.mxu3 %vm401_vm2, %v5211_v32 }
 0x151   : > { %v2659_v53 = vsel %vm317_vm1, %v2657_v8, %v2658_v11  ;;  %v3741_v8 = vld [vmem:[%s4267_s27 + $0x18] sm:$0xe] }
 0x152   : > { %v1024_v52 = vpop.f32.mrf.mxu2  ;;  %3739 = vmatmul.msk.f32.gmra.mxu0 %vm401_vm2, %v1642_v26  ;;  %v5997_v26 = vunpack.c.l.bf16 %v4639_v57  ;;  %v1875_v57 = vunpack.c.l.bf16 %v3741_v8 }
 0x153   : > { %v1090_v21 = vadd.f32 %v1024_v52, %v713_v55  ;;  %v1336_v18 = vpop.f32.mrf.mxu3  ;;  %v2660_v52 = vrot.slane %v2563_v54, 1 }
 0x154   : > { %v715_v28 = vpop.f32.mrf.mxu1  ;;  %v1909_v60 = vrot.slane %v5997_v26, 2 }
 0x155   : > { %v1402_v13 = vadd.f32 %v1336_v18, %v1090_v21  ;;  %v716_v55 = vadd.f32 %v715_v28, %v4782_v29  ;;  %v5266_v21 = vld [vmem:[%s4267_s27 + $0x24] sm:$0xff]   ;;  %v2661_v14 = vsel %vm317_vm1, %v2658_v11, %v2660_v52 }
 0x156   : > { %v2564_v29 = vunpack.c.l.bf16 %v5266_v21 }
 0x157   : > { %v5254_v3 = vadd.f32 %v1775_v25, %v1402_v13  ;;  %3758 = vmatmul.msk.f32.vlgmr.msra.gmra.mxu1 %vm401_vm2, %v1908_v62  ;;  %3824 = vmatmul.msk.f32.vlgmr.msra.gmra.mxu2 %vm401_vm2, %v4089_v19  ;;  %v1778_v6 = vpop.f32.mrf.mxu0  ;;  %v3792_v25 = vld [vmem:[%s4267_s27 + $0x24] sm:$0xff]   ;;  %v1910_v13 = vsel %vm811_vm3, %v1907_v63, %v1909_v60  ;;  %v1911_v63 = vrot.slane %v1875_v57, 2  ;;  %v2969_v60 = vunpack.c.l.bf16 %v3939_v5 }
 0x158   : > { %3906 = vmatmul.msk.f32.vlgmr.msra.gmra.mxu3 %vm401_vm2, %v2659_v53  ;;  %v3003_v53 = vrot.slane %v2563_v54, 2  ;;  %v2565_v28 = vunpack.c.h.bf16 %v3792_v25 }
 0x159   : > { %5996 = vst [vmem:[#allocation5_spill] sm:$0xff] %v5254_v3  ;;  %v3005_v57 = vrot.slane %v2969_v60, 2 }
 0x15a   : > { %v1027_v22 = vpop.f32.mrf.mxu2  ;;  %3956 = vmatmul.msk.f32.vlgmr.msra.gmra.mxu0 %vm401_vm2, %v3002_v37  ;;  %v3004_v54 = vsel %vm811_vm3, %v3001_v61, %v3003_v53  ;;  %v2663_v52 = vrot.slane %v2565_v28, 1  ;;  %v3006_v61 = vrot.slane %v2565_v28, 2 }
 0x15b   : > { %v1091_v18 = vadd.f32 %v1027_v22, %v716_v55  ;;  %v1339_v62 = vpop.f32.mrf.mxu3  ;;  %v2662_v55 = vrot.slane %v2564_v29, 1  ;;  %v3861_v22 = vld [vmem:[%s4267_s27 + $0x2c] sm:$0x1] }
 0x15c   : > { %v718_v19 = vpop.f32.mrf.mxu1  ;;  %v3007_v29 = vsel %vm811_vm3, %v3005_v57, %v3006_v61  ;;  %v3940_v57 = vld [vmem:[%s4267_s27 + $0x30] sm:$0xe] }
 0x15d   : > { %v1403_v26 = vadd.f32 %v1339_v62, %v1091_v18  ;;  %v719_v11 = vadd.f32 %v718_v19, %v4801_v40  ;;  %v2236_v62 = vunpack.c.l.bf16 %v3792_v25  ;;  %v2664_v40 = vsel %vm317_vm1, %v2662_v55, %v2663_v52 }
 0x15e   : > { %v2566_v19 = vunpack.c.l.bf16 %v3861_v22 }
 0x15f   : > { %v5273_v3 = vadd.f32 %v1778_v6, %v1403_v26  ;;  %3759 = vmatmul.msk.f32.gmra.mxu1 %vm401_vm2, %v1910_v13  ;;  %3825 = vmatmul.msk.f32.gmra.mxu2 %vm401_vm2, %v4122_v36  ;;  %v1781_v37 = vpop.f32.mrf.mxu0  ;;  %v1913_v36 = vsel %vm811_vm3, %v1911_v63, %v4690_v50  ;;  %v5998_v26 = vunpack.c.l.bf16 %v4664_v20 }
 0x160   : > { %3907 = vmatmul.msk.f32.gmra.mxu3 %vm401_vm2, %v2661_v14  ;;  %v2665_v63 = vrot.slane %v2566_v19, 1 }
 0x161   : > { %v1914_v14 = vrot.slane %v5998_v26, 2 }
 0x162   : > { %v1030_v8 = vpop.f32.mrf.mxu2  ;;  %3957 = vmatmul.msk.f32.gmra.mxu0 %vm401_vm2, %v3004_v54  ;;  %v3742_v54 = vld [vmem:[%s4267_s27 + $0x24] sm:$0xe] }
 0x163   : > { %v1092_v18 = vadd.f32 %v1030_v8, %v719_v11  ;;  %v1342_v6 = vpop.f32.mrf.mxu3  ;;  %v2237_v8 = vunpack.c.h.bf16 %v5266_v21  ;;  %v1915_v20 = vsel %vm811_vm3, %v4690_v50, %v1914_v14  ;;  %v5999_v50 = vunpack.c.h.bf16 %v4682_v23 }
 0x164   : > { %v721_v13 = vpop.f32.mrf.mxu1 }
 0x165   : > { %v1404_v5 = vadd.f32 %v1342_v6, %v1092_v18  ;;  %v722_v28 = vadd.f32 %v721_v13, %v4824_v48  ;;  %v1876_v18 = vunpack.c.l.bf16 %v3742_v54  ;;  %v3008_v6 = vrot.slane %v2566_v19, 2 }
 0x166   : > { %v2666_v48 = vsel %vm317_vm1, %v2663_v52, %v2665_v63  ;;  %v1917_v19 = vrot.slane %v5999_v50, 2  ;;  %v2970_v52 = vunpack.c.l.bf16 %v3940_v57  ;;  %v3864_v63 = vld [vmem:[%s4267_s27 + $0x38] sm:$0x1] }
 0x167   : > { %v5285_v53 = vadd.f32 %v1781_v37, %v1404_v5  ;;  %3760 = vmatmul.msk.f32.gmra.mxu1 %vm401_vm2, %v1913_v36  ;;  %3826 = vmatmul.msk.f32.gmra.mxu2 %vm401_vm2, %v2236_v62  ;;  %v1784_v25 = vpop.f32.mrf.mxu0  ;;  %v4175_v37 = vld [vmem:[%s4267_s27 + $0x30] sm:$0xff]   ;;  %v3009_v26 = vsel %vm811_vm3, %v3006_v61, %v3008_v6 }
 0x168   : > { %3908 = vmatmul.msk.f32.gmra.mxu3 %vm401_vm2, %v2664_v40  ;;  %v4093_v13 = vunpack.c.l.bf16 %v4175_v37  ;;  %v4126_v36 = vunpack.c.h.bf16 %v4175_v37  ;;  %v1916_v40 = vrot.slane %v1876_v18, 2  ;;  %v6000_v18 = vunpack.c.l.bf16 %v4703_v34 }
 0x16a   : > { %v1033_v60 = vpop.f32.mrf.mxu2  ;;  %3958 = vmatmul.msk.f32.gmra.mxu0 %vm401_vm2, %v3007_v29  ;;  %v2667_v29 = vrot.slane %v4093_v13, 1  ;;  %v3011_v23 = vrot.slane %v4126_v36, 2  ;;  %v1919_v6 = vrot.slane %v6000_v18, 2 }
 0x16b   : > { %v1093_v11 = vadd.f32 %v1033_v60, %v722_v28  ;;  %v1345_v55 = vpop.f32.mrf.mxu3  ;;  %v2668_v28 = vrot.slane %v4126_v36, 1 }
 0x16c   : > { %v724_v22 = vpop.f32.mrf.mxu1 }
 0x16d   : > { %v1405_v62 = vadd.f32 %v1345_v55, %v1093_v11  ;;  %v725_v14 = vadd.f32 %v724_v22, %v4853_v44  ;;  %v1918_v11 = vsel %vm811_vm3, %v1916_v40, %v1917_v19  ;;  %v3010_v55 = vrot.slane %v2970_v52, 2  ;;  %v3743_v40 = vld [vmem:[%s4267_s27 + $0x30] sm:$0xe] }
 0x16e   : > { %v2569_v44 = vunpack.c.l.bf16 %v3864_v63  ;;  %v1877_v34 = vunpack.c.l.bf16 %v3743_v40 }
 0x16f   : > { %v5302_v5 = vadd.f32 %v1784_v25, %v1405_v62  ;;  %3761 = vmatmul.msk.f32.gmra.mxu1 %vm401_vm2, %v1915_v20  ;;  %3827 = vmatmul.msk.f32.gmra.mxu2 %vm401_vm2, %v2237_v8  ;;  %v1787_v21 = vpop.f32.mrf.mxu0  ;;  %v2669_v8 = vsel %vm317_vm1, %v2667_v29, %v2668_v28  ;;  %v3012_v62 = vsel %vm811_vm3, %v3010_v55, %v3011_v23 }
 0x170   : > { %3909 = vmatmul.msk.f32.gmra.mxu3 %vm401_vm2, %v2666_v48  ;;  %v2670_v57 = vrot.slane %v2569_v44, 1  ;;  %v1920_v29 = vsel %vm811_vm3, %v1917_v19, %v1919_v6  ;;  %v1921_v19 = vrot.slane %v1877_v34, 2 }
 0x172   : > { %v1036_v25 = vpop.f32.mrf.mxu2  ;;  %3959 = vmatmul.msk.f32.gmra.mxu0 %vm401_vm2, %v3009_v26  ;;  %v5327_v26 = vld [vmem:[%s4267_s27 + $0x3c] sm:$0xff]  }
 0x173   : > { %v1094_v54 = vadd.f32 %v1036_v25, %v725_v14  ;;  %v1348_v60 = vpop.f32.mrf.mxu3  ;;  %v3013_v25 = vrot.slane %v2569_v44, 2 }
 0x174   : > { %v727_v37 = vpop.f32.mrf.mxu1 }
 0x175   : > { %v1406_v61 = vadd.f32 %v1348_v60, %v1094_v54  ;;  %v728_v48 = vadd.f32 %v727_v37, %v4878_v51  ;;  %v2671_v54 = vsel %vm317_vm1, %v2668_v28, %v2670_v57  ;;  %v2570_v51 = vunpack.c.l.bf16 %v5327_v26  ;;  %v3941_v37 = vld [vmem:[%s4267_s27 + $0x3c] sm:$0xe] }
 0x177   : > { %v5315_v22 = vadd.f32 %v1787_v21, %v1406_v61  ;;  %3762 = vmatmul.msk.f32.gmra.mxu1 %vm401_vm2, %v1918_v11  ;;  %3828 = vmatmul.msk.f32.gmra.mxu2 %vm401_vm2, %v4093_v13  ;;  %v1790_v20 = vpop.f32.mrf.mxu0  ;;  %v3796_v21 = vld [vmem:[%s4267_s27 + $0x3c] sm:$0xff]   ;;  %v3014_v61 = vsel %vm811_vm3, %v3011_v23, %v3013_v25  ;;  %v2672_v44 = vrot.slane %v2570_v51, 1 }
 0x178   : > { %3910 = vmatmul.msk.f32.gmra.mxu3 %vm401_vm2, %v2669_v8  ;;  %v2571_v60 = vunpack.c.h.bf16 %v3796_v21  ;;  %v2971_v8 = vunpack.c.l.bf16 %v3941_v37  ;;  %v2240_v57 = vunpack.c.l.bf16 %v3796_v21 }
 0x17a   : > { %v1039_v50 = vpop.f32.mrf.mxu2  ;;  %3960 = vmatmul.msk.f32.gmra.mxu0 %vm401_vm2, %v3012_v62  ;;  %v2673_v18 = vrot.slane %v2571_v60, 1  ;;  %v3867_v62 = vld [vmem:[%s4267_s27 + $0x44] sm:$0x1]  ;;  %v3016_v23 = vrot.slane %v2571_v60, 2  ;;  %v3744_v60 = vld [vmem:[%s4267_s27 + $0x3c] sm:$0xe] }
 0x17b   : > { %v1095_v52 = vadd.f32 %v1039_v50, %v728_v48  ;;  %v1351_v14 = vpop.f32.mrf.mxu3  ;;  %v3015_v50 = vrot.slane %v2971_v8, 2  ;;  %v2241_v8 = vunpack.c.h.bf16 %v5327_v26 }
 0x17c   : > { %v730_v13 = vpop.f32.mrf.mxu1 }
 0x17d   : > { %v1407_v63 = vadd.f32 %v1351_v14, %v1095_v52  ;;  %v731_v28 = vadd.f32 %v730_v13, %v4897_v49  ;;  %v2674_v49 = vsel %vm317_vm1, %v2672_v44, %v2673_v18  ;;  %v2572_v14 = vunpack.c.l.bf16 %v3867_v62 }
 0x17e   : > { %v3017_v25 = vsel %vm811_vm3, %v3015_v50, %v3016_v23  ;;  %v1878_v44 = vunpack.c.l.bf16 %v3744_v60 }
 0x17f   : > { %v5334_v11 = vadd.f32 %v1790_v20, %v1407_v63  ;;  %3763 = vmatmul.msk.f32.gmra.mxu1 %vm401_vm2, %v1920_v29  ;;  %3829 = vmatmul.msk.f32.gmra.mxu2 %vm401_vm2, %v4126_v36  ;;  %v1793_v55 = vpop.f32.mrf.mxu0  ;;  %v1923_v36 = vsel %vm811_vm3, %v1921_v19, %v4754_v31  ;;  %v6001_v29 = vunpack.c.l.bf16 %v4728_v33  ;;  %v6002_v63 = vld [vmem:[#allocation26_spill] sm:$0xff]  ;;  %v2675_v51 = vrot.slane %v2572_v14, 1 }
 0x180   : > { %3911 = vmatmul.msk.f32.gmra.mxu3 %vm401_vm2, %v2671_v54  ;;  %v1926_v50 = vrot.slane %v1878_v44, 2 }
 0x181   : > { %v1924_v34 = vrot.slane %v6001_v29, 2  ;;  %v6005_v29 = vld [vmem:[#allocation29_spill] sm:$0xff] }
 0x182   : > { %v1042_v6 = vpop.f32.mrf.mxu2  ;;  %3961 = vmatmul.msk.f32.gmra.mxu0 %vm401_vm2, %v3014_v61 }
 0x183   : > { %v1096_v48 = vadd.f32 %v1042_v6, %v731_v28  ;;  %v1354_v20 = vpop.f32.mrf.mxu3  ;;  %v1925_v33 = vsel %vm811_vm3, %v4754_v31, %v1924_v34  ;;  %v3018_v6 = vrot.slane %v2572_v14, 2  ;;  %v6003_v31 = vld [vmem:[#allocation13_spill] sm:$0xff] }
 0x184   : > { %v733_v40 = vpop.f32.mrf.mxu1 }
 0x185   : > { %v1408_v52 = vadd.f32 %v1354_v20, %v1096_v48  ;;  %v734_v54 = vadd.f32 %v733_v40, %v6002_v63  ;;  %v2676_v48 = vsel %vm317_vm1, %v2673_v18, %v2675_v51  ;;  %v3942_v40 = vld [vmem:[%s4267_s27 + $0x48] sm:$0xe]  ;;  %v3019_v14 = vsel %vm811_vm3, %v3016_v23, %v3018_v6  ;;  %v6006_v6 = vld [vmem:[#allocation14_spill] sm:$0xff] }
 0x186   : > { %v2972_v18 = vunpack.c.l.bf16 %v3942_v40 }
 0x187   : > { %v5346_v13 = vadd.f32 %v1793_v55, %v1408_v52  ;;  %3764 = vmatmul.msk.f32.gmra.mxu1 %vm401_vm2, %v1923_v36  ;;  %3830 = vmatmul.msk.f32.gmra.mxu2 %vm401_vm2, %v2240_v57  ;;  %v1796_v21 = vpop.f32.mrf.mxu0  ;;  %v4176_v55 = vld [vmem:[%s4267_s27 + $0x48] sm:$0xff]   ;;  %v6004_v52 = vunpack.c.h.bf16 %v6003_v31 }
 0x188   : > { %3912 = vmatmul.msk.f32.gmra.mxu3 %vm401_vm2, %v2674_v49  ;;  %v4097_v20 = vunpack.c.l.bf16 %v4176_v55  ;;  %v4130_v57 = vunpack.c.h.bf16 %v4176_v55 }
 0x189   : > { %v1927_v49 = vrot.slane %v6004_v52, 2 }
 0x18a   : > { %v1045_v37 = vpop.f32.mrf.mxu2  ;;  %3962 = vmatmul.msk.f32.gmra.mxu0 %vm401_vm2, %v3017_v25  ;;  %v2677_v25 = vrot.slane %v4097_v20, 1  ;;  %v2678_v63 = vrot.slane %v4130_v57, 1 }
 0x18b   : > { %v1097_v19 = vadd.f32 %v1045_v37, %v734_v54  ;;  %v1357_v61 = vpop.f32.mrf.mxu3  ;;  %v3870_v54 = vld [vmem:[%s4267_s27 + $0x50] sm:$0x1]  ;;  %v1928_v55 = vsel %vm811_vm3, %v1926_v50, %v1927_v49  ;;  %v6008_v50 = vld [vmem:[#allocation15_spill] sm:$0xff] }
 0x18c   : > { %v736_v28 = vpop.f32.mrf.mxu1 }
 0x18d   : > { %v1409_v62 = vadd.f32 %v1357_v61, %v1097_v19  ;;  %v737_v34 = vadd.f32 %v736_v28, %v6005_v29  ;;  %v3020_v19 = vrot.slane %v2972_v18, 2  ;;  %v3021_v61 = vrot.slane %v4130_v57, 2  ;;  %v5388_v29 = vld [vmem:[%s4267_s27 + $0x54] sm:$0xff]  }
 0x18e   : > { %v2575_v28 = vunpack.c.l.bf16 %v3870_v54 }
 0x18f   : > { %v5363_v36 = vadd.f32 %v1796_v21, %v1409_v62  ;;  %3765 = vmatmul.msk.f32.gmra.mxu1 %vm401_vm2, %v1925_v33  ;;  %3831 = vmatmul.msk.f32.gmra.mxu2 %vm401_vm2, %v2241_v8  ;;  %v1799_v26 = vpop.f32.mrf.mxu0  ;;  %v2679_v8 = vsel %vm317_vm1, %v2677_v25, %v2678_v63  ;;  %v6007_v62 = vunpack.c.l.bf16 %v6006_v6  ;;  %v3022_v40 = vsel %vm811_vm3, %v3020_v19, %v3021_v61 }
 0x190   : > { %3913 = vmatmul.msk.f32.gmra.mxu3 %vm401_vm2, %v2676_v48  ;;  %v2680_v52 = vrot.slane %v2575_v28, 1 }
 0x191   : > { %v1929_v48 = vrot.slane %v6007_v62, 2 }
 0x192   : > { %v1048_v21 = vpop.f32.mrf.mxu2  ;;  %3963 = vmatmul.msk.f32.gmra.mxu0 %vm401_vm2, %v3019_v14  ;;  %v3745_v14 = vld [vmem:[%s4267_s27 + $0x48] sm:$0xe] }
 0x193   : > { %v1098_v51 = vadd.f32 %v1048_v21, %v737_v34  ;;  %v1360_v60 = vpop.f32.mrf.mxu3  ;;  %v1930_v21 = vsel %vm811_vm3, %v1927_v49, %v1929_v48  ;;  %v1879_v54 = vunpack.c.l.bf16 %v3745_v14  ;;  %v6009_v48 = vld [vmem:[#allocation16_spill] sm:$0xff] }
 0x194   : > { %v739_v37 = vpop.f32.mrf.mxu1 }
 0x195   : > { %v1410_v23 = vadd.f32 %v1360_v60, %v1098_v51  ;;  %v740_v31 = vadd.f32 %v739_v37, %v6008_v50  ;;  %v3023_v51 = vrot.slane %v2575_v28, 2  ;;  %v2576_v37 = vunpack.c.l.bf16 %v5388_v29 }
 0x196   : > { %v1931_v49 = vrot.slane %v1879_v54, 2 }
 0x197   : > { %v5376_v33 = vadd.f32 %v1799_v26, %v1410_v23  ;;  %3766 = vmatmul.msk.f32.gmra.mxu1 %vm401_vm2, %v1928_v55  ;;  %3832 = vmatmul.msk.f32.gmra.mxu2 %vm401_vm2, %v4097_v20  ;;  %v1802_v44 = vpop.f32.mrf.mxu0  ;;  %v3800_v26 = vld [vmem:[%s4267_s27 + $0x54] sm:$0xff]   ;;  %v2681_v55 = vsel %vm317_vm1, %v2678_v63, %v2680_v52  ;;  %v3024_v28 = vsel %vm811_vm3, %v3021_v61, %v3023_v51  ;;  %v3873_v52 = vld [vmem:[%s4267_s27 + $0x5c] sm:$0x1] }
 0x198   : > { %3914 = vmatmul.msk.f32.gmra.mxu3 %vm401_vm2, %v2679_v8  ;;  %v2577_v19 = vunpack.c.h.bf16 %v3800_v26  ;;  %v3943_v23 = vld [vmem:[%s4267_s27 + $0x54] sm:$0xe]  ;;  %v2578_v51 = vunpack.c.l.bf16 %v3873_v52  ;;  %v2245_v52 = vunpack.c.h.bf16 %v5388_v29 }
 0x199   : > { %v2973_v62 = vunpack.c.l.bf16 %v3943_v23 }
 0x19a   : > { %v1051_v18 = vpop.f32.mrf.mxu2  ;;  %3964 = vmatmul.msk.f32.gmra.mxu0 %vm401_vm2, %v3022_v40  ;;  %v2682_v40 = vrot.slane %v2576_v37, 1  ;;  %v2683_v50 = vrot.slane %v2577_v19, 1  ;;  %v3026_v61 = vrot.slane %v2577_v19, 2 }
 0x19b   : > { %v1099_v34 = vadd.f32 %v1051_v18, %v740_v31  ;;  %v1363_v25 = vpop.f32.mrf.mxu3  ;;  %v2244_v18 = vunpack.c.l.bf16 %v3800_v26 }
 0x19c   : > { %v742_v20 = vpop.f32.mrf.mxu1 }
 0x19d   : > { %v1411_v60 = vadd.f32 %v1363_v25, %v1099_v34  ;;  %v743_v63 = vadd.f32 %v742_v20, %v6009_v48  ;;  %v2684_v20 = vsel %vm317_vm1, %v2682_v40, %v2683_v50  ;;  %v3746_v48 = vld [vmem:[%s4267_s27 + $0x54] sm:$0xe] }
 0x19f   : > { %v5395_v8 = vadd.f32 %v1802_v44, %v1411_v60  ;;  %3767 = vmatmul.msk.f32.gmra.mxu1 %vm401_vm2, %v1930_v21  ;;  %3833 = vmatmul.msk.f32.gmra.mxu2 %vm401_vm2, %v4130_v57  ;;  %v1805_v6 = vpop.f32.mrf.mxu0  ;;  %v6010_v57 = vld [vmem:[#allocation20_spill] sm:$0xff]  ;;  %v3025_v21 = vrot.slane %v2973_v62, 2  ;;  %v2685_v62 = vrot.slane %v2578_v51, 1 }
 0x1a0   : > { %3915 = vmatmul.msk.f32.gmra.mxu3 %vm401_vm2, %v2681_v55  ;;  %v1933_v25 = vsel %vm811_vm3, %v1931_v49, %v6010_v57  ;;  %v6011_v55 = vld [vmem:[#allocation17_spill] sm:$0xff] }
 0x1a1   : > { %v6012_v37 = vunpack.c.l.bf16 %v6011_v55  ;;  %v3027_v49 = vsel %vm811_vm3, %v3025_v21, %v3026_v61  ;;  %v3944_v55 = vld [vmem:[%s4267_s27 + $0x60] sm:$0xe] }
 0x1a2   : > { %v1054_v31 = vpop.f32.mrf.mxu2  ;;  %3965 = vmatmul.msk.f32.gmra.mxu0 %vm401_vm2, %v3024_v28  ;;  %v6013_v28 = vld [vmem:[#allocation18_spill] sm:$0xff] }
 0x1a3   : > { %v1100_v14 = vadd.f32 %v1054_v31, %v743_v63  ;;  %v1366_v44 = vpop.f32.mrf.mxu3  ;;  %v1934_v23 = vrot.slane %v6012_v37, 2 }
 0x1a4   : > { %v745_v34 = vpop.f32.mrf.mxu1 }
 0x1a5   : > { %v1412_v54 = vadd.f32 %v1366_v44, %v1100_v14  ;;  %v746_v19 = vadd.f32 %v745_v34, %v6013_v28  ;;  %v1935_v44 = vsel %vm811_vm3, %v6010_v57, %v1934_v23  ;;  %v2686_v34 = vsel %vm317_vm1, %v2683_v50, %v2685_v62  ;;  %v6014_v57 = vld [vmem:[#allocation19_spill] sm:$0xff] }
 0x1a6   : > { %v6015_v23 = vunpack.c.h.bf16 %v6014_v57  ;;  %v2974_v50 = vunpack.c.l.bf16 %v3944_v55  ;;  %v6018_v57 = vld [vmem:[#allocation22_spill] sm:$0xff] }
 0x1a7   : > { %v5407_v60 = vadd.f32 %v1805_v6, %v1412_v54  ;;  %3768 = vmatmul.msk.f32.gmra.mxu1 %vm401_vm2, %v1933_v25  ;;  %3834 = vmatmul.msk.f32.gmra.mxu2 %vm401_vm2, %v2244_v18  ;;  %v1808_v26 = vpop.f32.mrf.mxu0  ;;  %v4177_v6 = vld [vmem:[%s4267_s27 + $0x60] sm:$0xff]   ;;  %v1880_v18 = vunpack.c.l.bf16 %v3746_v48  ;;  %v3028_v25 = vrot.slane %v2578_v51, 2 }
 0x1a8   : > { %3916 = vmatmul.msk.f32.gmra.mxu3 %vm401_vm2, %v2684_v20  ;;  %v4101_v54 = vunpack.c.l.bf16 %v4177_v6  ;;  %v4134_v20 = vunpack.c.h.bf16 %v4177_v6  ;;  %v1937_v51 = vrot.slane %v6015_v23, 2  ;;  %v3876_v6 = vld [vmem:[%s4267_s27 + $0x68] sm:$0x1]  ;;  %v6019_v23 = vunpack.c.l.bf16 %v6018_v57 }
 0x1a9   : > { %v3029_v28 = vsel %vm811_vm3, %v3026_v61, %v3028_v25 }
 0x1aa   : > { %v1057_v63 = vpop.f32.mrf.mxu2  ;;  %3966 = vmatmul.msk.f32.gmra.mxu0 %vm401_vm2, %v3027_v49  ;;  %v1936_v49 = vrot.slane %v1880_v18, 2  ;;  %v2687_v48 = vrot.slane %v4101_v54, 1  ;;  %v3030_v18 = vrot.slane %v2974_v50, 2  ;;  %v6020_v50 = vld [vmem:[#allocation23_spill] sm:$0xff] }
 0x1ab   : > { %v1101_v40 = vadd.f32 %v1057_v63, %v746_v19  ;;  %v1369_v31 = vpop.f32.mrf.mxu3  ;;  %v6016_v19 = vld [vmem:[#allocation21_spill] sm:$0xff]  ;;  %v2688_v63 = vrot.slane %v4134_v20, 1 }
 0x1ac   : > { %v748_v14 = vpop.f32.mrf.mxu1 }
 0x1ad   : > { %v1413_v21 = vadd.f32 %v1369_v31, %v1101_v40  ;;  %v749_v62 = vadd.f32 %v748_v14, %v6016_v19  ;;  %v2689_v25 = vsel %vm317_vm1, %v2687_v48, %v2688_v63  ;;  %v2581_v14 = vunpack.c.l.bf16 %v3876_v6  ;;  %v3747_v48 = vld [vmem:[%s4267_s27 + $0x60] sm:$0xe]  ;;  %v5449_v6 = vld [vmem:[%s4267_s27 + $0x6c] sm:$0xff]  }
 0x1af   : > { %v5424_v37 = vadd.f32 %v1808_v26, %v1413_v21  ;;  %3769 = vmatmul.msk.f32.gmra.mxu1 %vm401_vm2, %v1935_v44  ;;  %3835 = vmatmul.msk.f32.gmra.mxu2 %vm401_vm2, %v2245_v52  ;;  %v1811_v29 = vpop.f32.mrf.mxu0  ;;  %v1938_v44 = vsel %vm811_vm3, %v1936_v49, %v1937_v51  ;;  %v3031_v21 = vrot.slane %v4134_v20, 2  ;;  %v1939_v49 = vrot.slane %v6019_v23, 2 }
 0x1b0   : > { %3917 = vmatmul.msk.f32.gmra.mxu3 %vm401_vm2, %v2686_v34 }
 0x1b2   : > { %v1060_v26 = vpop.f32.mrf.mxu2  ;;  %3967 = vmatmul.msk.f32.gmra.mxu0 %vm401_vm2, %v3029_v28  ;;  %v3032_v28 = vsel %vm811_vm3, %v3030_v18, %v3031_v21 }
 0x1b3   : > { %v1102_v40 = vadd.f32 %v1060_v26, %v749_v62  ;;  %v1372_v31 = vpop.f32.mrf.mxu3  ;;  %v2690_v62 = vrot.slane %v2581_v14, 1 }
 0x1b4   : > { %v751_v52 = vpop.f32.mrf.mxu1 }
 0x1b5   : > { %v1414_v61 = vadd.f32 %v1372_v31, %v1102_v40  ;;  %v752_v19 = vadd.f32 %v751_v52, %v6020_v50  ;;  %v2691_v18 = vsel %vm317_vm1, %v2688_v63, %v2690_v62  ;;  %v2582_v52 = vunpack.c.l.bf16 %v5449_v6  ;;  %v3945_v50 = vld [vmem:[%s4267_s27 + $0x6c] sm:$0xe] }
 0x1b7   : > { %v5437_v34 = vadd.f32 %v1811_v29, %v1414_v61  ;;  %3770 = vmatmul.msk.f32.gmra.mxu1 %vm401_vm2, %v1938_v44  ;;  %3836 = vmatmul.msk.f32.gmra.mxu2 %vm401_vm2, %v4101_v54  ;;  %v1814_v55 = vpop.f32.mrf.mxu0  ;;  %v3804_v29 = vld [vmem:[%s4267_s27 + $0x6c] sm:$0xff]   ;;  %v1940_v44 = vsel %vm811_vm3, %v1937_v51, %v1939_v49  ;;  %v1881_v61 = vunpack.c.l.bf16 %v3747_v48  ;;  %v2975_v49 = vunpack.c.l.bf16 %v3945_v50  ;;  %v6023_v50 = vld [vmem:[#allocation25_spill] sm:$0xff] }
 0x1b8   : > { %3918 = vmatmul.msk.f32.gmra.mxu3 %vm401_vm2, %v2689_v25  ;;  %v3033_v25 = vrot.slane %v2581_v14, 2  ;;  %v2583_v23 = vunpack.c.h.bf16 %v3804_v29  ;;  %v2692_v62 = vrot.slane %v2582_v52, 1 }
 0x1b9   : > { %6017 = vst [vmem:[#allocation7_spill] sm:$0xff] %v5437_v34  ;;  %v1941_v51 = vrot.slane %v1881_v61, 2  ;;  %v3035_v61 = vrot.slane %v2975_v49, 2  ;;  %v6025_v49 = vld [vmem:[#allocation27_spill] sm:$0xff] }
 0x1ba   : > { %v1063_v26 = vpop.f32.mrf.mxu2  ;;  %3968 = vmatmul.msk.f32.gmra.mxu0 %vm401_vm2, %v3032_v28  ;;  %v3034_v14 = vsel %vm811_vm3, %v3031_v21, %v3033_v25  ;;  %v2693_v48 = vrot.slane %v2583_v23, 1  ;;  %v3036_v21 = vrot.slane %v2583_v23, 2 }
 0x1bb   : > { %v1103_v40 = vadd.f32 %v1063_v26, %v752_v19  ;;  %v1375_v31 = vpop.f32.mrf.mxu3  ;;  %v6021_v19 = vld [vmem:[#allocation24_spill] sm:$0xff] }
 0x1bc   : > { %v754_v54 = vpop.f32.mrf.mxu1 }
 0x1bd   : > { %v1415_v57 = vadd.f32 %v1375_v31, %v1103_v40  ;;  %v755_v63 = vadd.f32 %v754_v54, %v6021_v19  ;;  %v3879_v40 = vld [vmem:[%s4267_s27 + $0x74] sm:$0x1]  ;;  %v2694_v54 = vsel %vm317_vm1, %v2692_v62, %v2693_v48  ;;  %v3748_v62 = vld [vmem:[%s4267_s27 + $0x6c] sm:$0xe] }
 0x1bf   : > { %v5456_v34 = vadd.f32 %v1814_v55, %v1415_v57  ;;  %3771 = vmatmul.msk.f32.gmra.mxu1 %vm401_vm2, %v1940_v44  ;;  %3837 = vmatmul.msk.f32.gmra.mxu2 %vm401_vm2, %v4134_v20  ;;  %v1817_v28 = vpop.f32.mrf.mxu0  ;;  %v2248_v57 = vunpack.c.l.bf16 %v3804_v29  ;;  %v1943_v20 = vsel %vm811_vm3, %v1941_v51, %v4942_v42  ;;  %v3037_v51 = vsel %vm811_vm3, %v3035_v61, %v3036_v21 }
 0x1c0   : > { %3919 = vmatmul.msk.f32.gmra.mxu3 %vm401_vm2, %v2691_v18  ;;  %v2584_v18 = vunpack.c.l.bf16 %v3879_v40 }
 0x1c2   : > { %v1066_v26 = vpop.f32.mrf.mxu2  ;;  %3969 = vmatmul.msk.f32.gmra.mxu0 %vm401_vm2, %v3034_v14  ;;  %v6024_v14 = vunpack.c.l.bf16 %v6023_v50 }
 0x1c3   : > { %v1104_v31 = vadd.f32 %v1066_v26, %v755_v63  ;;  %v1378_v55 = vpop.f32.mrf.mxu3  ;;  %v2695_v63 = vrot.slane %v2584_v18, 1 }
 0x1c4   : > { %v757_v44 = vpop.f32.mrf.mxu1  ;;  %v1944_v19 = vrot.slane %v6024_v14, 2 }
 0x1c5   : > { %v1416_v25 = vadd.f32 %v1378_v55, %v1104_v31  ;;  %v758_v23 = vadd.f32 %v757_v44, %v6025_v49  ;;  %v2249_v55 = vunpack.c.h.bf16 %v5449_v6  ;;  %v2696_v44 = vsel %vm317_vm1, %v2693_v48, %v2695_v63  ;;  %v3946_v49 = vld [vmem:[%s4267_s27 + $0x78] sm:$0xe]  ;;  %v6028_v63 = vld [vmem:[#allocation30_spill] sm:$0xff] }
 0x1c6   : > { %v2976_v48 = vunpack.c.l.bf16 %v3946_v49 }
 0x1c7   : > { %v5468_v52 = vadd.f32 %v1817_v28, %v1416_v25  ;;  %3772 = vmatmul.msk.f32.gmra.mxu1 %vm401_vm2, %v1943_v20  ;;  %3838 = vmatmul.msk.f32.gmra.mxu2 %vm401_vm2, %v2248_v57  ;;  %v1820_v29 = vpop.f32.mrf.mxu0  ;;  %v4178_v28 = vld [vmem:[%s4267_s27 + $0x78] sm:$0xff]   ;;  %v1945_v20 = vsel %vm811_vm3, %v4942_v42, %v1944_v19  ;;  %v1882_v25 = vunpack.c.l.bf16 %v3748_v62  ;;  %v6026_v42 = vld [vmem:[#allocation28_spill] sm:$0xff] }
 0x1c8   : > { %3920 = vmatmul.msk.f32.gmra.mxu3 %vm401_vm2, %v2694_v54  ;;  %v3038_v54 = vrot.slane %v2584_v18, 2  ;;  %v4105_v50 = vunpack.c.l.bf16 %v4178_v28  ;;  %v4138_v14 = vunpack.c.h.bf16 %v4178_v28  ;;  %v6027_v19 = vunpack.c.h.bf16 %v6026_v42 }
 0x1c9   : > { %6022 = vst [vmem:[#allocation9_spill] sm:$0xff] %v5468_v52 }
 0x1ca   : > { %v1069_v26 = vpop.f32.mrf.mxu2  ;;  %3970 = vmatmul.msk.f32.gmra.mxu0 %vm401_vm2, %v3037_v51  ;;  %v1946_v51 = vrot.slane %v1882_v25, 2  ;;  %v1947_v18 = vrot.slane %v6027_v19, 2  ;;  %v2698_v28 = vrot.slane %v4138_v14, 1  ;;  %v6029_v19 = vunpack.c.l.bf16 %v4959_v7 }
 0x1cb   : > { %v1105_v40 = vadd.f32 %v1069_v26, %v758_v23  ;;  %v1381_v31 = vpop.f32.mrf.mxu3  ;;  %v3039_v23 = vsel %vm811_vm3, %v3036_v21, %v3038_v54  ;;  %v2697_v26 = vrot.slane %v4105_v50, 1 }
 0x1cc   : > { %v760_v57 = vpop.f32.mrf.mxu1  ;;  %v1948_v25 = vsel %vm811_vm3, %v1946_v51, %v1947_v18  ;;  %v1949_v51 = vrot.slane %v6029_v19, 2  ;;  %v3947_v19 = vld [vmem:[%s4267_s27 + $0x84] sm:$0xe] }
 0x1cd   : > { %v1417_v61 = vadd.f32 %v1381_v31, %v1105_v40  ;;  %v761_v62 = vadd.f32 %v760_v57, %v6028_v63  ;;  %v3882_v40 = vld [vmem:[%s4267_s27 + $0x80] sm:$0x1]  ;;  %v2699_v54 = vsel %vm317_vm1, %v2697_v26, %v2698_v28 }
 0x1ce   : > { %v2587_v57 = vunpack.c.l.bf16 %v3882_v40 }
 0x1cf   : > { %v5485_v52 = vadd.f32 %v1820_v29, %v1417_v61  ;;  %3773 = vmatmul.msk.f32.gmra.mxu1 %vm401_vm2, %v1945_v20  ;;  %3839 = vmatmul.msk.f32.gmra.mxu2 %vm401_vm2, %v2249_v55  ;;  %v1823_v6 = vpop.f32.mrf.mxu0  ;;  %v3040_v61 = vrot.slane %v2976_v48, 2 }
 0x1d0   : > { %3921 = vmatmul.msk.f32.gmra.mxu3 %vm401_vm2, %v2696_v44  ;;  %v3041_v44 = vrot.slane %v4138_v14, 2  ;;  %v2700_v63 = vrot.slane %v2587_v57, 1 }
 0x1d2   : > { %v1072_v29 = vpop.f32.mrf.mxu2  ;;  %3971 = vmatmul.msk.f32.gmra.mxu0 %vm401_vm2, %v3039_v23  ;;  %v3042_v23 = vsel %vm811_vm3, %v3040_v61, %v3041_v44 }
 0x1d3   : > { %v1106_v31 = vadd.f32 %v1072_v29, %v761_v62  ;;  %v1384_v20 = vpop.f32.mrf.mxu3  ;;  %v3749_v62 = vld [vmem:[%s4267_s27 + $0x78] sm:$0xe]  ;;  %v5510_v29 = vld [vmem:[%s4267_s27 + $0x84] sm:$0xff]  }
 0x1d4   : > { %v2073_v55 = vpop.f32.mrf.mxu1  ;;  %v1883_v7 = vunpack.c.l.bf16 %v3749_v62 }
 0x1d5   : > { %v1418_v21 = vadd.f32 %v1384_v20, %v1106_v31  ;;  %v2169_v48 = vadd.f32 %v2073_v55, %v4976_v30  ;;  %v1950_v20 = vsel %vm811_vm3, %v1947_v18, %v1949_v51  ;;  %v5517_v30 = vld [vmem:[%s5849_s2] ss:$0 sm:$0xff]  ;;  %v2701_v55 = vsel %vm317_vm1, %v2698_v28, %v2700_v63 }
 0x1d7   : > { %v5498_v49 = vadd.f32 %v1823_v6, %v1418_v21  ;;  %3774 = vmatmul.msk.f32.gmra.mxu1 %vm401_vm2, %v1948_v25  ;;  %3840 = vmatmul.msk.f32.gmra.mxu2 %vm401_vm2, %v4105_v50  ;;  %v3167_v42 = vpop.f32.mrf.mxu0  ;;  %v3808_v6 = vld [vmem:[%s4267_s27 + $0x84] sm:$0xff]   ;;  %v3043_v25 = vrot.slane %v2587_v57, 2  ;;  %v2588_v21 = vunpack.c.l.bf16 %v5510_v29  ;;  %v1951_v57 = vrot.slane %v1883_v7, 2 }
 0x1d8   : > { %3922 = vmatmul.msk.f32.gmra.mxu3 %vm401_vm2, %v2699_v54  ;;  %v2589_v54 = vunpack.c.h.bf16 %v3808_v6 }
 0x1d9   : > { %v3044_v51 = vsel %vm811_vm3, %v3041_v44, %v3043_v25  ;;  %v2702_v63 = vrot.slane %v2588_v21, 1  ;;  %v1953_v44 = vsel %vm811_vm3, %v1951_v57, %v5019_v12  ;;  %v6030_v57 = vunpack.c.l.bf16 %v4988_v0 }
 0x1da   : > { %v2385_v26 = vpop.f32.mrf.mxu2  ;;  %3972 = vmatmul.msk.f32.gmra.mxu0 %vm401_vm2, %v3042_v23  ;;  %v3046_v25 = vrot.slane %v2589_v54, 2 }
 0x1db   : > { %v2481_v40 = vadd.f32 %v2385_v26, %v2169_v48  ;;  %v2824_v31 = vpop.f32.mrf.mxu3  ;;  %v2977_v48 = vunpack.c.l.bf16 %v3947_v19  ;;  %v2703_v26 = vrot.slane %v2589_v54, 1 }
 0x1dc   : > { %v2076_v50 = vpop.f32.mrf.mxu1 }
 0x1dd   : > { %v2920_v61 = vadd.f32 %v2824_v31, %v2481_v40  ;;  %v2170_v62 = vadd.f32 %v2076_v50, %v4990_v9  ;;  %v3885_v40 = vld [vmem:[%s4267_s27 + $0x8c] sm:$0x1]  ;;  %v3045_v7 = vrot.slane %v2977_v48, 2 }
 0x1de   : > { %v2590_v50 = vunpack.c.l.bf16 %v3885_v40 }
 0x1df   : > { %v3263_v23 = vadd.f32 %v3167_v42, %v2920_v61  ;;  %3775 = vmatmul.msk.f32.gmra.mxu1 %vm401_vm2, %v1950_v20  ;;  %3841 = vmatmul.msk.f32.gmra.mxu2 %vm401_vm2, %v4138_v14  ;;  %v3170_v18 = vpop.f32.mrf.mxu0  ;;  %v2252_v61 = vunpack.c.l.bf16 %v3808_v6  ;;  %v2704_v6 = vsel %vm317_vm1, %v2702_v63, %v2703_v26  ;;  %v3047_v54 = vsel %vm811_vm3, %v3045_v7, %v3046_v25  ;;  %v3750_v63 = vld [vmem:[%s4267_s27 + $0x84] sm:$0xe] }
 0x1e0   : > { %3923 = vmatmul.msk.f32.gmra.mxu3 %vm401_vm2, %v2701_v55  ;;  %v2705_v48 = vrot.slane %v2590_v50, 1 }
 0x1e1   : > { %v3299_v28 = vadd.f32 %v5517_v30, %v3263_v23 }
 0x1e2   : > { %v2388_v42 = vpop.f32.mrf.mxu2  ;;  %3973 = vmatmul.msk.f32.gmra.mxu0 %vm401_vm2, %v3044_v51  ;;  %v1954_v51 = vrot.slane %v6030_v57, 2 }
 0x1e3   : > { %v3331_v31 = vmax.f32 %v3299_v28, 0.0  ;;  %v2482_v20 = vadd.f32 %v2388_v42, %v2170_v62  ;;  %v2827_v14 = vpop.f32.mrf.mxu3 }
 0x1e4   : > { %v2079_v9 = vpop.f32.mrf.mxu1 }
 0x1e5   : > { %v3363_v55 = vpack.c.bf16 %v3331_v31, %v3331_v31  ;;  %v2921_v21 = vadd.f32 %v2827_v14, %v2482_v20  ;;  %v2171_v62 = vadd.f32 %v2079_v9, %v5011_v16  ;;  %v2253_v14 = vunpack.c.h.bf16 %v5510_v29 }
 0x1e6   : > { %v2706_v16 = vsel %vm317_vm1, %v2703_v26, %v2705_v48  ;;  %v1884_v9 = vunpack.c.l.bf16 %v3750_v63  ;;  %v3888_v63 = vld [vmem:[%s4267_s27 + $0x98] sm:$0x1] }
 0x1e7   : > { %3396 = vst.msk [vmem:[%s5534_s16] sm:$0xf] %vm3395_vm4, %v3363_v55  ;;  %v3264_v19 = vadd.f32 %v3170_v18, %v2921_v21  ;;  %3776 = vmatmul.msk.f32.gmra.mxu1 %vm401_vm2, %v1953_v44  ;;  %3842 = vmatmul.msk.f32.gmra.mxu2 %vm401_vm2, %v2252_v61  ;;  %v3173_v23 = vpop.f32.mrf.mxu0  ;;  %v4179_v18 = vld [vmem:[%s4267_s27 + $0x90] sm:$0xff]   ;;  %v1955_v61 = vsel %vm811_vm3, %v5019_v12, %v1954_v51  ;;  %v3048_v44 = vrot.slane %v2590_v50, 2  ;;  %v6031_v50 = vunpack.c.h.bf16 %v5009_v1 }
 0x1e8   : > { %3924 = vmatmul.msk.f32.gmra.mxu3 %vm401_vm2, %v2704_v6  ;;  %v4109_v21 = vunpack.c.l.bf16 %v4179_v18  ;;  %v5556_v6 = vunpack.c.h.bf16 %v4179_v18  ;;  %v1956_v26 = vrot.slane %v1884_v9, 2 }
 0x1e9   : > { %v3300_v28 = vadd.f32 %v5517_v30, %v3264_v19  ;;  %v3948_v19 = vld [vmem:[%s4267_s27 + $0x90] sm:$0xe]  ;;  %v1957_v57 = vrot.slane %v6031_v50, 2  ;;  %v3049_v51 = vsel %vm811_vm3, %v3046_v25, %v3048_v44  ;;  %v2593_v25 = vunpack.c.l.bf16 %v3888_v63 }
 0x1ea   : > { %v2391_v40 = vpop.f32.mrf.mxu2  ;;  %3974 = vmatmul.msk.f32.gmra.mxu0 %vm401_vm2, %v3047_v54  ;;  %v2978_v48 = vunpack.c.l.bf16 %v3948_v19 }
 0x1eb   : > { %v3332_v42 = vmax.f32 %v3300_v28, 0.0  ;;  %v2483_v31 = vadd.f32 %v2391_v40, %v2171_v62  ;;  %v2830_v20 = vpop.f32.mrf.mxu3  ;;  %v2707_v28 = vrot.slane %v4109_v21, 1  ;;  %v2710_v19 = vrot.slane %v2593_v25, 1 }
 0x1ec   : > { %v2082_v0 = vpop.f32.mrf.mxu1 }
 0x1ed   : > { %v3364_v7 = vpack.c.bf16 %v3332_v42, %v3332_v42  ;;  %v2922_v55 = vadd.f32 %v2830_v20, %v2483_v31  ;;  %v2172_v54 = vadd.f32 %v2082_v0, %v5035_v24  ;;  %v1958_v20 = vsel %vm811_vm3, %v1956_v26, %v1957_v57 }
 0x1ee   : > { %v3051_v24 = vrot.slane %v5556_v6, 2 }
 0x1ef   : > { %3397 = vst.msk [vmem:[%s5534_s16 + $0x4] sm:$0xf] %vm3395_vm4, %v3364_v7  ;;  %v3265_v29 = vadd.f32 %v3173_v23, %v2922_v55  ;;  %3777 = vmatmul.msk.f32.gmra.mxu1 %vm401_vm2, %v1955_v61  ;;  %3843 = vmatmul.msk.f32.gmra.mxu2 %vm401_vm2, %v2253_v14  ;;  %v3176_v12 = vpop.f32.mrf.mxu0  ;;  %v2708_v23 = vrot.slane %v5556_v6, 1  ;;  %v3050_v14 = vrot.slane %v2978_v48, 2  ;;  %v6032_v7 = vunpack.c.l.bf16 %v5033_v58 }
 0x1f0   : > { %3925 = vmatmul.msk.f32.gmra.mxu3 %vm401_vm2, %v2706_v16 }
 0x1f1   : > { %v3301_v62 = vadd.f32 %v5517_v30, %v3265_v29  ;;  %v2709_v16 = vsel %vm317_vm1, %v2707_v28, %v2708_v23  ;;  %v1959_v55 = vrot.slane %v6032_v7, 2  ;;  %v3052_v29 = vsel %vm811_vm3, %v3050_v14, %v3051_v24  ;;  %v3949_v14 = vld [vmem:[%s4267_s27 + $0x9c] sm:$0xe] }
 0x1f2   : > { %v2394_v40 = vpop.f32.mrf.mxu2  ;;  %3975 = vmatmul.msk.f32.gmra.mxu0 %vm401_vm2, %v3049_v51  ;;  %v3751_v51 = vld [vmem:[%s4267_s27 + $0x90] sm:$0xe] }
 0x1f3   : > { %v3333_v18 = vmax.f32 %v3301_v62, 0.0  ;;  %v2484_v42 = vadd.f32 %v2394_v40, %v2172_v54  ;;  %v2833_v31 = vpop.f32.mrf.mxu3  ;;  %v5588_v54 = vld [vmem:[%s4267_s27 + $0x9c] sm:$0xff]   ;;  %v1960_v63 = vsel %vm811_vm3, %v1957_v57, %v1959_v55  ;;  %v2711_v40 = vsel %vm317_vm1, %v2708_v23, %v2710_v19  ;;  %v3891_v19 = vld [vmem:[%s4267_s27 + $0xa4] sm:$0x1] }
 0x1f4   : > { %v2085_v1 = vpop.f32.mrf.mxu1 }
 0x1f5   : > { %v3365_v0 = vpack.c.bf16 %v3333_v18, %v3333_v18  ;;  %v2923_v61 = vadd.f32 %v2833_v31, %v2484_v42  ;;  %v2173_v26 = vadd.f32 %v2085_v1, %v5052_v56  ;;  %v1885_v56 = vunpack.c.l.bf16 %v3751_v51 }
 0x1f6   : > { %v3053_v18 = vrot.slane %v2593_v25, 2  ;;  %v2594_v1 = vunpack.c.l.bf16 %v5588_v54  ;;  %v1962_v25 = vrot.slane %v5061_v2, 2 }
 0x1f7   : > { %3398 = vst.msk [vmem:[%s5534_s16 + $0x8] sm:$0xf] %vm3395_vm4, %v3365_v0  ;;  %v3266_v9 = vadd.f32 %v3176_v12, %v2923_v61  ;;  %3778 = vmatmul.msk.f32.gmra.mxu1 %vm401_vm2, %v1958_v20  ;;  %3844 = vmatmul.msk.f32.gmra.mxu2 %vm401_vm2, %v4109_v21  ;;  %v3179_v44 = vpop.f32.mrf.mxu0  ;;  %v3812_v12 = vld [vmem:[%s4267_s27 + $0x9c] sm:$0xff]   ;;  %v1961_v23 = vrot.slane %v1885_v56, 2 }
 0x1f8   : > { %3926 = vmatmul.msk.f32.gmra.mxu3 %vm401_vm2, %v2709_v16  ;;  %v2595_v20 = vunpack.c.h.bf16 %v3812_v12  ;;  %v3054_v61 = vsel %vm811_vm3, %v3051_v24, %v3053_v18  ;;  %v2979_v16 = vunpack.c.l.bf16 %v3949_v14  ;;  %v2712_v55 = vrot.slane %v2594_v1, 1 }
 0x1f9   : > { %v3302_v50 = vadd.f32 %v5517_v30, %v3266_v9  ;;  %v2256_v51 = vunpack.c.l.bf16 %v3812_v12  ;;  %v1963_v2 = vsel %vm811_vm3, %v1961_v23, %v1962_v25  ;;  %v2596_v24 = vunpack.c.l.bf16 %v3891_v19 }
 0x1fa   : > { %v2397_v48 = vpop.f32.mrf.mxu2  ;;  %3976 = vmatmul.msk.f32.gmra.mxu0 %vm401_vm2, %v3052_v29 }
 0x1fb   : > { %v3334_v21 = vmax.f32 %v3302_v50, 0.0  ;;  %v2485_v62 = vadd.f32 %v2397_v48, %v2173_v26  ;;  %v2836_v28 = vpop.f32.mrf.mxu3  ;;  %v2715_v18 = vrot.slane %v2596_v24, 1 }
 0x1fc   : > { %v2088_v58 = vpop.f32.mrf.mxu1 }
 0x1fd   : > { %v3366_v42 = vpack.c.bf16 %v3334_v21, %v3334_v21  ;;  %v2924_v31 = vadd.f32 %v2836_v28, %v2485_v62  ;;  %v2174_v9 = vadd.f32 %v2088_v58, %v5070_v4  ;;  %v3055_v21 = vrot.slane %v2979_v16, 2 }
 0x1fe   : > { %v3056_v4 = vrot.slane %v2595_v20, 2  ;;  %v2257_v16 = vunpack.c.h.bf16 %v5588_v54 }
 0x1ff   : > { %3399 = vst.msk [vmem:[%s5534_s16 + $0xc] sm:$0xf] %vm3395_vm4, %v3366_v42  ;;  %v3267_v0 = vadd.f32 %v3179_v44, %v2924_v31  ;;  %3779 = vmatmul.msk.f32.gmra.mxu1 %vm401_vm2, %v1960_v63  ;;  %3845 = vmatmul.msk.f32.gmra.mxu2 %vm401_vm2, %v5556_v6  ;;  %v3182_v57 = vpop.f32.mrf.mxu0  ;;  %v2713_v44 = vrot.slane %v2595_v20, 1  ;;  %v3752_v20 = vld [vmem:[%s4267_s27 + $0x9c] sm:$0xe] }
 0x200   : > { %3927 = vmatmul.msk.f32.gmra.mxu3 %vm401_vm2, %v2711_v40  ;;  %v6033_v40 = vunpack.c.l.bf16 %v5068_v43  ;;  %v3057_v42 = vsel %vm811_vm3, %v3055_v21, %v3056_v4 }
 0x201   : > { %v3303_v7 = vadd.f32 %v5517_v30, %v3267_v0  ;;  %v2714_v58 = vsel %vm317_vm1, %v2712_v55, %v2713_v44  ;;  %v4180_v0 = vld [vmem:[%s4267_s27 + $0xa8] sm:$0xff]   ;;  %v3058_v55 = vrot.slane %v2596_v24, 2 }
 0x202   : > { %v2400_v29 = vpop.f32.mrf.mxu2  ;;  %3977 = vmatmul.msk.f32.gmra.mxu0 %vm401_vm2, %v3054_v61  ;;  %v1964_v56 = vrot.slane %v6033_v40, 2 }
 0x203   : > { %v3335_v26 = vmax.f32 %v3303_v7, 0.0  ;;  %v2486_v6 = vadd.f32 %v2400_v29, %v2174_v9  ;;  %v2839_v50 = vpop.f32.mrf.mxu3  ;;  %v2716_v7 = vsel %vm317_vm1, %v2713_v44, %v2715_v18  ;;  %v6034_v44 = vunpack.c.h.bf16 %v5088_v41 }
 0x204   : > { %v2091_v48 = vpop.f32.mrf.mxu1  ;;  %v1965_v9 = vsel %vm811_vm3, %v1962_v25, %v1964_v56 }
 0x205   : > { %v3367_v62 = vpack.c.bf16 %v3335_v26, %v3335_v26  ;;  %v2925_v28 = vadd.f32 %v2839_v50, %v2486_v6  ;;  %v2175_v31 = vadd.f32 %v2091_v48, %v5090_v46  ;;  %v1886_v46 = vunpack.c.l.bf16 %v3752_v20  ;;  %v3950_v50 = vld [vmem:[%s4267_s27 + $0xa8] sm:$0xe] }
 0x206   : > { %v4113_v26 = vunpack.c.l.bf16 %v4180_v0  ;;  %v5625_v6 = vunpack.c.h.bf16 %v4180_v0  ;;  %v1967_v48 = vrot.slane %v6034_v44, 2  ;;  %v2980_v24 = vunpack.c.l.bf16 %v3950_v50 }
 0x207   : > { %3400 = vst.msk [vmem:[%s5534_s16 + $0x10] sm:$0xf] %vm3395_vm4, %v3367_v62  ;;  %v3268_v63 = vadd.f32 %v3182_v57, %v2925_v28  ;;  %3780 = vmatmul.msk.f32.gmra.mxu1 %vm401_vm2, %v1963_v2  ;;  %3846 = vmatmul.msk.f32.gmra.mxu2 %vm401_vm2, %v2256_v51  ;;  %v3185_v12 = vpop.f32.mrf.mxu0  ;;  %v1966_v25 = vrot.slane %v1886_v46, 2  ;;  %v3059_v2 = vsel %vm811_vm3, %v3056_v4, %v3058_v55  ;;  %v3753_v46 = vld [vmem:[%s4267_s27 + $0xa8] sm:$0xe] }
 0x208   : > { %3928 = vmatmul.msk.f32.gmra.mxu3 %vm401_vm2, %v2714_v58  ;;  %v2717_v28 = vrot.slane %v4113_v26, 1  ;;  %v2718_v58 = vrot.slane %v5625_v6, 1 }
 0x209   : > { %v3304_v1 = vadd.f32 %v5517_v30, %v3268_v63  ;;  %v3894_v63 = vld [vmem:[%s4267_s27 + $0xb0] sm:$0x1] }
 0x20a   : > { %v2403_v14 = vpop.f32.mrf.mxu2  ;;  %3978 = vmatmul.msk.f32.gmra.mxu0 %vm401_vm2, %v3057_v42  ;;  %v1968_v42 = vsel %vm811_vm3, %v1966_v25, %v1967_v48  ;;  %v2599_v4 = vunpack.c.l.bf16 %v3894_v63 }
 0x20b   : > { %v3336_v57 = vmax.f32 %v3304_v1, 0.0  ;;  %v2487_v23 = vadd.f32 %v2403_v14, %v2175_v31  ;;  %v2842_v61 = vpop.f32.mrf.mxu3  ;;  %v3060_v31 = vrot.slane %v2980_v24, 2  ;;  %v2719_v14 = vsel %vm317_vm1, %v2717_v28, %v2718_v58  ;;  %v3951_v28 = vld [vmem:[%s4267_s27 + $0xb4] sm:$0xe] }
 0x20c   : > { %v2094_v43 = vpop.f32.mrf.mxu1  ;;  %v3063_v44 = vrot.slane %v2599_v4, 2 }
 0x20d   : > { %v3368_v19 = vpack.c.bf16 %v3336_v57, %v3336_v57  ;;  %v2926_v29 = vadd.f32 %v2842_v61, %v2487_v23  ;;  %v2176_v21 = vadd.f32 %v2094_v43, %v5110_v38  ;;  %v3061_v38 = vrot.slane %v5625_v6, 2 }
 0x20e   : > { %v6035_v23 = vunpack.c.l.bf16 %v5108_v39 }
 0x20f   : > { %3401 = vst.msk [vmem:[%s5534_s16 + $0x14] sm:$0xf] %vm3395_vm4, %v3368_v19  ;;  %v3269_v51 = vadd.f32 %v3185_v12, %v2926_v29  ;;  %3781 = vmatmul.msk.f32.gmra.mxu1 %vm401_vm2, %v1965_v9  ;;  %3847 = vmatmul.msk.f32.gmra.mxu2 %vm401_vm2, %v2257_v16  ;;  %v3188_v54 = vpop.f32.mrf.mxu0  ;;  %v2720_v16 = vrot.slane %v2599_v4, 1  ;;  %v3062_v43 = vsel %vm811_vm3, %v3060_v31, %v3061_v38  ;;  %v3816_v19 = vld [vmem:[%s4267_s27 + $0xb4] sm:$0xff]   ;;  %v3897_v31 = vld [vmem:[%s4267_s27 + $0xbc] sm:$0x1] }
 0x210   : > { %3929 = vmatmul.msk.f32.gmra.mxu3 %vm401_vm2, %v2716_v7  ;;  %v1969_v61 = vrot.slane %v6035_v23, 2  ;;  %v5657_v29 = vld [vmem:[%s4267_s27 + $0xb4] sm:$0xff]  }
 0x211   : > { %v3305_v62 = vadd.f32 %v5517_v30, %v3269_v51  ;;  %v2721_v25 = vsel %vm317_vm1, %v2718_v58, %v2720_v16 }
 0x212   : > { %v2406_v12 = vpop.f32.mrf.mxu2  ;;  %3979 = vmatmul.msk.f32.gmra.mxu0 %vm401_vm2, %v3059_v2 }
 0x213   : > { %v3337_v40 = vmax.f32 %v3305_v62, 0.0  ;;  %v2488_v56 = vadd.f32 %v2406_v12, %v2176_v21  ;;  %v2845_v18 = vpop.f32.mrf.mxu3  ;;  %v2600_v21 = vunpack.c.l.bf16 %v5657_v29  ;;  %v2601_v62 = vunpack.c.h.bf16 %v3816_v19 }
 0x214   : > { %v2097_v41 = vpop.f32.mrf.mxu1  ;;  %v1972_v12 = vrot.slane %v5136_v27, 2 }
 0x215   : > { %v3369_v1 = vpack.c.bf16 %v3337_v40, %v3337_v40  ;;  %v2927_v20 = vadd.f32 %v2845_v18, %v2488_v56  ;;  %v2177_v9 = vadd.f32 %v2097_v41, %v5127_v10  ;;  %v1887_v10 = vunpack.c.l.bf16 %v3753_v46 }
 0x216   : > { %v3064_v40 = vsel %vm811_vm3, %v3061_v38, %v3063_v44  ;;  %v2981_v56 = vunpack.c.l.bf16 %v3951_v28  ;;  %v2723_v4 = vrot.slane %v2601_v62, 1  ;;  %v2602_v38 = vunpack.c.l.bf16 %v3897_v31 }
 0x217   : > { %3402 = vst.msk [vmem:[%s5534_s16 + $0x18] sm:$0xf] %vm3395_vm4, %v3369_v1  ;;  %v3270_v0 = vadd.f32 %v3188_v54, %v2927_v20  ;;  %3782 = vmatmul.msk.f32.gmra.mxu1 %vm401_vm2, %v1968_v42  ;;  %3848 = vmatmul.msk.f32.gmra.mxu2 %vm401_vm2, %v4113_v26  ;;  %v3191_v57 = vpop.f32.mrf.mxu0  ;;  %v1970_v54 = vsel %vm811_vm3, %v1967_v48, %v1969_v61  ;;  %v1971_v58 = vrot.slane %v1887_v10, 2  ;;  %v2722_v42 = vrot.slane %v2600_v21, 1  ;;  %v4181_v10 = vld [vmem:[%s4267_s27 + $0xc0] sm:$0xff]  }
 0x218   : > { %3930 = vmatmul.msk.f32.gmra.mxu3 %vm401_vm2, %v2719_v14  ;;  %v3065_v23 = vrot.slane %v2981_v56, 2  ;;  %v6036_v46 = vunpack.c.l.bf16 %v5143_v35  ;;  %v2261_v21 = vunpack.c.h.bf16 %v5657_v29  ;;  %v4117_v56 = vunpack.c.l.bf16 %v4181_v10 }
 0x219   : > { %v3306_v7 = vadd.f32 %v5517_v30, %v3270_v0  ;;  %v2260_v0 = vunpack.c.l.bf16 %v3816_v19  ;;  %v1973_v27 = vsel %vm811_vm3, %v1971_v58, %v1972_v12  ;;  %v2725_v19 = vrot.slane %v2602_v38, 1 }
 0x21a   : > { %v2409_v55 = vpop.f32.mrf.mxu2  ;;  %3980 = vmatmul.msk.f32.gmra.mxu0 %vm401_vm2, %v3062_v43  ;;  %v2724_v43 = vsel %vm317_vm1, %v2722_v42, %v2723_v4 }
 0x21b   : > { %v3338_v26 = vmax.f32 %v3306_v7, 0.0  ;;  %v2489_v50 = vadd.f32 %v2409_v55, %v2177_v9  ;;  %v2848_v51 = vpop.f32.mrf.mxu3  ;;  %v1974_v55 = vrot.slane %v6036_v46, 2  ;;  %v2726_v28 = vsel %vm317_vm1, %v2723_v4, %v2725_v19 }
 0x21c   : > { %v2100_v39 = vpop.f32.mrf.mxu1  ;;  %v6038_v4 = vunpack.c.h.bf16 %v5163_v15 }
 0x21d   : > { %v3370_v2 = vpack.c.bf16 %v3338_v26, %v3338_v26  ;;  %v2928_v24 = vadd.f32 %v2848_v51, %v2489_v50  ;;  %v2178_v18 = vadd.f32 %v2100_v39, %v5145_v59  ;;  %v3066_v59 = vrot.slane %v2601_v62, 2  ;;  %v6037_v50 = vld [vmem:[#allocation3_spill] sm:$0xff] }
 0x21e   : > { %v1975_v62 = vsel %vm811_vm3, %v1972_v12, %v1974_v55  ;;  %v1977_v31 = vrot.slane %v6038_v4, 2 }
 0x21f   : > { %3403 = vst.msk [vmem:[%s5534_s16 + $0x1c] sm:$0xf] %vm3395_vm4, %v3370_v2  ;;  %v3271_v63 = vadd.f32 %v3191_v57, %v2928_v24  ;;  %3783 = vmatmul.msk.f32.gmra.mxu1 %vm401_vm2, %v1970_v54  ;;  %3849 = vmatmul.msk.f32.gmra.mxu2 %vm401_vm2, %v5625_v6  ;;  %v3194_v48 = vpop.f32.mrf.mxu0  ;;  %v3067_v26 = vsel %vm811_vm3, %v3065_v23, %v3066_v59  ;;  %v3754_v54 = vld [vmem:[%s4267_s27 + $0xb4] sm:$0xe] }
 0x220   : > { %3931 = vmatmul.msk.f32.gmra.mxu3 %vm401_vm2, %v2721_v25 }
 0x221   : > { %v3307_v41 = vadd.f32 %v5517_v30, %v3271_v63  ;;  %v1888_v63 = vunpack.c.l.bf16 %v3754_v54 }
 0x222   : > { %v2412_v1 = vpop.f32.mrf.mxu2  ;;  %3981 = vmatmul.msk.f32.gmra.mxu0 %vm401_vm2, %v3064_v40 }
 0x223   : > { %v3339_v20 = vmax.f32 %v3307_v41, 0.0  ;;  %v2490_v6 = vadd.f32 %v2412_v1, %v2178_v18  ;;  %v2851_v14 = vpop.f32.mrf.mxu3  ;;  %v5694_v18 = vunpack.c.h.bf16 %v4181_v10  ;;  %v3952_v41 = vld [vmem:[%s4267_s27 + $0xc0] sm:$0xe]  ;;  %v1976_v12 = vrot.slane %v1888_v63, 2 }
 0x224   : > { %v2103_v57 = vpop.f32.mrf.mxu1 }
 0x225   : > { %v3371_v61 = vpack.c.bf16 %v3339_v20, %v3339_v20  ;;  %v2929_v16 = vadd.f32 %v2851_v14, %v2490_v6  ;;  %v2179_v51 = vadd.f32 %v2103_v57, %v6037_v50  ;;  %v2982_v20 = vunpack.c.l.bf16 %v3952_v41  ;;  %v6039_v6 = vld [vmem:[#allocation2_spill] sm:$0xff] }
 0x226   : > { %v2727_v57 = vrot.slane %v4117_v56, 1  ;;  %v3071_v46 = vrot.slane %v5694_v18, 2 }
 0x227   : > { %3404 = vst.msk [vmem:[%s5534_s16 + $0x20] sm:$0xf] %vm3395_vm4, %v3371_v61  ;;  %v3272_v9 = vadd.f32 %v3194_v48, %v2929_v16  ;;  %3784 = vmatmul.msk.f32.gmra.mxu1 %vm401_vm2, %v1973_v27  ;;  %3850 = vmatmul.msk.f32.gmra.mxu2 %vm401_vm2, %v2260_v0  ;;  %v3197_v7 = vpop.f32.mrf.mxu0  ;;  %v3068_v48 = vrot.slane %v2602_v38, 2  ;;  %v2728_v27 = vrot.slane %v5694_v18, 1  ;;  %v3900_v38 = vld [vmem:[%s4267_s27 + $0xc8] sm:$0x1] }
 0x228   : > { %3932 = vmatmul.msk.f32.gmra.mxu3 %vm401_vm2, %v2724_v43 }
 0x229   : > { %v3308_v39 = vadd.f32 %v5517_v30, %v3272_v9  ;;  %v3069_v1 = vsel %vm811_vm3, %v3066_v59, %v3068_v48  ;;  %v1978_v9 = vsel %vm811_vm3, %v1976_v12, %v1977_v31  ;;  %v2605_v59 = vunpack.c.l.bf16 %v3900_v38  ;;  %v6042_v38 = vld [vmem:[#allocation6_spill] sm:$0xff] }
 0x22a   : > { %v2415_v25 = vpop.f32.mrf.mxu2  ;;  %3982 = vmatmul.msk.f32.gmra.mxu0 %vm401_vm2, %v3067_v26  ;;  %v2729_v26 = vsel %vm317_vm1, %v2727_v57, %v2728_v27 }
 0x22b   : > { %v3340_v44 = vmax.f32 %v3308_v39, 0.0  ;;  %v2491_v2 = vadd.f32 %v2415_v25, %v2179_v51  ;;  %v2854_v24 = vpop.f32.mrf.mxu3  ;;  %v6040_v39 = vunpack.c.l.bf16 %v5183_v45  ;;  %v2730_v25 = vrot.slane %v2605_v59, 1 }
 0x22c   : > { %v2106_v35 = vpop.f32.mrf.mxu1 }
 0x22d   : > { %v3372_v58 = vpack.c.bf16 %v3340_v44, %v3340_v44  ;;  %v2930_v40 = vadd.f32 %v2854_v24, %v2491_v2  ;;  %v2180_v14 = vadd.f32 %v2106_v35, %v6039_v6  ;;  %v1979_v54 = vrot.slane %v6040_v39, 2  ;;  %v6041_v44 = vld [vmem:[#allocation4_spill] sm:$0xff] }
 0x22f   : > { %3405 = vst.msk [vmem:[%s5534_s16 + $0x24] sm:$0xf] %vm3395_vm4, %v3372_v58  ;;  %v3273_v42 = vadd.f32 %v3197_v7, %v2930_v40  ;;  %3785 = vmatmul.msk.f32.gmra.mxu1 %vm401_vm2, %v1975_v62  ;;  %3851 = vmatmul.msk.f32.gmra.mxu2 %vm401_vm2, %v2261_v21  ;;  %v3200_v29 = vpop.f32.mrf.mxu0  ;;  %v3070_v7 = vrot.slane %v2982_v20, 2  ;;  %v3755_v21 = vld [vmem:[%s4267_s27 + $0xc0] sm:$0xe]  ;;  %v3820_v62 = vld [vmem:[%s4267_s27 + $0xcc] sm:$0xff]   ;;  %v1980_v40 = vsel %vm811_vm3, %v1977_v31, %v1979_v54 }
 0x230   : > { %3933 = vmatmul.msk.f32.gmra.mxu3 %vm401_vm2, %v2726_v28  ;;  %v5726_v28 = vld [vmem:[%s4267_s27 + $0xcc] sm:$0xff]   ;;  %v1889_v41 = vunpack.c.l.bf16 %v3755_v21 }
 0x231   : > { %v3309_v0 = vadd.f32 %v5517_v30, %v3273_v42  ;;  %v3072_v10 = vsel %vm811_vm3, %v3070_v7, %v3071_v46  ;;  %v3073_v42 = vrot.slane %v2605_v59, 2  ;;  %v2606_v4 = vunpack.c.l.bf16 %v5726_v28  ;;  %v3953_v20 = vld [vmem:[%s4267_s27 + $0xcc] sm:$0xe] }
 0x232   : > { %v2418_v23 = vpop.f32.mrf.mxu2  ;;  %3983 = vmatmul.msk.f32.gmra.mxu0 %vm401_vm2, %v3069_v1  ;;  %v2607_v1 = vunpack.c.h.bf16 %v3820_v62 }
 0x233   : > { %v3341_v61 = vmax.f32 %v3309_v0, 0.0  ;;  %v2492_v16 = vadd.f32 %v2418_v23, %v2180_v14  ;;  %v2857_v43 = vpop.f32.mrf.mxu3  ;;  %v1981_v14 = vrot.slane %v1889_v41, 2  ;;  %v1982_v0 = vrot.slane %v5211_v32, 2 }
 0x234   : > { %v2109_v15 = vpop.f32.mrf.mxu1  ;;  %v3074_v57 = vsel %vm811_vm3, %v3071_v46, %v3073_v42 }
 0x235   : > { %v3373_v55 = vpack.c.bf16 %v3341_v61, %v3341_v61  ;;  %v2931_v19 = vadd.f32 %v2857_v43, %v2492_v16  ;;  %v2181_v2 = vadd.f32 %v2109_v15, %v6041_v44  ;;  %v2732_v16 = vrot.slane %v2606_v4, 1 }
 0x236   : > { %v2733_v43 = vrot.slane %v2607_v1, 1  ;;  %v1983_v32 = vsel %vm811_vm3, %v1981_v14, %v1982_v0  ;;  %v6043_v44 = vunpack.c.l.bf16 %v5218_v17 }
 0x237   : > { %3406 = vst.msk [vmem:[%s5534_s16 + $0x28] sm:$0xf] %vm3395_vm4, %v3373_v55  ;;  %v3274_v50 = vadd.f32 %v3200_v29, %v2931_v19  ;;  %3786 = vmatmul.msk.f32.gmra.mxu1 %vm401_vm2, %v1978_v9  ;;  %3852 = vmatmul.msk.f32.gmra.mxu2 %vm401_vm2, %v4117_v56  ;;  %v3203_v51 = vpop.f32.mrf.mxu0  ;;  %v2731_v56 = vsel %vm317_vm1, %v2728_v27, %v2730_v25  ;;  %v2983_v27 = vunpack.c.l.bf16 %v3953_v20  ;;  %v3903_v9 = vld [vmem:[%s4267_s27 + $0xd4] sm:$0x1]  ;;  %v2264_v55 = vunpack.c.l.bf16 %v3820_v62 }
 0x238   : > { %3934 = vmatmul.msk.f32.gmra.mxu3 %vm401_vm2, %v2729_v26  ;;  %v3076_v26 = vrot.slane %v2607_v1, 2  ;;  %v2734_v39 = vsel %vm317_vm1, %v2732_v16, %v2733_v43  ;;  %v2608_v54 = vunpack.c.l.bf16 %v3903_v9  ;;  %v6044_v1 = vld [vmem:[#allocation5_spill] sm:$0xff] }
 0x239   : > { %v3310_v24 = vadd.f32 %v5517_v30, %v3274_v50  ;;  %v3075_v46 = vrot.slane %v2983_v27, 2 }
 0x23a   : > { %v2421_v35 = vpop.f32.mrf.mxu2  ;;  %3984 = vmatmul.msk.f32.gmra.mxu0 %vm401_vm2, %v3072_v10  ;;  %v2735_v62 = vrot.slane %v2608_v54, 1  ;;  %v3078_v41 = vrot.slane %v2608_v54, 2 }
 0x23b   : > { %v3342_v63 = vmax.f32 %v3310_v24, 0.0  ;;  %v2493_v48 = vadd.f32 %v2421_v35, %v2181_v2  ;;  %v2860_v58 = vpop.f32.mrf.mxu3  ;;  %v1984_v2 = vrot.slane %v6043_v44, 2  ;;  %v3077_v24 = vsel %vm811_vm3, %v3075_v46, %v3076_v26 }
 0x23c   : > { %v2112_v45 = vpop.f32.mrf.mxu1  ;;  %v3079_v4 = vsel %vm811_vm3, %v3076_v26, %v3078_v41 }
 0x23d   : > { %v3374_v29 = vpack.c.bf16 %v3342_v63, %v3342_v63  ;;  %v2932_v12 = vadd.f32 %v2860_v58, %v2493_v48  ;;  %v2182_v23 = vadd.f32 %v2112_v45, %v6042_v38  ;;  %v1985_v17 = vsel %vm811_vm3, %v1982_v0, %v1984_v2 }
 0x23f   : > { %3407 = vst.msk [vmem:[%s5534_s16 + $0x2c] sm:$0xf] %vm3395_vm4, %v3374_v29  ;;  %v3275_v6 = vadd.f32 %v3203_v51, %v2932_v12  ;;  %3787 = vmatmul.msk.f32.gmra.mxu1 %vm401_vm2, %v1980_v40  ;;  %3853 = vmatmul.msk.f32.gmra.mxu2 %vm401_vm2, %v5694_v18  ;;  %v3206_v31 = vpop.f32.mrf.mxu0  ;;  %v2265_v40 = vunpack.c.h.bf16 %v5726_v28  ;;  %v2736_v12 = vsel %vm317_vm1, %v2733_v43, %v2735_v62 }
 0x240   : > { %3935 = vmatmul.msk.f32.gmra.mxu3 %vm401_vm2, %v2731_v56 }
 0x241   : > { %v3311_v61 = vadd.f32 %v5517_v30, %v3275_v6 }
 0x242   : > { %v2424_v15 = vpop.f32.mrf.mxu2  ;;  %3985 = vmatmul.msk.f32.gmra.mxu0 %vm401_vm2, %v3074_v57 }
 0x243   : > { %v3343_v59 = vmax.f32 %v3311_v61, 0.0  ;;  %v2494_v18 = vadd.f32 %v2424_v15, %v2182_v23  ;;  %v2863_v7 = vpop.f32.mrf.mxu3 }
 0x244   : > { %v2115_v19 = vpop.f32.mrf.mxu1 }
 0x245   : > { %v3375_v50 = vpack.c.bf16 %v3343_v59, %v3343_v59  ;;  %v2933_v51 = vadd.f32 %v2863_v7, %v2494_v18  ;;  %v2183_v21 = vadd.f32 %v2115_v19, %v5239_v47 }
 0x247   : > { %3408 = vst.msk [vmem:[%s5534_s16 + $0x30] sm:$0xf] %vm3395_vm4, %v3375_v50  ;;  %v3276_v25 = vadd.f32 %v3206_v31, %v2933_v51  ;;  %3788 = vmatmul.msk.f32.gmra.mxu1 %vm401_vm2, %v1983_v32  ;;  %3854 = vmatmul.msk.f32.gmra.mxu2 %vm401_vm2, %v2264_v55  ;;  %v3209_v10 = vpop.f32.mrf.mxu0 }
 0x248   : > { %3936 = vmatmul.msk.f32.gmra.mxu3 %vm401_vm2, %v2734_v39 }
 0x249   : > { %v3312_v35 = vadd.f32 %v5517_v30, %v3276_v25 }
 0x24a   : > { %v2427_v63 = vpop.f32.mrf.mxu2  ;;  %3986 = vmatmul.msk.f32.gmra.mxu0 %vm401_vm2, %v3077_v24 }
 0x24b   : > { %v3344_v48 = vmax.f32 %v3312_v35, 0.0  ;;  %v2495_v58 = vadd.f32 %v2427_v63, %v2183_v21  ;;  %v2866_v45 = vpop.f32.mrf.mxu3 }
 0x24c   : > { %v2118_v56 = vpop.f32.mrf.mxu1 }
 0x24d   : > { %v3376_v42 = vpack.c.bf16 %v3344_v48, %v3344_v48  ;;  %v2934_v29 = vadd.f32 %v2866_v45, %v2495_v58  ;;  %v2184_v20 = vadd.f32 %v2118_v56, %v6044_v1 }
 0x24f   : > { %3409 = vst.msk [vmem:[%s5534_s16 + $0x34] sm:$0xf] %vm3395_vm4, %v3376_v42  ;;  %v3277_v47 = vadd.f32 %v3209_v10, %v2934_v29  ;;  %3789 = vmatmul.msk.f32.gmra.mxu1 %vm401_vm2, %v1985_v17  ;;  %3855 = vmatmul.msk.f32.gmra.mxu2 %vm401_vm2, %v2265_v40  ;;  %v3212_v28 = vpop.f32.mrf.mxu0 }
 0x250   : > { %3937 = vmatmul.msk.f32.gmra.mxu3 %vm401_vm2, %v2736_v12 }
 0x251   : > { %v3313_v6 = vadd.f32 %v5517_v30, %v3277_v47 }
 0x252   : > { %v2430_v31 = vpop.f32.mrf.mxu2  ;;  %3987 = vmatmul.msk.f32.gmra.mxu0 %vm401_vm2, %v3079_v4 }
 0x253   : > { %v3345_v14 = vmax.f32 %v3313_v6, 0.0  ;;  %v2496_v0 = vadd.f32 %v2430_v31, %v2184_v20  ;;  %v2869_v57 = vpop.f32.mrf.mxu3 }
 0x254   : > { %v2121_v27 = vpop.f32.mrf.mxu1 }
 0x255   : > { %v3377_v38 = vpack.c.bf16 %v3345_v14, %v3345_v14  ;;  %v2935_v23 = vadd.f32 %v2869_v57, %v2496_v0  ;;  %v2185_v43 = vadd.f32 %v2121_v27, %v5273_v3 }
 0x257   : > { %3410 = vst.msk [vmem:[%s5534_s16 + $0x38] sm:$0xf] %vm3395_vm4, %v3377_v38  ;;  %v3278_v61 = vadd.f32 %v3212_v28, %v2935_v23  ;;  %v3215_v16 = vpop.f32.mrf.mxu0 }
 0x259   : > { %v3314_v15 = vadd.f32 %v5517_v30, %v3278_v61 }
 0x25a   : > { %v2433_v9 = vpop.f32.mrf.mxu2 }
 0x25b   : > { %v3346_v59 = vmax.f32 %v3314_v15, 0.0  ;;  %v2497_v18 = vadd.f32 %v2433_v9, %v2185_v43  ;;  %v2872_v7 = vpop.f32.mrf.mxu3 }
 0x25c   : > { %v2124_v55 = vpop.f32.mrf.mxu1 }
 0x25d   : > { %v3378_v19 = vpack.c.bf16 %v3346_v59, %v3346_v59  ;;  %v2936_v32 = vadd.f32 %v2872_v7, %v2497_v18  ;;  %v2186_v50 = vadd.f32 %v2124_v55, %v5285_v53 }
 0x25f   : > { %3411 = vst.msk [vmem:[%s5534_s16 + $0x3c] sm:$0xf] %vm3395_vm4, %v3378_v19  ;;  %v3279_v46 = vadd.f32 %v3215_v16, %v2936_v32  ;;  %v3218_v26 = vpop.f32.mrf.mxu0 }
 0x261   : > { %v3315_v51 = vadd.f32 %v5517_v30, %v3279_v46 }
 0x262   : > { %v2436_v39 = vpop.f32.mrf.mxu2 }
 0x263   : > { %v3347_v3 = vmax.f32 %v3315_v51, 0.0  ;;  %v2498_v54 = vadd.f32 %v2436_v39, %v2186_v50  ;;  %v2875_v25 = vpop.f32.mrf.mxu3 }
 0x264   : > { %v2127_v10 = vpop.f32.mrf.mxu1 }
 0x265   : > { %v3379_v44 = vpack.c.bf16 %v3347_v3, %v3347_v3  ;;  %v2937_v2 = vadd.f32 %v2875_v25, %v2498_v54  ;;  %v2187_v35 = vadd.f32 %v2127_v10, %v5302_v5 }
 0x267   : > { %3412 = vst.msk [vmem:[%s5534_s16 + $0x40] sm:$0xf] %vm3395_vm4, %v3379_v44  ;;  %v3280_v24 = vadd.f32 %v3218_v26, %v2937_v2  ;;  %v3221_v21 = vpop.f32.mrf.mxu0 }
 0x269   : > { %v3316_v62 = vadd.f32 %v5517_v30, %v3280_v24 }
 0x26a   : > { %v2439_v63 = vpop.f32.mrf.mxu2 }
 0x26b   : > { %v3348_v53 = vmax.f32 %v3316_v62, 0.0  ;;  %v2499_v48 = vadd.f32 %v2439_v63, %v2187_v35  ;;  %v2878_v58 = vpop.f32.mrf.mxu3 }
 0x26c   : > { %v2130_v45 = vpop.f32.mrf.mxu1 }
 0x26d   : > { %v3380_v40 = vpack.c.bf16 %v3348_v53, %v3348_v53  ;;  %v2938_v56 = vadd.f32 %v2878_v58, %v2499_v48  ;;  %v2188_v42 = vadd.f32 %v2130_v45, %v5315_v22 }
 0x26f   : > { %3413 = vst.msk [vmem:[%s5534_s16 + $0x44] sm:$0xf] %vm3395_vm4, %v3380_v40  ;;  %v3281_v17 = vadd.f32 %v3221_v21, %v2938_v56  ;;  %v3224_v41 = vpop.f32.mrf.mxu0 }
 0x271   : > { %v3317_v29 = vadd.f32 %v5517_v30, %v3281_v17 }
 0x272   : > { %v2442_v12 = vpop.f32.mrf.mxu2 }
 0x273   : > { %v3349_v5 = vmax.f32 %v3317_v29, 0.0  ;;  %v2500_v47 = vadd.f32 %v2442_v12, %v2188_v42  ;;  %v2881_v28 = vpop.f32.mrf.mxu3 }
 0x274   : > { %v2133_v4 = vpop.f32.mrf.mxu1 }
 0x275   : > { %v3381_v1 = vpack.c.bf16 %v3349_v5, %v3349_v5  ;;  %v2939_v20 = vadd.f32 %v2881_v28, %v2500_v47  ;;  %v2189_v14 = vadd.f32 %v2133_v4, %v5334_v11 }
 0x277   : > { %3414 = vst.msk [vmem:[%s5534_s16 + $0x48] sm:$0xf] %vm3395_vm4, %v3381_v1  ;;  %v3282_v6 = vadd.f32 %v3224_v41, %v2939_v20  ;;  %v3227_v31 = vpop.f32.mrf.mxu0 }
 0x279   : > { %v3318_v0 = vadd.f32 %v5517_v30, %v3282_v6 }
 0x27a   : > { %v2445_v57 = vpop.f32.mrf.mxu2 }
 0x27b   : > { %v3350_v22 = vmax.f32 %v3318_v0, 0.0  ;;  %v2501_v27 = vadd.f32 %v2445_v57, %v2189_v14  ;;  %v2884_v38 = vpop.f32.mrf.mxu3 }
 0x27c   : > { %v2136_v23 = vpop.f32.mrf.mxu1 }
 0x27d   : > { %v3382_v61 = vpack.c.bf16 %v3350_v22, %v3350_v22  ;;  %v2940_v16 = vadd.f32 %v2884_v38, %v2501_v27  ;;  %v2190_v9 = vadd.f32 %v2136_v23, %v5346_v13 }
 0x27f   : > { %3415 = vst.msk [vmem:[%s5534_s16 + $0x4c] sm:$0xf] %vm3395_vm4, %v3382_v61  ;;  %v3283_v43 = vadd.f32 %v3227_v31, %v2940_v16  ;;  %v3230_v15 = vpop.f32.mrf.mxu0 }
 0x281   : > { %v3319_v59 = vadd.f32 %v5517_v30, %v3283_v43 }
 0x282   : > { %v2448_v18 = vpop.f32.mrf.mxu2 }
 0x283   : > { %v3351_v11 = vmax.f32 %v3319_v59, 0.0  ;;  %v2502_v7 = vadd.f32 %v2448_v18, %v2190_v9  ;;  %v2887_v55 = vpop.f32.mrf.mxu3 }
 0x284   : > { %v2139_v19 = vpop.f32.mrf.mxu1 }
 0x285   : > { %v3383_v32 = vpack.c.bf16 %v3351_v11, %v3351_v11  ;;  %v2941_v46 = vadd.f32 %v2887_v55, %v2502_v7  ;;  %v2191_v51 = vadd.f32 %v2139_v19, %v5363_v36 }
 0x287   : > { %3416 = vst.msk [vmem:[%s5534_s16 + $0x50] sm:$0xf] %vm3395_vm4, %v3383_v32  ;;  %v3284_v26 = vadd.f32 %v3230_v15, %v2941_v46  ;;  %v3233_v50 = vpop.f32.mrf.mxu0  ;;  %v6045_v32 = vld [vmem:[#allocation7_spill] sm:$0xff] }
 0x289   : > { %v3320_v39 = vadd.f32 %v5517_v30, %v3284_v26 }
 0x28a   : > { %v2451_v3 = vpop.f32.mrf.mxu2 }
 0x28b   : > { %v3352_v13 = vmax.f32 %v3320_v39, 0.0  ;;  %v2503_v54 = vadd.f32 %v2451_v3, %v2191_v51  ;;  %v2890_v25 = vpop.f32.mrf.mxu3 }
 0x28c   : > { %v2142_v10 = vpop.f32.mrf.mxu1 }
 0x28d   : > { %v3384_v44 = vpack.c.bf16 %v3352_v13, %v3352_v13  ;;  %v2942_v2 = vadd.f32 %v2890_v25, %v2503_v54  ;;  %v2192_v35 = vadd.f32 %v2142_v10, %v5376_v33  ;;  %v5808_v33 = vld [vmem:[%s5849_s2] ss:$0 sm:$0xff] }
 0x28f   : > { %3417 = vst.msk [vmem:[%s5534_s16 + $0x54] sm:$0xf] %vm3395_vm4, %v3384_v44  ;;  %v3285_v24 = vadd.f32 %v3233_v50, %v2942_v2  ;;  %v3236_v21 = vpop.f32.mrf.mxu0 }
 0x291   : > { %v3321_v62 = vadd.f32 %v5517_v30, %v3285_v24 }
 0x292   : > { %v2454_v63 = vpop.f32.mrf.mxu2 }
 0x293   : > { %v3353_v36 = vmax.f32 %v3321_v62, 0.0  ;;  %v2504_v53 = vadd.f32 %v2454_v63, %v2192_v35  ;;  %v2893_v48 = vpop.f32.mrf.mxu3 }
 0x294   : > { %v2145_v58 = vpop.f32.mrf.mxu1 }
 0x295   : > { %v3385_v45 = vpack.c.bf16 %v3353_v36, %v3353_v36  ;;  %v2943_v40 = vadd.f32 %v2893_v48, %v2504_v53  ;;  %v2193_v41 = vadd.f32 %v2145_v58, %v5395_v8 }
 0x297   : > { %3418 = vst.msk [vmem:[%s5534_s16 + $0x58] sm:$0xf] %vm3395_vm4, %v3385_v45  ;;  %v3286_v56 = vadd.f32 %v3236_v21, %v2943_v40  ;;  %v3239_v17 = vpop.f32.mrf.mxu0  ;;  %v6046_v45 = vld [vmem:[#allocation9_spill] sm:$0xff] }
 0x299   : > { %v3322_v30 = vadd.f32 %v5808_v33, %v3286_v56 }
 0x29a   : > { %v2457_v42 = vpop.f32.mrf.mxu2 }
 0x29b   : > { %v3354_v29 = vmax.f32 %v3322_v30, 0.0  ;;  %v2505_v12 = vadd.f32 %v2457_v42, %v2193_v41  ;;  %v2896_v5 = vpop.f32.mrf.mxu3 }
 0x29c   : > { %v2148_v47 = vpop.f32.mrf.mxu1 }
 0x29d   : > { %v3386_v28 = vpack.c.bf16 %v3354_v29, %v3354_v29  ;;  %v2944_v4 = vadd.f32 %v2896_v5, %v2505_v12  ;;  %v2194_v8 = vadd.f32 %v2148_v47, %v5407_v60 }
 0x29f   : > { %3419 = vst.msk [vmem:[%s5534_s16 + $0x5c] sm:$0xf] %vm3395_vm4, %v3386_v28  ;;  %v3287_v1 = vadd.f32 %v3239_v17, %v2944_v4  ;;  %v3242_v20 = vpop.f32.mrf.mxu0 }
 0x2a1   : > { %v3323_v6 = vadd.f32 %v5808_v33, %v3287_v1 }
 0x2a2   : > { %v2460_v31 = vpop.f32.mrf.mxu2 }
 0x2a3   : > { %v3355_v14 = vmax.f32 %v3323_v6, 0.0  ;;  %v2506_v0 = vadd.f32 %v2460_v31, %v2194_v8  ;;  %v2899_v57 = vpop.f32.mrf.mxu3 }
 0x2a4   : > { %v2151_v22 = vpop.f32.mrf.mxu1 }
 0x2a5   : > { %v3387_v27 = vpack.c.bf16 %v3355_v14, %v3355_v14  ;;  %v2945_v38 = vadd.f32 %v2899_v57, %v2506_v0  ;;  %v2195_v16 = vadd.f32 %v2151_v22, %v5424_v37 }
 0x2a7   : > { %3420 = vst.msk [vmem:[%s5534_s16 + $0x60] sm:$0xf] %vm3395_vm4, %v3387_v27  ;;  %v3288_v23 = vadd.f32 %v3242_v20, %v2945_v38  ;;  %v3245_v61 = vpop.f32.mrf.mxu0 }
 0x2a9   : > { %v3324_v43 = vadd.f32 %v5808_v33, %v3288_v23 }
 0x2aa   : > { %v2463_v15 = vpop.f32.mrf.mxu2 }
 0x2ab   : > { %v3356_v60 = vmax.f32 %v3324_v43, 0.0  ;;  %v2507_v9 = vadd.f32 %v2463_v15, %v2195_v16  ;;  %v2902_v59 = vpop.f32.mrf.mxu3 }
 0x2ac   : > { %v2154_v18 = vpop.f32.mrf.mxu1 }
 0x2ad   : > { %v3388_v11 = vpack.c.bf16 %v3356_v60, %v3356_v60  ;;  %v2946_v7 = vadd.f32 %v2902_v59, %v2507_v9  ;;  %v2196_v46 = vadd.f32 %v2154_v18, %v6045_v32 }
 0x2af   : > { %3421 = vst.msk [vmem:[%s5534_s16 + $0x64] sm:$0xf] %vm3395_vm4, %v3388_v11  ;;  %v3289_v55 = vadd.f32 %v3245_v61, %v2946_v7  ;;  %v3248_v19 = vpop.f32.mrf.mxu0 }
 0x2b1   : > { %v3325_v26 = vadd.f32 %v5808_v33, %v3289_v55 }
 0x2b2   : > { %v2466_v50 = vpop.f32.mrf.mxu2 }
 0x2b3   : > { %v3357_v37 = vmax.f32 %v3325_v26, 0.0  ;;  %v2508_v51 = vadd.f32 %v2466_v50, %v2196_v46  ;;  %v2905_v39 = vpop.f32.mrf.mxu3 }
 0x2b4   : > { %v2157_v3 = vpop.f32.mrf.mxu1 }
 0x2b5   : > { %v3389_v13 = vpack.c.bf16 %v3357_v37, %v3357_v37  ;;  %v2947_v54 = vadd.f32 %v2905_v39, %v2508_v51  ;;  %v2197_v44 = vadd.f32 %v2157_v3, %v5456_v34 }
 0x2b7   : > { %3422 = vst.msk [vmem:[%s5534_s16 + $0x68] sm:$0xf] %vm3395_vm4, %v3389_v13  ;;  %v3290_v25 = vadd.f32 %v3248_v19, %v2947_v54  ;;  %v3251_v10 = vpop.f32.mrf.mxu0 }
 0x2b9   : > { %v3326_v2 = vadd.f32 %v5808_v33, %v3290_v25 }
 0x2ba   : > { %v2469_v24 = vpop.f32.mrf.mxu2 }
 0x2bb   : > { %v3358_v21 = vmax.f32 %v3326_v2, 0.0  ;;  %v2509_v35 = vadd.f32 %v2469_v24, %v2197_v44  ;;  %v2908_v62 = vpop.f32.mrf.mxu3 }
 0x2bc   : > { %v2160_v63 = vpop.f32.mrf.mxu1 }
 0x2bd   : > { %v3390_v36 = vpack.c.bf16 %v3358_v21, %v3358_v21  ;;  %v2948_v53 = vadd.f32 %v2908_v62, %v2509_v35  ;;  %v2198_v40 = vadd.f32 %v2160_v63, %v6046_v45 }
 0x2bf   : > { %3423 = vst.msk [vmem:[%s5534_s16 + $0x6c] sm:$0xf] %vm3395_vm4, %v3390_v36  ;;  %v3291_v48 = vadd.f32 %v3251_v10, %v2948_v53  ;;  %v3254_v58 = vpop.f32.mrf.mxu0 }
 0x2c1   : > { %v3327_v56 = vadd.f32 %v5808_v33, %v3291_v48 }
 0x2c2   : > { %v2472_v17 = vpop.f32.mrf.mxu2 }
 0x2c3   : > { %v3359_v34 = vmax.f32 %v3327_v56, 0.0  ;;  %v2510_v41 = vadd.f32 %v2472_v17, %v2198_v40  ;;  %v2911_v30 = vpop.f32.mrf.mxu3 }
 0x2c4   : > { %v2163_v42 = vpop.f32.mrf.mxu1 }
 0x2c5   : > { %v3391_v29 = vpack.c.bf16 %v3359_v34, %v3359_v34  ;;  %v2949_v12 = vadd.f32 %v2911_v30, %v2510_v41  ;;  %v2199_v47 = vadd.f32 %v2163_v42, %v5485_v52 }
 0x2c7   : > { %3424 = vst.msk [vmem:[%s5534_s16 + $0x70] sm:$0xf] %vm3395_vm4, %v3391_v29  ;;  %v3292_v5 = vadd.f32 %v3254_v58, %v2949_v12  ;;  %v3257_v1 = vpop.f32.mrf.mxu0 }
 0x2c9   : > { %v3328_v28 = vadd.f32 %v5808_v33, %v3292_v5 }
 0x2ca   : > { %v2475_v4 = vpop.f32.mrf.mxu2 }
 0x2cb   : > { %v3360_v20 = vmax.f32 %v3328_v28, 0.0  ;;  %v2511_v8 = vadd.f32 %v2475_v4, %v2199_v47  ;;  %v2914_v6 = vpop.f32.mrf.mxu3 }
 0x2cc   : > { %v2166_v0 = vpop.f32.mrf.mxu1 }
 0x2cd   : > { %v3392_v31 = vpack.c.bf16 %v3360_v20, %v3360_v20  ;;  %v2950_v14 = vadd.f32 %v2914_v6, %v2511_v8  ;;  %v2200_v22 = vadd.f32 %v2166_v0, %v5498_v49 }
 0x2cf   : > { %3425 = vst.msk [vmem:[%s5534_s16 + $0x74] sm:$0xf] %vm3395_vm4, %v3392_v31  ;;  %v3293_v57 = vadd.f32 %v3257_v1, %v2950_v14  ;;  %v3260_v16 = vpop.f32.mrf.mxu0 }
 0x2d1   : > { %v3329_v27 = vadd.f32 %v5808_v33, %v3293_v57 }
 0x2d2   : > { %v2478_v52 = vpop.f32.mrf.mxu2 }
 0x2d3   : > { %v3361_v38 = vmax.f32 %v3329_v27, 0.0  ;;  %v2512_v23 = vadd.f32 %v2478_v52, %v2200_v22  ;;  %v2917_v61 = vpop.f32.mrf.mxu3 }
 0x2d5   : > { %v3393_v43 = vpack.c.bf16 %v3361_v38, %v3361_v38  ;;  %v2951_v15 = vadd.f32 %v2917_v61, %v2512_v23 }
 0x2d7   : > { %3426 = vst.msk [vmem:[%s5534_s16 + $0x78] sm:$0xf] %vm3395_vm4, %v3393_v43  ;;  %v3294_v60 = vadd.f32 %v3260_v16, %v2951_v15 }
 0x2d9   : > { %v3330_v9 = vadd.f32 %v5808_v33, %v3294_v60 }
 0x2db   : > { %v3362_v59 = vmax.f32 %v3330_v9, 0.0 }
 0x2dd   : > { %v3394_v18 = vpack.c.bf16 %v3362_v59, %v3362_v59 }
 0x2df   : > { %3427 = vst.msk [vmem:[%s5534_s16 + $0x7c] sm:$0xf] %vm3395_vm4, %v3394_v18 }
 0x2e0 PF: > { %s13_s12 = sadd.s32 1, %s4210_s12  }
 0x2e1   : > { %p10_p4 = scmp.ge.s32.totalorder %s13_s12, 4  }
 0x2e3   :  { %12 = sbr.rel (!%p10_p4) target bundleno = 1 (0x1), region = 72 }

// kernel: unetup_origin_forward.4
= control target key start
LH: loop header
LB: loop body
LE: loop exit
PB: predicated region body
PF: predicated region fallthrough
CT: control target
= control target key end

     0   :  { %s8343_s18 = smov 0   ;;  %s10922_s0 = inlined_call_operand.vmem [shape: bf16[2,18,18,4], index: 0, kind: input, shape index: {}]   ;;  %s10923_s1 = inlined_call_operand.vmem [shape: bf16[2,18,18,4], index: 1, kind: input, shape index: {}]   ;;  %s10924_s2 = inlined_call_operand.vmem [shape: bf16[9,4,4], index: 2, kind: input, shape index: {}]   ;;  %s10925_s3 = inlined_call_operand.vmem [shape: bf16[9,4,4], index: 3, kind: input, shape index: {}]   ;;  %s10926_s4 = inlined_call_operand.vmem [shape: f32[1,4], index: 4, kind: input, shape index: {}]   ;;  %s10927_s5 = inlined_call_operand.vmem [shape: bf16[2,256,4], index: 5, kind: output, shape index: {}]  }
   0x1 LB: > { %s6849_s19 = sadd.s32 4294967295, %s8311_s18   ;;  %p6853_p0 = scmp.ge.s32.totalorder %s8311_s18, 1  ;;  %s8311_s18 = sphi %s8343_s18, %s15_s18  }
   0x2   : > { %p197_p1 = scmp.lt.s32.totalorder %s8311_s18, 3 }
   0x4   : > { %p198_p2 = pnand %p6853_p0, %p197_p1 }
   0x6   : > { %201 = sbr.rel (%p198_p2) target bundleno = 1314 (0x522), region = 40 }
   0xb   : > { %v6858_v0 = vld [vmem:[%s10924_s2 + $0x2] sm:$0x3]  ;;  %vm540_vm0 = vcmask 1043456   ;;  %v309_v1 = vld [vmem:[%s10924_s2] sm:$0x3]  ;;  %p230_p3 = scmp.lt.s32.totalorder %s6849_s19, 1 }
   0xc   : > { %v474_v2 = vunpack.c.l.bf16 %v6858_v0  ;;  %v310_v3 = vunpack.c.l.bf16 %v309_v1  ;;  %v6925_v4 = vld [vmem:[%s10924_s2 + $0x4] sm:$0x3]  ;;  %v6991_v5 = vld [vmem:[%s10924_s2 + $0x6] sm:$0x3]  ;;  %v7073_v8 = vld [vmem:[%s10924_s2 + $0x8] sm:$0x3] }
   0xd   : > { %s11118_s19 = smov (!%p230_p3, %s6849_s19), 1  ;;  %v968_v6 = vunpack.c.l.bf16 %v6925_v4  ;;  %v1248_v7 = vunpack.c.l.bf16 %v6991_v5  ;;  %v7123_v9 = vld [vmem:[%s10924_s2 + $0xa] sm:$0x3]  ;;  %v1719_v10 = vunpack.c.l.bf16 %v7073_v8  ;;  %vm475_vm1 = vcmask 31744  }
   0xe   : > { %8292 = vmatpush.msk.msra.mxu2 %vm540_vm0, %v474_v2  ;;  %8293 = vmatpush.msk.msra.mxu3 %vm540_vm0, %v310_v3  ;;  %v2062_v11 = vunpack.c.l.bf16 %v7123_v9  ;;  %s8294_s7 = smul.u32 216, %s11118_s19  ;;  %vm391_vm2 = vcmask 1046528   ;;  %vm885_vm3 = vcmask 1045504   ;;  %s7854_s17 = sshll.u32 %s11118_s19, 7  ;;  %vm6749_vm4 = vcmask 27648  }
   0xf   : > { %6859 = vmatpush.msk.msra.mxu0 %vm540_vm0, %v474_v2  ;;  %6892 = vmatpush.msk.msra.mxu1 %vm540_vm0, %v310_v3  ;;  %s10641_s21 = scalar_lea.vmem %s10927_s5, %s7854_s17 }
  0x10   : > { %6926 = vmatpush.msk.msrb.mxu2 %vm540_vm0, %v968_v6  ;;  %6992 = vmatpush.msk.msrb.mxu3 %vm540_vm0, %v1248_v7  ;;  %s8383_s10 = scalar_lea.vmem %s10922_s0, %s8294_s7  ;;  %s9252_s6 = scalar_lea.vmem %s10923_s1, %s8294_s7 }
  0x11   : > { %7074 = vmatpush.msk.msrb.mxu0 %vm540_vm0, %v1719_v10  ;;  %7124 = vmatpush.msk.msrb.mxu1 %vm540_vm0, %v2062_v11  ;;  %v8210_v12 = vld [vmem:[%s8383_s10 + $0x60] sm:$0xff]   ;;  %v8389_v13 = vld [vmem:[%s8383_s10 + $0x68] sm:$0x1]  ;;  %v263_v29 = vld [vmem:[%s8383_s10 + $0x6c] sm:$0xff]  }
  0x12   : > { %v7856_v14 = vld [vmem:[%s8383_s10] sm:$0xff]   ;;  %v7873_v15 = vunpack.c.l.bf16 %v8210_v12  ;;  %v8392_v16 = vunpack.c.h.bf16 %v8210_v12  ;;  %v8395_v18 = vld [vmem:[%s8383_s10 + $0x8] sm:$0x1]  ;;  %v10935_v22 = vunpack.c.l.bf16 %v8389_v13  ;;  %v247_v31 = vld [vmem:[%s8383_s10 + $0xc] sm:$0xff]   ;;  %v295_v33 = vunpack.c.l.bf16 %v263_v29 }
  0x13   : > { %v7857_v17 = vunpack.c.l.bf16 %v7856_v14  ;;  %v8397_v19 = vunpack.c.h.bf16 %v7856_v14  ;;  %v327_v25 = vunpack.c.l.bf16 %v8395_v18  ;;  %v8418_v34 = vunpack.c.h.bf16 %v263_v29  ;;  %v8429_v40 = vld [vmem:[%s8383_s10 + $0x74] sm:$0x1]  ;;  %v8211_v49 = vld [vmem:[%s8383_s10 + $0x78] sm:$0xff]   ;;  %v8465_v60 = vld [vmem:[%s8383_s10 + $0x80] sm:$0x1] }
  0x14   : > { %v432_v20 = vrot.slane %v7873_v15, 1  ;;  %v433_v21 = vrot.slane %v8392_v16, 1  ;;  %6909 = vmatmul.msk.f32.vlgmr.msra.gmra.mxu3 %vm475_vm1, %v7873_v15  ;;  %v435_v28 = vrot.slane %v10935_v22, 1  ;;  %v279_v36 = vunpack.c.l.bf16 %v247_v31  ;;  %v8433_v43 = vld [vmem:[%s8383_s10 + $0x14] sm:$0x1]  ;;  %v8207_v51 = vld [vmem:[%s8383_s10 + $0x18] sm:$0xff]  }
  0x15   : > { %v392_v23 = vrot.slane %v7857_v17, 1  ;;  %6893 = vmatmul.msk.f32.vlgmr.msra.gmra.mxu1 %vm475_vm1, %v7857_v17  ;;  %v393_v24 = vrot.slane %v8397_v19, 1  ;;  %v395_v30 = vrot.slane %v327_v25, 1  ;;  %v8423_v37 = vunpack.c.h.bf16 %v247_v31  ;;  %v8472_v63 = vld [vmem:[%s8383_s10 + $0x20] sm:$0x1]  ;;  %v267_v5 = vld [vmem:[%s8383_s10 + $0x84] sm:$0xff]  }
  0x16   : > { %v434_v26 = vsel %vm391_vm2, %v432_v20, %v433_v21  ;;  %v436_v32 = vsel %vm391_vm2, %v433_v21, %v435_v28  ;;  %v437_v38 = vrot.slane %v295_v33, 1  ;;  %v438_v39 = vrot.slane %v8418_v34, 1  ;;  %v251_v7 = vld [vmem:[%s8383_s10 + $0x24] sm:$0xff]   ;;  %v8508_v20 = vld [vmem:[%s8383_s10 + $0x8c] sm:$0x1]  ;;  %v8212_v31 = vld [vmem:[%s8383_s10 + $0x90] sm:$0xff]  }
  0x17   : > { %6876 = vmatmul.msk.f32.vlgmr.msra.gmra.mxu2 %vm475_vm1, %v434_v26  ;;  %v394_v27 = vsel %vm391_vm2, %v392_v23, %v393_v24  ;;  %v396_v35 = vsel %vm391_vm2, %v393_v24, %v395_v30  ;;  %v397_v41 = vrot.slane %v279_v36, 1  ;;  %v398_v42 = vrot.slane %v8423_v37, 1  ;;  %v8512_v24 = vld [vmem:[%s8383_s10 + $0x2c] sm:$0x1] }
  0x18   : > { %6860 = vmatmul.msk.f32.vlgmr.msra.gmra.mxu0 %vm475_vm1, %v394_v27  ;;  %v439_v44 = vsel %vm391_vm2, %v437_v38, %v438_v39  ;;  %v10933_v45 = vunpack.c.l.bf16 %v8429_v40  ;;  %v328_v47 = vunpack.c.l.bf16 %v8433_v43  ;;  %v7877_v53 = vunpack.c.l.bf16 %v8211_v49 }
  0x19   : > { %v399_v46 = vsel %vm391_vm2, %v397_v41, %v398_v42  ;;  %v8452_v54 = vunpack.c.h.bf16 %v8211_v49  ;;  %v8457_v56 = vunpack.c.l.bf16 %v8207_v51  ;;  %v8459_v57 = vunpack.c.h.bf16 %v8207_v51  ;;  %v8551_v51 = vld [vmem:[%s8383_s10 + $0x38] sm:$0x1] }
  0x1a   : > { %v440_v48 = vrot.slane %v10933_v45, 1  ;;  %v400_v50 = vrot.slane %v328_v47, 1  ;;  %v442_v58 = vrot.slane %v7877_v53, 1  ;;  %v10932_v1 = vunpack.c.l.bf16 %v8465_v60 }
  0x1b   : > { %v443_v59 = vrot.slane %v8452_v54, 1  ;;  %v402_v61 = vrot.slane %v8457_v56, 1  ;;  %v8469_v62 = vrot.slane %v8459_v57, 1  ;;  %v10941_v3 = vunpack.c.l.bf16 %v8472_v63 }
  0x1c   : > { %6910 = vmatmul.msk.f32.gmra.mxu3 %vm475_vm1, %v8392_v16  ;;  %v441_v52 = vsel %vm391_vm2, %v438_v39, %v440_v48  ;;  %v401_v55 = vsel %vm391_vm2, %v398_v42, %v400_v50  ;;  %v445_v4 = vrot.slane %v10932_v1, 1  ;;  %v299_v9 = vunpack.c.l.bf16 %v267_v5  ;;  %v8544_v48 = vld [vmem:[%s8383_s10 + $0x98] sm:$0x1]  ;;  %v7107_v1 = vld [vmem:[%s8383_s10 + $0xc] sm:$0xe] }
  0x1d   : > { %6894 = vmatmul.msk.f32.gmra.mxu1 %vm475_vm1, %v8397_v19  ;;  %v444_v0 = vsel %vm391_vm2, %v442_v58, %v443_v59  ;;  %v8481_v2 = vsel %vm391_vm2, %v402_v61, %v8469_v62  ;;  %v405_v6 = vrot.slane %v10941_v3, 1  ;;  %v8496_v10 = vunpack.c.h.bf16 %v267_v5  ;;  %v271_v61 = vld [vmem:[%s8383_s10 + $0x9c] sm:$0xff]  }
  0x1e   : > { %v446_v8 = vsel %vm391_vm2, %v443_v59, %v445_v4  ;;  %v283_v12 = vunpack.c.l.bf16 %v251_v7  ;;  %v8502_v14 = vunpack.c.h.bf16 %v251_v7  ;;  %v447_v15 = vrot.slane %v299_v9, 1  ;;  %v255_v4 = vld [vmem:[%s8383_s10 + $0x3c] sm:$0xff]  }
  0x1f   : > { %6877 = vmatmul.msk.f32.gmra.mxu2 %vm475_vm1, %v436_v32  ;;  %v406_v11 = vsel %vm391_vm2, %v8469_v62, %v405_v6  ;;  %v448_v17 = vrot.slane %v8496_v10, 1  ;;  %v10931_v27 = vunpack.c.l.bf16 %v8508_v20  ;;  %v10940_v29 = vunpack.c.l.bf16 %v8512_v24 }
  0x20   : > { %6861 = vmatmul.msk.f32.gmra.mxu0 %vm475_vm1, %v396_v35  ;;  %v407_v21 = vrot.slane %v283_v12, 1  ;;  %v408_v23 = vrot.slane %v8502_v14, 1  ;;  %v8531_v38 = vunpack.c.h.bf16 %v8212_v31  ;;  %v10939_v58 = vunpack.c.l.bf16 %v8551_v51 }
  0x21   : > { %v449_v26 = vsel %vm391_vm2, %v447_v15, %v448_v17  ;;  %v450_v30 = vrot.slane %v10931_v27, 1  ;;  %v410_v32 = vrot.slane %v10940_v29, 1  ;;  %v303_v6 = vunpack.c.l.bf16 %v271_v61 }
  0x22   : > { %v409_v28 = vsel %vm391_vm2, %v407_v21, %v408_v23  ;;  %v8575_v7 = vunpack.c.h.bf16 %v271_v61 }
  0x23   : > { %v451_v35 = vsel %vm391_vm2, %v448_v17, %v450_v30  ;;  %v411_v39 = vsel %vm391_vm2, %v408_v23, %v410_v32  ;;  %v8587_v17 = vld [vmem:[%s8383_s10 + $0xa4] sm:$0x1] }
  0x24   : > { %6911 = vmatmul.msk.f32.gmra.mxu3 %vm475_vm1, %v295_v33  ;;  %v8208_v33 = vld [vmem:[%s8383_s10 + $0x30] sm:$0xff]   ;;  %v458_v15 = vrot.slane %v8575_v7, 1  ;;  %v10929_v30 = vunpack.c.l.bf16 %v8587_v17 }
  0x25   : > { %6895 = vmatmul.msk.f32.gmra.mxu1 %vm475_vm1, %v279_v36  ;;  %v7881_v36 = vunpack.c.l.bf16 %v8212_v31  ;;  %v8536_v41 = vunpack.c.l.bf16 %v8208_v33  ;;  %v8538_v42 = vunpack.c.h.bf16 %v8208_v33 }
  0x26   : > { %v460_v33 = vrot.slane %v10929_v30, 1 }
  0x27   : > { %6878 = vmatmul.msk.f32.gmra.mxu2 %vm475_vm1, %v439_v44  ;;  %v452_v44 = vrot.slane %v7881_v36, 1  ;;  %v412_v49 = vrot.slane %v8536_v41, 1  ;;  %v8548_v50 = vrot.slane %v8538_v42, 1 }
  0x28   : > { %6862 = vmatmul.msk.f32.gmra.mxu0 %vm475_vm1, %v399_v46  ;;  %v453_v46 = vrot.slane %v8531_v38, 1 }
  0x2c   : > { %6912 = vmatmul.msk.f32.gmra.mxu3 %vm475_vm1, %v8418_v34 }
  0x2d   : > { %6896 = vmatmul.msk.f32.gmra.mxu1 %vm475_vm1, %v8423_v37 }
  0x2f   : > { %6879 = vmatmul.msk.f32.gmra.mxu2 %vm475_vm1, %v441_v52  ;;  %v454_v52 = vsel %vm391_vm2, %v452_v44, %v453_v46  ;;  %v461_v44 = vsel %vm391_vm2, %v458_v15, %v460_v33 }
  0x30   : > { %6863 = vmatmul.msk.f32.gmra.mxu0 %vm475_vm1, %v401_v55  ;;  %v8560_v55 = vsel %vm391_vm2, %v412_v49, %v8548_v50 }
  0x34   : > { %6913 = vmatmul.msk.f32.gmra.mxu3 %vm475_vm1, %v7877_v53  ;;  %v10930_v53 = vunpack.c.l.bf16 %v8544_v48 }
  0x35   : > { %6897 = vmatmul.msk.f32.gmra.mxu1 %vm475_vm1, %v8457_v56 }
  0x36   : > { %v455_v59 = vrot.slane %v10930_v53, 1 }
  0x37   : > { %6880 = vmatmul.msk.f32.gmra.mxu2 %vm475_vm1, %v444_v0  ;;  %v415_v0 = vrot.slane %v10939_v58, 1 }
  0x38   : > { %6864 = vmatmul.msk.f32.gmra.mxu0 %vm475_vm1, %v8481_v2  ;;  %v456_v5 = vsel %vm391_vm2, %v453_v46, %v455_v59 }
  0x3c   : > { %6914 = vmatmul.msk.f32.gmra.mxu3 %vm475_vm1, %v8452_v54 }
  0x3d   : > { %6898 = vmatmul.msk.f32.gmra.mxu1 %vm475_vm1, %v8459_v57 }
  0x3f   : > { %6881 = vmatmul.msk.f32.gmra.mxu2 %vm475_vm1, %v446_v8  ;;  %v416_v8 = vsel %vm391_vm2, %v8548_v50, %v415_v0 }
  0x40   : > { %6865 = vmatmul.msk.f32.gmra.mxu0 %vm475_vm1, %v406_v11  ;;  %v8581_v11 = vunpack.c.h.bf16 %v255_v4 }
  0x42   : > { %v418_v23 = vrot.slane %v8581_v11, 1 }
  0x44   : > { %6915 = vmatmul.msk.f32.gmra.mxu3 %vm475_vm1, %v299_v9  ;;  %v287_v9 = vunpack.c.l.bf16 %v255_v4 }
  0x45   : > { %6899 = vmatmul.msk.f32.gmra.mxu1 %vm475_vm1, %v283_v12  ;;  %v457_v12 = vrot.slane %v303_v6, 1 }
  0x46   : > { %v417_v21 = vrot.slane %v287_v9, 1 }
  0x47   : > { %6882 = vmatmul.msk.f32.gmra.mxu2 %vm475_vm1, %v449_v26  ;;  %v8591_v26 = vld [vmem:[%s8383_s10 + $0x44] sm:$0x1] }
  0x48   : > { %6866 = vmatmul.msk.f32.gmra.mxu0 %vm475_vm1, %v409_v28  ;;  %v459_v28 = vsel %vm391_vm2, %v457_v12, %v458_v15  ;;  %v419_v31 = vsel %vm391_vm2, %v417_v21, %v418_v23  ;;  %v10938_v32 = vunpack.c.l.bf16 %v8591_v26 }
  0x4c   : > { %6916 = vmatmul.msk.f32.gmra.mxu3 %vm475_vm1, %v8496_v10 }
  0x4d   : > { %6900 = vmatmul.msk.f32.gmra.mxu1 %vm475_vm1, %v8502_v14 }
  0x4f   : > { %6883 = vmatmul.msk.f32.gmra.mxu2 %vm475_vm1, %v451_v35  ;;  %v8213_v35 = vld [vmem:[%s8383_s10 + $0xa8] sm:$0xff]  }
  0x50   : > { %6867 = vmatmul.msk.f32.gmra.mxu0 %vm475_vm1, %v411_v39  ;;  %v8209_v39 = vld [vmem:[%s8383_s10 + $0x48] sm:$0xff]   ;;  %v7885_v46 = vunpack.c.l.bf16 %v8213_v35  ;;  %v8610_v49 = vunpack.c.h.bf16 %v8213_v35 }
  0x51   : > { %v8615_v59 = vunpack.c.l.bf16 %v8209_v39  ;;  %v8617_v61 = vunpack.c.h.bf16 %v8209_v39  ;;  %v275_v39 = vld [vmem:[%s8383_s10 + $0xb4] sm:$0xff]  }
  0x52   : > { %v462_v0 = vrot.slane %v7885_v46, 1  ;;  %v463_v4 = vrot.slane %v8610_v49, 1 }
  0x54   : > { %6917 = vmatmul.msk.f32.gmra.mxu3 %vm475_vm1, %v7881_v36  ;;  %v420_v36 = vrot.slane %v10938_v32, 1  ;;  %v464_v12 = vsel %vm391_vm2, %v462_v0, %v463_v4  ;;  %v307_v0 = vunpack.c.l.bf16 %v275_v39 }
  0x55   : > { %6901 = vmatmul.msk.f32.gmra.mxu1 %vm475_vm1, %v8536_v41 }
  0x57   : > { %6884 = vmatmul.msk.f32.gmra.mxu2 %vm475_vm1, %v454_v52  ;;  %v421_v52 = vsel %vm391_vm2, %v418_v23, %v420_v36 }
  0x58   : > { %6868 = vmatmul.msk.f32.gmra.mxu0 %vm475_vm1, %v8560_v55 }
  0x5c   : > { %6918 = vmatmul.msk.f32.gmra.mxu3 %vm475_vm1, %v8531_v38 }
  0x5d   : > { %6902 = vmatmul.msk.f32.gmra.mxu1 %vm475_vm1, %v8538_v42 }
  0x5f   : > { %6885 = vmatmul.msk.f32.gmra.mxu2 %vm475_vm1, %v456_v5  ;;  %v8623_v5 = vld [vmem:[%s8383_s10 + $0xb0] sm:$0x1] }
  0x60   : > { %6869 = vmatmul.msk.f32.gmra.mxu0 %vm475_vm1, %v416_v8  ;;  %v8627_v8 = vrot.slane %v8617_v61, 1  ;;  %v10928_v15 = vunpack.c.l.bf16 %v8623_v5 }
  0x62   : > { %v465_v33 = vrot.slane %v10928_v15, 1 }
  0x64   : > { %6919 = vmatmul.msk.f32.gmra.mxu3 %vm475_vm1, %v303_v6  ;;  %v422_v6 = vrot.slane %v8615_v59, 1 }
  0x65   : > { %6903 = vmatmul.msk.f32.gmra.mxu1 %vm475_vm1, %v287_v9  ;;  %v8630_v9 = vld [vmem:[%s8383_s10 + $0x50] sm:$0x1] }
  0x66   : > { %v8639_v21 = vsel %vm391_vm2, %v422_v6, %v8627_v8  ;;  %v10936_v23 = vunpack.c.l.bf16 %v8630_v9  ;;  %v8662_v6 = vunpack.c.h.bf16 %v275_v39  ;;  %v8677_v39 = vld [vmem:[%s8383_s10 + $0xbc] sm:$0x1] }
  0x67   : > { %6886 = vmatmul.msk.f32.gmra.mxu2 %vm475_vm1, %v459_v28  ;;  %v7189_v28 = vld [vmem:[%s10924_s2 + $0xc] sm:$0x3]  ;;  %10982 = vst [vmem:[#allocation3_spill] sm:$0xff] %v8677_v39 }
  0x68   : > { %6870 = vmatmul.msk.f32.gmra.mxu0 %vm475_vm1, %v419_v31  ;;  %v7271_v31 = vld [vmem:[%s10924_s2 + $0xe] sm:$0x3]  ;;  %v2342_v35 = vunpack.c.l.bf16 %v7189_v28  ;;  %10981 = vst [vmem:[#allocation2_spill] sm:$0xff] %v8662_v6 }
  0x69   : > { %v2813_v36 = vunpack.c.l.bf16 %v7271_v31 }
  0x6a   : > { %7190 = vmatpush.msk.msra.mxu2 %vm540_vm0, %v2342_v35  ;;  %v468_v35 = vrot.slane %v8662_v6, 1 }
  0x6b   : > { %7272 = vmatpush.msk.msra.mxu3 %vm540_vm0, %v2813_v36 }
  0x6c   : > { %6920 = vmatmul.msk.f32.gmra.mxu3 %vm475_vm1, %v8575_v7 }
  0x6d   : > { %6904 = vmatmul.msk.f32.gmra.mxu1 %vm475_vm1, %v8581_v11 }
  0x6f   : > { %6887 = vmatmul.msk.f32.gmra.mxu2 %vm475_vm1, %v461_v44  ;;  %v425_v44 = vrot.slane %v10936_v23, 1 }
  0x70   : > { %6871 = vmatmul.msk.f32.gmra.mxu0 %vm475_vm1, %v421_v52  ;;  %v466_v52 = vsel %vm391_vm2, %v463_v4, %v465_v33  ;;  %v7321_v4 = vld [vmem:[%s10924_s2 + $0x10] sm:$0x3]  ;;  %v467_v33 = vrot.slane %v307_v0, 1 }
  0x71   : > { %v3156_v36 = vunpack.c.l.bf16 %v7321_v4 }
  0x72   : > { %v469_v30 = vsel %vm391_vm2, %v467_v33, %v468_v35 }
  0x73   : > { %7322 = vmatpush.msk.msra.mxu0 %vm540_vm0, %v3156_v36  ;;  %v837_v36 = vld [vmem:[%s8383_s10] sm:$0xe] }
  0x74   : > { %6921 = vmatmul.msk.f32.gmra.mxu3 %vm475_vm1, %v7885_v46  ;;  %v259_v46 = vld [vmem:[%s8383_s10 + $0x54] sm:$0xff]  }
  0x75   : > { %6905 = vmatmul.msk.f32.gmra.mxu1 %vm475_vm1, %v8615_v59  ;;  %v291_v28 = vunpack.c.l.bf16 %v259_v46  ;;  %v8668_v31 = vunpack.c.h.bf16 %v259_v46  ;;  %v8681_v46 = vld [vmem:[%s8383_s10 + $0x5c] sm:$0x1] }
  0x76   : > { %v10937_v27 = vunpack.c.l.bf16 %v8681_v46 }
  0x77   : > { %6888 = vmatmul.msk.f32.gmra.mxu2 %vm475_vm1, %v464_v12  ;;  %v426_v12 = vsel %vm391_vm2, %v8627_v8, %v425_v44  ;;  %v427_v15 = vrot.slane %v291_v28, 1  ;;  %v428_v44 = vrot.slane %v8668_v31, 1 }
  0x78   : > { %6872 = vmatmul.msk.f32.gmra.mxu0 %vm475_vm1, %v8639_v21 }
  0x79   : > { %v429_v53 = vsel %vm391_vm2, %v427_v15, %v428_v44 }
  0x7c   : > { %6922 = vmatmul.msk.f32.gmra.mxu3 %vm475_vm1, %v8610_v49 }
  0x7d   : > { %6906 = vmatmul.msk.f32.gmra.mxu1 %vm475_vm1, %v8617_v61 }
  0x7f   : > { %6889 = vmatmul.msk.f32.gmra.mxu2 %vm475_vm1, %v466_v52  ;;  %v3433_v52 = vld [vmem:[%s10925_s3] sm:$0x3] }
  0x80   : > { %6873 = vmatmul.msk.f32.gmra.mxu0 %vm475_vm1, %v426_v12  ;;  %v10934_v12 = vunpack.c.l.bf16 %v8677_v39  ;;  %v3434_v4 = vunpack.c.l.bf16 %v3433_v52  ;;  %v1948_v52 = vunpack.c.l.bf16 %v7107_v1 }
  0x82   : > { %7355 = vmatpush.msk.msra.mxu1 %vm540_vm0, %v3434_v4  ;;  %v470_v33 = vrot.slane %v10934_v12, 1  ;;  %v853_v4 = vunpack.c.l.bf16 %v837_v36  ;;  %v1980_v22 = vrot.slane %v1948_v52, 2  ;;  %v7027_v36 = vld [vmem:[%s8383_s10 + $0x14] sm:$0x1] }
  0x84   : > { %6923 = vmatmul.msk.f32.gmra.mxu3 %vm475_vm1, %v307_v0  ;;  %v7025_v0 = vld [vmem:[%s8383_s10 + $0xc] sm:$0xff]   ;;  %v471_v45 = vsel %vm391_vm2, %v468_v35, %v470_v33  ;;  %v886_v1 = vrot.slane %v853_v4, 2  ;;  %v887_v35 = vrot.slane %v8397_v19, 2  ;;  %v7108_v4 = vld [vmem:[%s8383_s10 + $0x18] sm:$0xe] }
  0x85   : > { %6907 = vmatmul.msk.f32.gmra.mxu1 %vm475_vm1, %v291_v28  ;;  %v430_v28 = vrot.slane %v10937_v27, 1  ;;  %v1542_v15 = vunpack.c.h.bf16 %v7025_v0  ;;  %v1541_v12 = vunpack.c.l.bf16 %v7025_v0  ;;  %v1543_v0 = vunpack.c.l.bf16 %v7027_v36 }
  0x87   : > { %6890 = vmatmul.msk.f32.gmra.mxu2 %vm475_vm1, %v469_v30  ;;  %v431_v30 = vsel %vm391_vm2, %v428_v44, %v430_v28  ;;  %v1981_v23 = vrot.slane %v1542_v15, 2  ;;  %v1637_v32 = vrot.slane %v1541_v12, 1  ;;  %v1638_v58 = vrot.slane %v1542_v15, 1 }
  0x88   : > { %6874 = vmatmul.msk.f32.gmra.mxu0 %vm475_vm1, %v429_v53  ;;  %v6959_v53 = vld [vmem:[%s8383_s10 + $0xc] sm:$0xff]   ;;  %v888_v28 = vsel %vm885_vm3, %v886_v1, %v887_v35  ;;  %v1983_v52 = vrot.slane %v1543_v0, 2  ;;  %v889_v15 = vrot.slane %v327_v25, 2 }
  0x89   : > { %v1214_v33 = vunpack.c.l.bf16 %v6959_v53  ;;  %v1982_v44 = vsel %vm885_vm3, %v1980_v22, %v1981_v23  ;;  %v1639_v19 = vsel %vm391_vm2, %v1637_v32, %v1638_v58  ;;  %v1215_v22 = vunpack.c.h.bf16 %v6959_v53  ;;  %v838_v1 = vld [vmem:[%s8383_s10 + $0xc] sm:$0xe] }
  0x8a   : > { %v1984_v36 = vsel %vm885_vm3, %v1981_v23, %v1983_v52  ;;  %v854_v18 = vunpack.c.l.bf16 %v838_v1 }
  0x8c   : > { %6924 = vmatmul.msk.f32.gmra.mxu3 %vm475_vm1, %v8662_v6  ;;  %v891_v52 = vrot.slane %v854_v18, 2  ;;  %v7031_v18 = vld [vmem:[%s8383_s10 + $0x24] sm:$0xff]  }
  0x8d   : > { %6908 = vmatmul.msk.f32.gmra.mxu1 %vm475_vm1, %v8668_v31 }
  0x8f   : > { %6891 = vmatmul.msk.f32.gmra.mxu2 %vm475_vm1, %v471_v45 }
  0x90   : > { %6875 = vmatmul.msk.f32.gmra.mxu0 %vm475_vm1, %v431_v30 }
  0x92   : > { %v8714_v27 = vpop.f32.mrf.mxu1 }
  0x94   : > { %6993 = vmatmul.msk.f32.vlgmr.msrb.gmra.mxu3 %vm475_vm1, %v1214_v33  ;;  %v1640_v33 = vrot.slane %v1543_v0, 1  ;;  %v8741_v0 = vrot.slane %v8459_v57, 2 }
  0x95   : > { %7125 = vmatmul.msk.f32.vlgmr.msrb.gmra.mxu1 %vm475_vm1, %v1982_v44  ;;  %v8720_v45 = vpop.f32.mrf.mxu0  ;;  %v1949_v44 = vunpack.c.l.bf16 %v7108_v4  ;;  %v7030_v4 = vld [vmem:[%s8383_s10 + $0x20] sm:$0x1] }
  0x96   : > { %v1641_v53 = vsel %vm391_vm2, %v1638_v58, %v1640_v33  ;;  %v1546_v1 = vunpack.c.l.bf16 %v7030_v4 }
  0x97   : > { %6927 = vmatmul.msk.f32.vlgmr.msrb.gmra.mxu2 %vm475_vm1, %v888_v28  ;;  %v789_v12 = vpop.f32.mrf.mxu3  ;;  %v890_v28 = vsel %vm885_vm3, %v887_v35, %v889_v15  ;;  %v892_v35 = vrot.slane %v8423_v37, 2 }
  0x98   : > { %7075 = vmatmul.msk.f32.vlgmr.msrb.gmra.mxu0 %vm475_vm1, %v1639_v19  ;;  %v1985_v19 = vrot.slane %v1949_v44, 2  ;;  %v7109_v44 = vld [vmem:[%s8383_s10 + $0x24] sm:$0xe] }
  0x99   : > { %v893_v33 = vsel %vm885_vm3, %v891_v52, %v892_v35  ;;  %v1950_v52 = vunpack.c.l.bf16 %v7109_v44 }
  0x9a   : > { %v8728_v30 = vpop.f32.mrf.mxu1  ;;  %v609_v32 = vpop.f32.mrf.mxu2  ;;  %v1987_v58 = vsel %vm885_vm3, %v1985_v19, %v8741_v0  ;;  %v1645_v19 = vrot.slane %v1546_v1, 1 }
  0x9b   : > { %v8732_v29 = vadd.f32 %v789_v12, %v609_v32  ;;  %v1990_v44 = vrot.slane %v1950_v52, 2 }
  0x9c   : > { %6994 = vmatmul.msk.f32.gmra.mxu3 %vm475_vm1, %v1215_v22 }
  0x9d   : > { %10983 = vst [vmem:[#allocation4_spill] sm:$0xff] %v8732_v29  ;;  %7126 = vmatmul.msk.f32.gmra.mxu1 %vm475_vm1, %v1984_v36  ;;  %v8737_v25 = vpop.f32.mrf.mxu0  ;;  %v1988_v36 = vrot.slane %v1546_v1, 2  ;;  %v6963_v1 = vld [vmem:[%s8383_s10 + $0x24] sm:$0xff]  }
  0x9f   : > { %6928 = vmatmul.msk.f32.gmra.mxu2 %vm475_vm1, %v890_v28  ;;  %v792_v23 = vpop.f32.mrf.mxu3  ;;  %v894_v28 = vrot.slane %v328_v47, 2 }
  0xa0   : > { %7076 = vmatmul.msk.f32.gmra.mxu0 %vm475_vm1, %v1641_v53 }
  0xa1   : > { %v895_v43 = vsel %vm885_vm3, %v892_v35, %v894_v28  ;;  %v1218_v35 = vunpack.c.l.bf16 %v6963_v1 }
  0xa2   : > { %v8747_v12 = vpop.f32.mrf.mxu1  ;;  %v612_v15 = vpop.f32.mrf.mxu2 }
  0xa3   : > { %v8751_v22 = vadd.f32 %v792_v23, %v612_v15  ;;  %v1989_v23 = vsel %vm885_vm3, %v8741_v0, %v1988_v36  ;;  %v1548_v15 = vunpack.c.h.bf16 %v7031_v18  ;;  %v1547_v36 = vunpack.c.l.bf16 %v7031_v18 }
  0xa4   : > { %6995 = vmatmul.msk.f32.gmra.mxu3 %vm475_vm1, %v8457_v56  ;;  %v839_v56 = vld [vmem:[%s8383_s10 + $0x18] sm:$0xe] }
  0xa5   : > { %10984 = vst [vmem:[#allocation5_spill] sm:$0xff] %v8751_v22  ;;  %7127 = vmatmul.msk.f32.gmra.mxu1 %vm475_vm1, %v1987_v58  ;;  %v8757_v37 = vpop.f32.mrf.mxu0  ;;  %v855_v47 = vunpack.c.l.bf16 %v839_v56  ;;  %v1647_v56 = vrot.slane %v1547_v36, 1 }
  0xa7   : > { %6929 = vmatmul.msk.f32.gmra.mxu2 %vm475_vm1, %v893_v33  ;;  %v795_v32 = vpop.f32.mrf.mxu3  ;;  %v1646_v33 = vsel %vm391_vm2, %v8469_v62, %v1645_v19  ;;  %v896_v3 = vrot.slane %v855_v47, 2 }
  0xa8   : > { %7077 = vmatmul.msk.f32.gmra.mxu0 %vm475_vm1, %v8481_v2 }
  0xa9   : > { %v898_v19 = vsel %vm885_vm3, %v896_v3, %v8741_v0 }
  0xaa   : > { %v8766_v53 = vpop.f32.mrf.mxu1  ;;  %v615_v4 = vpop.f32.mrf.mxu2 }
  0xab   : > { %v8771_v58 = vadd.f32 %v795_v32, %v615_v4  ;;  %v1991_v32 = vrot.slane %v1548_v15, 2 }
  0xac   : > { %6996 = vmatmul.msk.f32.gmra.mxu3 %vm475_vm1, %v8459_v57  ;;  %v7033_v57 = vld [vmem:[%s8383_s10 + $0x2c] sm:$0x1] }
  0xad   : > { %10985 = vst [vmem:[#allocation6_spill] sm:$0xff] %v8771_v58  ;;  %7128 = vmatmul.msk.f32.gmra.mxu1 %vm475_vm1, %v1989_v23  ;;  %v8777_v2 = vpop.f32.mrf.mxu0  ;;  %v1648_v23 = vrot.slane %v1548_v15, 1  ;;  %v1992_v58 = vsel %vm885_vm3, %v1990_v44, %v1991_v32  ;;  %v1549_v18 = vunpack.c.l.bf16 %v7033_v57  ;;  %v7110_v15 = vld [vmem:[%s8383_s10 + $0x30] sm:$0xe]  ;;  %v1219_v44 = vunpack.c.h.bf16 %v6963_v1 }
  0xae   : > { %v1951_v57 = vunpack.c.l.bf16 %v7110_v15 }
  0xaf   : > { %6930 = vmatmul.msk.f32.gmra.mxu2 %vm475_vm1, %v895_v43  ;;  %v798_v4 = vpop.f32.mrf.mxu3  ;;  %v1649_v43 = vsel %vm391_vm2, %v1647_v56, %v1648_v23  ;;  %v1993_v47 = vrot.slane %v1549_v18, 2 }
  0xb0   : > { %7078 = vmatmul.msk.f32.gmra.mxu0 %vm475_vm1, %v1646_v33 }
  0xb2   : > { %v8785_v28 = vpop.f32.mrf.mxu1  ;;  %v618_v22 = vpop.f32.mrf.mxu2 }
  0xb3   : > { %v8788_v62 = vadd.f32 %v798_v4, %v618_v22  ;;  %v10987_v22 = vunpack.c.l.bf16 %v8472_v63  ;;  %v840_v4 = vld [vmem:[%s8383_s10 + $0x24] sm:$0xe] }
  0xb4   : > { %6997 = vmatmul.msk.f32.gmra.mxu3 %vm475_vm1, %v1218_v35  ;;  %v1650_v35 = vrot.slane %v1549_v18, 1  ;;  %v856_v63 = vunpack.c.l.bf16 %v840_v4  ;;  %v1995_v18 = vrot.slane %v1951_v57, 2  ;;  %v7111_v57 = vld [vmem:[%s8383_s10 + $0x3c] sm:$0xe] }
  0xb5   : > { %10986 = vst [vmem:[#allocation7_spill] sm:$0xff] %v8788_v62  ;;  %7129 = vmatmul.msk.f32.gmra.mxu1 %vm475_vm1, %v1992_v58  ;;  %v8794_v52 = vpop.f32.mrf.mxu0  ;;  %v899_v36 = vrot.slane %v10987_v22, 2  ;;  %v1994_v58 = vsel %vm885_vm3, %v1991_v32, %v1993_v47  ;;  %v8816_v32 = vrot.slane %v8538_v42, 2 }
  0xb6   : > { %v901_v15 = vrot.slane %v856_v63, 2 }
  0xb7   : > { %6931 = vmatmul.msk.f32.gmra.mxu2 %vm475_vm1, %v898_v19  ;;  %v801_v33 = vpop.f32.mrf.mxu3  ;;  %v900_v19 = vsel %vm885_vm3, %v8741_v0, %v899_v36  ;;  %v902_v0 = vrot.slane %v8502_v14, 2 }
  0xb8   : > { %7079 = vmatmul.msk.f32.gmra.mxu0 %vm475_vm1, %v1649_v43  ;;  %v1651_v43 = vsel %vm391_vm2, %v1648_v23, %v1650_v35  ;;  %v1997_v23 = vsel %vm885_vm3, %v1995_v18, %v8816_v32 }
  0xb9   : > { %v903_v35 = vsel %vm885_vm3, %v901_v15, %v902_v0 }
  0xba   : > { %v8802_v3 = vpop.f32.mrf.mxu1  ;;  %v621_v56 = vpop.f32.mrf.mxu2 }
  0xbb   : > { %v8806_v62 = vadd.f32 %v801_v33, %v621_v56  ;;  %v7036_v33 = vld [vmem:[%s8383_s10 + $0x38] sm:$0x1] }
  0xbc   : > { %6998 = vmatmul.msk.f32.gmra.mxu3 %vm475_vm1, %v1219_v44  ;;  %v1552_v4 = vunpack.c.l.bf16 %v7036_v33  ;;  %v1952_v33 = vunpack.c.l.bf16 %v7111_v57 }
  0xbd   : > { %10988 = vst [vmem:[#allocation8_spill] sm:$0xff] %v8806_v62  ;;  %7130 = vmatmul.msk.f32.gmra.mxu1 %vm475_vm1, %v1994_v58  ;;  %v8812_v1 = vpop.f32.mrf.mxu0 }
  0xbe   : > { %v1998_v58 = vrot.slane %v1552_v4, 2 }
  0xbf   : > { %6932 = vmatmul.msk.f32.gmra.mxu2 %vm475_vm1, %v900_v19  ;;  %v804_v47 = vpop.f32.mrf.mxu3  ;;  %v10990_v19 = vunpack.c.l.bf16 %v8512_v24 }
  0xc0   : > { %7080 = vmatmul.msk.f32.gmra.mxu0 %vm475_vm1, %v1651_v43  ;;  %v7037_v43 = vld [vmem:[%s8383_s10 + $0x3c] sm:$0xff]   ;;  %v1999_v15 = vsel %vm885_vm3, %v8816_v32, %v1998_v58 }
  0xc1   : > { %v904_v63 = vrot.slane %v10990_v19, 2  ;;  %v1553_v57 = vunpack.c.l.bf16 %v7037_v43 }
  0xc2   : > { %v8822_v22 = vpop.f32.mrf.mxu1  ;;  %v624_v36 = vpop.f32.mrf.mxu2 }
  0xc3   : > { %v8826_v44 = vadd.f32 %v804_v47, %v624_v36  ;;  %v1655_v47 = vrot.slane %v1552_v4, 1  ;;  %v905_v24 = vsel %vm885_vm3, %v902_v0, %v904_v63  ;;  %v6967_v4 = vld [vmem:[%s8383_s10 + $0x3c] sm:$0xff]  }
  0xc4   : > { %6999 = vmatmul.msk.f32.gmra.mxu3 %vm475_vm1, %v8536_v41  ;;  %v841_v41 = vld [vmem:[%s8383_s10 + $0x30] sm:$0xe]  ;;  %v1222_v0 = vunpack.c.l.bf16 %v6967_v4 }
  0xc5   : > { %10989 = vst [vmem:[#allocation9_spill] sm:$0xff] %v8826_v44  ;;  %7131 = vmatmul.msk.f32.gmra.mxu1 %vm475_vm1, %v1997_v23  ;;  %v8832_v14 = vpop.f32.mrf.mxu0  ;;  %v1656_v58 = vsel %vm391_vm2, %v8548_v50, %v1655_v47  ;;  %v2000_v44 = vrot.slane %v1952_v33, 2 }
  0xc7   : > { %6933 = vmatmul.msk.f32.gmra.mxu2 %vm475_vm1, %v903_v35  ;;  %v807_v56 = vpop.f32.mrf.mxu3  ;;  %v1554_v35 = vunpack.c.h.bf16 %v7037_v43 }
  0xc8   : > { %7081 = vmatmul.msk.f32.gmra.mxu0 %vm475_vm1, %v8560_v55  ;;  %v857_v55 = vunpack.c.l.bf16 %v841_v41  ;;  %v1657_v41 = vrot.slane %v1553_v57, 1  ;;  %v1223_v57 = vunpack.c.h.bf16 %v6967_v4 }
  0xca   : > { %v8841_v18 = vpop.f32.mrf.mxu1  ;;  %v627_v23 = vpop.f32.mrf.mxu2 }
  0xcb   : > { %v8846_v36 = vadd.f32 %v807_v56, %v627_v23  ;;  %v2001_v56 = vrot.slane %v1554_v35, 2 }
  0xcc   : > { %7000 = vmatmul.msk.f32.gmra.mxu3 %vm475_vm1, %v8538_v42  ;;  %v7039_v42 = vld [vmem:[%s8383_s10 + $0x44] sm:$0x1] }
  0xcd   : > { %10991 = vst [vmem:[#allocation10_spill] sm:$0xff] %v8846_v36  ;;  %7132 = vmatmul.msk.f32.gmra.mxu1 %vm475_vm1, %v1999_v15  ;;  %v8852_v19 = vpop.f32.mrf.mxu0  ;;  %v906_v36 = vrot.slane %v857_v55, 2  ;;  %v1658_v15 = vrot.slane %v1554_v35, 1  ;;  %v2002_v62 = vsel %vm885_vm3, %v2000_v44, %v2001_v56  ;;  %v1555_v43 = vunpack.c.l.bf16 %v7039_v42  ;;  %v7112_v35 = vld [vmem:[%s8383_s10 + $0x48] sm:$0xe] }
  0xce   : > { %v1953_v42 = vunpack.c.l.bf16 %v7112_v35 }
  0xcf   : > { %6934 = vmatmul.msk.f32.gmra.mxu2 %vm475_vm1, %v905_v24  ;;  %v810_v23 = vpop.f32.mrf.mxu3  ;;  %v908_v47 = vsel %vm885_vm3, %v906_v36, %v8816_v32  ;;  %v1659_v24 = vsel %vm391_vm2, %v1657_v41, %v1658_v15  ;;  %v2003_v55 = vrot.slane %v1555_v43, 2 }
  0xd0   : > { %7082 = vmatmul.msk.f32.gmra.mxu0 %vm475_vm1, %v1656_v58 }
  0xd2   : > { %v8860_v63 = vpop.f32.mrf.mxu1  ;;  %v630_v29 = vpop.f32.mrf.mxu2 }
  0xd3   : > { %v8863_v50 = vadd.f32 %v810_v23, %v630_v29  ;;  %v10993_v29 = vunpack.c.l.bf16 %v8551_v51  ;;  %v842_v23 = vld [vmem:[%s8383_s10 + $0x3c] sm:$0xe] }
  0xd4   : > { %7001 = vmatmul.msk.f32.gmra.mxu3 %vm475_vm1, %v1222_v0  ;;  %v1660_v0 = vrot.slane %v1555_v43, 1  ;;  %v858_v51 = vunpack.c.l.bf16 %v842_v23  ;;  %v2005_v43 = vrot.slane %v1953_v42, 2  ;;  %v7113_v42 = vld [vmem:[%s8383_s10 + $0x54] sm:$0xe] }
  0xd5   : > { %10992 = vst [vmem:[#allocation11_spill] sm:$0xff] %v8863_v50  ;;  %7133 = vmatmul.msk.f32.gmra.mxu1 %vm475_vm1, %v2002_v62  ;;  %v8869_v33 = vpop.f32.mrf.mxu0  ;;  %v909_v58 = vrot.slane %v10993_v29, 2  ;;  %v2004_v62 = vsel %vm885_vm3, %v2001_v56, %v2003_v55  ;;  %v8891_v56 = vrot.slane %v8617_v61, 2 }
  0xd6   : > { %v911_v35 = vrot.slane %v858_v51, 2 }
  0xd7   : > { %6935 = vmatmul.msk.f32.gmra.mxu2 %vm475_vm1, %v908_v47  ;;  %v813_v44 = vpop.f32.mrf.mxu3  ;;  %v910_v47 = vsel %vm885_vm3, %v8816_v32, %v909_v58  ;;  %v912_v32 = vrot.slane %v8581_v11, 2 }
  0xd8   : > { %7083 = vmatmul.msk.f32.gmra.mxu0 %vm475_vm1, %v1659_v24  ;;  %v1661_v24 = vsel %vm391_vm2, %v1658_v15, %v1660_v0  ;;  %v2007_v15 = vsel %vm885_vm3, %v2005_v43, %v8891_v56 }
  0xd9   : > { %v913_v0 = vsel %vm885_vm3, %v911_v35, %v912_v32 }
  0xda   : > { %v8877_v36 = vpop.f32.mrf.mxu1  ;;  %v633_v41 = vpop.f32.mrf.mxu2 }
  0xdb   : > { %v8881_v50 = vadd.f32 %v813_v44, %v633_v41  ;;  %v7042_v44 = vld [vmem:[%s8383_s10 + $0x50] sm:$0x1] }
  0xdc   : > { %7002 = vmatmul.msk.f32.gmra.mxu3 %vm475_vm1, %v1223_v57  ;;  %v1558_v23 = vunpack.c.l.bf16 %v7042_v44  ;;  %v1954_v44 = vunpack.c.l.bf16 %v7113_v42 }
  0xdd   : > { %10994 = vst [vmem:[#allocation12_spill] sm:$0xff] %v8881_v50  ;;  %7134 = vmatmul.msk.f32.gmra.mxu1 %vm475_vm1, %v2004_v62  ;;  %v8887_v4 = vpop.f32.mrf.mxu0 }
  0xde   : > { %v2008_v62 = vrot.slane %v1558_v23, 2 }
  0xdf   : > { %6936 = vmatmul.msk.f32.gmra.mxu2 %vm475_vm1, %v910_v47  ;;  %v816_v55 = vpop.f32.mrf.mxu3  ;;  %v10996_v47 = vunpack.c.l.bf16 %v8591_v26 }
  0xe0   : > { %7084 = vmatmul.msk.f32.gmra.mxu0 %vm475_vm1, %v1661_v24  ;;  %v7043_v24 = vld [vmem:[%s8383_s10 + $0x54] sm:$0xff]   ;;  %v2009_v35 = vsel %vm885_vm3, %v8891_v56, %v2008_v62 }
  0xe1   : > { %v914_v51 = vrot.slane %v10996_v47, 2  ;;  %v1559_v42 = vunpack.c.l.bf16 %v7043_v24 }
  0xe2   : > { %v8897_v29 = vpop.f32.mrf.mxu1  ;;  %v636_v58 = vpop.f32.mrf.mxu2 }
  0xe3   : > { %v8901_v57 = vadd.f32 %v816_v55, %v636_v58  ;;  %v1665_v55 = vrot.slane %v1558_v23, 1  ;;  %v915_v26 = vsel %vm885_vm3, %v912_v32, %v914_v51  ;;  %v6971_v23 = vld [vmem:[%s8383_s10 + $0x54] sm:$0xff]  }
  0xe4   : > { %7003 = vmatmul.msk.f32.gmra.mxu3 %vm475_vm1, %v8615_v59  ;;  %v843_v59 = vld [vmem:[%s8383_s10 + $0x48] sm:$0xe]  ;;  %v1226_v32 = vunpack.c.l.bf16 %v6971_v23 }
  0xe5   : > { %10995 = vst [vmem:[#allocation13_spill] sm:$0xff] %v8901_v57  ;;  %7135 = vmatmul.msk.f32.gmra.mxu1 %vm475_vm1, %v2007_v15  ;;  %v8907_v11 = vpop.f32.mrf.mxu0  ;;  %v1666_v62 = vsel %vm391_vm2, %v8627_v8, %v1665_v55  ;;  %v2010_v57 = vrot.slane %v1954_v44, 2 }
  0xe7   : > { %6937 = vmatmul.msk.f32.gmra.mxu2 %vm475_vm1, %v913_v0  ;;  %v819_v41 = vpop.f32.mrf.mxu3  ;;  %v1560_v0 = vunpack.c.h.bf16 %v7043_v24 }
  0xe8   : > { %7085 = vmatmul.msk.f32.gmra.mxu0 %vm475_vm1, %v8639_v21  ;;  %v859_v21 = vunpack.c.l.bf16 %v843_v59  ;;  %v1667_v59 = vrot.slane %v1559_v42, 1  ;;  %v1227_v42 = vunpack.c.h.bf16 %v6971_v23 }
  0xea   : > { %v8916_v43 = vpop.f32.mrf.mxu1  ;;  %v639_v15 = vpop.f32.mrf.mxu2 }
  0xeb   : > { %v8921_v58 = vadd.f32 %v819_v41, %v639_v15  ;;  %v2011_v41 = vrot.slane %v1560_v0, 2 }
  0xec   : > { %7004 = vmatmul.msk.f32.gmra.mxu3 %vm475_vm1, %v8617_v61  ;;  %v7045_v61 = vld [vmem:[%s8383_s10 + $0x5c] sm:$0x1] }
  0xed   : > { %10997 = vst [vmem:[#allocation14_spill] sm:$0xff] %v8921_v58  ;;  %7136 = vmatmul.msk.f32.gmra.mxu1 %vm475_vm1, %v2009_v35  ;;  %v8927_v47 = vpop.f32.mrf.mxu0  ;;  %v916_v58 = vrot.slane %v859_v21, 2  ;;  %v1668_v35 = vrot.slane %v1560_v0, 1  ;;  %v2012_v50 = vsel %vm885_vm3, %v2010_v57, %v2011_v41  ;;  %v1561_v24 = vunpack.c.l.bf16 %v7045_v61  ;;  %v7114_v21 = vld [vmem:[%s8383_s10 + $0x60] sm:$0xe] }
  0xee   : > { %v1955_v61 = vunpack.c.l.bf16 %v7114_v21 }
  0xef   : > { %6938 = vmatmul.msk.f32.gmra.mxu2 %vm475_vm1, %v915_v26  ;;  %v822_v15 = vpop.f32.mrf.mxu3  ;;  %v918_v55 = vsel %vm885_vm3, %v916_v58, %v8891_v56  ;;  %v1669_v26 = vsel %vm391_vm2, %v1667_v59, %v1668_v35  ;;  %v2013_v0 = vrot.slane %v1561_v24, 2  ;;  %v8217_v59 = vld [vmem:[%s8383_s10 + $0x60] sm:$0xff]  }
  0xf0   : > { %7086 = vmatmul.msk.f32.gmra.mxu0 %vm475_vm1, %v1666_v62  ;;  %v7901_v21 = vunpack.c.l.bf16 %v8217_v59 }
  0xf2   : > { %v8935_v51 = vpop.f32.mrf.mxu1  ;;  %v642_v39 = vpop.f32.mrf.mxu2 }
  0xf3   : > { %v8938_v8 = vadd.f32 %v822_v15, %v642_v39  ;;  %v10999_v39 = vunpack.c.l.bf16 %v8630_v9  ;;  %v844_v15 = vld [vmem:[%s8383_s10 + $0x54] sm:$0xe] }
  0xf4   : > { %7005 = vmatmul.msk.f32.gmra.mxu3 %vm475_vm1, %v1226_v32  ;;  %v2014_v32 = vsel %vm885_vm3, %v2011_v41, %v2013_v0  ;;  %v860_v23 = vunpack.c.l.bf16 %v844_v15  ;;  %v2015_v41 = vrot.slane %v1955_v61, 2 }
  0xf5   : > { %10998 = vst [vmem:[#allocation15_spill] sm:$0xff] %v8938_v8  ;;  %7137 = vmatmul.msk.f32.gmra.mxu1 %vm475_vm1, %v2012_v50  ;;  %v8944_v44 = vpop.f32.mrf.mxu0  ;;  %v919_v62 = vrot.slane %v10999_v39, 2  ;;  %v1670_v50 = vrot.slane %v1561_v24, 1  ;;  %v922_v39 = vrot.slane %v8668_v31, 2 }
  0xf7   : > { %6939 = vmatmul.msk.f32.gmra.mxu2 %vm475_vm1, %v918_v55  ;;  %v825_v57 = vpop.f32.mrf.mxu3  ;;  %v7902_v55 = vunpack.c.h.bf16 %v8217_v59  ;;  %v920_v9 = vsel %vm885_vm3, %v8891_v56, %v919_v62  ;;  %v1671_v24 = vsel %vm391_vm2, %v1668_v35, %v1670_v50  ;;  %v7048_v56 = vld [vmem:[%s8383_s10 + $0x68] sm:$0x1] }
  0xf8   : > { %7087 = vmatmul.msk.f32.gmra.mxu0 %vm475_vm1, %v1669_v26  ;;  %v1564_v61 = vunpack.c.l.bf16 %v7048_v56 }
  0xf9   : > { %v2016_v0 = vrot.slane %v7902_v55, 2  ;;  %v1673_v15 = vrot.slane %v7902_v55, 1 }
  0xfa   : > { %v8952_v58 = vpop.f32.mrf.mxu1  ;;  %v645_v8 = vpop.f32.mrf.mxu2 }
  0xfb   : > { %11000 = vst [vmem:[#allocation16_spill] sm:$0xff] %v8952_v58  ;;  %v8957_v6 = vadd.f32 %v825_v57, %v645_v8  ;;  %v921_v57 = vrot.slane %v860_v23, 2  ;;  %v2017_v35 = vsel %vm885_vm3, %v2015_v41, %v2016_v0  ;;  %v2018_v23 = vrot.slane %v1564_v61, 2 }
  0xfc   : > { %7006 = vmatmul.msk.f32.gmra.mxu3 %vm475_vm1, %v1227_v42  ;;  %v1672_v42 = vrot.slane %v7901_v21, 1 }
  0xfd   : > { %11001 = vst [vmem:[#allocation17_spill] sm:$0xff] %v8957_v6  ;;  %7138 = vmatmul.msk.f32.gmra.mxu1 %vm475_vm1, %v2014_v32  ;;  %v8963_v26 = vpop.f32.mrf.mxu0  ;;  %v923_v59 = vsel %vm885_vm3, %v921_v57, %v922_v39  ;;  %v11006_v6 = vunpack.c.l.bf16 %v8681_v46  ;;  %v7049_v57 = vld [vmem:[%s8383_s10 + $0x6c] sm:$0xff]  }
  0xfe   : > { %11002 = vst [vmem:[#allocation18_spill] sm:$0xff] %v8963_v26 }
  0xff   : > { %6940 = vmatmul.msk.f32.gmra.mxu2 %vm475_vm1, %v920_v9  ;;  %v828_v8 = vpop.f32.mrf.mxu3  ;;  %v1674_v9 = vsel %vm391_vm2, %v1672_v42, %v1673_v15 }
 0x100   : > { %7088 = vmatmul.msk.f32.gmra.mxu0 %vm475_vm1, %v1671_v24  ;;  %v7115_v24 = vld [vmem:[%s8383_s10 + $0x6c] sm:$0xe] }
 0x102   : > { %v8970_v62 = vpop.f32.mrf.mxu1  ;;  %v648_v50 = vpop.f32.mrf.mxu2 }
 0x103   : > { %11003 = vst [vmem:[#allocation19_spill] sm:$0xff] %v8970_v62  ;;  %v8973_v32 = vadd.f32 %v828_v8, %v648_v50  ;;  %v924_v8 = vrot.slane %v11006_v6, 2  ;;  %v2019_v50 = vsel %vm885_vm3, %v2016_v0, %v2018_v23 }
 0x104   : > { %7007 = vmatmul.msk.f32.gmra.mxu3 %vm475_vm1, %v7901_v21  ;;  %v845_v21 = vld [vmem:[%s8383_s10 + $0x60] sm:$0xe] }
 0x105   : > { %11004 = vst [vmem:[#allocation20_spill] sm:$0xff] %v8973_v32  ;;  %7139 = vmatmul.msk.f32.gmra.mxu1 %vm475_vm1, %v2017_v35  ;;  %v8978_v31 = vpop.f32.mrf.mxu0  ;;  %v1675_v35 = vrot.slane %v1564_v61, 1  ;;  %v1956_v32 = vunpack.c.l.bf16 %v7115_v24  ;;  %v861_v6 = vunpack.c.l.bf16 %v845_v21 }
 0x106   : > { %11005 = vst [vmem:[#allocation21_spill] sm:$0xff] %v8978_v31  ;;  %v1566_v31 = vunpack.c.h.bf16 %v7049_v57 }
 0x107   : > { %6941 = vmatmul.msk.f32.gmra.mxu2 %vm475_vm1, %v923_v59  ;;  %v831_v41 = vpop.f32.mrf.mxu3  ;;  %v925_v59 = vsel %vm885_vm3, %v922_v39, %v924_v8  ;;  %v1676_v61 = vsel %vm391_vm2, %v1673_v15, %v1675_v35  ;;  %v2020_v0 = vrot.slane %v1956_v32, 2  ;;  %v927_v39 = vrot.slane %v8392_v16, 2 }
 0x108   : > { %7089 = vmatmul.msk.f32.gmra.mxu0 %vm475_vm1, %v1674_v9  ;;  %v6975_v9 = vld [vmem:[%s8383_s10 + $0x6c] sm:$0xff]   ;;  %v2021_v23 = vrot.slane %v1566_v31, 2 }
 0x109   : > { %v1230_v8 = vunpack.c.l.bf16 %v6975_v9 }
 0x10a   : > { %v8987_v56 = vpop.f32.mrf.mxu1  ;;  %v651_v42 = vpop.f32.mrf.mxu2 }
 0x10b   : > { %11007 = vst [vmem:[#allocation22_spill] sm:$0xff] %v8987_v56  ;;  %v8991_v62 = vadd.f32 %v831_v41, %v651_v42  ;;  %v1565_v56 = vunpack.c.l.bf16 %v7049_v57  ;;  %v926_v41 = vrot.slane %v861_v6, 2  ;;  %v1678_v42 = vrot.slane %v1566_v31, 1 }
 0x10c   : > { %7008 = vmatmul.msk.f32.gmra.mxu3 %vm475_vm1, %v7902_v55  ;;  %v7051_v55 = vld [vmem:[%s8383_s10 + $0x74] sm:$0x1] }
 0x10d   : > { %11008 = vst [vmem:[#allocation23_spill] sm:$0xff] %v8991_v62  ;;  %7140 = vmatmul.msk.f32.gmra.mxu1 %vm475_vm1, %v2019_v50  ;;  %v8996_v46 = vpop.f32.mrf.mxu0  ;;  %v1677_v50 = vrot.slane %v1565_v56, 1  ;;  %v2022_v62 = vsel %vm885_vm3, %v2020_v0, %v2021_v23  ;;  %v1567_v57 = vunpack.c.l.bf16 %v7051_v55  ;;  %v928_v35 = vsel %vm885_vm3, %v926_v41, %v927_v39  ;;  %v7116_v56 = vld [vmem:[%s8383_s10 + $0x78] sm:$0xe] }
 0x10e   : > { %11009 = vst [vmem:[#allocation24_spill] sm:$0xff] %v8996_v46  ;;  %v742_v41 = vadd.f32 %v8714_v27, %v8720_v45  ;;  %v8218_v46 = vld [vmem:[%s8383_s10 + $0x78] sm:$0xff]  }
 0x10f   : > { %6942 = vmatmul.msk.f32.gmra.mxu2 %vm475_vm1, %v925_v59  ;;  %v834_v24 = vpop.f32.mrf.mxu3  ;;  %v1679_v59 = vsel %vm391_vm2, %v1677_v50, %v1678_v42  ;;  %v2023_v6 = vrot.slane %v1567_v57, 2  ;;  %v1680_v55 = vrot.slane %v1567_v57, 1  ;;  %v1957_v50 = vunpack.c.l.bf16 %v7116_v56 }
 0x110   : > { %7090 = vmatmul.msk.f32.gmra.mxu0 %vm475_vm1, %v1676_v61  ;;  %v11011_v61 = vunpack.c.l.bf16 %v8389_v13 }
 0x111   : > { %v1681_v45 = vsel %vm391_vm2, %v1678_v42, %v1680_v55  ;;  %v2025_v57 = vrot.slane %v1957_v50, 2  ;;  %v7117_v55 = vld [vmem:[%s8383_s10 + $0x84] sm:$0xe] }
 0x112   : > { %v2147_v21 = vpop.f32.mrf.mxu1  ;;  %v654_v15 = vpop.f32.mrf.mxu2  ;;  %v929_v0 = vrot.slane %v11011_v61, 2  ;;  %v932_v61 = vrot.slane %v8418_v34, 2 }
 0x113   : > { %v9005_v32 = vadd.f32 %v834_v24, %v654_v15  ;;  %v1231_v24 = vunpack.c.h.bf16 %v6975_v9  ;;  %v2024_v15 = vsel %vm885_vm3, %v2021_v23, %v2023_v6 }
 0x114   : > { %7009 = vmatmul.msk.f32.gmra.mxu3 %vm475_vm1, %v1230_v8  ;;  %v846_v8 = vld [vmem:[%s8383_s10 + $0x6c] sm:$0xe]  ;;  %v930_v26 = vsel %vm885_vm3, %v927_v39, %v929_v0  ;;  %v745_v39 = vadd.f32 %v8728_v30, %v8737_v25  ;;  %v7054_v0 = vld [vmem:[%s8383_s10 + $0x80] sm:$0x1] }
 0x115   : > { %11010 = vst [vmem:[#allocation25_spill] sm:$0xff] %v9005_v32  ;;  %7141 = vmatmul.msk.f32.gmra.mxu1 %vm475_vm1, %v2022_v62  ;;  %v1804_v16 = vpop.f32.mrf.mxu0  ;;  %v862_v13 = vunpack.c.l.bf16 %v846_v8 }
 0x117   : > { %6943 = vmatmul.msk.f32.gmra.mxu2 %vm475_vm1, %v928_v35  ;;  %v1365_v31 = vpop.f32.mrf.mxu3  ;;  %v7906_v35 = vunpack.c.h.bf16 %v8218_v46  ;;  %v931_v56 = vrot.slane %v862_v13, 2  ;;  %v11012_v13 = vunpack.c.l.bf16 %v8429_v40 }
 0x118   : > { %7091 = vmatmul.msk.f32.gmra.mxu0 %vm475_vm1, %v1679_v59 }
 0x119   : > { %v2026_v59 = vrot.slane %v7906_v35, 2  ;;  %v933_v30 = vsel %vm885_vm3, %v931_v56, %v932_v61  ;;  %v1958_v56 = vunpack.c.l.bf16 %v7117_v55  ;;  %v7057_v55 = vld [vmem:[%s8383_s10 + $0x8c] sm:$0x1] }
 0x11a   : > { %v2150_v62 = vpop.f32.mrf.mxu1  ;;  %v1053_v32 = vpop.f32.mrf.mxu2 }
 0x11b   : > { %v1149_v58 = vadd.f32 %v1053_v32, %v742_v41  ;;  %v7905_v32 = vunpack.c.l.bf16 %v8218_v46  ;;  %v1570_v46 = vunpack.c.l.bf16 %v7054_v0 }
 0x11c   : > { %7010 = vmatmul.msk.f32.gmra.mxu3 %vm475_vm1, %v1231_v24  ;;  %v1683_v24 = vrot.slane %v7906_v35, 1 }
 0x11d   : > { %7142 = vmatmul.msk.f32.gmra.mxu1 %vm475_vm1, %v2024_v15  ;;  %v1461_v9 = vadd.f32 %v1365_v31, %v1149_v58  ;;  %v1807_v27 = vpop.f32.mrf.mxu0  ;;  %v1682_v31 = vrot.slane %v7905_v32, 1  ;;  %v2028_v8 = vrot.slane %v1570_v46, 2 }
 0x11f   : > { %v1900_v23 = vadd.f32 %v1804_v16, %v1461_v9  ;;  %6944 = vmatmul.msk.f32.gmra.mxu2 %vm475_vm1, %v930_v26  ;;  %v1368_v6 = vpop.f32.mrf.mxu3  ;;  %v2027_v16 = vsel %vm885_vm3, %v2025_v57, %v2026_v59  ;;  %v934_v9 = vrot.slane %v11012_v13, 2  ;;  %v7055_v57 = vld [vmem:[%s8383_s10 + $0x84] sm:$0xff]  }
 0x120   : > { %7092 = vmatmul.msk.f32.gmra.mxu0 %vm475_vm1, %v1681_v45  ;;  %v1685_v45 = vrot.slane %v1570_v46, 1  ;;  %v1571_v46 = vunpack.c.l.bf16 %v7055_v57 }
 0x121   : > { %v9031_v58 = vadd.f32 %v2147_v21, %v1900_v23  ;;  %v1684_v21 = vsel %vm391_vm2, %v1682_v31, %v1683_v24  ;;  %v748_v23 = vadd.f32 %v8747_v12, %v8757_v37  ;;  %v935_v40 = vsel %vm885_vm3, %v932_v61, %v934_v9 }
 0x122   : > { %v2153_v42 = vpop.f32.mrf.mxu1  ;;  %v1056_v26 = vpop.f32.mrf.mxu2  ;;  %v751_v61 = vadd.f32 %v8766_v53, %v8777_v2  ;;  %v1687_v13 = vrot.slane %v1571_v46, 1 }
 0x123   : > { %v1150_v41 = vadd.f32 %v1056_v26, %v745_v39 }
 0x124   : > { %7011 = vmatmul.msk.f32.gmra.mxu3 %vm475_vm1, %v7905_v32  ;;  %v847_v32 = vld [vmem:[%s8383_s10 + $0x78] sm:$0xe] }
 0x125   : > { %7143 = vmatmul.msk.f32.gmra.mxu1 %vm475_vm1, %v2027_v16  ;;  %v1462_v34 = vadd.f32 %v1368_v6, %v1150_v41  ;;  %v1810_v25 = vpop.f32.mrf.mxu0  ;;  %v1572_v16 = vunpack.c.h.bf16 %v7055_v57  ;;  %v863_v26 = vunpack.c.l.bf16 %v847_v32  ;;  %v1686_v41 = vsel %vm391_vm2, %v1683_v24, %v1685_v45 }
 0x127   : > { %v1901_v15 = vadd.f32 %v1807_v27, %v1462_v34  ;;  %6945 = vmatmul.msk.f32.gmra.mxu2 %vm475_vm1, %v933_v30  ;;  %v1371_v50 = vpop.f32.mrf.mxu3  ;;  %v2029_v27 = vsel %vm885_vm3, %v2026_v59, %v2028_v8  ;;  %v2030_v30 = vrot.slane %v1958_v56, 2  ;;  %v2031_v59 = vrot.slane %v1572_v16, 2 }
 0x128   : > { %7093 = vmatmul.msk.f32.gmra.mxu0 %vm475_vm1, %v1684_v21  ;;  %v937_v8 = vrot.slane %v8452_v54, 2  ;;  %v1688_v9 = vrot.slane %v1572_v16, 1  ;;  %v11013_v16 = vunpack.c.l.bf16 %v8465_v60 }
 0x129   : > { %v9046_v6 = vadd.f32 %v2150_v62, %v1901_v15  ;;  %v6979_v62 = vld [vmem:[%s8383_s10 + $0x84] sm:$0xff]  }
 0x12a   : > { %v2156_v39 = vpop.f32.mrf.mxu1  ;;  %v1059_v0 = vpop.f32.mrf.mxu2  ;;  %v1234_v24 = vunpack.c.l.bf16 %v6979_v62 }
 0x12b   : > { %v1151_v31 = vadd.f32 %v1059_v0, %v748_v23  ;;  %v1573_v23 = vunpack.c.l.bf16 %v7057_v55 }
 0x12c   : > { %7012 = vmatmul.msk.f32.gmra.mxu3 %vm475_vm1, %v7906_v35  ;;  %v936_v35 = vrot.slane %v863_v26, 2  ;;  %v1235_v26 = vunpack.c.h.bf16 %v6979_v62 }
 0x12d   : > { %7144 = vmatmul.msk.f32.gmra.mxu1 %vm475_vm1, %v2029_v27  ;;  %v1463_v12 = vadd.f32 %v1371_v50, %v1151_v31  ;;  %v1813_v37 = vpop.f32.mrf.mxu0  ;;  %v2033_v32 = vrot.slane %v1573_v23, 2  ;;  %v7118_v27 = vld [vmem:[%s8383_s10 + $0x90] sm:$0xe]  ;;  %v754_v31 = vadd.f32 %v8785_v28, %v8794_v52 }
 0x12e   : > { %v938_v53 = vsel %vm885_vm3, %v936_v35, %v937_v8 }
 0x12f   : > { %v1902_v34 = vadd.f32 %v1810_v25, %v1463_v12  ;;  %6946 = vmatmul.msk.f32.gmra.mxu2 %vm475_vm1, %v935_v40  ;;  %v1374_v21 = vpop.f32.mrf.mxu3  ;;  %v2032_v25 = vsel %vm885_vm3, %v2030_v30, %v2031_v59  ;;  %v939_v40 = vrot.slane %v11013_v16, 2  ;;  %v848_v12 = vld [vmem:[%s8383_s10 + $0x84] sm:$0xe]  ;;  %v1690_v30 = vrot.slane %v1573_v23, 1  ;;  %v7119_v16 = vld [vmem:[%s8383_s10 + $0x9c] sm:$0xe] }
 0x130   : > { %7094 = vmatmul.msk.f32.gmra.mxu0 %vm475_vm1, %v1686_v41  ;;  %v864_v60 = vunpack.c.l.bf16 %v848_v12  ;;  %v942_v23 = vrot.slane %v8496_v10, 2  ;;  %v11014_v12 = vunpack.c.l.bf16 %v8508_v20 }
 0x131   : > { %v9061_v15 = vadd.f32 %v2153_v42, %v1902_v34  ;;  %v1689_v42 = vsel %vm391_vm2, %v1687_v13, %v1688_v9  ;;  %v2034_v34 = vsel %vm885_vm3, %v2031_v59, %v2033_v32  ;;  %v940_v28 = vsel %vm885_vm3, %v937_v8, %v939_v40 }
 0x132   : > { %v2159_v50 = vpop.f32.mrf.mxu1  ;;  %v1062_v45 = vpop.f32.mrf.mxu2  ;;  %v1691_v62 = vsel %vm391_vm2, %v1688_v9, %v1690_v30  ;;  %v757_v8 = vadd.f32 %v8802_v3, %v8812_v1  ;;  %v944_v30 = vrot.slane %v11014_v12, 2 }
 0x133   : > { %v1152_v57 = vadd.f32 %v1062_v45, %v751_v61  ;;  %v8219_v61 = vld [vmem:[%s8383_s10 + $0x90] sm:$0xff]  }
 0x134   : > { %7013 = vmatmul.msk.f32.gmra.mxu3 %vm475_vm1, %v1234_v24  ;;  %v7910_v24 = vunpack.c.h.bf16 %v8219_v61  ;;  %v7909_v45 = vunpack.c.l.bf16 %v8219_v61  ;;  %v945_v20 = vsel %vm885_vm3, %v942_v23, %v944_v30  ;;  %v766_v30 = vadd.f32 %v8860_v63, %v8869_v33 }
 0x135   : > { %7145 = vmatmul.msk.f32.gmra.mxu1 %vm475_vm1, %v2032_v25  ;;  %v1464_v54 = vadd.f32 %v1374_v21, %v1152_v57  ;;  %v1816_v2 = vpop.f32.mrf.mxu0  ;;  %v941_v57 = vrot.slane %v864_v60, 2 }
 0x136   : > { %v2036_v13 = vrot.slane %v7910_v24, 2  ;;  %v1693_v32 = vrot.slane %v7910_v24, 1 }
 0x137   : > { %v1903_v56 = vadd.f32 %v1813_v37, %v1464_v54  ;;  %6947 = vmatmul.msk.f32.gmra.mxu2 %vm475_vm1, %v938_v53  ;;  %v1377_v0 = vpop.f32.mrf.mxu3  ;;  %v1959_v37 = vunpack.c.l.bf16 %v7118_v27  ;;  %v7060_v53 = vld [vmem:[%s8383_s10 + $0x98] sm:$0x1]  ;;  %v943_v3 = vsel %vm885_vm3, %v941_v57, %v942_v23  ;;  %v763_v23 = vadd.f32 %v8841_v18, %v8852_v19 }
 0x138   : > { %7095 = vmatmul.msk.f32.gmra.mxu0 %vm475_vm1, %v1689_v42  ;;  %v1692_v42 = vrot.slane %v7909_v45, 1 }
 0x139   : > { %v9075_v41 = vadd.f32 %v2156_v39, %v1903_v56  ;;  %v2035_v55 = vrot.slane %v1959_v37, 2  ;;  %v7061_v37 = vld [vmem:[%s8383_s10 + $0x9c] sm:$0xff]  }
 0x13a   : > { %v2162_v46 = vpop.f32.mrf.mxu1  ;;  %v1065_v21 = vpop.f32.mrf.mxu2 }
 0x13b   : > { %v1153_v35 = vadd.f32 %v1065_v21, %v754_v31  ;;  %v760_v21 = vadd.f32 %v8822_v22, %v8832_v14 }
 0x13c   : > { %7014 = vmatmul.msk.f32.gmra.mxu3 %vm475_vm1, %v1235_v26 }
 0x13d   : > { %7146 = vmatmul.msk.f32.gmra.mxu1 %vm475_vm1, %v2034_v34  ;;  %v1465_v52 = vadd.f32 %v1377_v0, %v1153_v35  ;;  %v1819_v39 = vpop.f32.mrf.mxu0  ;;  %v1576_v0 = vunpack.c.l.bf16 %v7060_v53  ;;  %v849_v35 = vld [vmem:[%s8383_s10 + $0x90] sm:$0xe] }
 0x13f   : > { %v1904_v59 = vadd.f32 %v1816_v2, %v1465_v52  ;;  %6948 = vmatmul.msk.f32.gmra.mxu2 %vm475_vm1, %v940_v28  ;;  %v1380_v25 = vpop.f32.mrf.mxu3  ;;  %v2037_v2 = vsel %vm885_vm3, %v2035_v55, %v2036_v13  ;;  %v2038_v31 = vrot.slane %v1576_v0, 2  ;;  %v1695_v34 = vrot.slane %v1576_v0, 1 }
 0x140   : > { %7096 = vmatmul.msk.f32.gmra.mxu0 %vm475_vm1, %v1691_v62  ;;  %v1960_v52 = vunpack.c.l.bf16 %v7119_v16  ;;  %v1578_v55 = vunpack.c.h.bf16 %v7061_v37 }
 0x141   : > { %v9090_v54 = vadd.f32 %v2159_v50, %v1904_v59  ;;  %v1694_v50 = vsel %vm391_vm2, %v1692_v42, %v1693_v32  ;;  %v2039_v60 = vsel %vm885_vm3, %v2036_v13, %v2038_v31  ;;  %v865_v59 = vunpack.c.l.bf16 %v849_v35 }
 0x142   : > { %v2165_v9 = vpop.f32.mrf.mxu1  ;;  %v1068_v27 = vpop.f32.mrf.mxu2  ;;  %v2041_v13 = vrot.slane %v1578_v55, 2  ;;  %v947_v42 = vrot.slane %v8531_v38, 2 }
 0x143   : > { %v1154_v56 = vadd.f32 %v1068_v27, %v757_v8  ;;  %v2040_v8 = vrot.slane %v1960_v52, 2 }
 0x144   : > { %7015 = vmatmul.msk.f32.gmra.mxu3 %vm475_vm1, %v7909_v45  ;;  %v1577_v45 = vunpack.c.l.bf16 %v7061_v37 }
 0x145   : > { %7147 = vmatmul.msk.f32.gmra.mxu1 %vm475_vm1, %v2037_v2  ;;  %v1466_v10 = vadd.f32 %v1380_v25, %v1154_v56  ;;  %v1822_v1 = vpop.f32.mrf.mxu0  ;;  %v1696_v25 = vsel %vm391_vm2, %v1693_v32, %v1695_v34  ;;  %v7063_v2 = vld [vmem:[%s8383_s10 + $0xa4] sm:$0x1]  ;;  %v11015_v34 = vunpack.c.l.bf16 %v8544_v48 }
 0x146   : > { %v1697_v0 = vrot.slane %v1577_v45, 1  ;;  %v1579_v31 = vunpack.c.l.bf16 %v7063_v2 }
 0x147   : > { %v1905_v40 = vadd.f32 %v1819_v39, %v1466_v10  ;;  %6949 = vmatmul.msk.f32.gmra.mxu2 %vm475_vm1, %v943_v3  ;;  %v1383_v26 = vpop.f32.mrf.mxu3  ;;  %v1698_v3 = vrot.slane %v1578_v55, 1  ;;  %v2042_v10 = vsel %vm885_vm3, %v2040_v8, %v2041_v13  ;;  %v949_v37 = vrot.slane %v11015_v34, 2 }
 0x148   : > { %7097 = vmatmul.msk.f32.gmra.mxu0 %vm475_vm1, %v1694_v50  ;;  %v2043_v16 = vrot.slane %v1579_v31, 2 }
 0x149   : > { %v9105_v61 = vadd.f32 %v2162_v46, %v1905_v40  ;;  %v6983_v46 = vld [vmem:[%s8383_s10 + $0x9c] sm:$0xff]   ;;  %v7120_v40 = vld [vmem:[%s8383_s10 + $0xa8] sm:$0xe]  ;;  %v950_v63 = vsel %vm885_vm3, %v947_v42, %v949_v37 }
 0x14a   : > { %v2168_v28 = vpop.f32.mrf.mxu1  ;;  %v1071_v39 = vpop.f32.mrf.mxu2  ;;  %v1238_v32 = vunpack.c.l.bf16 %v6983_v46  ;;  %v1961_v55 = vunpack.c.l.bf16 %v7120_v40  ;;  %v851_v37 = vld [vmem:[%s8383_s10 + $0xa8] sm:$0xe] }
 0x14b   : > { %v1155_v62 = vadd.f32 %v1071_v39, %v760_v21  ;;  %v1239_v21 = vunpack.c.h.bf16 %v6983_v46  ;;  %v1700_v39 = vrot.slane %v1579_v31, 1 }
 0x14c   : > { %7016 = vmatmul.msk.f32.gmra.mxu3 %vm475_vm1, %v7910_v24  ;;  %v946_v24 = vrot.slane %v865_v59, 2  ;;  %v8220_v59 = vld [vmem:[%s8383_s10 + $0xa8] sm:$0xff]   ;;  %v2045_v46 = vrot.slane %v1961_v55, 2 }
 0x14d   : > { %7148 = vmatmul.msk.f32.gmra.mxu1 %vm475_vm1, %v2039_v60  ;;  %v1467_v22 = vadd.f32 %v1383_v26, %v1155_v62  ;;  %v1825_v14 = vpop.f32.mrf.mxu0  ;;  %v850_v60 = vld [vmem:[%s8383_s10 + $0x9c] sm:$0xe]  ;;  %v2044_v62 = vsel %vm885_vm3, %v2041_v13, %v2043_v16  ;;  %v11016_v16 = vunpack.c.l.bf16 %v8587_v17 }
 0x14e   : > { %v948_v18 = vsel %vm885_vm3, %v946_v24, %v947_v42  ;;  %v866_v48 = vunpack.c.l.bf16 %v850_v60  ;;  %v952_v24 = vrot.slane %v8575_v7, 2  ;;  %v7066_v42 = vld [vmem:[%s8383_s10 + $0xb0] sm:$0x1] }
 0x14f   : > { %v1906_v57 = vadd.f32 %v1822_v1, %v1467_v22  ;;  %6950 = vmatmul.msk.f32.gmra.mxu2 %vm475_vm1, %v945_v20  ;;  %v1386_v53 = vpop.f32.mrf.mxu3  ;;  %v7914_v22 = vunpack.c.h.bf16 %v8220_v59  ;;  %v1582_v31 = vunpack.c.l.bf16 %v7066_v42  ;;  %v954_v40 = vrot.slane %v11016_v16, 2  ;;  %v852_v16 = vld [vmem:[%s8383_s10 + $0xb4] sm:$0xe] }
 0x150   : > { %7098 = vmatmul.msk.f32.gmra.mxu0 %vm475_vm1, %v1696_v25 }
 0x151   : > { %v9120_v27 = vadd.f32 %v2165_v9, %v1906_v57  ;;  %v1699_v9 = vsel %vm391_vm2, %v1697_v0, %v1698_v3  ;;  %v2046_v45 = vrot.slane %v7914_v22, 2  ;;  %v7913_v57 = vunpack.c.l.bf16 %v8220_v59 }
 0x152   : > { %v2171_v56 = vpop.f32.mrf.mxu1  ;;  %v1074_v1 = vpop.f32.mrf.mxu2  ;;  %v955_v17 = vsel %vm885_vm3, %v952_v24, %v954_v40  ;;  %v867_v59 = vunpack.c.l.bf16 %v851_v37  ;;  %v7422_v37 = vld [vmem:[%s10925_s3 + $0x4] sm:$0x3] }
 0x153   : > { %v1156_v50 = vadd.f32 %v1074_v1, %v763_v23  ;;  %v951_v23 = vrot.slane %v866_v48, 2  ;;  %v1702_v0 = vrot.slane %v7913_v57, 1 }
 0x154   : > { %7017 = vmatmul.msk.f32.gmra.mxu3 %vm475_vm1, %v1238_v32 }
 0x155   : > { %7149 = vmatmul.msk.f32.gmra.mxu1 %vm475_vm1, %v2042_v10  ;;  %v1468_v38 = vadd.f32 %v1386_v53, %v1156_v50  ;;  %v1828_v19 = vpop.f32.mrf.mxu0  ;;  %v769_v53 = vadd.f32 %v8877_v36, %v8887_v4  ;;  %v2047_v10 = vsel %vm885_vm3, %v2045_v46, %v2046_v45  ;;  %v953_v36 = vsel %vm885_vm3, %v951_v23, %v952_v24 }
 0x156   : > { %v775_v46 = vadd.f32 %v8916_v43, %v8927_v47 }
 0x157   : > { %v1907_v26 = vadd.f32 %v1825_v14, %v1468_v38  ;;  %6951 = vmatmul.msk.f32.gmra.mxu2 %vm475_vm1, %v948_v18  ;;  %v1389_v12 = vpop.f32.mrf.mxu3  ;;  %v1701_v14 = vsel %vm391_vm2, %v1698_v3, %v1700_v39  ;;  %v1703_v3 = vrot.slane %v7914_v22, 1  ;;  %v2048_v18 = vrot.slane %v1582_v31, 2  ;;  %v7121_v38 = vld [vmem:[%s8383_s10 + $0xb4] sm:$0xe] }
 0x158   : > { %7099 = vmatmul.msk.f32.gmra.mxu0 %vm475_vm1, %v1699_v9  ;;  %v1962_v39 = vunpack.c.l.bf16 %v7121_v38 }
 0x159   : > { %v9134_v35 = vadd.f32 %v2168_v28, %v1907_v26  ;;  %v1705_v26 = vrot.slane %v1582_v31, 1  ;;  %v2049_v60 = vsel %vm885_vm3, %v2046_v45, %v2048_v18  ;;  %v957_v45 = vrot.slane %v8610_v49, 2 }
 0x15a   : > { %v2174_v52 = vpop.f32.mrf.mxu1  ;;  %v1077_v20 = vpop.f32.mrf.mxu2  ;;  %v2050_v48 = vrot.slane %v1962_v39, 2 }
 0x15b   : > { %v1157_v25 = vadd.f32 %v1077_v20, %v766_v30  ;;  %v772_v30 = vadd.f32 %v8897_v29, %v8907_v11 }
 0x15c   : > { %7018 = vmatmul.msk.f32.gmra.mxu3 %vm475_vm1, %v1239_v21 }
 0x15d   : > { %7150 = vmatmul.msk.f32.gmra.mxu1 %vm475_vm1, %v2044_v62  ;;  %v1469_v33 = vadd.f32 %v1389_v12, %v1157_v25  ;;  %v1831_v28 = vpop.f32.mrf.mxu0  ;;  %v7067_v12 = vld [vmem:[%s8383_s10 + $0xb4] sm:$0xff]   ;;  %v1706_v25 = vsel %vm391_vm2, %v1703_v3, %v1705_v26 }
 0x15e   : > { %v1584_v20 = vunpack.c.h.bf16 %v7067_v12 }
 0x15f   : > { %v1908_v8 = vadd.f32 %v1828_v19, %v1469_v33  ;;  %6952 = vmatmul.msk.f32.gmra.mxu2 %vm475_vm1, %v950_v63  ;;  %v1392_v13 = vpop.f32.mrf.mxu3  ;;  %v1583_v63 = vunpack.c.l.bf16 %v7067_v12 }
 0x160   : > { %7100 = vmatmul.msk.f32.gmra.mxu0 %vm475_vm1, %v1701_v14  ;;  %v2051_v33 = vrot.slane %v1584_v20, 2  ;;  %v1708_v24 = vrot.slane %v1584_v20, 1 }
 0x161   : > { %v9149_v32 = vadd.f32 %v2171_v56, %v1908_v8  ;;  %v1704_v56 = vsel %vm391_vm2, %v1702_v0, %v1703_v3  ;;  %v1707_v23 = vrot.slane %v1583_v63, 1  ;;  %v11018_v63 = vld [vmem:[#allocation18_spill] sm:$0xff] }
 0x162   : > { %v2177_v2 = vpop.f32.mrf.mxu1  ;;  %v1080_v1 = vpop.f32.mrf.mxu2  ;;  %v2052_v42 = vsel %vm885_vm3, %v2050_v48, %v2051_v33  ;;  %v11019_v48 = vld [vmem:[#allocation16_spill] sm:$0xff] }
 0x163   : > { %v1158_v50 = vadd.f32 %v1080_v1, %v769_v53 }
 0x164   : > { %7019 = vmatmul.msk.f32.gmra.mxu3 %vm475_vm1, %v7913_v57 }
 0x165   : > { %7151 = vmatmul.msk.f32.gmra.mxu1 %vm475_vm1, %v2047_v10  ;;  %v1470_v7 = vadd.f32 %v1392_v13, %v1158_v50  ;;  %v1834_v4 = vpop.f32.mrf.mxu0  ;;  %v7069_v13 = vld [vmem:[%s8383_s10 + $0xbc] sm:$0x1]  ;;  %v7122_v50 = vld [vmem:[%s8383_s10 + $0xc0] sm:$0xe] }
 0x166   : > { %v1585_v10 = vunpack.c.l.bf16 %v7069_v13 }
 0x167   : > { %v1909_v19 = vadd.f32 %v1831_v28, %v1470_v7  ;;  %6953 = vmatmul.msk.f32.gmra.mxu2 %vm475_vm1, %v953_v36  ;;  %v1395_v9 = vpop.f32.mrf.mxu3  ;;  %v7388_v7 = vld [vmem:[%s10925_s3 + $0x2] sm:$0x3] }
 0x168   : > { %7101 = vmatmul.msk.f32.gmra.mxu0 %vm475_vm1, %v1704_v56  ;;  %v2053_v1 = vrot.slane %v1585_v10, 2  ;;  %v11017_v56 = vunpack.c.l.bf16 %v8623_v5  ;;  %v1710_v26 = vrot.slane %v1585_v10, 1  ;;  %v4248_v5 = vunpack.c.l.bf16 %v7422_v37 }
 0x169   : > { %v9164_v34 = vadd.f32 %v2174_v52, %v1909_v19  ;;  %v6987_v52 = vld [vmem:[%s8383_s10 + $0xb4] sm:$0xff]   ;;  %v3905_v19 = vunpack.c.l.bf16 %v7388_v7 }
 0x16a   : > { %v2180_v21 = vpop.f32.mrf.mxu1  ;;  %v1083_v62 = vpop.f32.mrf.mxu2  ;;  %v1242_v8 = vunpack.c.l.bf16 %v6987_v52  ;;  %v959_v18 = vrot.slane %v11017_v56, 2  ;;  %v1243_v38 = vunpack.c.h.bf16 %v6987_v52  ;;  %v2054_v12 = vsel %vm885_vm3, %v2051_v33, %v2053_v1  ;;  %7423 = vmatpush.msk.msrb.mxu3 %vm540_vm0, %v4248_v5  ;;  %v11021_v56 = vld [vmem:[#allocation3_spill] sm:$0xff] }
 0x16b   : > { %v1159_v55 = vadd.f32 %v1083_v62, %v772_v30  ;;  %v1963_v30 = vunpack.c.l.bf16 %v7122_v50  ;;  %7389 = vmatpush.msk.msrb.mxu2 %vm540_vm0, %v3905_v19  ;;  %v868_v62 = vunpack.c.l.bf16 %v852_v16  ;;  %v781_v33 = vadd.f32 %v11019_v48, %v11018_v63 }
 0x16c   : > { %7020 = vmatmul.msk.f32.gmra.mxu3 %vm475_vm1, %v7914_v22  ;;  %v956_v22 = vrot.slane %v867_v59, 2 }
 0x16d   : > { %7152 = vmatmul.msk.f32.gmra.mxu1 %vm475_vm1, %v2049_v60  ;;  %v1471_v29 = vadd.f32 %v1395_v9, %v1159_v55  ;;  %v1837_v11 = vpop.f32.mrf.mxu0  ;;  %v2055_v59 = vrot.slane %v1963_v30, 2 }
 0x16e   : > { %v958_v43 = vsel %vm885_vm3, %v956_v22, %v957_v45  ;;  %v7072_v22 = vld [vmem:[%s8383_s10 + $0xc8] sm:$0x1] }
 0x16f   : > { %v1910_v28 = vadd.f32 %v1834_v4, %v1471_v29  ;;  %6954 = vmatmul.msk.f32.gmra.mxu2 %vm475_vm1, %v955_v17  ;;  %v1398_v14 = vpop.f32.mrf.mxu3  ;;  %v778_v4 = vadd.f32 %v8935_v51, %v8944_v44  ;;  %v8221_v44 = vld [vmem:[%s8383_s10 + $0xc0] sm:$0xff]   ;;  %v1711_v17 = vsel %vm391_vm2, %v1708_v24, %v1710_v26  ;;  %v11023_v26 = vld [vmem:[#allocation21_spill] sm:$0xff] }
 0x170   : > { %7102 = vmatmul.msk.f32.gmra.mxu0 %vm475_vm1, %v1706_v25  ;;  %v9205_v39 = vunpack.c.h.bf16 %v8221_v44  ;;  %v7917_v52 = vunpack.c.l.bf16 %v8221_v44 }
 0x171   : > { %v9179_v57 = vadd.f32 %v2177_v2, %v1910_v28  ;;  %v1709_v2 = vsel %vm391_vm2, %v1707_v23, %v1708_v24  ;;  %v961_v28 = vrot.slane %v868_v62, 2 }
 0x172   : > { %v2183_v53 = vpop.f32.mrf.mxu1  ;;  %v1086_v0 = vpop.f32.mrf.mxu2  ;;  %v2056_v25 = vrot.slane %v9205_v39, 2  ;;  %v1712_v13 = vrot.slane %v7917_v52, 1  ;;  %v1713_v23 = vrot.slane %v9205_v39, 1 }
 0x173   : > { %v1160_v3 = vadd.f32 %v1086_v0, %v775_v46 }
 0x174   : > { %7021 = vmatmul.msk.f32.gmra.mxu3 %vm475_vm1, %v1242_v8  ;;  %v2057_v24 = vsel %vm885_vm3, %v2055_v59, %v2056_v25  ;;  %v1714_v50 = vsel %vm391_vm2, %v1712_v13, %v1713_v23 }
 0x175   : > { %7153 = vmatmul.msk.f32.gmra.mxu1 %vm475_vm1, %v2052_v42  ;;  %v1472_v49 = vadd.f32 %v1398_v14, %v1160_v3  ;;  %v1840_v47 = vpop.f32.mrf.mxu0  ;;  %v11020_v14 = vld [vmem:[#allocation2_spill] sm:$0xff] }
 0x176   : > { %v962_v46 = vrot.slane %v11020_v14, 2  ;;  %v7488_v42 = vld [vmem:[%s10925_s3 + $0x6] sm:$0x3] }
 0x177   : > { %v1911_v31 = vadd.f32 %v1837_v11, %v1472_v49  ;;  %6955 = vmatmul.msk.f32.gmra.mxu2 %vm475_vm1, %v958_v43  ;;  %v1401_v36 = vpop.f32.mrf.mxu3  ;;  %v4528_v3 = vunpack.c.l.bf16 %v7488_v42  ;;  %v1588_v43 = vunpack.c.l.bf16 %v7072_v22 }
 0x178   : > { %7103 = vmatmul.msk.f32.gmra.mxu0 %vm475_vm1, %v1709_v2  ;;  %v963_v49 = vsel %vm885_vm3, %v961_v28, %v962_v46  ;;  %v11026_v28 = vld [vmem:[#allocation22_spill] sm:$0xff] }
 0x179   : > { %v9196_v9 = vadd.f32 %v2180_v21, %v1911_v31  ;;  %v960_v21 = vsel %vm885_vm3, %v957_v45, %v959_v18  ;;  %v8230_v31 = vld [vmem:[%s8383_s10 + $0x18] sm:$0xff]   ;;  %7489 = vmatpush.msk.msrb.mxu0 %vm540_vm0, %v4528_v3  ;;  %v11022_v18 = vunpack.c.l.bf16 %v11021_v56  ;;  %v1715_v44 = vrot.slane %v1588_v43, 1 }
 0x17a   : > { %v2186_v40 = vpop.f32.mrf.mxu1  ;;  %v1089_v51 = vpop.f32.mrf.mxu2  ;;  %v7953_v19 = vunpack.c.l.bf16 %v8230_v31  ;;  %v9240_v16 = vunpack.c.h.bf16 %v8230_v31 }
 0x17b   : > { %v1161_v60 = vadd.f32 %v1089_v51, %v778_v4 }
 0x17c   : > { %7022 = vmatmul.msk.f32.gmra.mxu3 %vm475_vm1, %v1243_v38  ;;  %v964_v38 = vrot.slane %v11022_v18, 2  ;;  %v3075_v42 = vrot.slane %v9240_v16, 2 }
 0x17d   : > { %7154 = vmatmul.msk.f32.gmra.mxu1 %vm475_vm1, %v2054_v12  ;;  %v1473_v55 = vadd.f32 %v1401_v36, %v1161_v60  ;;  %v1843_v20 = vpop.f32.mrf.mxu0  ;;  %v2058_v36 = vrot.slane %v1588_v43, 2  ;;  %v11024_v12 = vld [vmem:[#allocation19_spill] sm:$0xff] }
 0x17e   : > { %v784_v30 = vadd.f32 %v11024_v12, %v11023_v26  ;;  %v7306_v26 = vld [vmem:[%s8383_s10 + $0x24] sm:$0xe]  ;;  %v11027_v12 = vld [vmem:[#allocation4_spill] sm:$0xff] }
 0x17f   : > { %v1912_v29 = vadd.f32 %v1840_v47, %v1473_v55  ;;  %6956 = vmatmul.msk.f32.gmra.mxu2 %vm475_vm1, %v960_v21  ;;  %v1404_v11 = vpop.f32.mrf.mxu3  ;;  %v2059_v5 = vsel %vm885_vm3, %v2056_v25, %v2058_v36  ;;  %v7305_v21 = vld [vmem:[%s8383_s10 + $0x18] sm:$0xe]  ;;  %v965_v55 = vsel %vm885_vm3, %v962_v46, %v964_v38  ;;  %v1716_v25 = vsel %vm391_vm2, %v1713_v23, %v1715_v44 }
 0x180   : > { %7104 = vmatmul.msk.f32.gmra.mxu0 %vm475_vm1, %v1711_v17 }
 0x181   : > { %v9219_v45 = vadd.f32 %v2183_v53, %v1912_v29  ;;  %v7570_v53 = vld [vmem:[%s10925_s3 + $0x8] sm:$0x3]  ;;  %v3042_v29 = vunpack.c.l.bf16 %v7305_v21  ;;  %v3043_v21 = vunpack.c.l.bf16 %v7306_v26 }
 0x182   : > { %v2189_v8 = vpop.f32.mrf.mxu1  ;;  %v1092_v0 = vpop.f32.mrf.mxu2  ;;  %v4999_v47 = vunpack.c.l.bf16 %v7570_v53 }
 0x183   : > { %v1162_v10 = vadd.f32 %v1092_v0, %v781_v33  ;;  %v11025_v33 = vld [vmem:[#allocation24_spill] sm:$0xff] }
 0x184   : > { %7023 = vmatmul.msk.f32.gmra.mxu3 %vm475_vm1, %v7917_v52  ;;  %7571 = vmatpush.msk.msrb.mxu1 %vm540_vm0, %v4999_v47  ;;  %v7225_v52 = vld [vmem:[%s8383_s10 + $0x20] sm:$0x1]  ;;  %v787_v14 = vadd.f32 %v11026_v28, %v11025_v33  ;;  %v7159_v47 = vld [vmem:[%s8383_s10 + $0x24] sm:$0xff]   ;;  %v11028_v33 = vld [vmem:[#allocation5_spill] sm:$0xff] }
 0x185   : > { %7155 = vmatmul.msk.f32.gmra.mxu1 %vm475_vm1, %v2057_v24  ;;  %v1474_v2 = vadd.f32 %v1404_v11, %v1162_v10  ;;  %v1846_v1 = vpop.f32.mrf.mxu0  ;;  %v8016_v11 = vld [vmem:[%s9252_s6] sm:$0xff]   ;;  %v2637_v23 = vunpack.c.l.bf16 %v7225_v52  ;;  %v3074_v24 = vrot.slane %v3042_v29, 2  ;;  %v2639_v31 = vunpack.c.h.bf16 %v7159_v47 }
 0x186   : > { %v8017_v46 = vunpack.c.l.bf16 %v8016_v11  ;;  %v8018_v36 = vunpack.c.h.bf16 %v8016_v11  ;;  %v3079_v52 = vrot.slane %v3043_v21, 2 }
 0x187   : > { %v1913_v7 = vadd.f32 %v1843_v20, %v1474_v2  ;;  %6957 = vmatmul.msk.f32.gmra.mxu2 %vm475_vm1, %v963_v49  ;;  %v1407_v4 = vpop.f32.mrf.mxu3  ;;  %v2732_v20 = vrot.slane %v9240_v16, 1  ;;  %v2734_v53 = vrot.slane %v2637_v23, 1  ;;  %v3076_v49 = vsel %vm885_vm3, %v3074_v24, %v3075_v42 }
 0x188   : > { %7105 = vmatmul.msk.f32.gmra.mxu0 %vm475_vm1, %v1714_v50  ;;  %v3077_v18 = vrot.slane %v2637_v23, 2  ;;  %v2737_v44 = vrot.slane %v2639_v31, 1 }
 0x189   : > { %v9244_v37 = vadd.f32 %v2186_v40, %v1913_v7  ;;  %v2731_v40 = vrot.slane %v7953_v19, 1 }
 0x18a   : > { %v2192_v51 = vpop.f32.mrf.mxu1  ;;  %v1095_v60 = vpop.f32.mrf.mxu2 }
 0x18b   : > { %v1163_v62 = vadd.f32 %v1095_v60, %v784_v30 }
 0x18c   : > { %7024 = vmatmul.msk.f32.gmra.mxu3 %vm475_vm1, %v9205_v39  ;;  %v2733_v39 = vsel %vm391_vm2, %v2731_v40, %v2732_v20 }
 0x18d   : > { %7156 = vmatmul.msk.f32.gmra.mxu1 %vm475_vm1, %v2059_v5  ;;  %v1475_v17 = vadd.f32 %v1407_v4, %v1163_v62  ;;  %v1849_v59 = vpop.f32.mrf.mxu0  ;;  %v2735_v4 = vsel %vm391_vm2, %v2732_v20, %v2734_v53  ;;  %v3371_v62 = vld [vmem:[%s9252_s6 + $0xc] sm:$0xff]  }
 0x18f   : > { %v1914_v63 = vadd.f32 %v1846_v1, %v1475_v17  ;;  %6958 = vmatmul.msk.f32.gmra.mxu2 %vm475_vm1, %v965_v55  ;;  %v1410_v48 = vpop.f32.mrf.mxu3  ;;  %v7228_v55 = vld [vmem:[%s8383_s10 + $0x2c] sm:$0x1] }
 0x190   : > { %7106 = vmatmul.msk.f32.gmra.mxu0 %vm475_vm1, %v1716_v25  ;;  %v2640_v11 = vunpack.c.l.bf16 %v7228_v55 }
 0x191   : > { %v9268_v22 = vadd.f32 %v2189_v8, %v1914_v63  ;;  %v9276_v8 = vld [vmem:[%s8383_s10 + $0x24] sm:$0xff]   ;;  %v3080_v63 = vrot.slane %v2639_v31, 2 }
 0x192   : > { %v2195_v13 = vpop.f32.mrf.mxu1  ;;  %v1098_v0 = vpop.f32.mrf.mxu2  ;;  %v2638_v50 = vunpack.c.l.bf16 %v9276_v8 }
 0x193   : > { %v1164_v3 = vadd.f32 %v1098_v0, %v787_v14  ;;  %v2310_v14 = vunpack.c.l.bf16 %v7159_v47  ;;  %v3081_v23 = vsel %vm885_vm3, %v3079_v52, %v3080_v63  ;;  %v3082_v47 = vrot.slane %v2640_v11, 2 }
 0x194   : > { %7273 = vmatmul.msk.f32.vlgmr.msra.gmra.mxu3 %vm475_vm1, %v2733_v39 }
 0x195   : > { %7356 = vmatmul.msk.f32.vlgmr.msra.gmra.mxu1 %vm475_vm1, %v8017_v46  ;;  %v1476_v10 = vadd.f32 %v1410_v48, %v1164_v3  ;;  %v1852_v43 = vpop.f32.mrf.mxu0  ;;  %v2739_v46 = vrot.slane %v2640_v11, 1  ;;  %v3083_v26 = vsel %vm885_vm3, %v3080_v63, %v3082_v47  ;;  %v11031_v47 = vld [vmem:[#allocation8_spill] sm:$0xff] }
 0x197   : > { %v1915_v2 = vadd.f32 %v1849_v59, %v1476_v10  ;;  %7191 = vmatmul.msk.f32.vlgmr.msra.gmra.mxu2 %vm475_vm1, %v7953_v19  ;;  %v1413_v1 = vpop.f32.mrf.mxu3  ;;  %v2736_v19 = vrot.slane %v2638_v50, 1  ;;  %v3403_v59 = vunpack.c.l.bf16 %v3371_v62  ;;  %v3404_v10 = vunpack.c.h.bf16 %v3371_v62  ;;  %v11029_v50 = vld [vmem:[#allocation6_spill] sm:$0xff] }
 0x198   : > { %7323 = vmatmul.msk.f32.vlgmr.msra.gmra.mxu0 %vm475_vm1, %v3076_v49  ;;  %v2740_v53 = vsel %vm391_vm2, %v2737_v44, %v2739_v46 }
 0x199   : > { %v9281_v7 = vadd.f32 %v2192_v51, %v1915_v2  ;;  %v3078_v51 = vsel %vm885_vm3, %v3075_v42, %v3077_v18  ;;  %v2738_v17 = vsel %vm391_vm2, %v2736_v19, %v2737_v44  ;;  %v7231_v19 = vld [vmem:[%s8383_s10 + $0x38] sm:$0x1] }
 0x19a   : > { %v2198_v56 = vpop.f32.mrf.mxu1  ;;  %v1101_v38 = vpop.f32.mrf.mxu2  ;;  %v2643_v62 = vunpack.c.l.bf16 %v7231_v19 }
 0x19b   : > { %v1165_v30 = vadd.f32 %v1101_v38, %v11027_v12 }
 0x19c   : > { %7274 = vmatmul.msk.f32.gmra.mxu3 %vm475_vm1, %v2735_v4  ;;  %v2744_v63 = vrot.slane %v2643_v62, 1 }
 0x19d   : > { %7357 = vmatmul.msk.f32.gmra.mxu1 %vm475_vm1, %v8018_v36  ;;  %v1477_v5 = vadd.f32 %v1413_v1, %v1165_v30  ;;  %v1855_v60 = vpop.f32.mrf.mxu0  ;;  %v7307_v1 = vld [vmem:[%s8383_s10 + $0x30] sm:$0xe]  ;;  %v2311_v36 = vunpack.c.h.bf16 %v9276_v8  ;;  %v8246_v30 = vld [vmem:[%s9252_s6 + $0x18] sm:$0xff]  }
 0x19e   : > { %v3044_v12 = vunpack.c.l.bf16 %v7307_v1  ;;  %v8022_v46 = vunpack.c.h.bf16 %v8246_v30 }
 0x19f   : > { %v1916_v40 = vadd.f32 %v1852_v43, %v1477_v5  ;;  %7192 = vmatmul.msk.f32.gmra.mxu2 %vm475_vm1, %v9240_v16  ;;  %v1416_v20 = vpop.f32.mrf.mxu3 }
 0x1a0   : > { %7324 = vmatmul.msk.f32.gmra.mxu0 %vm475_vm1, %v3078_v51  ;;  %v3084_v55 = vrot.slane %v3044_v12, 2 }
 0x1a1   : > { %v9295_v25 = vadd.f32 %v2195_v13, %v1916_v40  ;;  %v8231_v13 = vld [vmem:[%s8383_s10 + $0x30] sm:$0xff]  }
 0x1a2   : > { %v2201_v29 = vpop.f32.mrf.mxu1  ;;  %v1104_v48 = vpop.f32.mrf.mxu2  ;;  %v7957_v0 = vunpack.c.l.bf16 %v8231_v13  ;;  %v9304_v3 = vunpack.c.h.bf16 %v8231_v13 }
 0x1a3   : > { %v1166_v28 = vadd.f32 %v1104_v48, %v11028_v33  ;;  %v9330_v33 = vld [vmem:[%s8383_s10 + $0x3c] sm:$0xff]  }
 0x1a4   : > { %7275 = vmatmul.msk.f32.gmra.mxu3 %vm475_vm1, %v2738_v17  ;;  %v2741_v4 = vrot.slane %v7957_v0, 1  ;;  %v2742_v18 = vrot.slane %v9304_v3, 1  ;;  %v3085_v40 = vrot.slane %v9304_v3, 2  ;;  %v11030_v17 = vld [vmem:[#allocation7_spill] sm:$0xff] }
 0x1a5   : > { %7358 = vmatmul.msk.f32.gmra.mxu1 %vm475_vm1, %v3403_v59  ;;  %v1478_v16 = vadd.f32 %v1416_v20, %v1166_v28  ;;  %v1858_v39 = vpop.f32.mrf.mxu0 }
 0x1a6   : > { %v2743_v8 = vsel %vm391_vm2, %v2741_v4, %v2742_v18  ;;  %v3086_v48 = vsel %vm885_vm3, %v3084_v55, %v3085_v40  ;;  %v2745_v13 = vsel %vm391_vm2, %v2742_v18, %v2744_v63  ;;  %v3375_v4 = vld [vmem:[%s9252_s6 + $0x24] sm:$0xff]  }
 0x1a7   : > { %v1917_v24 = vadd.f32 %v1855_v60, %v1478_v16  ;;  %7193 = vmatmul.msk.f32.gmra.mxu2 %vm475_vm1, %v2310_v14  ;;  %v1419_v42 = vpop.f32.mrf.mxu3  ;;  %v8021_v60 = vunpack.c.l.bf16 %v8246_v30  ;;  %v2644_v16 = vunpack.c.l.bf16 %v9330_v33  ;;  %v3407_v12 = vunpack.c.l.bf16 %v3375_v4 }
 0x1a8   : > { %7325 = vmatmul.msk.f32.gmra.mxu0 %vm475_vm1, %v3081_v23 }
 0x1a9   : > { %v9306_v43 = vadd.f32 %v2198_v56, %v1917_v24 }
 0x1aa   : > { %v2204_v49 = vpop.f32.mrf.mxu1  ;;  %v1107_v2 = vpop.f32.mrf.mxu2 }
 0x1ab   : > { %v1167_v31 = vadd.f32 %v1107_v2, %v11029_v50 }
 0x1ac   : > { %7276 = vmatmul.msk.f32.gmra.mxu3 %vm475_vm1, %v2740_v53  ;;  %v7308_v53 = vld [vmem:[%s8383_s10 + $0x3c] sm:$0xe] }
 0x1ad   : > { %7359 = vmatmul.msk.f32.gmra.mxu1 %vm475_vm1, %v3404_v10  ;;  %v1479_v56 = vadd.f32 %v1419_v42, %v1167_v31  ;;  %v1861_v38 = vpop.f32.mrf.mxu0  ;;  %v3087_v42 = vrot.slane %v2643_v62, 2  ;;  %v11032_v62 = vld [vmem:[#allocation9_spill] sm:$0xff] }
 0x1af   : > { %v1918_v44 = vadd.f32 %v1858_v39, %v1479_v56  ;;  %7194 = vmatmul.msk.f32.gmra.mxu2 %vm475_vm1, %v2311_v36  ;;  %v1422_v5 = vpop.f32.mrf.mxu3  ;;  %v3045_v36 = vunpack.c.l.bf16 %v7308_v53  ;;  %v7234_v56 = vld [vmem:[%s8383_s10 + $0x44] sm:$0x1]  ;;  %v2315_v53 = vunpack.c.h.bf16 %v9330_v33 }
 0x1b0   : > { %7326 = vmatmul.msk.f32.gmra.mxu0 %vm475_vm1, %v3083_v26 }
 0x1b1   : > { %v9321_v51 = vadd.f32 %v2201_v29, %v1918_v44  ;;  %v7163_v29 = vld [vmem:[%s8383_s10 + $0x3c] sm:$0xff]   ;;  %v2646_v44 = vunpack.c.l.bf16 %v7234_v56 }
 0x1b2   : > { %v2207_v21 = vpop.f32.mrf.mxu1  ;;  %v1110_v20 = vpop.f32.mrf.mxu2  ;;  %v2645_v39 = vunpack.c.h.bf16 %v7163_v29 }
 0x1b3   : > { %v1168_v59 = vadd.f32 %v1110_v20, %v11030_v17  ;;  %v2749_v17 = vrot.slane %v2646_v44, 1 }
 0x1b4   : > { %7277 = vmatmul.msk.f32.gmra.mxu3 %vm475_vm1, %v2743_v8  ;;  %v2747_v1 = vrot.slane %v2645_v39, 1  ;;  %v3090_v8 = vrot.slane %v2645_v39, 2  ;;  %v3092_v39 = vrot.slane %v2646_v44, 2 }
 0x1b5   : > { %7360 = vmatmul.msk.f32.gmra.mxu1 %vm475_vm1, %v8021_v60  ;;  %v1480_v11 = vadd.f32 %v1422_v5, %v1168_v59  ;;  %v1864_v52 = vpop.f32.mrf.mxu0  ;;  %v3089_v5 = vrot.slane %v3045_v36, 2 }
 0x1b7   : > { %v1919_v28 = vadd.f32 %v1861_v38, %v1480_v11  ;;  %7195 = vmatmul.msk.f32.gmra.mxu2 %vm475_vm1, %v7957_v0  ;;  %v1425_v14 = vpop.f32.mrf.mxu3  ;;  %v2746_v0 = vrot.slane %v2644_v16, 1  ;;  %v3091_v59 = vsel %vm885_vm3, %v3089_v5, %v3090_v8 }
 0x1b8   : > { %7327 = vmatmul.msk.f32.gmra.mxu0 %vm475_vm1, %v3086_v48 }
 0x1b9   : > { %v9335_v23 = vadd.f32 %v2204_v49, %v1919_v28  ;;  %v3088_v49 = vsel %vm885_vm3, %v3085_v40, %v3087_v42  ;;  %v2748_v26 = vsel %vm391_vm2, %v2746_v0, %v2747_v1  ;;  %v2314_v40 = vunpack.c.l.bf16 %v7163_v29  ;;  %v11033_v42 = vld [vmem:[#allocation10_spill] sm:$0xff] }
 0x1ba   : > { %v2210_v24 = vpop.f32.mrf.mxu1  ;;  %v1113_v10 = vpop.f32.mrf.mxu2  ;;  %v3408_v29 = vunpack.c.h.bf16 %v3375_v4 }
 0x1bb   : > { %v1169_v2 = vadd.f32 %v1113_v10, %v11031_v47 }
 0x1bc   : > { %7278 = vmatmul.msk.f32.gmra.mxu3 %vm475_vm1, %v2745_v13  ;;  %v7309_v13 = vld [vmem:[%s8383_s10 + $0x48] sm:$0xe] }
 0x1bd   : > { %7361 = vmatmul.msk.f32.gmra.mxu1 %vm475_vm1, %v8022_v46  ;;  %v1481_v50 = vadd.f32 %v1425_v14, %v1169_v2  ;;  %v1867_v31 = vpop.f32.mrf.mxu0  ;;  %v2750_v14 = vsel %vm391_vm2, %v2747_v1, %v2749_v17  ;;  %v3093_v1 = vsel %vm885_vm3, %v3090_v8, %v3092_v39  ;;  %v11034_v8 = vld [vmem:[#allocation11_spill] sm:$0xff] }
 0x1bf   : > { %v1920_v18 = vadd.f32 %v1864_v52, %v1481_v50  ;;  %7196 = vmatmul.msk.f32.gmra.mxu2 %vm475_vm1, %v9304_v3  ;;  %v1428_v38 = vpop.f32.mrf.mxu3  ;;  %v3046_v50 = vunpack.c.l.bf16 %v7309_v13 }
 0x1c0   : > { %7328 = vmatmul.msk.f32.gmra.mxu0 %vm475_vm1, %v3088_v49  ;;  %v7237_v49 = vld [vmem:[%s8383_s10 + $0x50] sm:$0x1] }
 0x1c1   : > { %v9349_v30 = vadd.f32 %v2207_v21, %v1920_v18  ;;  %v8232_v21 = vld [vmem:[%s8383_s10 + $0x48] sm:$0xff]  }
 0x1c2   : > { %v2213_v19 = vpop.f32.mrf.mxu1  ;;  %v1116_v60 = vpop.f32.mrf.mxu2  ;;  %v7961_v63 = vunpack.c.l.bf16 %v8232_v21  ;;  %v9358_v48 = vunpack.c.h.bf16 %v8232_v21 }
 0x1c3   : > { %v1170_v55 = vadd.f32 %v1116_v60, %v11032_v62 }
 0x1c4   : > { %7279 = vmatmul.msk.f32.gmra.mxu3 %vm475_vm1, %v2748_v26  ;;  %v2751_v47 = vrot.slane %v7961_v63, 1  ;;  %v2752_v2 = vrot.slane %v9358_v48, 1  ;;  %v2649_v26 = vunpack.c.l.bf16 %v7237_v49  ;;  %v3095_v44 = vrot.slane %v9358_v48, 2 }
 0x1c5   : > { %7362 = vmatmul.msk.f32.gmra.mxu1 %vm475_vm1, %v3407_v12  ;;  %v1482_v3 = vadd.f32 %v1428_v38, %v1170_v55  ;;  %v1870_v20 = vpop.f32.mrf.mxu0  ;;  %v3094_v12 = vrot.slane %v3046_v50, 2  ;;  %v3379_v50 = vld [vmem:[%s9252_s6 + $0x3c] sm:$0xff]  }
 0x1c6   : > { %v2753_v33 = vsel %vm391_vm2, %v2751_v47, %v2752_v2 }
 0x1c7   : > { %v1921_v11 = vadd.f32 %v1867_v31, %v1482_v3  ;;  %7197 = vmatmul.msk.f32.gmra.mxu2 %vm475_vm1, %v2314_v40  ;;  %v1431_v52 = vpop.f32.mrf.mxu3  ;;  %v8247_v31 = vld [vmem:[%s9252_s6 + $0x30] sm:$0xff]   ;;  %v2754_v40 = vrot.slane %v2649_v26, 1  ;;  %v3096_v3 = vsel %vm885_vm3, %v3094_v12, %v3095_v44 }
 0x1c8   : > { %7329 = vmatmul.msk.f32.gmra.mxu0 %vm475_vm1, %v3091_v59  ;;  %v8025_v56 = vunpack.c.l.bf16 %v8247_v31 }
 0x1c9   : > { %v9360_v28 = vadd.f32 %v2210_v24, %v1921_v11 }
 0x1ca   : > { %v2216_v16 = vpop.f32.mrf.mxu1  ;;  %v1119_v46 = vpop.f32.mrf.mxu2 }
 0x1cb   : > { %v1171_v10 = vadd.f32 %v1119_v46, %v11033_v42  ;;  %v3097_v46 = vrot.slane %v2649_v26, 2  ;;  %v7310_v42 = vld [vmem:[%s8383_s10 + $0x54] sm:$0xe] }
 0x1cc   : > { %7280 = vmatmul.msk.f32.gmra.mxu3 %vm475_vm1, %v2750_v14  ;;  %v2755_v14 = vsel %vm391_vm2, %v2752_v2, %v2754_v40 }
 0x1cd   : > { %7363 = vmatmul.msk.f32.gmra.mxu1 %vm475_vm1, %v3408_v29  ;;  %v1483_v24 = vadd.f32 %v1431_v52, %v1171_v10  ;;  %v1873_v0 = vpop.f32.mrf.mxu0  ;;  %v8026_v52 = vunpack.c.h.bf16 %v8247_v31  ;;  %v11035_v10 = vld [vmem:[#allocation12_spill] sm:$0xff]  ;;  %v7240_v31 = vld [vmem:[%s8383_s10 + $0x5c] sm:$0x1] }
 0x1ce   : > { %v2652_v26 = vunpack.c.l.bf16 %v7240_v31  ;;  %v8248_v31 = vld [vmem:[%s9252_s6 + $0x48] sm:$0xff]  }
 0x1cf   : > { %v1922_v36 = vadd.f32 %v1870_v20, %v1483_v24  ;;  %7198 = vmatmul.msk.f32.gmra.mxu2 %vm475_vm1, %v2315_v53  ;;  %v1434_v4 = vpop.f32.mrf.mxu3  ;;  %v9384_v20 = vld [vmem:[%s8383_s10 + $0x54] sm:$0xff]  }
 0x1d0   : > { %7330 = vmatmul.msk.f32.gmra.mxu0 %vm475_vm1, %v3093_v1  ;;  %v2650_v21 = vunpack.c.l.bf16 %v9384_v20  ;;  %v3047_v1 = vunpack.c.l.bf16 %v7310_v42  ;;  %v2759_v40 = vrot.slane %v2652_v26, 1 }
 0x1d1   : > { %v9375_v18 = vadd.f32 %v2213_v19, %v1922_v36  ;;  %v7167_v19 = vld [vmem:[%s8383_s10 + $0x54] sm:$0xff]  }
 0x1d2   : > { %v2219_v38 = vpop.f32.mrf.mxu1  ;;  %v1122_v5 = vpop.f32.mrf.mxu2  ;;  %v2651_v11 = vunpack.c.h.bf16 %v7167_v19  ;;  %v3099_v12 = vrot.slane %v3047_v1, 2 }
 0x1d3   : > { %v1172_v60 = vadd.f32 %v1122_v5, %v11034_v8  ;;  %v11036_v8 = vld [vmem:[#allocation13_spill] sm:$0xff] }
 0x1d4   : > { %7281 = vmatmul.msk.f32.gmra.mxu3 %vm475_vm1, %v2753_v33  ;;  %v2757_v47 = vrot.slane %v2651_v11, 1 }
 0x1d5   : > { %7364 = vmatmul.msk.f32.gmra.mxu1 %vm475_vm1, %v8025_v56  ;;  %v1484_v62 = vadd.f32 %v1434_v4, %v1172_v60  ;;  %v1876_v55 = vpop.f32.mrf.mxu0  ;;  %v3411_v4 = vunpack.c.l.bf16 %v3379_v50 }
 0x1d7   : > { %v1923_v17 = vadd.f32 %v1873_v0, %v1484_v62  ;;  %7199 = vmatmul.msk.f32.gmra.mxu2 %vm475_vm1, %v7961_v63  ;;  %v1437_v59 = vpop.f32.mrf.mxu3  ;;  %v2756_v63 = vrot.slane %v2650_v21, 1  ;;  %v2318_v62 = vunpack.c.l.bf16 %v7167_v19  ;;  %v3412_v19 = vunpack.c.h.bf16 %v3379_v50 }
 0x1d8   : > { %7331 = vmatmul.msk.f32.gmra.mxu0 %vm475_vm1, %v3096_v3 }
 0x1d9   : > { %v9389_v29 = vadd.f32 %v2216_v16, %v1923_v17  ;;  %v3098_v16 = vsel %vm885_vm3, %v3095_v44, %v3097_v46  ;;  %v2758_v36 = vsel %vm391_vm2, %v2756_v63, %v2757_v47  ;;  %v3100_v44 = vrot.slane %v2651_v11, 2 }
 0x1da   : > { %v2222_v39 = vpop.f32.mrf.mxu1  ;;  %v1125_v13 = vpop.f32.mrf.mxu2 }
 0x1db   : > { %v1173_v53 = vadd.f32 %v1125_v13, %v11035_v10  ;;  %v3101_v3 = vsel %vm885_vm3, %v3099_v12, %v3100_v44  ;;  %v3102_v13 = vrot.slane %v2652_v26, 2  ;;  %v7311_v10 = vld [vmem:[%s8383_s10 + $0x60] sm:$0xe] }
 0x1dc   : > { %7282 = vmatmul.msk.f32.gmra.mxu3 %vm475_vm1, %v2755_v14  ;;  %v2760_v14 = vsel %vm391_vm2, %v2757_v47, %v2759_v40  ;;  %v3048_v50 = vunpack.c.l.bf16 %v7311_v10 }
 0x1dd   : > { %7365 = vmatmul.msk.f32.gmra.mxu1 %vm475_vm1, %v8026_v52  ;;  %v1485_v24 = vadd.f32 %v1437_v59, %v1173_v53  ;;  %v1879_v0 = vpop.f32.mrf.mxu0  ;;  %v11037_v53 = vld [vmem:[#allocation14_spill] sm:$0xff]  ;;  %v3103_v47 = vsel %vm885_vm3, %v3100_v44, %v3102_v13 }
 0x1df   : > { %v1924_v2 = vadd.f32 %v1876_v55, %v1485_v24  ;;  %7200 = vmatmul.msk.f32.gmra.mxu2 %vm475_vm1, %v9358_v48  ;;  %v1440_v49 = vpop.f32.mrf.mxu3  ;;  %v2319_v24 = vunpack.c.h.bf16 %v9384_v20 }
 0x1e0   : > { %7332 = vmatmul.msk.f32.gmra.mxu0 %vm475_vm1, %v3098_v16 }
 0x1e1   : > { %v9403_v33 = vadd.f32 %v2219_v38, %v1924_v2  ;;  %v8233_v38 = vld [vmem:[%s8383_s10 + $0x60] sm:$0xff]   ;;  %v7243_v2 = vld [vmem:[%s8383_s10 + $0x68] sm:$0x1] }
 0x1e2   : > { %v2225_v56 = vpop.f32.mrf.mxu1  ;;  %v1128_v5 = vpop.f32.mrf.mxu2  ;;  %v7965_v21 = vunpack.c.l.bf16 %v8233_v38  ;;  %v9412_v11 = vunpack.c.h.bf16 %v8233_v38 }
 0x1e3   : > { %v1174_v60 = vadd.f32 %v1128_v5, %v11036_v8  ;;  %v2655_v5 = vunpack.c.l.bf16 %v7243_v2  ;;  %v3104_v8 = vrot.slane %v3048_v50, 2 }
 0x1e4   : > { %7283 = vmatmul.msk.f32.gmra.mxu3 %vm475_vm1, %v2758_v36  ;;  %v2762_v16 = vrot.slane %v9412_v11, 1  ;;  %v3105_v44 = vrot.slane %v9412_v11, 2 }
 0x1e5   : > { %7366 = vmatmul.msk.f32.gmra.mxu1 %vm475_vm1, %v3411_v4  ;;  %v1486_v48 = vadd.f32 %v1440_v49, %v1174_v60  ;;  %v1882_v55 = vpop.f32.mrf.mxu0  ;;  %v8029_v4 = vunpack.c.l.bf16 %v8248_v31 }
 0x1e6   : > { %v3106_v38 = vsel %vm885_vm3, %v3104_v8, %v3105_v44 }
 0x1e7   : > { %v1925_v17 = vadd.f32 %v1879_v0, %v1486_v48  ;;  %7201 = vmatmul.msk.f32.gmra.mxu2 %vm475_vm1, %v2318_v62  ;;  %v1443_v59 = vpop.f32.mrf.mxu3  ;;  %v2761_v0 = vrot.slane %v7965_v21, 1  ;;  %v11038_v62 = vld [vmem:[#allocation15_spill] sm:$0xff] }
 0x1e8   : > { %7333 = vmatmul.msk.f32.gmra.mxu0 %vm475_vm1, %v3101_v3  ;;  %v2764_v3 = vrot.slane %v2655_v5, 1 }
 0x1e9   : > { %v9414_v52 = vadd.f32 %v2222_v39, %v1925_v17  ;;  %v2763_v20 = vsel %vm391_vm2, %v2761_v0, %v2762_v16  ;;  %v9438_v17 = vld [vmem:[%s8383_s10 + $0x6c] sm:$0xff]  }
 0x1ea   : > { %v2228_v46 = vpop.f32.mrf.mxu1  ;;  %v1131_v42 = vpop.f32.mrf.mxu2 }
 0x1eb   : > { %v1175_v63 = vadd.f32 %v1131_v42, %v11037_v53  ;;  %v8030_v42 = vunpack.c.h.bf16 %v8248_v31  ;;  %v2765_v53 = vsel %vm391_vm2, %v2762_v16, %v2764_v3 }
 0x1ec   : > { %7284 = vmatmul.msk.f32.gmra.mxu3 %vm475_vm1, %v2760_v14  ;;  %v2656_v14 = vunpack.c.l.bf16 %v9438_v17 }
 0x1ed   : > { %7367 = vmatmul.msk.f32.gmra.mxu1 %vm475_vm1, %v3412_v19  ;;  %v1487_v39 = vadd.f32 %v1443_v59, %v1175_v63  ;;  %v1885_v1 = vpop.f32.mrf.mxu0 }
 0x1ef   : > { %v1926_v49 = vadd.f32 %v1882_v55, %v1487_v39  ;;  %7202 = vmatmul.msk.f32.gmra.mxu2 %vm475_vm1, %v2319_v24  ;;  %v1446_v36 = vpop.f32.mrf.mxu3  ;;  %v3107_v24 = vrot.slane %v2655_v5, 2  ;;  %v7312_v39 = vld [vmem:[%s8383_s10 + $0x6c] sm:$0xe] }
 0x1f0   : > { %7334 = vmatmul.msk.f32.gmra.mxu0 %vm475_vm1, %v3103_v47 }
 0x1f1   : > { %v9429_v26 = vadd.f32 %v2225_v56, %v1926_v49  ;;  %v7171_v56 = vld [vmem:[%s8383_s10 + $0x6c] sm:$0xff]   ;;  %v3049_v49 = vunpack.c.l.bf16 %v7312_v39 }
 0x1f2   : > { %v2231_v12 = vpop.f32.mrf.mxu1  ;;  %v1134_v60 = vpop.f32.mrf.mxu2  ;;  %v2657_v13 = vunpack.c.h.bf16 %v7171_v56 }
 0x1f3   : > { %v1176_v48 = vadd.f32 %v1134_v60, %v11038_v62 }
 0x1f4   : > { %7285 = vmatmul.msk.f32.gmra.mxu3 %vm475_vm1, %v2763_v20  ;;  %v2767_v50 = vrot.slane %v2657_v13, 1  ;;  %v7246_v20 = vld [vmem:[%s8383_s10 + $0x74] sm:$0x1] }
 0x1f5   : > { %7368 = vmatmul.msk.f32.gmra.mxu1 %vm475_vm1, %v8029_v4  ;;  %v1488_v55 = vadd.f32 %v1446_v36, %v1176_v48  ;;  %v1888_v40 = vpop.f32.mrf.mxu0  ;;  %v3383_v36 = vld [vmem:[%s9252_s6 + $0x54] sm:$0xff]   ;;  %v2658_v48 = vunpack.c.l.bf16 %v7246_v20  ;;  %v2323_v20 = vunpack.c.h.bf16 %v9438_v17 }
 0x1f6   : > { %v3415_v8 = vunpack.c.l.bf16 %v3383_v36 }
 0x1f7   : > { %v1927_v59 = vadd.f32 %v1885_v1, %v1488_v55  ;;  %7203 = vmatmul.msk.f32.gmra.mxu2 %vm475_vm1, %v7965_v21  ;;  %v1449_v19 = vpop.f32.mrf.mxu3  ;;  %v11039_v1 = vld [vmem:[#allocation17_spill] sm:$0xff]  ;;  %v2766_v21 = vrot.slane %v2656_v14, 1  ;;  %v3109_v55 = vrot.slane %v3049_v49, 2  ;;  %v2769_v14 = vrot.slane %v2658_v48, 1 }
 0x1f8   : > { %7335 = vmatmul.msk.f32.gmra.mxu0 %vm475_vm1, %v3106_v38  ;;  %v11040_v38 = vld [vmem:[#allocation20_spill] sm:$0xff] }
 0x1f9   : > { %v9443_v10 = vadd.f32 %v2228_v46, %v1927_v59  ;;  %v3108_v46 = vsel %vm885_vm3, %v3105_v44, %v3107_v24  ;;  %v2768_v5 = vsel %vm391_vm2, %v2766_v21, %v2767_v50  ;;  %v3110_v44 = vrot.slane %v2657_v13, 2 }
 0x1fa   : > { %v2234_v63 = vpop.f32.mrf.mxu1  ;;  %v1137_v0 = vpop.f32.mrf.mxu2  ;;  %v3112_v21 = vrot.slane %v2658_v48, 2  ;;  %v7249_v48 = vld [vmem:[%s8383_s10 + $0x80] sm:$0x1] }
 0x1fb   : > { %v1177_v47 = vadd.f32 %v1137_v0, %v11039_v1  ;;  %v2770_v1 = vsel %vm391_vm2, %v2767_v50, %v2769_v14 }
 0x1fc   : > { %7286 = vmatmul.msk.f32.gmra.mxu3 %vm475_vm1, %v2765_v53  ;;  %v3113_v50 = vsel %vm885_vm3, %v3110_v44, %v3112_v21  ;;  %v9492_v21 = vld [vmem:[%s8383_s10 + $0x84] sm:$0xff]  }
 0x1fd   : > { %7369 = vmatmul.msk.f32.gmra.mxu1 %vm475_vm1, %v8030_v42  ;;  %v1489_v2 = vadd.f32 %v1449_v19, %v1177_v47  ;;  %v1891_v31 = vpop.f32.mrf.mxu0  ;;  %v3111_v42 = vsel %vm885_vm3, %v3109_v55, %v3110_v44 }
 0x1ff   : > { %v1928_v16 = vadd.f32 %v1888_v40, %v1489_v2  ;;  %7204 = vmatmul.msk.f32.gmra.mxu2 %vm475_vm1, %v9412_v11  ;;  %v1452_v4 = vpop.f32.mrf.mxu3  ;;  %v2322_v40 = vunpack.c.l.bf16 %v7171_v56  ;;  %v3416_v56 = vunpack.c.h.bf16 %v3383_v36 }
 0x200   : > { %7336 = vmatmul.msk.f32.gmra.mxu0 %vm475_vm1, %v3108_v46  ;;  %v7313_v46 = vld [vmem:[%s8383_s10 + $0x78] sm:$0xe] }
 0x201   : > { %v9457_v60 = vadd.f32 %v2231_v12, %v1928_v16  ;;  %v8234_v12 = vld [vmem:[%s8383_s10 + $0x78] sm:$0xff]  }
 0x202   : > { %v2237_v62 = vpop.f32.mrf.mxu1  ;;  %v1140_v3 = vpop.f32.mrf.mxu2  ;;  %v7969_v13 = vunpack.c.l.bf16 %v8234_v12  ;;  %v9466_v0 = vunpack.c.h.bf16 %v8234_v12  ;;  %v11042_v12 = vld [vmem:[#allocation25_spill] sm:$0xff] }
 0x203   : > { %v1178_v59 = vadd.f32 %v1140_v3, %v11040_v38 }
 0x204   : > { %7287 = vmatmul.msk.f32.gmra.mxu3 %vm475_vm1, %v2768_v5  ;;  %v2771_v16 = vrot.slane %v7969_v13, 1  ;;  %v3050_v5 = vunpack.c.l.bf16 %v7313_v46  ;;  %v3115_v44 = vrot.slane %v9466_v0, 2 }
 0x205   : > { %7370 = vmatmul.msk.f32.gmra.mxu1 %vm475_vm1, %v3415_v8  ;;  %v1490_v11 = vadd.f32 %v1452_v4, %v1178_v59  ;;  %v1894_v19 = vpop.f32.mrf.mxu0  ;;  %v2772_v4 = vrot.slane %v9466_v0, 1  ;;  %v8249_v8 = vld [vmem:[%s9252_s6 + $0x60] sm:$0xff]  }
 0x206   : > { %v8033_v38 = vunpack.c.l.bf16 %v8249_v8  ;;  %v3114_v14 = vrot.slane %v3050_v5, 2 }
 0x207   : > { %v1929_v53 = vadd.f32 %v1891_v31, %v1490_v11  ;;  %7205 = vmatmul.msk.f32.gmra.mxu2 %vm475_vm1, %v2322_v40  ;;  %v1455_v24 = vpop.f32.mrf.mxu3  ;;  %v11041_v31 = vld [vmem:[#allocation23_spill] sm:$0xff]  ;;  %v2773_v17 = vsel %vm391_vm2, %v2771_v16, %v2772_v4  ;;  %v2661_v11 = vunpack.c.l.bf16 %v7249_v48 }
 0x208   : > { %7337 = vmatmul.msk.f32.gmra.mxu0 %vm475_vm1, %v3111_v42 }
 0x209   : > { %v9468_v39 = vadd.f32 %v2234_v63, %v1929_v53  ;;  %v3117_v5 = vrot.slane %v2661_v11, 2 }
 0x20a   : > { %v2240_v47 = vpop.f32.mrf.mxu1  ;;  %v1143_v2 = vpop.f32.mrf.mxu2 }
 0x20b   : > { %v1179_v49 = vadd.f32 %v1143_v2, %v11041_v31  ;;  %v2662_v31 = vunpack.c.l.bf16 %v9492_v21 }
 0x20c   : > { %7288 = vmatmul.msk.f32.gmra.mxu3 %vm475_vm1, %v2770_v1  ;;  %v3116_v1 = vsel %vm885_vm3, %v3114_v14, %v3115_v44  ;;  %v3387_v14 = vld [vmem:[%s9252_s6 + $0x6c] sm:$0xff]  }
 0x20d   : > { %7371 = vmatmul.msk.f32.gmra.mxu1 %vm475_vm1, %v3416_v56  ;;  %v1491_v63 = vadd.f32 %v1455_v24, %v1179_v49  ;;  %v1897_v36 = vpop.f32.mrf.mxu0  ;;  %v2774_v56 = vrot.slane %v2661_v11, 1 }
 0x20f   : > { %v1930_v55 = vadd.f32 %v1894_v19, %v1491_v63  ;;  %7206 = vmatmul.msk.f32.gmra.mxu2 %vm475_vm1, %v2323_v20  ;;  %v1458_v3 = vpop.f32.mrf.mxu3  ;;  %v8034_v20 = vunpack.c.h.bf16 %v8249_v8  ;;  %v2775_v63 = vsel %vm391_vm2, %v2772_v4, %v2774_v56 }
 0x210   : > { %7338 = vmatmul.msk.f32.gmra.mxu0 %vm475_vm1, %v3113_v50 }
 0x211   : > { %v9483_v59 = vadd.f32 %v2237_v62, %v1930_v55  ;;  %v7175_v62 = vld [vmem:[%s8383_s10 + $0x84] sm:$0xff]  }
 0x212   : > { %v3551_v40 = vpop.f32.mrf.mxu1  ;;  %v1146_v42 = vpop.f32.mrf.mxu2  ;;  %v2663_v49 = vunpack.c.h.bf16 %v7175_v62  ;;  %v7314_v55 = vld [vmem:[%s8383_s10 + $0x84] sm:$0xe] }
 0x213   : > { %v1180_v19 = vadd.f32 %v1146_v42, %v11042_v12  ;;  %v7252_v42 = vld [vmem:[%s8383_s10 + $0x8c] sm:$0x1]  ;;  %v3419_v12 = vunpack.c.l.bf16 %v3387_v14 }
 0x214   : > { %7289 = vmatmul.msk.f32.gmra.mxu3 %vm475_vm1, %v2773_v17  ;;  %v2664_v56 = vunpack.c.l.bf16 %v7252_v42  ;;  %v2327_v42 = vunpack.c.h.bf16 %v9492_v21 }
 0x215   : > { %7372 = vmatmul.msk.f32.gmra.mxu1 %vm475_vm1, %v8033_v38  ;;  %v1492_v53 = vadd.f32 %v1458_v3, %v1180_v19  ;;  %v3241_v24 = vpop.f32.mrf.mxu0  ;;  %v2777_v3 = vrot.slane %v2663_v49, 1  ;;  %v3051_v38 = vunpack.c.l.bf16 %v7314_v55 }
 0x217   : > { %v1931_v2 = vadd.f32 %v1897_v36, %v1492_v53  ;;  %7207 = vmatmul.msk.f32.gmra.mxu2 %vm475_vm1, %v7969_v13  ;;  %v2898_v46 = vpop.f32.mrf.mxu3  ;;  %v2776_v13 = vrot.slane %v2662_v31, 1 }
 0x218   : > { %7339 = vmatmul.msk.f32.gmra.mxu0 %vm475_vm1, %v3116_v1  ;;  %v3119_v1 = vrot.slane %v3051_v38, 2  ;;  %v7315_v38 = vld [vmem:[%s8383_s10 + $0x90] sm:$0xe] }
 0x219   : > { %v9497_v16 = vadd.f32 %v2240_v47, %v1931_v2  ;;  %v3118_v47 = vsel %vm885_vm3, %v3115_v44, %v3117_v5  ;;  %v3120_v44 = vrot.slane %v2663_v49, 2 }
 0x21a   : > { %v3554_v50 = vpop.f32.mrf.mxu1  ;;  %v2459_v48 = vpop.f32.mrf.mxu2 }
 0x21b   : > { %v2555_v36 = vadd.f32 %v2459_v48, %v9031_v58  ;;  %v2778_v58 = vsel %vm391_vm2, %v2776_v13, %v2777_v3 }
 0x21c   : > { %7290 = vmatmul.msk.f32.gmra.mxu3 %vm475_vm1, %v2775_v63  ;;  %v3121_v63 = vsel %vm885_vm3, %v3119_v1, %v3120_v44 }
 0x21d   : > { %7373 = vmatmul.msk.f32.gmra.mxu1 %vm475_vm1, %v8034_v20  ;;  %v2994_v17 = vadd.f32 %v2898_v46, %v2555_v36  ;;  %v3244_v8 = vpop.f32.mrf.mxu0  ;;  %v2779_v20 = vrot.slane %v2664_v56, 1 }
 0x21f   : > { %v3337_v4 = vadd.f32 %v3241_v24, %v2994_v17  ;;  %7208 = vmatmul.msk.f32.gmra.mxu2 %vm475_vm1, %v9466_v0  ;;  %v2901_v11 = vpop.f32.mrf.mxu3  ;;  %v2326_v24 = vunpack.c.l.bf16 %v7175_v62  ;;  %v3420_v62 = vunpack.c.h.bf16 %v3387_v14  ;;  %v2780_v36 = vsel %vm391_vm2, %v2777_v3, %v2779_v20 }
 0x220   : > { %7340 = vmatmul.msk.f32.gmra.mxu0 %vm475_vm1, %v3118_v47  ;;  %v3122_v17 = vrot.slane %v2664_v56, 2  ;;  %v7255_v56 = vld [vmem:[%s8383_s10 + $0x98] sm:$0x1] }
 0x221   : > { %v9511_v19 = vadd.f32 %v3551_v40, %v3337_v4  ;;  %v8235_v40 = vld [vmem:[%s8383_s10 + $0x90] sm:$0xff]  }
 0x222   : > { %v3557_v53 = vpop.f32.mrf.mxu1  ;;  %v2462_v2 = vpop.f32.mrf.mxu2  ;;  %v7973_v49 = vunpack.c.l.bf16 %v8235_v40  ;;  %v3123_v3 = vsel %vm885_vm3, %v3120_v44, %v3122_v17 }
 0x223   : > { %v2556_v46 = vadd.f32 %v2462_v2, %v9046_v6  ;;  %v9520_v6 = vunpack.c.h.bf16 %v8235_v40 }
 0x224   : > { %7291 = vmatmul.msk.f32.gmra.mxu3 %vm475_vm1, %v2778_v58  ;;  %v2781_v4 = vrot.slane %v7973_v49, 1  ;;  %v3052_v58 = vunpack.c.l.bf16 %v7315_v38 }
 0x225   : > { %7374 = vmatmul.msk.f32.gmra.mxu1 %vm475_vm1, %v3419_v12  ;;  %v2995_v0 = vadd.f32 %v2901_v11, %v2556_v46  ;;  %v3247_v31 = vpop.f32.mrf.mxu0  ;;  %v2782_v11 = vrot.slane %v9520_v6, 1  ;;  %v8250_v12 = vld [vmem:[%s9252_s6 + $0x78] sm:$0xff]   ;;  %v3125_v44 = vrot.slane %v9520_v6, 2 }
 0x226   : > { %v8037_v2 = vunpack.c.l.bf16 %v8250_v12  ;;  %v3124_v20 = vrot.slane %v3052_v58, 2 }
 0x227   : > { %v3338_v5 = vadd.f32 %v3244_v8, %v2995_v0  ;;  %7209 = vmatmul.msk.f32.gmra.mxu2 %vm475_vm1, %v2326_v24  ;;  %v2904_v48 = vpop.f32.mrf.mxu3  ;;  %v2783_v21 = vsel %vm391_vm2, %v2781_v4, %v2782_v11  ;;  %v2667_v0 = vunpack.c.l.bf16 %v7255_v56  ;;  %v7316_v56 = vld [vmem:[%s8383_s10 + $0x9c] sm:$0xe] }
 0x228   : > { %7341 = vmatmul.msk.f32.gmra.mxu0 %vm475_vm1, %v3121_v63 }
 0x229   : > { %v9522_v55 = vadd.f32 %v3554_v50, %v3338_v5 }
 0x22a   : > { %v3560_v13 = vpop.f32.mrf.mxu1  ;;  %v2465_v47 = vpop.f32.mrf.mxu2 }
 0x22b   : > { %v2557_v8 = vadd.f32 %v2465_v47, %v9061_v15 }
 0x22c   : > { %7292 = vmatmul.msk.f32.gmra.mxu3 %vm475_vm1, %v2780_v36  ;;  %v9546_v36 = vld [vmem:[%s8383_s10 + $0x9c] sm:$0xff]  }
 0x22d   : > { %7375 = vmatmul.msk.f32.gmra.mxu1 %vm475_vm1, %v3420_v62  ;;  %v2996_v50 = vadd.f32 %v2904_v48, %v2557_v8  ;;  %v3250_v14 = vpop.f32.mrf.mxu0  ;;  %v2784_v48 = vrot.slane %v2667_v0, 1  ;;  %v3126_v62 = vsel %vm885_vm3, %v3124_v20, %v3125_v44  ;;  %v8038_v8 = vunpack.c.h.bf16 %v8250_v12  ;;  %v7258_v20 = vld [vmem:[%s8383_s10 + $0xa4] sm:$0x1] }
 0x22f   : > { %v3339_v1 = vadd.f32 %v3247_v31, %v2996_v50  ;;  %7210 = vmatmul.msk.f32.gmra.mxu2 %vm475_vm1, %v2327_v42  ;;  %v2907_v15 = vpop.f32.mrf.mxu3  ;;  %v2785_v4 = vsel %vm391_vm2, %v2782_v11, %v2784_v48  ;;  %v2670_v48 = vunpack.c.l.bf16 %v7258_v20  ;;  %v2331_v20 = vunpack.c.h.bf16 %v9546_v36 }
 0x230   : > { %7342 = vmatmul.msk.f32.gmra.mxu0 %vm475_vm1, %v3123_v3  ;;  %v3127_v3 = vrot.slane %v2667_v0, 2 }
 0x231   : > { %v9537_v46 = vadd.f32 %v3557_v53, %v3339_v1  ;;  %v7179_v53 = vld [vmem:[%s8383_s10 + $0x9c] sm:$0xff]  }
 0x232   : > { %v3563_v24 = vpop.f32.mrf.mxu1  ;;  %v2468_v63 = vpop.f32.mrf.mxu2  ;;  %v2669_v38 = vunpack.c.h.bf16 %v7179_v53 }
 0x233   : > { %v2558_v31 = vadd.f32 %v2468_v63, %v9075_v41  ;;  %v2668_v41 = vunpack.c.l.bf16 %v9546_v36 }
 0x234   : > { %7293 = vmatmul.msk.f32.gmra.mxu3 %vm475_vm1, %v2783_v21  ;;  %v2787_v1 = vrot.slane %v2669_v38, 1  ;;  %v3053_v21 = vunpack.c.l.bf16 %v7316_v56 }
 0x235   : > { %7376 = vmatmul.msk.f32.gmra.mxu1 %vm475_vm1, %v8037_v2  ;;  %v2997_v40 = vadd.f32 %v2907_v15, %v2558_v31  ;;  %v3253_v5 = vpop.f32.mrf.mxu0  ;;  %v3391_v2 = vld [vmem:[%s9252_s6 + $0x84] sm:$0xff]  }
 0x236   : > { %v3423_v63 = vunpack.c.l.bf16 %v3391_v2 }
 0x237   : > { %v3340_v17 = vadd.f32 %v3250_v14, %v2997_v40  ;;  %7211 = vmatmul.msk.f32.gmra.mxu2 %vm475_vm1, %v7973_v49  ;;  %v2910_v47 = vpop.f32.mrf.mxu3  ;;  %v2786_v49 = vrot.slane %v2668_v41, 1 }
 0x238   : > { %7343 = vmatmul.msk.f32.gmra.mxu0 %vm475_vm1, %v3126_v62  ;;  %v3129_v62 = vrot.slane %v3053_v21, 2  ;;  %v7317_v21 = vld [vmem:[%s8383_s10 + $0xa8] sm:$0xe] }
 0x239   : > { %v9551_v42 = vadd.f32 %v3560_v13, %v3340_v17  ;;  %v3128_v13 = vsel %vm885_vm3, %v3125_v44, %v3127_v3  ;;  %v3130_v44 = vrot.slane %v2669_v38, 2 }
 0x23a   : > { %v3566_v50 = vpop.f32.mrf.mxu1  ;;  %v2471_v58 = vpop.f32.mrf.mxu2 }
 0x23b   : > { %v2559_v14 = vadd.f32 %v2471_v58, %v9090_v54  ;;  %v2788_v54 = vsel %vm391_vm2, %v2786_v49, %v2787_v1 }
 0x23c   : > { %7294 = vmatmul.msk.f32.gmra.mxu3 %vm475_vm1, %v2785_v4  ;;  %v3131_v4 = vsel %vm885_vm3, %v3129_v62, %v3130_v44 }
 0x23d   : > { %7377 = vmatmul.msk.f32.gmra.mxu1 %vm475_vm1, %v8038_v8  ;;  %v2998_v15 = vadd.f32 %v2910_v47, %v2559_v14  ;;  %v3256_v12 = vpop.f32.mrf.mxu0  ;;  %v2789_v8 = vrot.slane %v2670_v48, 1 }
 0x23f   : > { %v3341_v11 = vadd.f32 %v3253_v5, %v2998_v15  ;;  %7212 = vmatmul.msk.f32.gmra.mxu2 %vm475_vm1, %v9520_v6  ;;  %v2913_v0 = vpop.f32.mrf.mxu3  ;;  %v2330_v5 = vunpack.c.l.bf16 %v7179_v53  ;;  %v3424_v53 = vunpack.c.h.bf16 %v3391_v2  ;;  %v2790_v14 = vsel %vm391_vm2, %v2787_v1, %v2789_v8 }
 0x240   : > { %7344 = vmatmul.msk.f32.gmra.mxu0 %vm475_vm1, %v3128_v13  ;;  %v3132_v15 = vrot.slane %v2670_v48, 2  ;;  %v7261_v48 = vld [vmem:[%s8383_s10 + $0xb0] sm:$0x1] }
 0x241   : > { %v9565_v31 = vadd.f32 %v3563_v24, %v3341_v11  ;;  %v8236_v24 = vld [vmem:[%s8383_s10 + $0xa8] sm:$0xff]  }
 0x242   : > { %v3569_v40 = vpop.f32.mrf.mxu1  ;;  %v2474_v17 = vpop.f32.mrf.mxu2  ;;  %v7977_v38 = vunpack.c.l.bf16 %v8236_v24  ;;  %v3133_v1 = vsel %vm885_vm3, %v3130_v44, %v3132_v15 }
 0x243   : > { %v2560_v47 = vadd.f32 %v2474_v17, %v9105_v61  ;;  %v9574_v61 = vunpack.c.h.bf16 %v8236_v24 }
 0x244   : > { %7295 = vmatmul.msk.f32.gmra.mxu3 %vm475_vm1, %v2788_v54  ;;  %v2791_v11 = vrot.slane %v7977_v38, 1  ;;  %v3054_v54 = vunpack.c.l.bf16 %v7317_v21 }
 0x245   : > { %7378 = vmatmul.msk.f32.gmra.mxu1 %vm475_vm1, %v3423_v63  ;;  %v2999_v6 = vadd.f32 %v2913_v0, %v2560_v47  ;;  %v3259_v41 = vpop.f32.mrf.mxu0  ;;  %v2792_v0 = vrot.slane %v9574_v61, 1  ;;  %v8251_v63 = vld [vmem:[%s9252_s6 + $0x90] sm:$0xff]   ;;  %v3135_v44 = vrot.slane %v9574_v61, 2 }
 0x246   : > { %v8041_v17 = vunpack.c.l.bf16 %v8251_v63  ;;  %v3134_v8 = vrot.slane %v3054_v54, 2 }
 0x247   : > { %v3342_v3 = vadd.f32 %v3256_v12, %v2999_v6  ;;  %7213 = vmatmul.msk.f32.gmra.mxu2 %vm475_vm1, %v2330_v5  ;;  %v2916_v58 = vpop.f32.mrf.mxu3  ;;  %v2793_v36 = vsel %vm391_vm2, %v2791_v11, %v2792_v0  ;;  %v2673_v6 = vunpack.c.l.bf16 %v7261_v48  ;;  %v7318_v48 = vld [vmem:[%s8383_s10 + $0xb4] sm:$0xe] }
 0x248   : > { %7345 = vmatmul.msk.f32.gmra.mxu0 %vm475_vm1, %v3131_v4 }
 0x249   : > { %v9576_v56 = vadd.f32 %v3566_v50, %v3342_v3 }
 0x24a   : > { %v3572_v49 = vpop.f32.mrf.mxu1  ;;  %v2477_v13 = vpop.f32.mrf.mxu2 }
 0x24b   : > { %v2561_v12 = vadd.f32 %v2477_v13, %v9120_v27 }
 0x24c   : > { %7296 = vmatmul.msk.f32.gmra.mxu3 %vm475_vm1, %v2790_v14  ;;  %v9600_v14 = vld [vmem:[%s8383_s10 + $0xb4] sm:$0xff]  }
 0x24d   : > { %7379 = vmatmul.msk.f32.gmra.mxu1 %vm475_vm1, %v3424_v53  ;;  %v3000_v50 = vadd.f32 %v2916_v58, %v2561_v12  ;;  %v3262_v2 = vpop.f32.mrf.mxu0  ;;  %v2794_v58 = vrot.slane %v2673_v6, 1  ;;  %v3136_v53 = vsel %vm885_vm3, %v3134_v8, %v3135_v44  ;;  %v8042_v12 = vunpack.c.h.bf16 %v8251_v63  ;;  %v7264_v8 = vld [vmem:[%s8383_s10 + $0xbc] sm:$0x1] }
 0x24f   : > { %v3343_v62 = vadd.f32 %v3259_v41, %v3000_v50  ;;  %7214 = vmatmul.msk.f32.gmra.mxu2 %vm475_vm1, %v2331_v20  ;;  %v2919_v27 = vpop.f32.mrf.mxu3  ;;  %v2795_v11 = vsel %vm391_vm2, %v2792_v0, %v2794_v58  ;;  %v2676_v58 = vunpack.c.l.bf16 %v7264_v8  ;;  %v2335_v8 = vunpack.c.h.bf16 %v9600_v14 }
 0x250   : > { %7346 = vmatmul.msk.f32.gmra.mxu0 %vm475_vm1, %v3133_v1  ;;  %v3137_v1 = vrot.slane %v2673_v6, 2 }
 0x251   : > { %v9591_v47 = vadd.f32 %v3569_v40, %v3343_v62  ;;  %v7183_v40 = vld [vmem:[%s8383_s10 + $0xb4] sm:$0xff]  }
 0x252   : > { %v3575_v5 = vpop.f32.mrf.mxu1  ;;  %v2480_v4 = vpop.f32.mrf.mxu2  ;;  %v2675_v21 = vunpack.c.h.bf16 %v7183_v40 }
 0x253   : > { %v2562_v41 = vadd.f32 %v2480_v4, %v9134_v35  ;;  %v2674_v35 = vunpack.c.l.bf16 %v9600_v14 }
 0x254   : > { %7297 = vmatmul.msk.f32.gmra.mxu3 %vm475_vm1, %v2793_v36  ;;  %v2797_v62 = vrot.slane %v2675_v21, 1  ;;  %v3055_v36 = vunpack.c.l.bf16 %v7318_v48 }
 0x255   : > { %7380 = vmatmul.msk.f32.gmra.mxu1 %vm475_vm1, %v8041_v17  ;;  %v3001_v24 = vadd.f32 %v2919_v27, %v2562_v41  ;;  %v3265_v3 = vpop.f32.mrf.mxu0  ;;  %v3395_v17 = vld [vmem:[%s9252_s6 + $0x9c] sm:$0xff]  }
 0x256   : > { %v3427_v4 = vunpack.c.l.bf16 %v3395_v17 }
 0x257   : > { %v3344_v15 = vadd.f32 %v3262_v2, %v3001_v24  ;;  %7215 = vmatmul.msk.f32.gmra.mxu2 %vm475_vm1, %v7977_v38  ;;  %v2922_v13 = vpop.f32.mrf.mxu3  ;;  %v2796_v38 = vrot.slane %v2674_v35, 1 }
 0x258   : > { %7347 = vmatmul.msk.f32.gmra.mxu0 %vm475_vm1, %v3136_v53  ;;  %v3139_v53 = vrot.slane %v3055_v36, 2  ;;  %v7319_v36 = vld [vmem:[%s8383_s10 + $0xc0] sm:$0xe] }
 0x259   : > { %v9605_v20 = vadd.f32 %v3572_v49, %v3344_v15  ;;  %v3138_v49 = vsel %vm885_vm3, %v3135_v44, %v3137_v1  ;;  %v3140_v44 = vrot.slane %v2675_v21, 2 }
 0x25a   : > { %v3578_v50 = vpop.f32.mrf.mxu1  ;;  %v2483_v54 = vpop.f32.mrf.mxu2 }
 0x25b   : > { %v2563_v2 = vadd.f32 %v2483_v54, %v9149_v32  ;;  %v2798_v32 = vsel %vm391_vm2, %v2796_v38, %v2797_v62 }
 0x25c   : > { %7298 = vmatmul.msk.f32.gmra.mxu3 %vm475_vm1, %v2795_v11  ;;  %v3141_v11 = vsel %vm885_vm3, %v3139_v53, %v3140_v44 }
 0x25d   : > { %7381 = vmatmul.msk.f32.gmra.mxu1 %vm475_vm1, %v8042_v12  ;;  %v3002_v27 = vadd.f32 %v2922_v13, %v2563_v2  ;;  %v3268_v63 = vpop.f32.mrf.mxu0  ;;  %v2799_v12 = vrot.slane %v2676_v58, 1 }
 0x25f   : > { %v3345_v0 = vadd.f32 %v3265_v3, %v3002_v27  ;;  %7216 = vmatmul.msk.f32.gmra.mxu2 %vm475_vm1, %v9574_v61  ;;  %v2925_v6 = vpop.f32.mrf.mxu3  ;;  %v2334_v3 = vunpack.c.l.bf16 %v7183_v40  ;;  %v3428_v40 = vunpack.c.h.bf16 %v3395_v17  ;;  %v2800_v2 = vsel %vm391_vm2, %v2797_v62, %v2799_v12 }
 0x260   : > { %7348 = vmatmul.msk.f32.gmra.mxu0 %vm475_vm1, %v3138_v49  ;;  %v3142_v27 = vrot.slane %v2676_v58, 2  ;;  %v7267_v58 = vld [vmem:[%s8383_s10 + $0xc8] sm:$0x1] }
 0x261   : > { %v9619_v41 = vadd.f32 %v3575_v5, %v3345_v0  ;;  %v8237_v5 = vld [vmem:[%s8383_s10 + $0xc0] sm:$0xff]  }
 0x262   : > { %v3581_v24 = vpop.f32.mrf.mxu1  ;;  %v2486_v15 = vpop.f32.mrf.mxu2  ;;  %v7981_v21 = vunpack.c.l.bf16 %v8237_v5  ;;  %v3143_v62 = vsel %vm885_vm3, %v3140_v44, %v3142_v27 }
 0x263   : > { %v2564_v13 = vadd.f32 %v2486_v15, %v9164_v34  ;;  %v9628_v34 = vunpack.c.h.bf16 %v8237_v5 }
 0x264   : > { %7299 = vmatmul.msk.f32.gmra.mxu3 %vm475_vm1, %v2798_v32  ;;  %v2801_v0 = vrot.slane %v7981_v21, 1  ;;  %v3056_v32 = vunpack.c.l.bf16 %v7319_v36 }
 0x265   : > { %7382 = vmatmul.msk.f32.gmra.mxu1 %vm475_vm1, %v3427_v4  ;;  %v3003_v61 = vadd.f32 %v2925_v6, %v2564_v13  ;;  %v3271_v35 = vpop.f32.mrf.mxu0  ;;  %v2802_v6 = vrot.slane %v9628_v34, 1  ;;  %v8252_v4 = vld [vmem:[%s9252_s6 + $0xa8] sm:$0xff]   ;;  %v3145_v44 = vrot.slane %v9628_v34, 2 }
 0x266   : > { %v8045_v15 = vunpack.c.l.bf16 %v8252_v4  ;;  %v3144_v12 = vrot.slane %v3056_v32, 2 }
 0x267   : > { %v3346_v1 = vadd.f32 %v3268_v63, %v3003_v61  ;;  %7217 = vmatmul.msk.f32.gmra.mxu2 %vm475_vm1, %v2334_v3  ;;  %v2928_v54 = vpop.f32.mrf.mxu3  ;;  %v2803_v14 = vsel %vm391_vm2, %v2801_v0, %v2802_v6  ;;  %v2679_v61 = vunpack.c.l.bf16 %v7267_v58 }
 0x268   : > { %7349 = vmatmul.msk.f32.gmra.mxu0 %vm475_vm1, %v3141_v11 }
 0x269   : > { %v9630_v48 = vadd.f32 %v3578_v50, %v3346_v1  ;;  %v3147_v32 = vrot.slane %v2679_v61, 2 }
 0x26a   : > { %v3584_v38 = vpop.f32.mrf.mxu1  ;;  %v2489_v49 = vpop.f32.mrf.mxu2 }
 0x26b   : > { %v2565_v63 = vadd.f32 %v2489_v49, %v9179_v57 }
 0x26c   : > { %7300 = vmatmul.msk.f32.gmra.mxu3 %vm475_vm1, %v2800_v2  ;;  %v9653_v2 = vld [vmem:[%s8383_s10 + $0xcc] sm:$0xff]  }
 0x26d   : > { %7383 = vmatmul.msk.f32.gmra.mxu1 %vm475_vm1, %v3428_v40  ;;  %v3004_v50 = vadd.f32 %v2928_v54, %v2565_v63  ;;  %v3274_v17 = vpop.f32.mrf.mxu0  ;;  %v2804_v54 = vrot.slane %v2679_v61, 1  ;;  %v3146_v40 = vsel %vm885_vm3, %v3144_v12, %v3145_v44  ;;  %v2680_v36 = vunpack.c.l.bf16 %v9653_v2  ;;  %v7270_v12 = vld [vmem:[%s8383_s10 + $0xd4] sm:$0x1] }
 0x26e   : > { %v8046_v63 = vunpack.c.h.bf16 %v8252_v4  ;;  %v3148_v61 = vsel %vm885_vm3, %v3145_v44, %v3147_v32 }
 0x26f   : > { %v3347_v53 = vadd.f32 %v3271_v35, %v3004_v50  ;;  %7218 = vmatmul.msk.f32.gmra.mxu2 %vm475_vm1, %v2335_v8  ;;  %v2931_v57 = vpop.f32.mrf.mxu3  ;;  %v2805_v50 = vsel %vm391_vm2, %v2802_v6, %v2804_v54  ;;  %v2682_v54 = vunpack.c.l.bf16 %v7270_v12 }
 0x270   : > { %7350 = vmatmul.msk.f32.gmra.mxu0 %vm475_vm1, %v3143_v62 }
 0x271   : > { %v9645_v13 = vadd.f32 %v3581_v24, %v3347_v53  ;;  %v7187_v24 = vld [vmem:[%s8383_s10 + $0xcc] sm:$0xff]   ;;  %v2809_v32 = vrot.slane %v2682_v54, 1 }
 0x272   : > { %v3587_v3 = vpop.f32.mrf.mxu1  ;;  %v2492_v11 = vpop.f32.mrf.mxu2  ;;  %v7320_v53 = vld [vmem:[%s8383_s10 + $0xcc] sm:$0xe] }
 0x273   : > { %v2566_v35 = vadd.f32 %v2492_v11, %v9196_v9  ;;  %v7620_v9 = vld [vmem:[%s10925_s3 + $0xa] sm:$0x3]  ;;  %v3057_v11 = vunpack.c.l.bf16 %v7320_v53 }
 0x274   : > { %7301 = vmatmul.msk.f32.gmra.mxu3 %vm475_vm1, %v2803_v14  ;;  %v5342_v8 = vunpack.c.l.bf16 %v7620_v9 }
 0x275   : > { %7384 = vmatmul.msk.f32.gmra.mxu1 %vm475_vm1, %v8045_v15  ;;  %v3005_v5 = vadd.f32 %v2931_v57, %v2566_v35  ;;  %v3277_v1 = vpop.f32.mrf.mxu0  ;;  %v3399_v35 = vld [vmem:[%s9252_s6 + $0xb4] sm:$0xff]   ;;  %v3149_v44 = vrot.slane %v3057_v11, 2 }
 0x276   : > { %7621 = vmatpush.msk.msra.mxu2 %vm540_vm0, %v5342_v8  ;;  %v3432_v11 = vunpack.c.h.bf16 %v3399_v35 }
 0x277   : > { %v3348_v27 = vadd.f32 %v3274_v17, %v3005_v5  ;;  %7219 = vmatmul.msk.f32.gmra.mxu2 %vm475_vm1, %v7981_v21  ;;  %v2934_v49 = vpop.f32.mrf.mxu3  ;;  %v2681_v17 = vunpack.c.h.bf16 %v7187_v24  ;;  %v7686_v21 = vld [vmem:[%s10925_s3 + $0xc] sm:$0x3] }
 0x278   : > { %7351 = vmatmul.msk.f32.gmra.mxu0 %vm475_vm1, %v3146_v40  ;;  %v5622_v57 = vunpack.c.l.bf16 %v7686_v21  ;;  %v3431_v40 = vunpack.c.l.bf16 %v3399_v35 }
 0x279   : > { %v9662_v0 = vadd.f32 %v3584_v38, %v3348_v27  ;;  %v2806_v38 = vrot.slane %v2680_v36, 1  ;;  %v2807_v15 = vrot.slane %v2681_v17, 1  ;;  %v3150_v36 = vrot.slane %v2681_v17, 2 }
 0x27a   : > { %v3590_v62 = vpop.f32.mrf.mxu1  ;;  %v2495_v58 = vpop.f32.mrf.mxu2  ;;  %7687 = vmatpush.msk.msra.mxu3 %vm540_vm0, %v5622_v57  ;;  %v4118_v57 = vld [vmem:[%s9252_s6] sm:$0xe] }
 0x27b   : > { %v2567_v4 = vadd.f32 %v2495_v58, %v9219_v45  ;;  %v3151_v53 = vsel %vm885_vm3, %v3149_v44, %v3150_v36  ;;  %v4134_v12 = vunpack.c.l.bf16 %v4118_v57 }
 0x27c   : > { %7302 = vmatmul.msk.f32.gmra.mxu3 %vm475_vm1, %v2805_v50  ;;  %v2338_v50 = vunpack.c.l.bf16 %v7187_v24  ;;  %v9699_v24 = vld [vmem:[%s9252_s6 + $0xc] sm:$0xff]  }
 0x27d   : > { %7385 = vmatmul.msk.f32.gmra.mxu1 %vm475_vm1, %v8046_v63  ;;  %v3006_v6 = vadd.f32 %v2934_v49, %v2567_v4  ;;  %v3280_v14 = vpop.f32.mrf.mxu0  ;;  %v2808_v49 = vsel %vm391_vm2, %v2806_v38, %v2807_v15  ;;  %v4166_v35 = vrot.slane %v4134_v12, 2 }
 0x27f   : > { %v3349_v5 = vadd.f32 %v3277_v1, %v3006_v6  ;;  %7220 = vmatmul.msk.f32.gmra.mxu2 %vm475_vm1, %v9628_v34  ;;  %v2937_v45 = vpop.f32.mrf.mxu3  ;;  %v7768_v1 = vld [vmem:[%s10925_s3 + $0xe] sm:$0x3]  ;;  %v8048_v6 = vld [vmem:[%s9252_s6] sm:$0xff]  }
 0x280   : > { %7352 = vmatmul.msk.f32.gmra.mxu0 %vm475_vm1, %v3148_v61  ;;  %v6093_v63 = vunpack.c.l.bf16 %v7768_v1  ;;  %v2810_v61 = vsel %vm391_vm2, %v2807_v15, %v2809_v32  ;;  %v8050_v1 = vunpack.c.h.bf16 %v8048_v6  ;;  %v2339_v15 = vunpack.c.h.bf16 %v9653_v2 }
 0x281   : > { %v9680_v27 = vadd.f32 %v3587_v3, %v3349_v5  ;;  %v7818_v3 = vld [vmem:[%s10925_s3 + $0x10] sm:$0x3] }
 0x282   : > { %v3593_v9 = vpop.f32.mrf.mxu1  ;;  %v2498_v34 = vpop.f32.mrf.mxu2  ;;  %v6436_v17 = vunpack.c.l.bf16 %v7818_v3  ;;  %7769 = vmatpush.msk.msra.mxu0 %vm540_vm0, %v6093_v63  ;;  %v8049_v63 = vunpack.c.l.bf16 %v8048_v6  ;;  %v3824_v57 = vrot.slane %v8050_v1, 1 }
 0x283   : > { %v2568_v8 = vadd.f32 %v2498_v34, %v9244_v37  ;;  %v9696_v37 = vld [vmem:[%s9252_s6 + $0xc] sm:$0xff]  }
 0x284   : > { %7303 = vmatmul.msk.f32.gmra.mxu3 %vm475_vm1, %v2808_v49  ;;  %7819 = vmatpush.msk.msra.mxu1 %vm540_vm0, %v6436_v17  ;;  %v4821_v49 = vunpack.c.l.bf16 %v9699_v24  ;;  %v10948_v44 = vunpack.c.h.bf16 %v9696_v37  ;;  %v9718_v17 = vld [vmem:[%s9252_s6 + $0x14] sm:$0x1] }
 0x285   : > { %7386 = vmatmul.msk.f32.gmra.mxu1 %vm475_vm1, %v3431_v40  ;;  %v3007_v21 = vadd.f32 %v2937_v45, %v2568_v8  ;;  %v3283_v58 = vpop.f32.mrf.mxu0  ;;  %v3152_v40 = vrot.slane %v2682_v54, 2 }
 0x286   : > { %v4917_v3 = vrot.slane %v4821_v49, 1  ;;  %v4918_v32 = vrot.slane %v10948_v44, 1  ;;  %v9860_v44 = vld [vmem:[%s9252_s6 + $0x3c] sm:$0xff]  }
 0x287   : > { %v3350_v4 = vadd.f32 %v3280_v14, %v3007_v21  ;;  %7221 = vmatmul.msk.f32.gmra.mxu2 %vm475_vm1, %v2338_v50  ;;  %v2940_v38 = vpop.f32.mrf.mxu3  ;;  %v3153_v50 = vsel %vm885_vm3, %v3150_v36, %v3152_v40  ;;  %v3681_v21 = vld [vmem:[%s9252_s6 + $0x8] sm:$0x1] }
 0x288   : > { %7353 = vmatmul.msk.f32.gmra.mxu0 %vm475_vm1, %v3151_v53  ;;  %v3823_v53 = vrot.slane %v8049_v63, 1  ;;  %v4919_v6 = vsel %vm391_vm2, %v4917_v3, %v4918_v32  ;;  %v3729_v12 = vunpack.c.l.bf16 %v3681_v21  ;;  %v8260_v63 = vld [vmem:[%s9252_s6 + $0x18] sm:$0xff]   ;;  %v3682_v21 = vld [vmem:[%s9252_s6 + $0xc] sm:$0xff]  }
 0x289   : > { %v9706_v5 = vadd.f32 %v3590_v62, %v3350_v4  ;;  %v4167_v62 = vrot.slane %v8050_v1, 2 }
 0x28a   : > { %v3596_v45 = vpop.f32.mrf.mxu1  ;;  %v2501_v14 = vpop.f32.mrf.mxu2  ;;  %v3825_v40 = vsel %vm391_vm2, %v3823_v53, %v3824_v57  ;;  %v4169_v49 = vrot.slane %v3729_v12, 2 }
 0x28b   : > { %v2569_v34 = vadd.f32 %v2501_v14, %v9268_v22  ;;  %v4168_v36 = vsel %vm885_vm3, %v4166_v35, %v4167_v62 }
 0x28c   : > { %7304 = vmatmul.msk.f32.gmra.mxu3 %vm475_vm1, %v2810_v61  ;;  %v10946_v61 = vunpack.c.l.bf16 %v9718_v17 }
 0x28d   : > { %7387 = vmatmul.msk.f32.gmra.mxu1 %vm475_vm1, %v3432_v11  ;;  %v3008_v54 = vadd.f32 %v2940_v38, %v2569_v34  ;;  %v3286_v8 = vpop.f32.mrf.mxu0  ;;  %v4119_v34 = vld [vmem:[%s9252_s6 + $0xc] sm:$0xe] }
 0x28e   : > { %v4135_v3 = vunpack.c.l.bf16 %v4119_v34 }
 0x28f   : > { %v3351_v22 = vadd.f32 %v3283_v58, %v3008_v54  ;;  %7222 = vmatmul.msk.f32.gmra.mxu2 %vm475_vm1, %v2339_v15  ;;  %v2943_v2 = vpop.f32.mrf.mxu3  ;;  %v4920_v15 = vrot.slane %v10946_v61, 1  ;;  %v3826_v54 = vrot.slane %v3729_v12, 1  ;;  %v3731_v12 = vunpack.c.h.bf16 %v9699_v24 }
 0x290   : > { %7354 = vmatmul.msk.f32.gmra.mxu0 %vm475_vm1, %v3153_v50  ;;  %v4170_v50 = vsel %vm885_vm3, %v4167_v62, %v4169_v49 }
 0x291   : > { %v9723_v4 = vadd.f32 %v3593_v9, %v3351_v22  ;;  %v4494_v9 = vunpack.c.l.bf16 %v9696_v37  ;;  %v4921_v53 = vsel %vm391_vm2, %v4918_v32, %v4920_v15  ;;  %v3827_v62 = vsel %vm391_vm2, %v3824_v57, %v3826_v54  ;;  %v3684_v15 = vld [vmem:[%s9252_s6 + $0x14] sm:$0x1] }
 0x292   : > { %v3599_v38 = vpop.f32.mrf.mxu1  ;;  %v2504_v58 = vpop.f32.mrf.mxu2 }
 0x293   : > { %v2570_v11 = vadd.f32 %v2504_v58, %v9281_v7 }
 0x294   : > { %7424 = vmatmul.msk.f32.vlgmr.msrb.gmra.mxu3 %vm475_vm1, %v4168_v36  ;;  %v8081_v36 = vunpack.c.l.bf16 %v8260_v63 }
 0x295   : > { %7572 = vmatmul.msk.f32.vlgmr.msrb.gmra.mxu1 %vm475_vm1, %v4919_v6  ;;  %v3009_v14 = vadd.f32 %v2943_v2, %v2570_v11  ;;  %v3289_v1 = vpop.f32.mrf.mxu0  ;;  %v9744_v6 = vunpack.c.h.bf16 %v8260_v63  ;;  %v4171_v11 = vrot.slane %v4135_v3, 2 }
 0x297   : > { %v3352_v35 = vadd.f32 %v3286_v8, %v3009_v14  ;;  %7390 = vmatmul.msk.f32.vlgmr.msrb.gmra.mxu2 %vm475_vm1, %v3825_v40  ;;  %v2946_v7 = vpop.f32.mrf.mxu3  ;;  %v4495_v40 = vunpack.c.h.bf16 %v3682_v21  ;;  %v4922_v14 = vrot.slane %v8081_v36, 1  ;;  %v9752_v34 = vrot.slane %v9744_v6, 1 }
 0x298   : > { %7490 = vmatmul.msk.f32.vlgmr.msrb.gmra.mxu0 %vm475_vm1, %v4494_v9  ;;  %v4172_v9 = vrot.slane %v3731_v12, 2 }
 0x299   : > { %v9740_v22 = vadd.f32 %v3596_v45, %v3352_v35  ;;  %v3730_v45 = vunpack.c.l.bf16 %v3682_v21  ;;  %v3829_v35 = vrot.slane %v3731_v12, 1  ;;  %v4924_v3 = vsel %vm391_vm2, %v4922_v14, %v9752_v34 }
 0x29a   : > { %v3602_v2 = vpop.f32.mrf.mxu1  ;;  %v2507_v8 = vpop.f32.mrf.mxu2 }
 0x29b   : > { %v2571_v58 = vadd.f32 %v2507_v8, %v9295_v25  ;;  %v9755_v25 = vld [vmem:[%s9252_s6 + $0x20] sm:$0x1]  ;;  %v3828_v63 = vrot.slane %v3730_v45, 1  ;;  %v4120_v45 = vld [vmem:[%s9252_s6 + $0x18] sm:$0xe] }
 0x29c   : > { %7425 = vmatmul.msk.f32.gmra.mxu3 %vm475_vm1, %v4170_v50 }
 0x29d   : > { %7573 = vmatmul.msk.f32.gmra.mxu1 %vm475_vm1, %v4921_v53  ;;  %v3010_v32 = vadd.f32 %v2946_v7, %v2571_v58  ;;  %v3292_v49 = vpop.f32.mrf.mxu0  ;;  %v4173_v7 = vsel %vm885_vm3, %v4171_v11, %v4172_v9  ;;  %v3732_v53 = vunpack.c.l.bf16 %v3684_v15  ;;  %v3830_v58 = vsel %vm391_vm2, %v3828_v63, %v3829_v35 }
 0x29e   : > { %v4136_v63 = vunpack.c.l.bf16 %v4120_v45 }
 0x29f   : > { %v3353_v24 = vadd.f32 %v3289_v1, %v3010_v32  ;;  %7391 = vmatmul.msk.f32.gmra.mxu2 %vm475_vm1, %v3827_v62  ;;  %v2949_v57 = vpop.f32.mrf.mxu3  ;;  %v10944_v1 = vunpack.c.l.bf16 %v9755_v25  ;;  %v9777_v32 = vld [vmem:[%s9252_s6 + $0x24] sm:$0xff]  }
 0x2a0   : > { %7491 = vmatmul.msk.f32.gmra.mxu0 %vm475_vm1, %v4495_v40  ;;  %v9774_v40 = vld [vmem:[%s9252_s6 + $0x24] sm:$0xff]  }
 0x2a1   : > { %v9760_v54 = vadd.f32 %v3599_v38, %v3353_v24  ;;  %v4174_v38 = vrot.slane %v3732_v53, 2  ;;  %v4925_v11 = vrot.slane %v10944_v1, 1  ;;  %v3831_v24 = vrot.slane %v3732_v53, 1 }
 0x2a2   : > { %v3605_v50 = vpop.f32.mrf.mxu1  ;;  %v2510_v21 = vpop.f32.mrf.mxu2 }
 0x2a3   : > { %v2572_v8 = vadd.f32 %v2510_v21, %v9306_v43  ;;  %v4175_v15 = vsel %vm885_vm3, %v4172_v9, %v4174_v38  ;;  %v4926_v21 = vsel %vm391_vm2, %v9752_v34, %v4925_v11  ;;  %v3832_v9 = vsel %vm391_vm2, %v3829_v35, %v3831_v24  ;;  %v3687_v35 = vld [vmem:[%s9252_s6 + $0x20] sm:$0x1] }
 0x2a4   : > { %7426 = vmatmul.msk.f32.gmra.mxu3 %vm475_vm1, %v4173_v7 }
 0x2a5   : > { %7574 = vmatmul.msk.f32.gmra.mxu1 %vm475_vm1, %v4924_v3  ;;  %v3011_v12 = vadd.f32 %v2949_v57, %v2572_v8  ;;  %v3295_v62 = vpop.f32.mrf.mxu0  ;;  %v4827_v8 = vunpack.c.l.bf16 %v9777_v32 }
 0x2a7   : > { %v3354_v14 = vadd.f32 %v3292_v49, %v3011_v12  ;;  %7392 = vmatmul.msk.f32.gmra.mxu2 %vm475_vm1, %v3830_v58  ;;  %v2952_v43 = vpop.f32.mrf.mxu3  ;;  %v10945_v49 = vunpack.c.h.bf16 %v9774_v40  ;;  %v9793_v12 = vrot.slane %v9744_v6, 2  ;;  %v4927_v45 = vrot.slane %v4827_v8, 1 }
 0x2a8   : > { %7492 = vmatmul.msk.f32.gmra.mxu0 %vm475_vm1, %v8081_v36  ;;  %v4176_v36 = vrot.slane %v4136_v63, 2  ;;  %v3735_v8 = vunpack.c.l.bf16 %v3687_v35 }
 0x2a9   : > { %v9782_v57 = vadd.f32 %v3602_v2, %v3354_v14  ;;  %v4928_v11 = vrot.slane %v10945_v49, 1  ;;  %v9798_v14 = vld [vmem:[%s9252_s6 + $0x2c] sm:$0x1] }
 0x2aa   : > { %v3608_v7 = vpop.f32.mrf.mxu1  ;;  %v2513_v58 = vpop.f32.mrf.mxu2  ;;  %v4178_v24 = vsel %vm885_vm3, %v4176_v36, %v9793_v12 }
 0x2ab   : > { %v2573_v53 = vadd.f32 %v2513_v58, %v9321_v51  ;;  %v4929_v63 = vsel %vm391_vm2, %v4927_v45, %v4928_v11 }
 0x2ac   : > { %7427 = vmatmul.msk.f32.gmra.mxu3 %vm475_vm1, %v4175_v15 }
 0x2ad   : > { %7575 = vmatmul.msk.f32.gmra.mxu1 %vm475_vm1, %v4926_v21  ;;  %v3012_v2 = vadd.f32 %v2952_v43, %v2573_v53  ;;  %v3298_v38 = vpop.f32.mrf.mxu0  ;;  %v10947_v21 = vunpack.c.l.bf16 %v9798_v14  ;;  %v4179_v53 = vrot.slane %v3735_v8, 2 }
 0x2af   : > { %v3355_v1 = vadd.f32 %v3295_v62, %v3012_v2  ;;  %7393 = vmatmul.msk.f32.gmra.mxu2 %vm475_vm1, %v3832_v9  ;;  %v2955_v51 = vpop.f32.mrf.mxu3  ;;  %v4121_v9 = vld [vmem:[%s9252_s6 + $0x24] sm:$0xe]  ;;  %v4930_v36 = vrot.slane %v10947_v21, 1  ;;  %v8261_v2 = vld [vmem:[%s9252_s6 + $0x30] sm:$0xff]  }
 0x2b0   : > { %7493 = vmatmul.msk.f32.gmra.mxu0 %vm475_vm1, %v9744_v6  ;;  %v4498_v6 = vunpack.c.l.bf16 %v9774_v40  ;;  %v8085_v61 = vunpack.c.l.bf16 %v8261_v2  ;;  %v9826_v21 = vunpack.c.h.bf16 %v8261_v2 }
 0x2b1   : > { %v9804_v43 = vadd.f32 %v3605_v50, %v3355_v1 }
 0x2b2   : > { %v3611_v15 = vpop.f32.mrf.mxu1  ;;  %v2516_v62 = vpop.f32.mrf.mxu2  ;;  %v4932_v2 = vrot.slane %v8085_v61, 1 }
 0x2b3   : > { %v2574_v58 = vadd.f32 %v2516_v62, %v9335_v23  ;;  %v3836_v23 = vrot.slane %v3735_v8, 1  ;;  %v4137_v62 = vunpack.c.l.bf16 %v4121_v9  ;;  %v3737_v8 = vunpack.c.h.bf16 %v9777_v32 }
 0x2b4   : > { %7428 = vmatmul.msk.f32.gmra.mxu3 %vm475_vm1, %v4178_v24  ;;  %v4180_v24 = vsel %vm885_vm3, %v9793_v12, %v4179_v53 }
 0x2b5   : > { %7576 = vmatmul.msk.f32.gmra.mxu1 %vm475_vm1, %v4929_v63  ;;  %v3013_v50 = vadd.f32 %v2955_v51, %v2574_v58  ;;  %v3301_v1 = vpop.f32.mrf.mxu0  ;;  %v3688_v51 = vld [vmem:[%s9252_s6 + $0x24] sm:$0xff]   ;;  %v4931_v58 = vsel %vm391_vm2, %v4928_v11, %v4930_v36  ;;  %v3837_v53 = vsel %vm391_vm2, %v9752_v34, %v3836_v23  ;;  %v4182_v36 = vrot.slane %v3737_v8, 2  ;;  %v3690_v23 = vld [vmem:[%s9252_s6 + $0x2c] sm:$0x1] }
 0x2b7   : > { %v3356_v45 = vadd.f32 %v3298_v38, %v3013_v50  ;;  %7394 = vmatmul.msk.f32.gmra.mxu2 %vm475_vm1, %v4924_v3  ;;  %v2958_v35 = vpop.f32.mrf.mxu3  ;;  %v4499_v50 = vunpack.c.h.bf16 %v3688_v51 }
 0x2b8   : > { %7494 = vmatmul.msk.f32.gmra.mxu0 %vm475_vm1, %v4498_v6  ;;  %v4181_v6 = vrot.slane %v4137_v62, 2 }
 0x2b9   : > { %v9822_v49 = vadd.f32 %v3608_v7, %v3356_v45  ;;  %v3736_v7 = vunpack.c.l.bf16 %v3688_v51  ;;  %v9835_v45 = vrot.slane %v9826_v21, 1 }
 0x2ba   : > { %v3614_v63 = vpop.f32.mrf.mxu1  ;;  %v2519_v38 = vpop.f32.mrf.mxu2 }
 0x2bb   : > { %v2575_v3 = vadd.f32 %v2519_v38, %v9349_v30  ;;  %v9838_v30 = vld [vmem:[%s9252_s6 + $0x38] sm:$0x1]  ;;  %v3839_v38 = vrot.slane %v3737_v8, 1 }
 0x2bc   : > { %7429 = vmatmul.msk.f32.gmra.mxu3 %vm475_vm1, %v4180_v24  ;;  %11043 = vst [vmem:[#allocation18_spill] sm:$0xff] %v9838_v30  ;;  %v3838_v24 = vrot.slane %v3736_v7, 1 }
 0x2bd   : > { %7577 = vmatmul.msk.f32.gmra.mxu1 %vm475_vm1, %v4931_v58  ;;  %v3014_v11 = vadd.f32 %v2958_v35, %v2575_v3  ;;  %v3304_v9 = vpop.f32.mrf.mxu0  ;;  %v4183_v35 = vsel %vm885_vm3, %v4181_v6, %v4182_v36  ;;  %v4934_v58 = vsel %vm391_vm2, %v4932_v2, %v9835_v45  ;;  %v9857_v2 = vld [vmem:[%s9252_s6 + $0x3c] sm:$0xff]  }
 0x2be   : > { %v3840_v8 = vsel %vm391_vm2, %v3838_v24, %v3839_v38 }
 0x2bf   : > { %v3357_v32 = vadd.f32 %v3301_v1, %v3014_v11  ;;  %7395 = vmatmul.msk.f32.gmra.mxu2 %vm475_vm1, %v3837_v53  ;;  %v2961_v34 = vpop.f32.mrf.mxu3  ;;  %v10949_v1 = vunpack.c.l.bf16 %v9838_v30  ;;  %v3738_v53 = vunpack.c.l.bf16 %v3690_v23  ;;  %v4122_v11 = vld [vmem:[%s9252_s6 + $0x30] sm:$0xe]  ;;  %v4833_v30 = vunpack.c.l.bf16 %v9860_v44 }
 0x2c0   : > { %7495 = vmatmul.msk.f32.gmra.mxu0 %vm475_vm1, %v4499_v50 }
 0x2c1   : > { %v9843_v62 = vadd.f32 %v3611_v15, %v3357_v32  ;;  %v4184_v15 = vrot.slane %v3738_v53, 2  ;;  %v4935_v32 = vrot.slane %v10949_v1, 1  ;;  %v3841_v24 = vrot.slane %v3738_v53, 1 }
 0x2c2   : > { %v3617_v51 = vpop.f32.mrf.mxu1  ;;  %v2522_v3 = vpop.f32.mrf.mxu2 }
 0x2c3   : > { %v2576_v7 = vadd.f32 %v2522_v3, %v9360_v28  ;;  %v4138_v3 = vunpack.c.l.bf16 %v4122_v11  ;;  %v4936_v1 = vsel %vm391_vm2, %v9835_v45, %v4935_v32  ;;  %v4937_v11 = vrot.slane %v4833_v30, 1 }
 0x2c4   : > { %7430 = vmatmul.msk.f32.gmra.mxu3 %vm475_vm1, %v4183_v35  ;;  %v4185_v35 = vsel %vm885_vm3, %v4182_v36, %v4184_v15  ;;  %v3842_v36 = vsel %vm391_vm2, %v3839_v38, %v3841_v24  ;;  %v3693_v38 = vld [vmem:[%s9252_s6 + $0x38] sm:$0x1] }
 0x2c5   : > { %7578 = vmatmul.msk.f32.gmra.mxu1 %vm475_vm1, %v4934_v58  ;;  %v3015_v50 = vadd.f32 %v2961_v34, %v2576_v7  ;;  %v3307_v6 = vpop.f32.mrf.mxu0 }
 0x2c7   : > { %v3358_v23 = vadd.f32 %v3304_v9, %v3015_v50  ;;  %7396 = vmatmul.msk.f32.gmra.mxu2 %vm475_vm1, %v3840_v8  ;;  %v2964_v28 = vpop.f32.mrf.mxu3  ;;  %v10951_v9 = vunpack.c.h.bf16 %v9857_v2  ;;  %v9876_v50 = vrot.slane %v9826_v21, 2 }
 0x2c8   : > { %7496 = vmatmul.msk.f32.gmra.mxu0 %vm475_vm1, %v8085_v61  ;;  %v4186_v61 = vrot.slane %v4138_v3, 2  ;;  %v3741_v3 = vunpack.c.l.bf16 %v3693_v38 }
 0x2c9   : > { %v9865_v34 = vadd.f32 %v3614_v63, %v3358_v23  ;;  %v4938_v32 = vrot.slane %v10951_v9, 1  ;;  %v9881_v23 = vld [vmem:[%s9252_s6 + $0x44] sm:$0x1] }
 0x2ca   : > { %v3620_v7 = vpop.f32.mrf.mxu1  ;;  %v2525_v8 = vpop.f32.mrf.mxu2  ;;  %11045 = vst [vmem:[#allocation2_spill] sm:$0xff] %v9881_v23  ;;  %v4188_v30 = vsel %vm885_vm3, %v4186_v61, %v9876_v50 }
 0x2cb   : > { %11044 = vst [vmem:[#allocation16_spill] sm:$0xff] %v9865_v34  ;;  %v2577_v53 = vadd.f32 %v2525_v8, %v9375_v18  ;;  %v4939_v24 = vsel %vm391_vm2, %v4937_v11, %v4938_v32 }
 0x2cc   : > { %7431 = vmatmul.msk.f32.gmra.mxu3 %vm475_vm1, %v4185_v35  ;;  %v10953_v35 = vunpack.c.l.bf16 %v9881_v23 }
 0x2cd   : > { %7579 = vmatmul.msk.f32.gmra.mxu1 %vm475_vm1, %v4936_v1  ;;  %v3016_v63 = vadd.f32 %v2964_v28, %v2577_v53  ;;  %v3310_v15 = vpop.f32.mrf.mxu0  ;;  %v4189_v53 = vrot.slane %v3741_v3, 2 }
 0x2ce   : > { %v4940_v61 = vrot.slane %v10953_v35, 1 }
 0x2cf   : > { %v3359_v34 = vadd.f32 %v3307_v6, %v3016_v63  ;;  %7397 = vmatmul.msk.f32.gmra.mxu2 %vm475_vm1, %v3842_v36  ;;  %v2967_v18 = vpop.f32.mrf.mxu3  ;;  %v4123_v36 = vld [vmem:[%s9252_s6 + $0x3c] sm:$0xe]  ;;  %v8262_v63 = vld [vmem:[%s9252_s6 + $0x48] sm:$0xff]  }
 0x2d0   : > { %7497 = vmatmul.msk.f32.gmra.mxu0 %vm475_vm1, %v9826_v21  ;;  %v4502_v21 = vunpack.c.l.bf16 %v9857_v2  ;;  %v8089_v23 = vunpack.c.l.bf16 %v8262_v63  ;;  %v9909_v35 = vunpack.c.h.bf16 %v8262_v63 }
 0x2d1   : > { %v9887_v1 = vadd.f32 %v3617_v51, %v3359_v34 }
 0x2d2   : > { %v3623_v28 = vpop.f32.mrf.mxu1  ;;  %v2528_v6 = vpop.f32.mrf.mxu2  ;;  %v4942_v63 = vrot.slane %v8089_v23, 1 }
 0x2d3   : > { %v2578_v8 = vadd.f32 %v2528_v6, %v9389_v29  ;;  %v3846_v29 = vrot.slane %v3741_v3, 1  ;;  %v4139_v6 = vunpack.c.l.bf16 %v4123_v36  ;;  %v3743_v3 = vunpack.c.h.bf16 %v9860_v44 }
 0x2d4   : > { %7432 = vmatmul.msk.f32.gmra.mxu3 %vm475_vm1, %v4188_v30  ;;  %v4190_v30 = vsel %vm885_vm3, %v9876_v50, %v4189_v53 }
 0x2d5   : > { %7580 = vmatmul.msk.f32.gmra.mxu1 %vm475_vm1, %v4939_v24  ;;  %v3017_v51 = vadd.f32 %v2967_v18, %v2578_v8  ;;  %v3313_v34 = vpop.f32.mrf.mxu0  ;;  %v3694_v18 = vld [vmem:[%s9252_s6 + $0x3c] sm:$0xff]   ;;  %v4941_v8 = vsel %vm391_vm2, %v4938_v32, %v4940_v61  ;;  %v3847_v53 = vsel %vm391_vm2, %v9835_v45, %v3846_v29  ;;  %v4192_v61 = vrot.slane %v3743_v3, 2  ;;  %v3696_v29 = vld [vmem:[%s9252_s6 + $0x44] sm:$0x1] }
 0x2d7   : > { %v3360_v11 = vadd.f32 %v3310_v15, %v3017_v51  ;;  %7398 = vmatmul.msk.f32.gmra.mxu2 %vm475_vm1, %v4934_v58  ;;  %v2970_v38 = vpop.f32.mrf.mxu3  ;;  %v4503_v51 = vunpack.c.h.bf16 %v3694_v18 }
 0x2d8   : > { %7498 = vmatmul.msk.f32.gmra.mxu0 %vm475_vm1, %v4502_v21  ;;  %v4191_v21 = vrot.slane %v4139_v6, 2 }
 0x2d9   : > { %v9905_v9 = vadd.f32 %v3620_v7, %v3360_v11  ;;  %v3742_v7 = vunpack.c.l.bf16 %v3694_v18  ;;  %v9918_v11 = vrot.slane %v9909_v35, 1 }
 0x2da   : > { %v3626_v24 = vpop.f32.mrf.mxu1  ;;  %v2531_v15 = vpop.f32.mrf.mxu2 }
 0x2db   : > { %v2579_v58 = vadd.f32 %v2531_v15, %v9403_v33  ;;  %v9921_v33 = vld [vmem:[%s9252_s6 + $0x50] sm:$0x1]  ;;  %v3849_v15 = vrot.slane %v3743_v3, 1 }
 0x2dc   : > { %7433 = vmatmul.msk.f32.gmra.mxu3 %vm475_vm1, %v4190_v30  ;;  %11046 = vst [vmem:[#allocation3_spill] sm:$0xff] %v9921_v33  ;;  %v3848_v30 = vrot.slane %v3742_v7, 1 }
 0x2dd   : > { %7581 = vmatmul.msk.f32.gmra.mxu1 %vm475_vm1, %v4941_v8  ;;  %v3018_v32 = vadd.f32 %v2970_v38, %v2579_v58  ;;  %v3316_v36 = vpop.f32.mrf.mxu0  ;;  %v4193_v38 = vsel %vm885_vm3, %v4191_v21, %v4192_v61  ;;  %v4944_v8 = vsel %vm391_vm2, %v4942_v63, %v9918_v11  ;;  %v9940_v63 = vld [vmem:[%s9252_s6 + $0x54] sm:$0xff]  }
 0x2de   : > { %v3850_v3 = vsel %vm391_vm2, %v3848_v30, %v3849_v15 }
 0x2df   : > { %v3361_v44 = vadd.f32 %v3313_v34, %v3018_v32  ;;  %7399 = vmatmul.msk.f32.gmra.mxu2 %vm475_vm1, %v3847_v53  ;;  %v2973_v45 = vpop.f32.mrf.mxu3  ;;  %v10954_v34 = vunpack.c.l.bf16 %v9921_v33  ;;  %v3744_v53 = vunpack.c.l.bf16 %v3696_v29  ;;  %v4124_v32 = vld [vmem:[%s9252_s6 + $0x48] sm:$0xe] }
 0x2e0   : > { %7499 = vmatmul.msk.f32.gmra.mxu0 %vm475_vm1, %v4503_v51 }
 0x2e1   : > { %v9926_v6 = vadd.f32 %v3623_v28, %v3361_v44  ;;  %v4194_v28 = vrot.slane %v3744_v53, 2  ;;  %v4945_v44 = vrot.slane %v10954_v34, 1  ;;  %v3851_v30 = vrot.slane %v3744_v53, 1 }
 0x2e2   : > { %v3629_v18 = vpop.f32.mrf.mxu1  ;;  %v2534_v58 = vpop.f32.mrf.mxu2 }
 0x2e3   : > { %11047 = vst [vmem:[#allocation21_spill] sm:$0xff] %v9926_v6  ;;  %v2580_v7 = vadd.f32 %v2534_v58, %v9414_v52  ;;  %v9943_v6 = vld [vmem:[%s9252_s6 + $0x54] sm:$0xff]   ;;  %v4140_v58 = vunpack.c.l.bf16 %v4124_v32  ;;  %v4946_v34 = vsel %vm391_vm2, %v9918_v11, %v4945_v44 }
 0x2e4   : > { %7434 = vmatmul.msk.f32.gmra.mxu3 %vm475_vm1, %v4193_v38  ;;  %v4195_v38 = vsel %vm885_vm3, %v4192_v61, %v4194_v28  ;;  %v4839_v33 = vunpack.c.l.bf16 %v9943_v6  ;;  %v3852_v61 = vsel %vm391_vm2, %v3849_v15, %v3851_v30  ;;  %v3699_v15 = vld [vmem:[%s9252_s6 + $0x50] sm:$0x1] }
 0x2e5   : > { %7582 = vmatmul.msk.f32.gmra.mxu1 %vm475_vm1, %v4944_v8  ;;  %v3019_v51 = vadd.f32 %v2973_v45, %v2580_v7  ;;  %v3319_v21 = vpop.f32.mrf.mxu0 }
 0x2e6   : > { %v4947_v32 = vrot.slane %v4839_v33, 1 }
 0x2e7   : > { %v3362_v29 = vadd.f32 %v3316_v36, %v3019_v51  ;;  %7400 = vmatmul.msk.f32.gmra.mxu2 %vm475_vm1, %v3850_v3  ;;  %v2976_v52 = vpop.f32.mrf.mxu3  ;;  %v10956_v36 = vunpack.c.h.bf16 %v9940_v63  ;;  %v9959_v51 = vrot.slane %v9909_v35, 2 }
 0x2e8   : > { %7500 = vmatmul.msk.f32.gmra.mxu0 %vm475_vm1, %v8089_v23  ;;  %v4196_v23 = vrot.slane %v4140_v58, 2  ;;  %v3747_v58 = vunpack.c.l.bf16 %v3699_v15 }
 0x2e9   : > { %v9948_v45 = vadd.f32 %v3626_v24, %v3362_v29  ;;  %v4948_v44 = vrot.slane %v10956_v36, 1  ;;  %v9964_v29 = vld [vmem:[%s9252_s6 + $0x5c] sm:$0x1] }
 0x2ea   : > { %v3632_v7 = vpop.f32.mrf.mxu1  ;;  %v2537_v3 = vpop.f32.mrf.mxu2  ;;  %11049 = vst [vmem:[#allocation24_spill] sm:$0xff] %v9964_v29  ;;  %v4198_v33 = vsel %vm885_vm3, %v4196_v23, %v9959_v51 }
 0x2eb   : > { %11048 = vst [vmem:[#allocation19_spill] sm:$0xff] %v9948_v45  ;;  %v2581_v53 = vadd.f32 %v2537_v3, %v9429_v26  ;;  %v4949_v30 = vsel %vm391_vm2, %v4947_v32, %v4948_v44 }
 0x2ec   : > { %7435 = vmatmul.msk.f32.gmra.mxu3 %vm475_vm1, %v4195_v38  ;;  %v10958_v38 = vunpack.c.l.bf16 %v9964_v29 }
 0x2ed   : > { %7583 = vmatmul.msk.f32.gmra.mxu1 %vm475_vm1, %v4946_v34  ;;  %v3020_v24 = vadd.f32 %v2976_v52, %v2581_v53  ;;  %v3322_v28 = vpop.f32.mrf.mxu0  ;;  %v4199_v53 = vrot.slane %v3747_v58, 2 }
 0x2ee   : > { %v4950_v23 = vrot.slane %v10958_v38, 1 }
 0x2ef   : > { %v3363_v45 = vadd.f32 %v3319_v21, %v3020_v24  ;;  %7401 = vmatmul.msk.f32.gmra.mxu2 %vm475_vm1, %v3852_v61  ;;  %v2979_v26 = vpop.f32.mrf.mxu3  ;;  %v4125_v61 = vld [vmem:[%s9252_s6 + $0x54] sm:$0xe]  ;;  %v8263_v24 = vld [vmem:[%s9252_s6 + $0x60] sm:$0xff]  }
 0x2f0   : > { %7501 = vmatmul.msk.f32.gmra.mxu0 %vm475_vm1, %v9909_v35  ;;  %v4506_v35 = vunpack.c.l.bf16 %v9940_v63  ;;  %v8093_v29 = vunpack.c.l.bf16 %v8263_v24  ;;  %v9992_v38 = vunpack.c.h.bf16 %v8263_v24 }
 0x2f1   : > { %v9970_v34 = vadd.f32 %v3629_v18, %v3363_v45 }
 0x2f2   : > { %v3635_v52 = vpop.f32.mrf.mxu1  ;;  %v2540_v21 = vpop.f32.mrf.mxu2  ;;  %v4952_v24 = vrot.slane %v8093_v29, 1 }
 0x2f3   : > { %v2582_v3 = vadd.f32 %v2540_v21, %v9443_v10  ;;  %v3856_v10 = vrot.slane %v3747_v58, 1  ;;  %v4141_v21 = vunpack.c.l.bf16 %v4125_v61  ;;  %v3749_v58 = vunpack.c.h.bf16 %v9943_v6 }
 0x2f4   : > { %7436 = vmatmul.msk.f32.gmra.mxu3 %vm475_vm1, %v4198_v33  ;;  %v4200_v33 = vsel %vm885_vm3, %v9959_v51, %v4199_v53 }
 0x2f5   : > { %7584 = vmatmul.msk.f32.gmra.mxu1 %vm475_vm1, %v4949_v30  ;;  %v3021_v18 = vadd.f32 %v2979_v26, %v2582_v3  ;;  %v3325_v45 = vpop.f32.mrf.mxu0  ;;  %v3700_v26 = vld [vmem:[%s9252_s6 + $0x54] sm:$0xff]   ;;  %v4951_v3 = vsel %vm391_vm2, %v4948_v44, %v4950_v23  ;;  %v3857_v53 = vsel %vm391_vm2, %v9918_v11, %v3856_v10  ;;  %v4202_v23 = vrot.slane %v3749_v58, 2  ;;  %v3702_v10 = vld [vmem:[%s9252_s6 + $0x5c] sm:$0x1] }
 0x2f7   : > { %v3364_v32 = vadd.f32 %v3322_v28, %v3021_v18  ;;  %7402 = vmatmul.msk.f32.gmra.mxu2 %vm475_vm1, %v4944_v8  ;;  %v2982_v15 = vpop.f32.mrf.mxu3  ;;  %v4507_v18 = vunpack.c.h.bf16 %v3700_v26 }
 0x2f8   : > { %7502 = vmatmul.msk.f32.gmra.mxu0 %vm475_vm1, %v4506_v35  ;;  %v4201_v35 = vrot.slane %v4141_v21, 2 }
 0x2f9   : > { %v9988_v36 = vadd.f32 %v3632_v7, %v3364_v32  ;;  %v3748_v7 = vunpack.c.l.bf16 %v3700_v26  ;;  %v10001_v32 = vrot.slane %v9992_v38, 1 }
 0x2fa   : > { %v3638_v30 = vpop.f32.mrf.mxu1  ;;  %v2543_v28 = vpop.f32.mrf.mxu2 }
 0x2fb   : > { %v2583_v8 = vadd.f32 %v2543_v28, %v9457_v60  ;;  %v10004_v60 = vld [vmem:[%s9252_s6 + $0x68] sm:$0x1]  ;;  %v3859_v28 = vrot.slane %v3749_v58, 1 }
 0x2fc   : > { %7437 = vmatmul.msk.f32.gmra.mxu3 %vm475_vm1, %v4200_v33  ;;  %11050 = vst [vmem:[#allocation22_spill] sm:$0xff] %v10004_v60  ;;  %v3858_v33 = vrot.slane %v3748_v7, 1 }
 0x2fd   : > { %7585 = vmatmul.msk.f32.gmra.mxu1 %vm475_vm1, %v4951_v3  ;;  %v3022_v44 = vadd.f32 %v2982_v15, %v2583_v8  ;;  %v3328_v61 = vpop.f32.mrf.mxu0  ;;  %v4203_v15 = vsel %vm885_vm3, %v4201_v35, %v4202_v23  ;;  %v4954_v3 = vsel %vm391_vm2, %v4952_v24, %v10001_v32  ;;  %v10023_v24 = vld [vmem:[%s9252_s6 + $0x6c] sm:$0xff]  }
 0x2fe   : > { %v3860_v58 = vsel %vm391_vm2, %v3858_v33, %v3859_v28 }
 0x2ff   : > { %v3365_v6 = vadd.f32 %v3325_v45, %v3022_v44  ;;  %7403 = vmatmul.msk.f32.gmra.mxu2 %vm475_vm1, %v3857_v53  ;;  %v2985_v11 = vpop.f32.mrf.mxu3  ;;  %v10959_v45 = vunpack.c.l.bf16 %v10004_v60  ;;  %v3750_v53 = vunpack.c.l.bf16 %v3702_v10  ;;  %v4126_v44 = vld [vmem:[%s9252_s6 + $0x60] sm:$0xe] }
 0x300   : > { %7503 = vmatmul.msk.f32.gmra.mxu0 %vm475_vm1, %v4507_v18 }
 0x301   : > { %v10009_v21 = vadd.f32 %v3635_v52, %v3365_v6  ;;  %v4204_v52 = vrot.slane %v3750_v53, 2  ;;  %v4955_v6 = vrot.slane %v10959_v45, 1  ;;  %v3861_v33 = vrot.slane %v3750_v53, 1 }
 0x302   : > { %v3641_v26 = vpop.f32.mrf.mxu1  ;;  %v2546_v8 = vpop.f32.mrf.mxu2 }
 0x303   : > { %11051 = vst [vmem:[#allocation4_spill] sm:$0xff] %v10009_v21  ;;  %v2584_v7 = vadd.f32 %v2546_v8, %v9468_v39  ;;  %v10026_v21 = vld [vmem:[%s9252_s6 + $0x6c] sm:$0xff]   ;;  %v4142_v8 = vunpack.c.l.bf16 %v4126_v44  ;;  %v4956_v45 = vsel %vm391_vm2, %v10001_v32, %v4955_v6 }
 0x304   : > { %7438 = vmatmul.msk.f32.gmra.mxu3 %vm475_vm1, %v4203_v15  ;;  %v4205_v15 = vsel %vm885_vm3, %v4202_v23, %v4204_v52  ;;  %v4845_v60 = vunpack.c.l.bf16 %v10026_v21  ;;  %v3862_v23 = vsel %vm391_vm2, %v3859_v28, %v3861_v33  ;;  %v3705_v28 = vld [vmem:[%s9252_s6 + $0x68] sm:$0x1] }
 0x305   : > { %7586 = vmatmul.msk.f32.gmra.mxu1 %vm475_vm1, %v4954_v3  ;;  %v3023_v18 = vadd.f32 %v2985_v11, %v2584_v7  ;;  %v3331_v35 = vpop.f32.mrf.mxu0 }
 0x306   : > { %v4957_v44 = vrot.slane %v4845_v60, 1 }
 0x307   : > { %v3366_v10 = vadd.f32 %v3328_v61, %v3023_v18  ;;  %7404 = vmatmul.msk.f32.gmra.mxu2 %vm475_vm1, %v3860_v58  ;;  %v2988_v39 = vpop.f32.mrf.mxu3  ;;  %v10961_v61 = vunpack.c.h.bf16 %v10023_v24  ;;  %v10042_v18 = vrot.slane %v9992_v38, 2 }
 0x308   : > { %7504 = vmatmul.msk.f32.gmra.mxu0 %vm475_vm1, %v8093_v29  ;;  %v4206_v29 = vrot.slane %v4142_v8, 2  ;;  %v3753_v8 = vunpack.c.l.bf16 %v3705_v28 }
 0x309   : > { %v10031_v11 = vadd.f32 %v3638_v30, %v3366_v10  ;;  %v4958_v6 = vrot.slane %v10961_v61, 1  ;;  %v10047_v10 = vld [vmem:[%s9252_s6 + $0x74] sm:$0x1] }
 0x30a   : > { %v3644_v7 = vpop.f32.mrf.mxu1  ;;  %v2549_v58 = vpop.f32.mrf.mxu2  ;;  %11053 = vst [vmem:[#allocation6_spill] sm:$0xff] %v10047_v10  ;;  %v4208_v60 = vsel %vm885_vm3, %v4206_v29, %v10042_v18 }
 0x30b   : > { %11052 = vst [vmem:[#allocation5_spill] sm:$0xff] %v10031_v11  ;;  %v2585_v53 = vadd.f32 %v2549_v58, %v9483_v59  ;;  %v4959_v33 = vsel %vm391_vm2, %v4957_v44, %v4958_v6 }
 0x30c   : > { %7439 = vmatmul.msk.f32.gmra.mxu3 %vm475_vm1, %v4205_v15  ;;  %v10963_v15 = vunpack.c.l.bf16 %v10047_v10 }
 0x30d   : > { %7587 = vmatmul.msk.f32.gmra.mxu1 %vm475_vm1, %v4956_v45  ;;  %v3024_v30 = vadd.f32 %v2988_v39, %v2585_v53  ;;  %v3334_v52 = vpop.f32.mrf.mxu0  ;;  %v4209_v53 = vrot.slane %v3753_v8, 2 }
 0x30e   : > { %v4960_v29 = vrot.slane %v10963_v15, 1 }
 0x30f   : > { %v3367_v11 = vadd.f32 %v3331_v35, %v3024_v30  ;;  %7405 = vmatmul.msk.f32.gmra.mxu2 %vm475_vm1, %v3862_v23  ;;  %v2991_v59 = vpop.f32.mrf.mxu3  ;;  %v4127_v23 = vld [vmem:[%s9252_s6 + $0x6c] sm:$0xe]  ;;  %v8264_v30 = vld [vmem:[%s9252_s6 + $0x78] sm:$0xff]  }
 0x310   : > { %7505 = vmatmul.msk.f32.gmra.mxu0 %vm475_vm1, %v9992_v38  ;;  %v4510_v38 = vunpack.c.l.bf16 %v10023_v24  ;;  %v8097_v10 = vunpack.c.l.bf16 %v8264_v30  ;;  %v10075_v15 = vunpack.c.h.bf16 %v8264_v30 }
 0x311   : > { %v10053_v45 = vadd.f32 %v3641_v26, %v3367_v11 }
 0x312   : > { %v5084_v39 = vpop.f32.mrf.mxu1  ;;  %v2552_v35 = vpop.f32.mrf.mxu2  ;;  %v4962_v30 = vrot.slane %v8097_v10, 1 }
 0x313   : > { %v2586_v58 = vadd.f32 %v2552_v35, %v9497_v16  ;;  %v3866_v16 = vrot.slane %v3753_v8, 1  ;;  %v4143_v35 = vunpack.c.l.bf16 %v4127_v23  ;;  %v3755_v8 = vunpack.c.h.bf16 %v10026_v21 }
 0x314   : > { %7440 = vmatmul.msk.f32.gmra.mxu3 %vm475_vm1, %v4208_v60  ;;  %v4210_v60 = vsel %vm885_vm3, %v10042_v18, %v4209_v53 }
 0x315   : > { %7588 = vmatmul.msk.f32.gmra.mxu1 %vm475_vm1, %v4959_v33  ;;  %v3025_v26 = vadd.f32 %v2991_v59, %v2586_v58  ;;  %v4645_v11 = vpop.f32.mrf.mxu0  ;;  %v3706_v59 = vld [vmem:[%s9252_s6 + $0x6c] sm:$0xff]   ;;  %v4961_v58 = vsel %vm391_vm2, %v4958_v6, %v4960_v29  ;;  %v3867_v53 = vsel %vm391_vm2, %v10001_v32, %v3866_v16  ;;  %v4212_v29 = vrot.slane %v3755_v8, 2  ;;  %v3708_v16 = vld [vmem:[%s9252_s6 + $0x74] sm:$0x1] }
 0x317   : > { %v3368_v44 = vadd.f32 %v3334_v52, %v3025_v26  ;;  %7406 = vmatmul.msk.f32.gmra.mxu2 %vm475_vm1, %v4954_v3  ;;  %v4333_v28 = vpop.f32.mrf.mxu3  ;;  %v4511_v26 = vunpack.c.h.bf16 %v3706_v59 }
 0x318   : > { %7506 = vmatmul.msk.f32.gmra.mxu0 %vm475_vm1, %v4510_v38  ;;  %v4211_v38 = vrot.slane %v4143_v35, 2 }
 0x319   : > { %v10071_v61 = vadd.f32 %v3644_v7, %v3368_v44  ;;  %v3754_v7 = vunpack.c.l.bf16 %v3706_v59  ;;  %v10084_v44 = vrot.slane %v10075_v15, 1 }
 0x31a   : > { %v5087_v33 = vpop.f32.mrf.mxu1  ;;  %v3990_v52 = vpop.f32.mrf.mxu2 }
 0x31b   : > { %v4086_v3 = vadd.f32 %v3990_v52, %v9511_v19  ;;  %v10087_v19 = vld [vmem:[%s9252_s6 + $0x80] sm:$0x1]  ;;  %v3869_v52 = vrot.slane %v3755_v8, 1 }
 0x31c   : > { %7441 = vmatmul.msk.f32.gmra.mxu3 %vm475_vm1, %v4210_v60  ;;  %11054 = vst [vmem:[#allocation7_spill] sm:$0xff] %v10087_v19  ;;  %v3868_v60 = vrot.slane %v3754_v7, 1 }
 0x31d   : > { %7589 = vmatmul.msk.f32.gmra.mxu1 %vm475_vm1, %v4961_v58  ;;  %v4429_v6 = vadd.f32 %v4333_v28, %v4086_v3  ;;  %v4648_v23 = vpop.f32.mrf.mxu0  ;;  %v4213_v28 = vsel %vm885_vm3, %v4211_v38, %v4212_v29  ;;  %v4964_v58 = vsel %vm391_vm2, %v4962_v30, %v10084_v44  ;;  %v10106_v30 = vld [vmem:[%s9252_s6 + $0x84] sm:$0xff]  }
 0x31e   : > { %v3870_v8 = vsel %vm391_vm2, %v3868_v60, %v3869_v52 }
 0x31f   : > { %v4741_v21 = vadd.f32 %v4645_v11, %v4429_v6  ;;  %7407 = vmatmul.msk.f32.gmra.mxu2 %vm475_vm1, %v3867_v53  ;;  %v4336_v32 = vpop.f32.mrf.mxu3  ;;  %v10964_v11 = vunpack.c.l.bf16 %v10087_v19  ;;  %v3756_v53 = vunpack.c.l.bf16 %v3708_v16  ;;  %v4128_v6 = vld [vmem:[%s9252_s6 + $0x78] sm:$0xe] }
 0x320   : > { %7507 = vmatmul.msk.f32.gmra.mxu0 %vm475_vm1, %v4511_v26 }
 0x321   : > { %v10092_v35 = vadd.f32 %v5084_v39, %v4741_v21  ;;  %v4214_v39 = vrot.slane %v3756_v53, 2  ;;  %v4965_v21 = vrot.slane %v10964_v11, 1  ;;  %v3871_v60 = vrot.slane %v3756_v53, 1 }
 0x322   : > { %v5090_v59 = vpop.f32.mrf.mxu1  ;;  %v3993_v3 = vpop.f32.mrf.mxu2 }
 0x323   : > { %11055 = vst [vmem:[#allocation8_spill] sm:$0xff] %v10092_v35  ;;  %v4087_v7 = vadd.f32 %v3993_v3, %v9522_v55  ;;  %v10109_v35 = vld [vmem:[%s9252_s6 + $0x84] sm:$0xff]   ;;  %v4144_v3 = vunpack.c.l.bf16 %v4128_v6  ;;  %v4966_v11 = vsel %vm391_vm2, %v10084_v44, %v4965_v21 }
 0x324   : > { %7442 = vmatmul.msk.f32.gmra.mxu3 %vm475_vm1, %v4213_v28  ;;  %v4215_v28 = vsel %vm885_vm3, %v4212_v29, %v4214_v39  ;;  %v4851_v19 = vunpack.c.l.bf16 %v10109_v35  ;;  %v3872_v29 = vsel %vm391_vm2, %v3869_v52, %v3871_v60  ;;  %v3711_v52 = vld [vmem:[%s9252_s6 + $0x80] sm:$0x1] }
 0x325   : > { %7590 = vmatmul.msk.f32.gmra.mxu1 %vm475_vm1, %v4964_v58  ;;  %v4430_v26 = vadd.f32 %v4336_v32, %v4087_v7  ;;  %v4651_v38 = vpop.f32.mrf.mxu0 }
 0x326   : > { %v4967_v6 = vrot.slane %v4851_v19, 1 }
 0x327   : > { %v4742_v16 = vadd.f32 %v4648_v23, %v4430_v26  ;;  %7408 = vmatmul.msk.f32.gmra.mxu2 %vm475_vm1, %v3870_v8  ;;  %v4339_v55 = vpop.f32.mrf.mxu3  ;;  %v10966_v23 = vunpack.c.h.bf16 %v10106_v30  ;;  %v10125_v26 = vrot.slane %v10075_v15, 2 }
 0x328   : > { %7508 = vmatmul.msk.f32.gmra.mxu0 %vm475_vm1, %v8097_v10  ;;  %v4216_v10 = vrot.slane %v4144_v3, 2  ;;  %v3759_v3 = vunpack.c.l.bf16 %v3711_v52 }
 0x329   : > { %v10114_v32 = vadd.f32 %v5087_v33, %v4742_v16  ;;  %v4968_v21 = vrot.slane %v10966_v23, 1  ;;  %v10130_v16 = vld [vmem:[%s9252_s6 + $0x8c] sm:$0x1] }
 0x32a   : > { %v5093_v7 = vpop.f32.mrf.mxu1  ;;  %v3996_v8 = vpop.f32.mrf.mxu2  ;;  %11057 = vst [vmem:[#allocation10_spill] sm:$0xff] %v10130_v16  ;;  %v4218_v19 = vsel %vm885_vm3, %v4216_v10, %v10125_v26 }
 0x32b   : > { %11056 = vst [vmem:[#allocation9_spill] sm:$0xff] %v10114_v32  ;;  %v4088_v53 = vadd.f32 %v3996_v8, %v9537_v46  ;;  %v4969_v60 = vsel %vm391_vm2, %v4967_v6, %v4968_v21 }
 0x32c   : > { %7443 = vmatmul.msk.f32.gmra.mxu3 %vm475_vm1, %v4215_v28  ;;  %v10968_v28 = vunpack.c.l.bf16 %v10130_v16 }
 0x32d   : > { %7591 = vmatmul.msk.f32.gmra.mxu1 %vm475_vm1, %v4966_v11  ;;  %v4431_v33 = vadd.f32 %v4339_v55, %v4088_v53  ;;  %v4654_v39 = vpop.f32.mrf.mxu0  ;;  %v4219_v53 = vrot.slane %v3759_v3, 2 }
 0x32e   : > { %v4970_v10 = vrot.slane %v10968_v28, 1 }
 0x32f   : > { %v4743_v32 = vadd.f32 %v4651_v38, %v4431_v33  ;;  %7409 = vmatmul.msk.f32.gmra.mxu2 %vm475_vm1, %v3872_v29  ;;  %v4342_v46 = vpop.f32.mrf.mxu3  ;;  %v4129_v29 = vld [vmem:[%s9252_s6 + $0x84] sm:$0xe]  ;;  %v8265_v33 = vld [vmem:[%s9252_s6 + $0x90] sm:$0xff]  }
 0x330   : > { %7509 = vmatmul.msk.f32.gmra.mxu0 %vm475_vm1, %v10075_v15  ;;  %v4514_v15 = vunpack.c.l.bf16 %v10106_v30  ;;  %v8101_v16 = vunpack.c.l.bf16 %v8265_v33  ;;  %v10158_v28 = vunpack.c.h.bf16 %v8265_v33 }
 0x331   : > { %v10136_v11 = vadd.f32 %v5090_v59, %v4743_v32 }
 0x332   : > { %v5096_v55 = vpop.f32.mrf.mxu1  ;;  %v3999_v38 = vpop.f32.mrf.mxu2  ;;  %v4972_v33 = vrot.slane %v8101_v16, 1 }
 0x333   : > { %v4089_v8 = vadd.f32 %v3999_v38, %v9551_v42  ;;  %v3876_v42 = vrot.slane %v3759_v3, 1  ;;  %v4145_v38 = vunpack.c.l.bf16 %v4129_v29  ;;  %v3761_v3 = vunpack.c.h.bf16 %v10109_v35 }
 0x334   : > { %7444 = vmatmul.msk.f32.gmra.mxu3 %vm475_vm1, %v4218_v19  ;;  %v4220_v19 = vsel %vm885_vm3, %v10125_v26, %v4219_v53 }
 0x335   : > { %7592 = vmatmul.msk.f32.gmra.mxu1 %vm475_vm1, %v4969_v60  ;;  %v4432_v59 = vadd.f32 %v4342_v46, %v4089_v8  ;;  %v4657_v32 = vpop.f32.mrf.mxu0  ;;  %v3712_v46 = vld [vmem:[%s9252_s6 + $0x84] sm:$0xff]   ;;  %v4971_v8 = vsel %vm391_vm2, %v4968_v21, %v4970_v10  ;;  %v3877_v53 = vsel %vm391_vm2, %v10084_v44, %v3876_v42  ;;  %v4222_v10 = vrot.slane %v3761_v3, 2  ;;  %v3714_v42 = vld [vmem:[%s9252_s6 + $0x8c] sm:$0x1] }
 0x337   : > { %v4744_v6 = vadd.f32 %v4654_v39, %v4432_v59  ;;  %7410 = vmatmul.msk.f32.gmra.mxu2 %vm475_vm1, %v4964_v58  ;;  %v4345_v52 = vpop.f32.mrf.mxu3  ;;  %v4515_v59 = vunpack.c.h.bf16 %v3712_v46 }
 0x338   : > { %7510 = vmatmul.msk.f32.gmra.mxu0 %vm475_vm1, %v4514_v15  ;;  %v4221_v15 = vrot.slane %v4145_v38, 2 }
 0x339   : > { %v10154_v23 = vadd.f32 %v5093_v7, %v4744_v6  ;;  %v3760_v7 = vunpack.c.l.bf16 %v3712_v46  ;;  %v10167_v6 = vrot.slane %v10158_v28, 1 }
 0x33a   : > { %v5099_v60 = vpop.f32.mrf.mxu1  ;;  %v4002_v39 = vpop.f32.mrf.mxu2 }
 0x33b   : > { %v4090_v58 = vadd.f32 %v4002_v39, %v9565_v31  ;;  %v10170_v31 = vld [vmem:[%s9252_s6 + $0x98] sm:$0x1]  ;;  %v3879_v39 = vrot.slane %v3761_v3, 1 }
 0x33c   : > { %7445 = vmatmul.msk.f32.gmra.mxu3 %vm475_vm1, %v4220_v19  ;;  %11058 = vst [vmem:[#allocation11_spill] sm:$0xff] %v10170_v31  ;;  %v3878_v19 = vrot.slane %v3760_v7, 1 }
 0x33d   : > { %7593 = vmatmul.msk.f32.gmra.mxu1 %vm475_vm1, %v4971_v8  ;;  %v4433_v21 = vadd.f32 %v4345_v52, %v4090_v58  ;;  %v4660_v29 = vpop.f32.mrf.mxu0  ;;  %v4223_v52 = vsel %vm885_vm3, %v4221_v15, %v4222_v10  ;;  %v4974_v8 = vsel %vm391_vm2, %v4972_v33, %v10167_v6  ;;  %v10189_v33 = vld [vmem:[%s9252_s6 + $0x9c] sm:$0xff]  }
 0x33e   : > { %v3880_v3 = vsel %vm391_vm2, %v3878_v19, %v3879_v39 }
 0x33f   : > { %v4745_v35 = vadd.f32 %v4657_v32, %v4433_v21  ;;  %7411 = vmatmul.msk.f32.gmra.mxu2 %vm475_vm1, %v3877_v53  ;;  %v4348_v44 = vpop.f32.mrf.mxu3  ;;  %v10969_v32 = vunpack.c.l.bf16 %v10170_v31  ;;  %v3762_v53 = vunpack.c.l.bf16 %v3714_v42  ;;  %v4130_v21 = vld [vmem:[%s9252_s6 + $0x90] sm:$0xe] }
 0x340   : > { %7511 = vmatmul.msk.f32.gmra.mxu0 %vm475_vm1, %v4515_v59 }
 0x341   : > { %v10175_v38 = vadd.f32 %v5096_v55, %v4745_v35  ;;  %v4224_v55 = vrot.slane %v3762_v53, 2  ;;  %v4975_v35 = vrot.slane %v10969_v32, 1  ;;  %v3881_v19 = vrot.slane %v3762_v53, 1 }
 0x342   : > { %v5102_v46 = vpop.f32.mrf.mxu1  ;;  %v4005_v58 = vpop.f32.mrf.mxu2 }
 0x343   : > { %11059 = vst [vmem:[#allocation12_spill] sm:$0xff] %v10175_v38  ;;  %v4091_v7 = vadd.f32 %v4005_v58, %v9576_v56  ;;  %v10192_v38 = vld [vmem:[%s9252_s6 + $0x9c] sm:$0xff]   ;;  %v4146_v58 = vunpack.c.l.bf16 %v4130_v21  ;;  %v4976_v32 = vsel %vm391_vm2, %v10167_v6, %v4975_v35 }
 0x344   : > { %7446 = vmatmul.msk.f32.gmra.mxu3 %vm475_vm1, %v4223_v52  ;;  %v4225_v52 = vsel %vm885_vm3, %v4222_v10, %v4224_v55  ;;  %v4857_v31 = vunpack.c.l.bf16 %v10192_v38  ;;  %v3882_v10 = vsel %vm391_vm2, %v3879_v39, %v3881_v19  ;;  %v3717_v39 = vld [vmem:[%s9252_s6 + $0x98] sm:$0x1] }
 0x345   : > { %7594 = vmatmul.msk.f32.gmra.mxu1 %vm475_vm1, %v4974_v8  ;;  %v4434_v59 = vadd.f32 %v4348_v44, %v4091_v7  ;;  %v4663_v15 = vpop.f32.mrf.mxu0 }
 0x346   : > { %v4977_v21 = vrot.slane %v4857_v31, 1 }
 0x347   : > { %v4746_v42 = vadd.f32 %v4660_v29, %v4434_v59  ;;  %7412 = vmatmul.msk.f32.gmra.mxu2 %vm475_vm1, %v3880_v3  ;;  %v4351_v56 = vpop.f32.mrf.mxu3  ;;  %v10971_v29 = vunpack.c.h.bf16 %v10189_v33  ;;  %v10208_v59 = vrot.slane %v10158_v28, 2 }
 0x348   : > { %7512 = vmatmul.msk.f32.gmra.mxu0 %vm475_vm1, %v8101_v16  ;;  %v4226_v16 = vrot.slane %v4146_v58, 2  ;;  %v3765_v58 = vunpack.c.l.bf16 %v3717_v39 }
 0x349   : > { %v10197_v44 = vadd.f32 %v5099_v60, %v4746_v42  ;;  %v4978_v35 = vrot.slane %v10971_v29, 1  ;;  %v10213_v42 = vld [vmem:[%s9252_s6 + $0xa4] sm:$0x1] }
 0x34a   : > { %v5105_v7 = vpop.f32.mrf.mxu1  ;;  %v4008_v3 = vpop.f32.mrf.mxu2  ;;  %11061 = vst [vmem:[#allocation14_spill] sm:$0xff] %v10213_v42  ;;  %v4228_v31 = vsel %vm885_vm3, %v4226_v16, %v10208_v59 }
 0x34b   : > { %11060 = vst [vmem:[#allocation13_spill] sm:$0xff] %v10197_v44  ;;  %v4092_v53 = vadd.f32 %v4008_v3, %v9591_v47  ;;  %v4979_v19 = vsel %vm391_vm2, %v4977_v21, %v4978_v35 }
 0x34c   : > { %7447 = vmatmul.msk.f32.gmra.mxu3 %vm475_vm1, %v4225_v52  ;;  %v10973_v52 = vunpack.c.l.bf16 %v10213_v42 }
 0x34d   : > { %7595 = vmatmul.msk.f32.gmra.mxu1 %vm475_vm1, %v4976_v32  ;;  %v4435_v60 = vadd.f32 %v4351_v56, %v4092_v53  ;;  %v4666_v55 = vpop.f32.mrf.mxu0  ;;  %v4229_v53 = vrot.slane %v3765_v58, 2 }
 0x34e   : > { %v4980_v16 = vrot.slane %v10973_v52, 1 }
 0x34f   : > { %v4747_v44 = vadd.f32 %v4663_v15, %v4435_v60  ;;  %7413 = vmatmul.msk.f32.gmra.mxu2 %vm475_vm1, %v3882_v10  ;;  %v4354_v47 = vpop.f32.mrf.mxu3  ;;  %v4131_v10 = vld [vmem:[%s9252_s6 + $0x9c] sm:$0xe]  ;;  %v8266_v60 = vld [vmem:[%s9252_s6 + $0xa8] sm:$0xff]  }
 0x350   : > { %7513 = vmatmul.msk.f32.gmra.mxu0 %vm475_vm1, %v10158_v28  ;;  %v4518_v28 = vunpack.c.l.bf16 %v10189_v33  ;;  %v8105_v42 = vunpack.c.l.bf16 %v8266_v60  ;;  %v10241_v52 = vunpack.c.h.bf16 %v8266_v60 }
 0x351   : > { %v10219_v32 = vadd.f32 %v5102_v46, %v4747_v44 }
 0x352   : > { %v5108_v56 = vpop.f32.mrf.mxu1  ;;  %v4011_v15 = vpop.f32.mrf.mxu2  ;;  %v4982_v60 = vrot.slane %v8105_v42, 1 }
 0x353   : > { %v4093_v3 = vadd.f32 %v4011_v15, %v9605_v20  ;;  %v3886_v20 = vrot.slane %v3765_v58, 1  ;;  %v4147_v15 = vunpack.c.l.bf16 %v4131_v10  ;;  %v3767_v58 = vunpack.c.h.bf16 %v10192_v38 }
 0x354   : > { %7448 = vmatmul.msk.f32.gmra.mxu3 %vm475_vm1, %v4228_v31  ;;  %v4230_v31 = vsel %vm885_vm3, %v10208_v59, %v4229_v53 }
 0x355   : > { %7596 = vmatmul.msk.f32.gmra.mxu1 %vm475_vm1, %v4979_v19  ;;  %v4436_v46 = vadd.f32 %v4354_v47, %v4093_v3  ;;  %v4669_v44 = vpop.f32.mrf.mxu0  ;;  %v3718_v47 = vld [vmem:[%s9252_s6 + $0x9c] sm:$0xff]   ;;  %v4981_v3 = vsel %vm391_vm2, %v4978_v35, %v4980_v16  ;;  %v3887_v53 = vsel %vm391_vm2, %v10167_v6, %v3886_v20  ;;  %v4232_v16 = vrot.slane %v3767_v58, 2  ;;  %v3720_v20 = vld [vmem:[%s9252_s6 + $0xa4] sm:$0x1] }
 0x357   : > { %v4748_v21 = vadd.f32 %v4666_v55, %v4436_v46  ;;  %7414 = vmatmul.msk.f32.gmra.mxu2 %vm475_vm1, %v4974_v8  ;;  %v4357_v39 = vpop.f32.mrf.mxu3  ;;  %v4519_v46 = vunpack.c.h.bf16 %v3718_v47 }
 0x358   : > { %7514 = vmatmul.msk.f32.gmra.mxu0 %vm475_vm1, %v4518_v28  ;;  %v4231_v28 = vrot.slane %v4147_v15, 2 }
 0x359   : > { %v10237_v29 = vadd.f32 %v5105_v7, %v4748_v21  ;;  %v3766_v7 = vunpack.c.l.bf16 %v3718_v47  ;;  %v10250_v21 = vrot.slane %v10241_v52, 1 }
 0x35a   : > { %v5111_v19 = vpop.f32.mrf.mxu1  ;;  %v4014_v55 = vpop.f32.mrf.mxu2 }
 0x35b   : > { %v4094_v8 = vadd.f32 %v4014_v55, %v9619_v41  ;;  %v10253_v41 = vld [vmem:[%s9252_s6 + $0xb0] sm:$0x1]  ;;  %v3889_v55 = vrot.slane %v3767_v58, 1 }
 0x35c   : > { %7449 = vmatmul.msk.f32.gmra.mxu3 %vm475_vm1, %v4230_v31  ;;  %11062 = vst [vmem:[#allocation15_spill] sm:$0xff] %v10253_v41  ;;  %v3888_v31 = vrot.slane %v3766_v7, 1 }
 0x35d   : > { %7597 = vmatmul.msk.f32.gmra.mxu1 %vm475_vm1, %v4981_v3  ;;  %v4437_v35 = vadd.f32 %v4357_v39, %v4094_v8  ;;  %v4672_v10 = vpop.f32.mrf.mxu0  ;;  %v4233_v39 = vsel %vm885_vm3, %v4231_v28, %v4232_v16  ;;  %v4984_v3 = vsel %vm391_vm2, %v4982_v60, %v10250_v21  ;;  %v10272_v60 = vld [vmem:[%s9252_s6 + $0xb4] sm:$0xff]  }
 0x35e   : > { %v3890_v58 = vsel %vm391_vm2, %v3888_v31, %v3889_v55 }
 0x35f   : > { %v4749_v38 = vadd.f32 %v4669_v44, %v4437_v35  ;;  %7415 = vmatmul.msk.f32.gmra.mxu2 %vm475_vm1, %v3887_v53  ;;  %v4360_v6 = vpop.f32.mrf.mxu3  ;;  %v10974_v44 = vunpack.c.l.bf16 %v10253_v41  ;;  %v3768_v53 = vunpack.c.l.bf16 %v3720_v20  ;;  %v4132_v35 = vld [vmem:[%s9252_s6 + $0xa8] sm:$0xe] }
 0x360   : > { %7515 = vmatmul.msk.f32.gmra.mxu0 %vm475_vm1, %v4519_v46 }
 0x361   : > { %v10258_v15 = vadd.f32 %v5108_v56, %v4749_v38  ;;  %v4234_v56 = vrot.slane %v3768_v53, 2  ;;  %v4985_v38 = vrot.slane %v10974_v44, 1  ;;  %v3891_v31 = vrot.slane %v3768_v53, 1 }
 0x362   : > { %v5114_v47 = vpop.f32.mrf.mxu1  ;;  %v4017_v8 = vpop.f32.mrf.mxu2 }
 0x363   : > { %11063 = vst [vmem:[#allocation17_spill] sm:$0xff] %v10258_v15  ;;  %v4095_v7 = vadd.f32 %v4017_v8, %v9630_v48  ;;  %v10275_v15 = vld [vmem:[%s9252_s6 + $0xb4] sm:$0xff]   ;;  %v4148_v8 = vunpack.c.l.bf16 %v4132_v35  ;;  %v4986_v44 = vsel %vm391_vm2, %v10250_v21, %v4985_v38 }
 0x364   : > { %7450 = vmatmul.msk.f32.gmra.mxu3 %vm475_vm1, %v4233_v39  ;;  %v4235_v39 = vsel %vm885_vm3, %v4232_v16, %v4234_v56  ;;  %v4863_v41 = vunpack.c.l.bf16 %v10275_v15  ;;  %v3892_v16 = vsel %vm391_vm2, %v3889_v55, %v3891_v31  ;;  %v3723_v55 = vld [vmem:[%s9252_s6 + $0xb0] sm:$0x1] }
 0x365   : > { %7598 = vmatmul.msk.f32.gmra.mxu1 %vm475_vm1, %v4984_v3  ;;  %v4438_v46 = vadd.f32 %v4360_v6, %v4095_v7  ;;  %v4675_v28 = vpop.f32.mrf.mxu0 }
 0x366   : > { %v4987_v35 = vrot.slane %v4863_v41, 1 }
 0x367   : > { %v4750_v20 = vadd.f32 %v4672_v10, %v4438_v46  ;;  %7416 = vmatmul.msk.f32.gmra.mxu2 %vm475_vm1, %v3890_v58  ;;  %v4363_v48 = vpop.f32.mrf.mxu3  ;;  %v10976_v10 = vunpack.c.h.bf16 %v10272_v60  ;;  %v10291_v46 = vrot.slane %v10241_v52, 2 }
 0x368   : > { %7516 = vmatmul.msk.f32.gmra.mxu0 %vm475_vm1, %v8105_v42  ;;  %v4236_v42 = vrot.slane %v4148_v8, 2  ;;  %v3771_v8 = vunpack.c.l.bf16 %v3723_v55 }
 0x369   : > { %v10280_v6 = vadd.f32 %v5111_v19, %v4750_v20  ;;  %v4988_v38 = vrot.slane %v10976_v10, 1  ;;  %v10296_v20 = vld [vmem:[%s9252_s6 + $0xbc] sm:$0x1] }
 0x36a   : > { %v5117_v7 = vpop.f32.mrf.mxu1  ;;  %v4020_v58 = vpop.f32.mrf.mxu2  ;;  %11065 = vst [vmem:[#allocation23_spill] sm:$0xff] %v10296_v20  ;;  %v4238_v41 = vsel %vm885_vm3, %v4236_v42, %v10291_v46 }
 0x36b   : > { %11064 = vst [vmem:[#allocation20_spill] sm:$0xff] %v10280_v6  ;;  %v4096_v53 = vadd.f32 %v4020_v58, %v9645_v13  ;;  %v4989_v31 = vsel %vm391_vm2, %v4987_v35, %v4988_v38 }
 0x36c   : > { %7451 = vmatmul.msk.f32.gmra.mxu3 %vm475_vm1, %v4235_v39  ;;  %v10978_v39 = vunpack.c.l.bf16 %v10296_v20 }
 0x36d   : > { %7599 = vmatmul.msk.f32.gmra.mxu1 %vm475_vm1, %v4986_v44  ;;  %v4439_v19 = vadd.f32 %v4363_v48, %v4096_v53  ;;  %v4678_v56 = vpop.f32.mrf.mxu0  ;;  %v4239_v53 = vrot.slane %v3771_v8, 2 }
 0x36e   : > { %v4990_v42 = vrot.slane %v10978_v39, 1 }
 0x36f   : > { %v4751_v6 = vadd.f32 %v4675_v28, %v4439_v19  ;;  %7417 = vmatmul.msk.f32.gmra.mxu2 %vm475_vm1, %v3892_v16  ;;  %v4366_v13 = vpop.f32.mrf.mxu3  ;;  %v4133_v16 = vld [vmem:[%s9252_s6 + $0xb4] sm:$0xe]  ;;  %v8267_v19 = vld [vmem:[%s9252_s6 + $0xc0] sm:$0xff]  }
 0x370   : > { %7517 = vmatmul.msk.f32.gmra.mxu0 %vm475_vm1, %v10241_v52  ;;  %v4522_v52 = vunpack.c.l.bf16 %v10272_v60  ;;  %v8109_v20 = vunpack.c.l.bf16 %v8267_v19  ;;  %v10324_v39 = vunpack.c.h.bf16 %v8267_v19 }
 0x371   : > { %v10302_v44 = vadd.f32 %v5114_v47, %v4751_v6 }
 0x372   : > { %v5120_v48 = vpop.f32.mrf.mxu1  ;;  %v4023_v28 = vpop.f32.mrf.mxu2  ;;  %v4992_v19 = vrot.slane %v8109_v20, 1 }
 0x373   : > { %v4097_v58 = vadd.f32 %v4023_v28, %v9662_v0  ;;  %v3896_v0 = vrot.slane %v3771_v8, 1  ;;  %v4149_v28 = vunpack.c.l.bf16 %v4133_v16  ;;  %v3773_v8 = vunpack.c.h.bf16 %v10275_v15 }
 0x374   : > { %7452 = vmatmul.msk.f32.gmra.mxu3 %vm475_vm1, %v4238_v41  ;;  %v4240_v41 = vsel %vm885_vm3, %v10291_v46, %v4239_v53 }
 0x375   : > { %7600 = vmatmul.msk.f32.gmra.mxu1 %vm475_vm1, %v4989_v31  ;;  %v4440_v47 = vadd.f32 %v4366_v13, %v4097_v58  ;;  %v4681_v6 = vpop.f32.mrf.mxu0  ;;  %v3724_v13 = vld [vmem:[%s9252_s6 + $0xb4] sm:$0xff]   ;;  %v4991_v58 = vsel %vm391_vm2, %v4988_v38, %v4990_v42  ;;  %v3897_v53 = vsel %vm391_vm2, %v10250_v21, %v3896_v0  ;;  %v4242_v42 = vrot.slane %v3773_v8, 2 }
 0x377   : > { %v4752_v35 = vadd.f32 %v4678_v56, %v4440_v47  ;;  %7418 = vmatmul.msk.f32.gmra.mxu2 %vm475_vm1, %v4984_v3  ;;  %v4369_v55 = vpop.f32.mrf.mxu3  ;;  %v4523_v47 = vunpack.c.h.bf16 %v3724_v13 }
 0x378   : > { %7518 = vmatmul.msk.f32.gmra.mxu0 %vm475_vm1, %v4522_v52  ;;  %v4241_v52 = vrot.slane %v4149_v28, 2  ;;  %v3726_v28 = vld [vmem:[%s9252_s6 + $0xbc] sm:$0x1] }
 0x379   : > { %v10320_v10 = vadd.f32 %v5117_v7, %v4752_v35  ;;  %v3772_v7 = vunpack.c.l.bf16 %v3724_v13  ;;  %v4993_v35 = vrot.slane %v10324_v39, 1 }
 0x37a   : > { %v5123_v31 = vpop.f32.mrf.mxu1  ;;  %v4026_v56 = vpop.f32.mrf.mxu2 }
 0x37b   : > { %11066 = vst [vmem:[#allocation25_spill] sm:$0xff] %v10320_v10  ;;  %v4098_v3 = vadd.f32 %v4026_v56, %v9680_v27  ;;  %v10334_v27 = vld [vmem:[%s9252_s6 + $0xc8] sm:$0x1]  ;;  %v3898_v0 = vrot.slane %v3772_v7, 1  ;;  %v4994_v56 = vsel %vm391_vm2, %v4992_v19, %v4993_v35 }
 0x37c   : > { %7453 = vmatmul.msk.f32.gmra.mxu3 %vm475_vm1, %v4240_v41  ;;  %11067 = vst [vmem:[#allocation26_spill] sm:$0xff] %v10334_v27  ;;  %v3899_v41 = vrot.slane %v3773_v8, 1 }
 0x37d   : > { %7601 = vmatmul.msk.f32.gmra.mxu1 %vm475_vm1, %v4991_v58  ;;  %v4441_v38 = vadd.f32 %v4369_v55, %v4098_v3  ;;  %v4684_v16 = vpop.f32.mrf.mxu0  ;;  %v4243_v55 = vsel %vm885_vm3, %v4241_v52, %v4242_v42  ;;  %v10980_v3 = vunpack.c.l.bf16 %v10334_v27  ;;  %v8276_v27 = vld [vmem:[%s9252_s6 + $0x18] sm:$0xff]  }
 0x37e   : > { %v3900_v8 = vsel %vm391_vm2, %v3898_v0, %v3899_v41 }
 0x37f   : > { %v4753_v15 = vadd.f32 %v4681_v6, %v4441_v38  ;;  %7419 = vmatmul.msk.f32.gmra.mxu2 %vm475_vm1, %v3897_v53  ;;  %v4372_v21 = vpop.f32.mrf.mxu3  ;;  %v3774_v53 = vunpack.c.l.bf16 %v3726_v28  ;;  %v7802_v38 = vld [vmem:[%s9252_s6 + $0x18] sm:$0xe]  ;;  %v7604_v28 = vld [vmem:[%s9252_s6 + $0xc] sm:$0xe] }
 0x380   : > { %7519 = vmatmul.msk.f32.gmra.mxu0 %vm475_vm1, %v4523_v47  ;;  %v4995_v47 = vrot.slane %v10980_v3, 1 }
 0x381   : > { %v10339_v13 = vadd.f32 %v5120_v48, %v4753_v15  ;;  %v4244_v52 = vrot.slane %v3774_v53, 2 }
 0x382   : > { %v5126_v58 = vpop.f32.mrf.mxu1  ;;  %v4029_v10 = vpop.f32.mrf.mxu2 }
 0x383   : > { %v4099_v6 = vadd.f32 %v4029_v10, %v9706_v5  ;;  %v3901_v10 = vrot.slane %v3774_v53, 1  ;;  %v4245_v0 = vsel %vm885_vm3, %v4242_v42, %v4244_v52 }
 0x384   : > { %7454 = vmatmul.msk.f32.gmra.mxu3 %vm475_vm1, %v4243_v55  ;;  %v4996_v55 = vsel %vm391_vm2, %v4993_v35, %v4995_v47  ;;  %v8145_v47 = vunpack.c.l.bf16 %v8276_v27 }
 0x385   : > { %7602 = vmatmul.msk.f32.gmra.mxu1 %vm475_vm1, %v4994_v56  ;;  %v4442_v48 = vadd.f32 %v4372_v21, %v4099_v6  ;;  %v4687_v7 = vpop.f32.mrf.mxu0  ;;  %v6322_v56 = vunpack.c.l.bf16 %v7802_v38 }
 0x387   : > { %v4754_v19 = vadd.f32 %v4684_v16, %v4442_v48  ;;  %7420 = vmatmul.msk.f32.gmra.mxu2 %vm475_vm1, %v3900_v8  ;;  %v4375_v5 = vpop.f32.mrf.mxu3  ;;  %v8146_v16 = vunpack.c.h.bf16 %v8276_v27  ;;  %v3902_v8 = vsel %vm391_vm2, %v3899_v41, %v3901_v10  ;;  %v6354_v53 = vrot.slane %v6322_v56, 2  ;;  %v7722_v41 = vld [vmem:[%s9252_s6 + $0x20] sm:$0x1] }
 0x388   : > { %7520 = vmatmul.msk.f32.gmra.mxu0 %vm475_vm1, %v8109_v20  ;;  %v5228_v20 = vunpack.c.l.bf16 %v7604_v28  ;;  %v5917_v27 = vunpack.c.l.bf16 %v7722_v41 }
 0x389   : > { %v10353_v15 = vadd.f32 %v5123_v31, %v4754_v19  ;;  %v6355_v48 = vrot.slane %v8146_v16, 2 }
 0x38a   : > { %v5129_v21 = vpop.f32.mrf.mxu1  ;;  %v4032_v6 = vpop.f32.mrf.mxu2  ;;  %v5260_v38 = vrot.slane %v5228_v20, 2  ;;  %v7803_v20 = vld [vmem:[%s9252_s6 + $0x24] sm:$0xe] }
 0x38b   : > { %v4100_v3 = vadd.f32 %v4032_v6, %v9723_v4  ;;  %v11068_v4 = vunpack.c.h.bf16 %v9696_v37 }
 0x38c   : > { %7455 = vmatmul.msk.f32.gmra.mxu3 %vm475_vm1, %v4245_v0  ;;  %v6012_v0 = vrot.slane %v8146_v16, 1 }
 0x38d   : > { %7603 = vmatmul.msk.f32.gmra.mxu1 %vm475_vm1, %v4996_v55  ;;  %v4443_v31 = vadd.f32 %v4375_v5, %v4100_v3  ;;  %v4690_v42 = vpop.f32.mrf.mxu0  ;;  %v5261_v19 = vrot.slane %v11068_v4, 2  ;;  %v6011_v5 = vrot.slane %v8145_v47, 1  ;;  %v7723_v4 = vld [vmem:[%s9252_s6 + $0x24] sm:$0xff]  }
 0x38f   : > { %v4755_v52 = vadd.f32 %v4687_v7, %v4443_v31  ;;  %7421 = vmatmul.msk.f32.gmra.mxu2 %vm475_vm1, %v3902_v8  ;;  %v4378_v35 = vpop.f32.mrf.mxu3  ;;  %v6356_v7 = vsel %vm885_vm3, %v6354_v53, %v6355_v48  ;;  %v5262_v37 = vsel %vm885_vm3, %v5260_v38, %v5261_v19  ;;  %v6013_v6 = vsel %vm391_vm2, %v6011_v5, %v6012_v0 }
 0x390   : > { %7521 = vmatmul.msk.f32.gmra.mxu0 %vm475_vm1, %v10324_v39  ;;  %v6357_v8 = vrot.slane %v5917_v27, 2  ;;  %v6014_v38 = vrot.slane %v5917_v27, 1 }
 0x391   : > { %v10369_v10 = vadd.f32 %v5126_v58, %v4755_v52 }
 0x392   : > { %v5132_v3 = vpop.f32.mrf.mxu1  ;;  %v4035_v28 = vpop.f32.mrf.mxu2  ;;  %v6358_v5 = vsel %vm885_vm3, %v6355_v48, %v6357_v8  ;;  %v6015_v27 = vsel %vm391_vm2, %v6012_v0, %v6014_v38 }
 0x393   : > { %v4101_v55 = vadd.f32 %v4035_v28, %v9740_v22  ;;  %v11069_v22 = vunpack.c.l.bf16 %v9718_v17 }
 0x394   : > { %7688 = vmatmul.msk.f32.vlgmr.msra.gmra.mxu3 %vm475_vm1, %v8145_v47 }
 0x395   : > { %7820 = vmatmul.msk.f32.vlgmr.msra.gmra.mxu1 %vm475_vm1, %v6356_v7  ;;  %v4444_v56 = vadd.f32 %v4378_v35, %v4101_v55  ;;  %v4693_v58 = vpop.f32.mrf.mxu0  ;;  %v5263_v52 = vrot.slane %v11069_v22, 2  ;;  %v7605_v35 = vld [vmem:[%s9252_s6 + $0x18] sm:$0xe]  ;;  %v6323_v7 = vunpack.c.l.bf16 %v7803_v20  ;;  %v5919_v55 = vunpack.c.h.bf16 %v7723_v4 }
 0x396   : > { %v5229_v17 = vunpack.c.l.bf16 %v7605_v35 }
 0x397   : > { %v4756_v31 = vadd.f32 %v4690_v42, %v4444_v56  ;;  %7622 = vmatmul.msk.f32.vlgmr.msra.gmra.mxu2 %vm475_vm1, %v5262_v37  ;;  %v4381_v53 = vpop.f32.mrf.mxu3  ;;  %v5264_v37 = vsel %vm885_vm3, %v5261_v19, %v5263_v52  ;;  %v6359_v48 = vrot.slane %v6323_v7, 2  ;;  %v6360_v8 = vrot.slane %v5919_v55, 2 }
 0x398   : > { %7770 = vmatmul.msk.f32.vlgmr.msra.gmra.mxu0 %vm475_vm1, %v6013_v6  ;;  %v7656_v6 = vld [vmem:[%s9252_s6 + $0x24] sm:$0xff]   ;;  %v5265_v22 = vrot.slane %v5229_v17, 2 }
 0x399   : > { %v10383_v47 = vadd.f32 %v5129_v21, %v4756_v31  ;;  %v5918_v31 = vunpack.c.l.bf16 %v7723_v4  ;;  %v5590_v19 = vunpack.c.l.bf16 %v7656_v6  ;;  %v6361_v35 = vsel %vm885_vm3, %v6359_v48, %v6360_v8 }
 0x39a   : > { %v5135_v41 = vpop.f32.mrf.mxu1  ;;  %v4038_v28 = vpop.f32.mrf.mxu2  ;;  %v5267_v7 = vsel %vm885_vm3, %v5265_v22, %v9793_v12 }
 0x39b   : > { %v4102_v42 = vadd.f32 %v4038_v28, %v9760_v54  ;;  %v6016_v38 = vrot.slane %v5918_v31, 1  ;;  %v5591_v31 = vunpack.c.h.bf16 %v7656_v6 }
 0x39c   : > { %7689 = vmatmul.msk.f32.gmra.mxu3 %vm475_vm1, %v8146_v16  ;;  %v7725_v16 = vld [vmem:[%s9252_s6 + $0x2c] sm:$0x1] }
 0x39d   : > { %7821 = vmatmul.msk.f32.gmra.mxu1 %vm475_vm1, %v6358_v5  ;;  %v4445_v21 = vadd.f32 %v4381_v53, %v4102_v42  ;;  %v4696_v56 = vpop.f32.mrf.mxu0  ;;  %v6017_v53 = vrot.slane %v5919_v55, 1 }
 0x39f   : > { %v4757_v20 = vadd.f32 %v4693_v58, %v4445_v21  ;;  %7623 = vmatmul.msk.f32.gmra.mxu2 %vm475_vm1, %v5264_v37  ;;  %v4384_v54 = vpop.f32.mrf.mxu3  ;;  %v5920_v58 = vunpack.c.l.bf16 %v7725_v16  ;;  %v6018_v42 = vsel %vm391_vm2, %v6016_v38, %v6017_v53  ;;  %v7804_v37 = vld [vmem:[%s9252_s6 + $0x30] sm:$0xe] }
 0x3a0   : > { %7771 = vmatmul.msk.f32.gmra.mxu0 %vm475_vm1, %v6015_v27  ;;  %v11070_v27 = vunpack.c.l.bf16 %v9755_v25  ;;  %v6324_v16 = vunpack.c.l.bf16 %v7804_v37 }
 0x3a1   : > { %v10396_v52 = vadd.f32 %v5132_v3, %v4757_v20  ;;  %v6362_v55 = vrot.slane %v5920_v58, 2  ;;  %v7606_v20 = vld [vmem:[%s9252_s6 + $0x24] sm:$0xe]  ;;  %v6019_v22 = vrot.slane %v5920_v58, 1 }
 0x3a2   : > { %v5138_v0 = vpop.f32.mrf.mxu1  ;;  %v4041_v4 = vpop.f32.mrf.mxu2  ;;  %v5268_v21 = vrot.slane %v11070_v27, 2  ;;  %v5230_v6 = vunpack.c.l.bf16 %v7606_v20 }
 0x3a3   : > { %v4103_v5 = vadd.f32 %v4041_v4, %v9782_v57  ;;  %v6020_v58 = vsel %vm391_vm2, %v6017_v53, %v6019_v22 }
 0x3a4   : > { %7690 = vmatmul.msk.f32.gmra.mxu3 %vm475_vm1, %v5590_v19  ;;  %v6363_v19 = vsel %vm885_vm3, %v6360_v8, %v6362_v55  ;;  %v5269_v25 = vsel %vm885_vm3, %v9793_v12, %v5268_v21  ;;  %v6364_v8 = vrot.slane %v6324_v16, 2  ;;  %v5270_v55 = vrot.slane %v5230_v6, 2 }
 0x3a5   : > { %7822 = vmatmul.msk.f32.gmra.mxu1 %vm475_vm1, %v6361_v35  ;;  %v4446_v28 = vadd.f32 %v4384_v54, %v4103_v5  ;;  %v4699_v3 = vpop.f32.mrf.mxu0  ;;  %v8277_v35 = vld [vmem:[%s9252_s6 + $0x30] sm:$0xff]   ;;  %v11071_v12 = vunpack.c.h.bf16 %v9774_v40 }
 0x3a6   : > { %v8150_v4 = vunpack.c.h.bf16 %v8277_v35 }
 0x3a7   : > { %v4758_v17 = vadd.f32 %v4696_v56, %v4446_v28  ;;  %7624 = vmatmul.msk.f32.gmra.mxu2 %vm475_vm1, %v5267_v7  ;;  %v4387_v57 = vpop.f32.mrf.mxu3  ;;  %v5271_v37 = vrot.slane %v11071_v12, 2 }
 0x3a8   : > { %7772 = vmatmul.msk.f32.gmra.mxu0 %vm475_vm1, %v6018_v42  ;;  %v6365_v7 = vrot.slane %v8150_v4, 2  ;;  %v8149_v42 = vunpack.c.l.bf16 %v8277_v35  ;;  %v6022_v53 = vrot.slane %v8150_v4, 1  ;;  %v7805_v35 = vld [vmem:[%s9252_s6 + $0x3c] sm:$0xe] }
 0x3a9   : > { %v10410_v48 = vadd.f32 %v5135_v41, %v4758_v17  ;;  %v7728_v17 = vld [vmem:[%s9252_s6 + $0x38] sm:$0x1] }
 0x3aa   : > { %v5141_v54 = vpop.f32.mrf.mxu1  ;;  %v4044_v38 = vpop.f32.mrf.mxu2  ;;  %v6021_v21 = vrot.slane %v8149_v42, 1  ;;  %v5923_v22 = vunpack.c.l.bf16 %v7728_v17 }
 0x3ab   : > { %v4104_v56 = vadd.f32 %v4044_v38, %v9804_v43 }
 0x3ac   : > { %7691 = vmatmul.msk.f32.gmra.mxu3 %vm475_vm1, %v5591_v31  ;;  %v6366_v31 = vsel %vm885_vm3, %v6364_v8, %v6365_v7  ;;  %v6023_v16 = vsel %vm391_vm2, %v6021_v21, %v6022_v53  ;;  %v6367_v38 = vrot.slane %v5923_v22, 2 }
 0x3ad   : > { %7823 = vmatmul.msk.f32.gmra.mxu1 %vm475_vm1, %v6363_v19  ;;  %v4447_v41 = vadd.f32 %v4387_v57, %v4104_v56  ;;  %v4702_v5 = vpop.f32.mrf.mxu0  ;;  %v5272_v19 = vsel %vm885_vm3, %v5270_v55, %v5271_v37  ;;  %v6325_v55 = vunpack.c.l.bf16 %v7805_v35 }
 0x3af   : > { %v4759_v28 = vadd.f32 %v4699_v3, %v4447_v41  ;;  %7625 = vmatmul.msk.f32.gmra.mxu2 %vm475_vm1, %v5269_v25  ;;  %v4390_v43 = vpop.f32.mrf.mxu3  ;;  %v6024_v41 = vrot.slane %v5923_v22, 1 }
 0x3b0   : > { %7773 = vmatmul.msk.f32.gmra.mxu0 %vm475_vm1, %v6020_v58  ;;  %v7729_v58 = vld [vmem:[%s9252_s6 + $0x3c] sm:$0xff]  }
 0x3b1   : > { %v10426_v27 = vadd.f32 %v5138_v0, %v4759_v28  ;;  %v7607_v28 = vld [vmem:[%s9252_s6 + $0x30] sm:$0xe]  ;;  %v5925_v17 = vunpack.c.h.bf16 %v7729_v58  ;;  %v5924_v22 = vunpack.c.l.bf16 %v7729_v58 }
 0x3b2   : > { %v5144_v57 = vpop.f32.mrf.mxu1  ;;  %v4047_v3 = vpop.f32.mrf.mxu2 }
 0x3b3   : > { %v4105_v20 = vadd.f32 %v4047_v3, %v9822_v49  ;;  %v11072_v49 = vunpack.c.l.bf16 %v9798_v14  ;;  %v5231_v14 = vunpack.c.l.bf16 %v7607_v28  ;;  %v6026_v35 = vrot.slane %v5924_v22, 1 }
 0x3b4   : > { %7692 = vmatmul.msk.f32.gmra.mxu3 %vm475_vm1, %v8149_v42  ;;  %v6368_v42 = vsel %vm885_vm3, %v6365_v7, %v6367_v38  ;;  %v6369_v7 = vrot.slane %v6325_v55, 2 }
 0x3b5   : > { %7824 = vmatmul.msk.f32.gmra.mxu1 %vm475_vm1, %v6366_v31  ;;  %v4448_v40 = vadd.f32 %v4390_v43, %v4105_v20  ;;  %v4705_v0 = vpop.f32.mrf.mxu0  ;;  %v5273_v6 = vrot.slane %v11072_v49, 2  ;;  %v6025_v31 = vsel %vm391_vm2, %v6022_v53, %v6024_v41  ;;  %v7660_v20 = vld [vmem:[%s9252_s6 + $0x3c] sm:$0xff]  }
 0x3b7   : > { %v4760_v56 = vadd.f32 %v4702_v5, %v4448_v40  ;;  %7626 = vmatmul.msk.f32.gmra.mxu2 %vm475_vm1, %v5272_v19  ;;  %v4393_v25 = vpop.f32.mrf.mxu3  ;;  %v5274_v21 = vsel %vm885_vm3, %v5271_v37, %v5273_v6  ;;  %v6370_v19 = vrot.slane %v5925_v17, 2  ;;  %v5594_v37 = vunpack.c.l.bf16 %v7660_v20  ;;  %v11073_v6 = vld [vmem:[#allocation16_spill] sm:$0xff] }
 0x3b8   : > { %7774 = vmatmul.msk.f32.gmra.mxu0 %vm475_vm1, %v6023_v16  ;;  %v5275_v16 = vrot.slane %v5231_v14, 2 }
 0x3b9   : > { %v10440_v8 = vadd.f32 %v5141_v54, %v4760_v56  ;;  %v6027_v56 = vrot.slane %v5925_v17, 1 }
 0x3ba   : > { %v5147_v43 = vpop.f32.mrf.mxu1  ;;  %v4050_v12 = vpop.f32.mrf.mxu2  ;;  %v5277_v58 = vsel %vm885_vm3, %v5275_v16, %v9876_v50 }
 0x3bb   : > { %v4106_v5 = vadd.f32 %v4050_v12, %v9843_v62  ;;  %v7806_v12 = vld [vmem:[%s9252_s6 + $0x48] sm:$0xe] }
 0x3bc   : > { %7693 = vmatmul.msk.f32.gmra.mxu3 %vm475_vm1, %v8150_v4  ;;  %v7731_v4 = vld [vmem:[%s9252_s6 + $0x44] sm:$0x1] }
 0x3bd   : > { %7825 = vmatmul.msk.f32.gmra.mxu1 %vm475_vm1, %v6368_v42  ;;  %v4449_v54 = vadd.f32 %v4393_v25, %v4106_v5  ;;  %v4708_v3 = vpop.f32.mrf.mxu0  ;;  %v6371_v25 = vsel %vm885_vm3, %v6369_v7, %v6370_v19  ;;  %v6028_v42 = vsel %vm391_vm2, %v6026_v35, %v6027_v56  ;;  %v7608_v7 = vld [vmem:[%s9252_s6 + $0x3c] sm:$0xe]  ;;  %v8278_v35 = vld [vmem:[%s9252_s6 + $0x48] sm:$0xff]  }
 0x3bf   : > { %v4761_v40 = vadd.f32 %v4705_v0, %v4449_v54  ;;  %7627 = vmatmul.msk.f32.gmra.mxu2 %vm475_vm1, %v5274_v21  ;;  %v4396_v62 = vpop.f32.mrf.mxu3  ;;  %v5926_v0 = vunpack.c.l.bf16 %v7731_v4  ;;  %v11074_v21 = vld [vmem:[#allocation18_spill] sm:$0xff]  ;;  %v5595_v54 = vunpack.c.h.bf16 %v7660_v20  ;;  %v5232_v20 = vunpack.c.l.bf16 %v7608_v7 }
 0x3c0   : > { %7775 = vmatmul.msk.f32.gmra.mxu0 %vm475_vm1, %v6025_v31  ;;  %v11075_v14 = vunpack.c.l.bf16 %v11074_v21 }
 0x3c1   : > { %v10453_v38 = vadd.f32 %v5144_v57, %v4761_v40  ;;  %v6372_v55 = vrot.slane %v5926_v0, 2 }
 0x3c2   : > { %v5150_v53 = vpop.f32.mrf.mxu1  ;;  %v4053_v49 = vpop.f32.mrf.mxu2  ;;  %v5278_v31 = vrot.slane %v11075_v14, 2 }
 0x3c3   : > { %v4107_v41 = vadd.f32 %v4053_v49, %v11073_v6  ;;  %v6373_v16 = vsel %vm885_vm3, %v6370_v19, %v6372_v55 }
 0x3c4   : > { %7694 = vmatmul.msk.f32.gmra.mxu3 %vm475_vm1, %v5594_v37  ;;  %v6326_v37 = vunpack.c.l.bf16 %v7806_v12  ;;  %v5279_v49 = vsel %vm885_vm3, %v9876_v50, %v5278_v31  ;;  %v11076_v50 = vunpack.c.h.bf16 %v9857_v2  ;;  %v7734_v12 = vld [vmem:[%s9252_s6 + $0x50] sm:$0x1] }
 0x3c5   : > { %7826 = vmatmul.msk.f32.gmra.mxu1 %vm475_vm1, %v6371_v25  ;;  %v4450_v28 = vadd.f32 %v4396_v62, %v4107_v41  ;;  %v4711_v57 = vpop.f32.mrf.mxu0  ;;  %v6029_v62 = vrot.slane %v5926_v0, 1  ;;  %v8154_v25 = vunpack.c.h.bf16 %v8278_v35 }
 0x3c6   : > { %v6374_v19 = vrot.slane %v6326_v37, 2  ;;  %v5281_v55 = vrot.slane %v11076_v50, 2  ;;  %v7807_v37 = vld [vmem:[%s9252_s6 + $0x54] sm:$0xe] }
 0x3c7   : > { %v4762_v5 = vadd.f32 %v4708_v3, %v4450_v28  ;;  %7628 = vmatmul.msk.f32.gmra.mxu2 %vm475_vm1, %v5277_v58  ;;  %v4399_v17 = vpop.f32.mrf.mxu3  ;;  %v6030_v41 = vsel %vm391_vm2, %v6027_v56, %v6029_v62  ;;  %v6375_v0 = vrot.slane %v8154_v25, 2  ;;  %v8153_v28 = vunpack.c.l.bf16 %v8278_v35 }
 0x3c8   : > { %7776 = vmatmul.msk.f32.gmra.mxu0 %vm475_vm1, %v6028_v42  ;;  %v5280_v42 = vrot.slane %v5232_v20, 2  ;;  %v6032_v56 = vrot.slane %v8154_v25, 1 }
 0x3c9   : > { %v10467_v22 = vadd.f32 %v5147_v43, %v4762_v5  ;;  %v6031_v21 = vrot.slane %v8153_v28, 1  ;;  %v6376_v14 = vsel %vm885_vm3, %v6374_v19, %v6375_v0  ;;  %v7609_v19 = vld [vmem:[%s9252_s6 + $0x48] sm:$0xe] }
 0x3ca   : > { %v5153_v40 = vpop.f32.mrf.mxu1  ;;  %v4056_v4 = vpop.f32.mrf.mxu2  ;;  %v5282_v7 = vsel %vm885_vm3, %v5280_v42, %v5281_v55 }
 0x3cb   : > { %v4108_v3 = vadd.f32 %v4056_v4, %v9887_v1  ;;  %v6033_v62 = vsel %vm391_vm2, %v6031_v21, %v6032_v56 }
 0x3cc   : > { %7695 = vmatmul.msk.f32.gmra.mxu3 %vm475_vm1, %v5595_v54  ;;  %v5929_v54 = vunpack.c.l.bf16 %v7734_v12 }
 0x3cd   : > { %7827 = vmatmul.msk.f32.gmra.mxu1 %vm475_vm1, %v6373_v16  ;;  %v4451_v43 = vadd.f32 %v4399_v17, %v4108_v3  ;;  %v4714_v6 = vpop.f32.mrf.mxu0 }
 0x3ce   : > { %v6377_v16 = vrot.slane %v5929_v54, 2  ;;  %v6034_v20 = vrot.slane %v5929_v54, 1  ;;  %v7664_v54 = vld [vmem:[%s9252_s6 + $0x54] sm:$0xff]  }
 0x3cf   : > { %v4763_v58 = vadd.f32 %v4711_v57, %v4451_v43  ;;  %7629 = vmatmul.msk.f32.gmra.mxu2 %vm475_vm1, %v5279_v49  ;;  %v4402_v1 = vpop.f32.mrf.mxu3  ;;  %v7735_v43 = vld [vmem:[%s9252_s6 + $0x54] sm:$0xff]  }
 0x3d0   : > { %7777 = vmatmul.msk.f32.gmra.mxu0 %vm475_vm1, %v6030_v41  ;;  %v5931_v12 = vunpack.c.h.bf16 %v7735_v43 }
 0x3d1   : > { %v10483_v5 = vadd.f32 %v5150_v53, %v4763_v58 }
 0x3d2   : > { %v5156_v17 = vpop.f32.mrf.mxu1  ;;  %v4059_v57 = vpop.f32.mrf.mxu2 }
 0x3d3   : > { %v4109_v31 = vadd.f32 %v4059_v57, %v9905_v9  ;;  %v11077_v9 = vld [vmem:[#allocation2_spill] sm:$0xff]  ;;  %v6035_v57 = vsel %vm391_vm2, %v6032_v56, %v6034_v20  ;;  %v11080_v20 = vld [vmem:[#allocation19_spill] sm:$0xff] }
 0x3d4   : > { %7696 = vmatmul.msk.f32.gmra.mxu3 %vm475_vm1, %v8153_v28  ;;  %v11078_v3 = vunpack.c.l.bf16 %v11077_v9  ;;  %v6327_v28 = vunpack.c.l.bf16 %v7807_v37 }
 0x3d5   : > { %7828 = vmatmul.msk.f32.gmra.mxu1 %vm475_vm1, %v6376_v14  ;;  %v4452_v2 = vadd.f32 %v4402_v1, %v4109_v31  ;;  %v4717_v53 = vpop.f32.mrf.mxu0  ;;  %v6378_v1 = vsel %vm885_vm3, %v6375_v0, %v6377_v16  ;;  %v5233_v14 = vunpack.c.l.bf16 %v7609_v19 }
 0x3d6   : > { %v5283_v49 = vrot.slane %v11078_v3, 2  ;;  %v6379_v0 = vrot.slane %v6327_v28, 2 }
 0x3d7   : > { %v4764_v4 = vadd.f32 %v4714_v6, %v4452_v2  ;;  %7630 = vmatmul.msk.f32.gmra.mxu2 %vm475_vm1, %v5282_v7  ;;  %v4405_v35 = vpop.f32.mrf.mxu3  ;;  %v11079_v6 = vld [vmem:[#allocation21_spill] sm:$0xff]  ;;  %v5930_v7 = vunpack.c.l.bf16 %v7735_v43  ;;  %v6380_v2 = vrot.slane %v5931_v12, 2  ;;  %v5285_v37 = vrot.slane %v5233_v14, 2 }
 0x3d8   : > { %7778 = vmatmul.msk.f32.gmra.mxu0 %vm475_vm1, %v6033_v62  ;;  %v5284_v21 = vsel %vm885_vm3, %v5281_v55, %v5283_v49  ;;  %v5598_v55 = vunpack.c.l.bf16 %v7664_v54 }
 0x3d9   : > { %v10497_v41 = vadd.f32 %v5153_v40, %v4764_v4  ;;  %v6036_v9 = vrot.slane %v5930_v7, 1  ;;  %v6381_v3 = vsel %vm885_vm3, %v6379_v0, %v6380_v2  ;;  %v5287_v19 = vsel %vm885_vm3, %v5285_v37, %v9959_v51  ;;  %v7610_v0 = vld [vmem:[%s9252_s6 + $0x54] sm:$0xe] }
 0x3da   : > { %v5159_v58 = vpop.f32.mrf.mxu1  ;;  %v4062_v42 = vpop.f32.mrf.mxu2 }
 0x3db   : > { %v4110_v50 = vadd.f32 %v4062_v42, %v11079_v6  ;;  %v7808_v6 = vld [vmem:[%s9252_s6 + $0x60] sm:$0xe] }
 0x3dc   : > { %7697 = vmatmul.msk.f32.gmra.mxu3 %vm475_vm1, %v8154_v25  ;;  %v7737_v25 = vld [vmem:[%s9252_s6 + $0x5c] sm:$0x1] }
 0x3dd   : > { %7829 = vmatmul.msk.f32.gmra.mxu1 %vm475_vm1, %v6378_v1  ;;  %v4453_v40 = vadd.f32 %v4405_v35, %v4110_v50  ;;  %v4720_v31 = vpop.f32.mrf.mxu0  ;;  %v6037_v35 = vrot.slane %v5931_v12, 1 }
 0x3df   : > { %v4765_v62 = vadd.f32 %v4717_v53, %v4453_v40  ;;  %7631 = vmatmul.msk.f32.gmra.mxu2 %vm475_vm1, %v5284_v21  ;;  %v4408_v16 = vpop.f32.mrf.mxu3  ;;  %v5932_v53 = vunpack.c.l.bf16 %v7737_v25  ;;  %v6038_v28 = vsel %vm391_vm2, %v6036_v9, %v6037_v35  ;;  %v11081_v21 = vld [vmem:[#allocation3_spill] sm:$0xff]  ;;  %v5599_v40 = vunpack.c.h.bf16 %v7664_v54  ;;  %v8279_v9 = vld [vmem:[%s9252_s6 + $0x60] sm:$0xff]  }
 0x3e0   : > { %7779 = vmatmul.msk.f32.gmra.mxu0 %vm475_vm1, %v6035_v57  ;;  %v11082_v14 = vunpack.c.l.bf16 %v11081_v21  ;;  %v5234_v54 = vunpack.c.l.bf16 %v7610_v0 }
 0x3e1   : > { %v10510_v4 = vadd.f32 %v5156_v17, %v4765_v62  ;;  %v6382_v42 = vrot.slane %v5932_v53, 2 }
 0x3e2   : > { %v5162_v56 = vpop.f32.mrf.mxu1  ;;  %v4065_v49 = vpop.f32.mrf.mxu2  ;;  %v5288_v57 = vrot.slane %v11082_v14, 2 }
 0x3e3   : > { %v4111_v43 = vadd.f32 %v4065_v49, %v11080_v20  ;;  %v6383_v37 = vsel %vm885_vm3, %v6380_v2, %v6382_v42 }
 0x3e4   : > { %7698 = vmatmul.msk.f32.gmra.mxu3 %vm475_vm1, %v5598_v55  ;;  %v6328_v55 = vunpack.c.l.bf16 %v7808_v6  ;;  %v5289_v49 = vsel %vm885_vm3, %v9959_v51, %v5288_v57  ;;  %v11083_v51 = vunpack.c.h.bf16 %v9940_v63  ;;  %v7740_v6 = vld [vmem:[%s9252_s6 + $0x68] sm:$0x1] }
 0x3e5   : > { %7830 = vmatmul.msk.f32.gmra.mxu1 %vm475_vm1, %v6381_v3  ;;  %v4454_v1 = vadd.f32 %v4408_v16, %v4111_v43  ;;  %v4723_v17 = vpop.f32.mrf.mxu0  ;;  %v6039_v16 = vrot.slane %v5932_v53, 1  ;;  %v8158_v3 = vunpack.c.h.bf16 %v8279_v9 }
 0x3e6   : > { %v6384_v2 = vrot.slane %v6328_v55, 2  ;;  %v5291_v42 = vrot.slane %v11083_v51, 2  ;;  %v7809_v55 = vld [vmem:[%s9252_s6 + $0x6c] sm:$0xe] }
 0x3e7   : > { %v4766_v50 = vadd.f32 %v4720_v31, %v4454_v1  ;;  %7632 = vmatmul.msk.f32.gmra.mxu2 %vm475_vm1, %v5287_v19  ;;  %v4411_v12 = vpop.f32.mrf.mxu3  ;;  %v6040_v43 = vsel %vm391_vm2, %v6037_v35, %v6039_v16  ;;  %v6385_v53 = vrot.slane %v8158_v3, 2  ;;  %v8157_v1 = vunpack.c.l.bf16 %v8279_v9 }
 0x3e8   : > { %7780 = vmatmul.msk.f32.gmra.mxu0 %vm475_vm1, %v6038_v28  ;;  %v5290_v28 = vrot.slane %v5234_v54, 2  ;;  %v6042_v35 = vrot.slane %v8158_v3, 1 }
 0x3e9   : > { %v10524_v7 = vadd.f32 %v5159_v58, %v4766_v50  ;;  %v6041_v21 = vrot.slane %v8157_v1, 1  ;;  %v6386_v14 = vsel %vm885_vm3, %v6384_v2, %v6385_v53  ;;  %v7611_v2 = vld [vmem:[%s9252_s6 + $0x60] sm:$0xe] }
 0x3ea   : > { %v5165_v62 = vpop.f32.mrf.mxu1  ;;  %v4068_v25 = vpop.f32.mrf.mxu2  ;;  %v5292_v0 = vsel %vm885_vm3, %v5290_v28, %v5291_v42 }
 0x3eb   : > { %v4112_v31 = vadd.f32 %v4068_v25, %v9970_v34  ;;  %v6043_v16 = vsel %vm391_vm2, %v6041_v21, %v6042_v35 }
 0x3ec   : > { %7699 = vmatmul.msk.f32.gmra.mxu3 %vm475_vm1, %v5599_v40  ;;  %v5935_v40 = vunpack.c.l.bf16 %v7740_v6 }
 0x3ed   : > { %7831 = vmatmul.msk.f32.gmra.mxu1 %vm475_vm1, %v6383_v37  ;;  %v4455_v58 = vadd.f32 %v4411_v12, %v4112_v31  ;;  %v4726_v20 = vpop.f32.mrf.mxu0 }
 0x3ee   : > { %v6387_v37 = vrot.slane %v5935_v40, 2  ;;  %v6044_v54 = vrot.slane %v5935_v40, 1  ;;  %v7668_v40 = vld [vmem:[%s9252_s6 + $0x6c] sm:$0xff]  }
 0x3ef   : > { %v4767_v19 = vadd.f32 %v4723_v17, %v4455_v58  ;;  %7633 = vmatmul.msk.f32.gmra.mxu2 %vm475_vm1, %v5289_v49  ;;  %v4414_v34 = vpop.f32.mrf.mxu3  ;;  %v7741_v58 = vld [vmem:[%s9252_s6 + $0x6c] sm:$0xff]  }
 0x3f0   : > { %7781 = vmatmul.msk.f32.gmra.mxu0 %vm475_vm1, %v6040_v43  ;;  %v5937_v6 = vunpack.c.h.bf16 %v7741_v58 }
 0x3f1   : > { %v10540_v50 = vadd.f32 %v5162_v56, %v4767_v19 }
 0x3f2   : > { %v5168_v12 = vpop.f32.mrf.mxu1  ;;  %v4071_v17 = vpop.f32.mrf.mxu2 }
 0x3f3   : > { %v4113_v57 = vadd.f32 %v4071_v17, %v9988_v36  ;;  %v11084_v36 = vld [vmem:[#allocation24_spill] sm:$0xff]  ;;  %v6045_v17 = vsel %vm391_vm2, %v6042_v35, %v6044_v54  ;;  %v11087_v54 = vld [vmem:[#allocation5_spill] sm:$0xff] }
 0x3f4   : > { %7700 = vmatmul.msk.f32.gmra.mxu3 %vm475_vm1, %v8157_v1  ;;  %v11085_v31 = vunpack.c.l.bf16 %v11084_v36  ;;  %v6329_v1 = vunpack.c.l.bf16 %v7809_v55 }
 0x3f5   : > { %7832 = vmatmul.msk.f32.gmra.mxu1 %vm475_vm1, %v6386_v14  ;;  %v4456_v63 = vadd.f32 %v4414_v34, %v4113_v57  ;;  %v4729_v56 = vpop.f32.mrf.mxu0  ;;  %v6388_v34 = vsel %vm885_vm3, %v6385_v53, %v6387_v37  ;;  %v5235_v14 = vunpack.c.l.bf16 %v7611_v2 }
 0x3f6   : > { %v5293_v49 = vrot.slane %v11085_v31, 2  ;;  %v6389_v53 = vrot.slane %v6329_v1, 2 }
 0x3f7   : > { %v4768_v25 = vadd.f32 %v4726_v20, %v4456_v63  ;;  %7634 = vmatmul.msk.f32.gmra.mxu2 %vm475_vm1, %v5292_v0  ;;  %v4417_v9 = vpop.f32.mrf.mxu3  ;;  %v11086_v20 = vld [vmem:[#allocation4_spill] sm:$0xff]  ;;  %v5936_v0 = vunpack.c.l.bf16 %v7741_v58  ;;  %v6390_v63 = vrot.slane %v5937_v6, 2  ;;  %v5295_v55 = vrot.slane %v5235_v14, 2 }
 0x3f8   : > { %7782 = vmatmul.msk.f32.gmra.mxu0 %vm475_vm1, %v6043_v16  ;;  %v5294_v21 = vsel %vm885_vm3, %v5291_v42, %v5293_v49  ;;  %v5602_v42 = vunpack.c.l.bf16 %v7668_v40 }
 0x3f9   : > { %v10554_v43 = vadd.f32 %v5165_v62, %v4768_v25  ;;  %v6046_v36 = vrot.slane %v5936_v0, 1  ;;  %v6391_v31 = vsel %vm885_vm3, %v6389_v53, %v6390_v63  ;;  %v5297_v2 = vsel %vm885_vm3, %v5295_v55, %v10042_v18  ;;  %v7612_v53 = vld [vmem:[%s9252_s6 + $0x6c] sm:$0xe] }
 0x3fa   : > { %v5171_v19 = vpop.f32.mrf.mxu1  ;;  %v4074_v28 = vpop.f32.mrf.mxu2 }
 0x3fb   : > { %v4114_v51 = vadd.f32 %v4074_v28, %v11086_v20  ;;  %v7810_v20 = vld [vmem:[%s9252_s6 + $0x78] sm:$0xe] }
 0x3fc   : > { %7701 = vmatmul.msk.f32.gmra.mxu3 %vm475_vm1, %v8158_v3  ;;  %v7743_v3 = vld [vmem:[%s9252_s6 + $0x74] sm:$0x1] }
 0x3fd   : > { %7833 = vmatmul.msk.f32.gmra.mxu1 %vm475_vm1, %v6388_v34  ;;  %v4457_v62 = vadd.f32 %v4417_v9, %v4114_v51  ;;  %v4732_v57 = vpop.f32.mrf.mxu0  ;;  %v6047_v9 = vrot.slane %v5937_v6, 1 }
 0x3ff   : > { %v4769_v16 = vadd.f32 %v4729_v56, %v4457_v62  ;;  %7635 = vmatmul.msk.f32.gmra.mxu2 %vm475_vm1, %v5294_v21  ;;  %v4420_v37 = vpop.f32.mrf.mxu3  ;;  %v5938_v56 = vunpack.c.l.bf16 %v7743_v3  ;;  %v6048_v1 = vsel %vm391_vm2, %v6046_v36, %v6047_v9  ;;  %v11088_v21 = vld [vmem:[#allocation22_spill] sm:$0xff]  ;;  %v5603_v62 = vunpack.c.h.bf16 %v7668_v40  ;;  %v8280_v36 = vld [vmem:[%s9252_s6 + $0x78] sm:$0xff]  }
 0x400   : > { %7783 = vmatmul.msk.f32.gmra.mxu0 %vm475_vm1, %v6045_v17  ;;  %v11089_v14 = vunpack.c.l.bf16 %v11088_v21  ;;  %v5236_v40 = vunpack.c.l.bf16 %v7612_v53 }
 0x401   : > { %v10567_v25 = vadd.f32 %v5168_v12, %v4769_v16  ;;  %v6392_v28 = vrot.slane %v5938_v56, 2 }
 0x402   : > { %v5174_v35 = vpop.f32.mrf.mxu1  ;;  %v4077_v49 = vpop.f32.mrf.mxu2  ;;  %v5298_v17 = vrot.slane %v11089_v14, 2 }
 0x403   : > { %v4115_v58 = vadd.f32 %v4077_v49, %v11087_v54  ;;  %v6393_v55 = vsel %vm885_vm3, %v6390_v63, %v6392_v28 }
 0x404   : > { %7702 = vmatmul.msk.f32.gmra.mxu3 %vm475_vm1, %v5602_v42  ;;  %v6330_v42 = vunpack.c.l.bf16 %v7810_v20  ;;  %v5299_v49 = vsel %vm885_vm3, %v10042_v18, %v5298_v17  ;;  %v11090_v18 = vunpack.c.h.bf16 %v10023_v24  ;;  %v7746_v20 = vld [vmem:[%s9252_s6 + $0x80] sm:$0x1] }
 0x405   : > { %7834 = vmatmul.msk.f32.gmra.mxu1 %vm475_vm1, %v6391_v31  ;;  %v4458_v34 = vadd.f32 %v4420_v37, %v4115_v58  ;;  %v4735_v12 = vpop.f32.mrf.mxu0  ;;  %v6049_v37 = vrot.slane %v5938_v56, 1  ;;  %v8162_v31 = vunpack.c.h.bf16 %v8280_v36 }
 0x406   : > { %v6394_v63 = vrot.slane %v6330_v42, 2  ;;  %v5301_v28 = vrot.slane %v11090_v18, 2  ;;  %v7811_v42 = vld [vmem:[%s9252_s6 + $0x84] sm:$0xe] }
 0x407   : > { %v4770_v51 = vadd.f32 %v4732_v57, %v4458_v34  ;;  %7636 = vmatmul.msk.f32.gmra.mxu2 %vm475_vm1, %v5297_v2  ;;  %v4423_v6 = vpop.f32.mrf.mxu3  ;;  %v6050_v58 = vsel %vm391_vm2, %v6047_v9, %v6049_v37  ;;  %v6395_v56 = vrot.slane %v8162_v31, 2  ;;  %v8161_v34 = vunpack.c.l.bf16 %v8280_v36 }
 0x408   : > { %7784 = vmatmul.msk.f32.gmra.mxu0 %vm475_vm1, %v6048_v1  ;;  %v5300_v1 = vrot.slane %v5236_v40, 2  ;;  %v6052_v9 = vrot.slane %v8162_v31, 1 }
 0x409   : > { %v10581_v0 = vadd.f32 %v5171_v19, %v4770_v51  ;;  %v6051_v21 = vrot.slane %v8161_v34, 1  ;;  %v6396_v14 = vsel %vm885_vm3, %v6394_v63, %v6395_v56  ;;  %v7613_v63 = vld [vmem:[%s9252_s6 + $0x78] sm:$0xe] }
 0x40a   : > { %v5177_v16 = vpop.f32.mrf.mxu1  ;;  %v4080_v3 = vpop.f32.mrf.mxu2  ;;  %v5302_v53 = vsel %vm885_vm3, %v5300_v1, %v5301_v28 }
 0x40b   : > { %v4116_v57 = vadd.f32 %v4080_v3, %v10053_v45  ;;  %v6053_v37 = vsel %vm391_vm2, %v6051_v21, %v6052_v9 }
 0x40c   : > { %7703 = vmatmul.msk.f32.gmra.mxu3 %vm475_vm1, %v5603_v62  ;;  %v5941_v62 = vunpack.c.l.bf16 %v7746_v20 }
 0x40d   : > { %7835 = vmatmul.msk.f32.gmra.mxu1 %vm475_vm1, %v6393_v55  ;;  %v4459_v19 = vadd.f32 %v4423_v6, %v4116_v57  ;;  %v4738_v54 = vpop.f32.mrf.mxu0 }
 0x40e   : > { %v6397_v55 = vrot.slane %v5941_v62, 2  ;;  %v6054_v40 = vrot.slane %v5941_v62, 1  ;;  %v7672_v62 = vld [vmem:[%s9252_s6 + $0x84] sm:$0xff]  }
 0x40f   : > { %v4771_v2 = vadd.f32 %v4735_v12, %v4459_v19  ;;  %7637 = vmatmul.msk.f32.gmra.mxu2 %vm475_vm1, %v5299_v49  ;;  %v4426_v45 = vpop.f32.mrf.mxu3  ;;  %v7747_v19 = vld [vmem:[%s9252_s6 + $0x84] sm:$0xff]  }
 0x410   : > { %7785 = vmatmul.msk.f32.gmra.mxu0 %vm475_vm1, %v6050_v58  ;;  %v5943_v20 = vunpack.c.h.bf16 %v7747_v19 }
 0x411   : > { %v10597_v51 = vadd.f32 %v5174_v35, %v4771_v2 }
 0x412   : > { %v6521_v6 = vpop.f32.mrf.mxu1  ;;  %v4083_v12 = vpop.f32.mrf.mxu2 }
 0x413   : > { %v4117_v17 = vadd.f32 %v4083_v12, %v10071_v61  ;;  %v11091_v61 = vld [vmem:[#allocation6_spill] sm:$0xff]  ;;  %v6055_v12 = vsel %vm391_vm2, %v6052_v9, %v6054_v40  ;;  %v5606_v9 = vunpack.c.l.bf16 %v7672_v62 }
 0x414   : > { %7704 = vmatmul.msk.f32.gmra.mxu3 %vm475_vm1, %v8161_v34  ;;  %v11092_v57 = vunpack.c.l.bf16 %v11091_v61  ;;  %v6331_v34 = vunpack.c.l.bf16 %v7811_v42  ;;  %v7749_v42 = vld [vmem:[%s9252_s6 + $0x8c] sm:$0x1] }
 0x415   : > { %7836 = vmatmul.msk.f32.gmra.mxu1 %vm475_vm1, %v6396_v14  ;;  %v4460_v24 = vadd.f32 %v4426_v45, %v4117_v17  ;;  %v6178_v35 = vpop.f32.mrf.mxu0  ;;  %v6398_v45 = vsel %vm885_vm3, %v6395_v56, %v6397_v55  ;;  %v5237_v14 = vunpack.c.l.bf16 %v7613_v63 }
 0x416   : > { %v5303_v49 = vrot.slane %v11092_v57, 2  ;;  %v6399_v56 = vrot.slane %v6331_v34, 2  ;;  %v6057_v57 = vrot.slane %v5943_v20, 1 }
 0x417   : > { %v4772_v3 = vadd.f32 %v4738_v54, %v4460_v24  ;;  %7638 = vmatmul.msk.f32.gmra.mxu2 %vm475_vm1, %v5302_v53  ;;  %v5739_v36 = vpop.f32.mrf.mxu3  ;;  %v11093_v54 = vld [vmem:[#allocation8_spill] sm:$0xff]  ;;  %v5942_v53 = vunpack.c.l.bf16 %v7747_v19  ;;  %v6400_v24 = vrot.slane %v5943_v20, 2  ;;  %v5305_v55 = vrot.slane %v5237_v14, 2  ;;  %v11094_v19 = vld [vmem:[#allocation9_spill] sm:$0xff] }
 0x418   : > { %7786 = vmatmul.msk.f32.gmra.mxu0 %vm475_vm1, %v6053_v37  ;;  %v5304_v21 = vsel %vm885_vm3, %v5301_v28, %v5303_v49 }
 0x419   : > { %v10611_v58 = vadd.f32 %v5177_v16, %v4772_v3  ;;  %v6056_v61 = vrot.slane %v5942_v53, 1  ;;  %v6401_v49 = vsel %vm885_vm3, %v6399_v56, %v6400_v24  ;;  %v5307_v34 = vsel %vm885_vm3, %v5305_v55, %v10125_v26  ;;  %v11095_v53 = vld [vmem:[#allocation7_spill] sm:$0xff] }
 0x41a   : > { %v6524_v2 = vpop.f32.mrf.mxu1  ;;  %v5427_v1 = vpop.f32.mrf.mxu2  ;;  %v11096_v56 = vunpack.c.l.bf16 %v11095_v53 }
 0x41b   : > { %v5523_v18 = vadd.f32 %v5427_v1, %v11093_v54 }
 0x41c   : > { %7705 = vmatmul.msk.f32.gmra.mxu3 %vm475_vm1, %v8162_v31  ;;  %v10625_v31 = vld [vmem:[%s10926_s4] ss:$0 sm:$0xff] }
 0x41d   : > { %7837 = vmatmul.msk.f32.gmra.mxu1 %vm475_vm1, %v6398_v45  ;;  %v5835_v16 = vadd.f32 %v5739_v36, %v5523_v18  ;;  %v6181_v17 = vpop.f32.mrf.mxu0  ;;  %v5944_v45 = vunpack.c.l.bf16 %v7749_v42  ;;  %v6058_v18 = vsel %vm391_vm2, %v6056_v61, %v6057_v57  ;;  %v7614_v42 = vld [vmem:[%s9252_s6 + $0x84] sm:$0xe] }
 0x41f   : > { %v6274_v37 = vadd.f32 %v6178_v35, %v5835_v16  ;;  %7639 = vmatmul.msk.f32.gmra.mxu2 %vm475_vm1, %v5304_v21  ;;  %v5742_v28 = vpop.f32.mrf.mxu3  ;;  %v6402_v20 = vrot.slane %v5944_v45, 2  ;;  %v7812_v21 = vld [vmem:[%s9252_s6 + $0x90] sm:$0xe]  ;;  %v6059_v55 = vrot.slane %v5944_v45, 1  ;;  %v5238_v45 = vunpack.c.l.bf16 %v7614_v42 }
 0x420   : > { %7787 = vmatmul.msk.f32.gmra.mxu0 %vm475_vm1, %v6055_v12 }
 0x421   : > { %v6617_v3 = vadd.f32 %v6521_v6, %v6274_v37  ;;  %v5308_v37 = vrot.slane %v11096_v56, 2  ;;  %v6403_v61 = vsel %vm885_vm3, %v6400_v24, %v6402_v20 }
 0x422   : > { %v6527_v36 = vpop.f32.mrf.mxu1  ;;  %v5430_v35 = vpop.f32.mrf.mxu2 }
 0x423   : > { %v6653_v40 = vadd.f32 %v10625_v31, %v6617_v3  ;;  %v5524_v63 = vadd.f32 %v5430_v35, %v11094_v19 }
 0x424   : > { %7706 = vmatmul.msk.f32.gmra.mxu3 %vm475_vm1, %v5606_v9 }
 0x425   : > { %7838 = vmatmul.msk.f32.gmra.mxu1 %vm475_vm1, %v6401_v49  ;;  %v6685_v6 = vmax.f32 %v6653_v40, 0.0  ;;  %v5836_v1 = vadd.f32 %v5742_v28, %v5524_v63  ;;  %v6184_v54 = vpop.f32.mrf.mxu0  ;;  %v5607_v28 = vunpack.c.h.bf16 %v7672_v62  ;;  %v6332_v49 = vunpack.c.l.bf16 %v7812_v21 }
 0x426   : > { %v5309_v62 = vsel %vm885_vm3, %v10125_v26, %v5308_v37 }
 0x427   : > { %v6717_v14 = vpack.c.bf16 %v6685_v6, %v6685_v6  ;;  %v6275_v12 = vadd.f32 %v6181_v17, %v5836_v1  ;;  %7640 = vmatmul.msk.f32.gmra.mxu2 %vm475_vm1, %v5307_v34  ;;  %v5745_v16 = vpop.f32.mrf.mxu3  ;;  %v8281_v17 = vld [vmem:[%s9252_s6 + $0x90] sm:$0xff]   ;;  %v6404_v1 = vrot.slane %v6332_v49, 2 }
 0x428   : > { %7788 = vmatmul.msk.f32.gmra.mxu0 %vm475_vm1, %v6058_v18  ;;  %v8166_v63 = vunpack.c.h.bf16 %v8281_v17  ;;  %v8165_v26 = vunpack.c.l.bf16 %v8281_v17 }
 0x429   : > { %6750 = vst.msk [vmem:[%s10641_s21] sm:$0xf] %vm6749_vm4, %v6717_v14  ;;  %v6618_v9 = vadd.f32 %v6524_v2, %v6275_v12  ;;  %v6060_v2 = vsel %vm391_vm2, %v6057_v57, %v6059_v55  ;;  %v5310_v14 = vrot.slane %v5238_v45, 2  ;;  %v11097_v12 = vunpack.c.h.bf16 %v10106_v30  ;;  %v7752_v57 = vld [vmem:[%s9252_s6 + $0x98] sm:$0x1] }
 0x42a   : > { %v6530_v3 = vpop.f32.mrf.mxu1  ;;  %v5433_v35 = vpop.f32.mrf.mxu2  ;;  %v6405_v18 = vrot.slane %v8166_v63, 2  ;;  %v6061_v37 = vrot.slane %v8165_v26, 1 }
 0x42b   : > { %v6654_v40 = vadd.f32 %v10625_v31, %v6618_v9  ;;  %v5525_v19 = vadd.f32 %v5433_v35, %v10136_v11  ;;  %v5311_v53 = vrot.slane %v11097_v12, 2 }
 0x42c   : > { %7707 = vmatmul.msk.f32.gmra.mxu3 %vm475_vm1, %v5607_v28  ;;  %v6062_v28 = vrot.slane %v8166_v63, 1 }
 0x42d   : > { %7839 = vmatmul.msk.f32.gmra.mxu1 %vm475_vm1, %v6403_v61  ;;  %v6686_v24 = vmax.f32 %v6654_v40, 0.0  ;;  %v5837_v34 = vadd.f32 %v5745_v16, %v5525_v19  ;;  %v6187_v6 = vpop.f32.mrf.mxu0  ;;  %v5947_v61 = vunpack.c.l.bf16 %v7752_v57  ;;  %v5312_v30 = vsel %vm885_vm3, %v5310_v14, %v5311_v53  ;;  %v7813_v19 = vld [vmem:[%s9252_s6 + $0x9c] sm:$0xe] }
 0x42e   : > { %v6063_v17 = vsel %vm391_vm2, %v6061_v37, %v6062_v28  ;;  %v6333_v12 = vunpack.c.l.bf16 %v7813_v19 }
 0x42f   : > { %v6718_v20 = vpack.c.bf16 %v6686_v24, %v6686_v24  ;;  %v6276_v11 = vadd.f32 %v6184_v54, %v5837_v34  ;;  %7641 = vmatmul.msk.f32.gmra.mxu2 %vm475_vm1, %v5309_v62  ;;  %v5748_v21 = vpop.f32.mrf.mxu3  ;;  %v6406_v54 = vsel %vm885_vm3, %v6404_v1, %v6405_v18  ;;  %v6407_v40 = vrot.slane %v5947_v61, 2 }
 0x430   : > { %7789 = vmatmul.msk.f32.gmra.mxu0 %vm475_vm1, %v6060_v2  ;;  %v11098_v2 = vld [vmem:[#allocation10_spill] sm:$0xff]  ;;  %v6064_v1 = vrot.slane %v5947_v61, 1 }
 0x431   : > { %6751 = vst.msk [vmem:[%s10641_s21 + $0x4] sm:$0xf] %vm6749_vm4, %v6718_v20  ;;  %v6619_v56 = vadd.f32 %v6527_v36, %v6276_v11  ;;  %v11099_v24 = vunpack.c.l.bf16 %v11098_v2  ;;  %v7753_v20 = vld [vmem:[%s9252_s6 + $0x9c] sm:$0xff]   ;;  %v6408_v14 = vsel %vm885_vm3, %v6405_v18, %v6407_v40 }
 0x432   : > { %v6533_v16 = vpop.f32.mrf.mxu1  ;;  %v5436_v55 = vpop.f32.mrf.mxu2 }
 0x433   : > { %v6655_v9 = vadd.f32 %v10625_v31, %v6619_v56  ;;  %v5526_v42 = vadd.f32 %v5436_v55, %v10154_v23  ;;  %v5313_v34 = vrot.slane %v11099_v24, 2  ;;  %v11100_v56 = vld [vmem:[#allocation12_spill] sm:$0xff] }
 0x434   : > { %7708 = vmatmul.msk.f32.gmra.mxu3 %vm475_vm1, %v8165_v26 }
 0x435   : > { %7840 = vmatmul.msk.f32.gmra.mxu1 %vm475_vm1, %v6406_v54  ;;  %v6687_v36 = vmax.f32 %v6655_v9, 0.0  ;;  %v5838_v49 = vadd.f32 %v5748_v21, %v5526_v42  ;;  %v6190_v35 = vpop.f32.mrf.mxu0  ;;  %v7615_v21 = vld [vmem:[%s9252_s6 + $0x90] sm:$0xe]  ;;  %v5949_v54 = vunpack.c.h.bf16 %v7753_v20  ;;  %v5314_v55 = vsel %vm885_vm3, %v5311_v53, %v5313_v34 }
 0x436   : > { %v5239_v9 = vunpack.c.l.bf16 %v7615_v21  ;;  %v6065_v42 = vsel %vm391_vm2, %v6062_v28, %v6064_v1  ;;  %v7755_v28 = vld [vmem:[%s9252_s6 + $0xa4] sm:$0x1] }
 0x437   : > { %v6719_v62 = vpack.c.bf16 %v6687_v36, %v6687_v36  ;;  %v6277_v45 = vadd.f32 %v6187_v6, %v5838_v49  ;;  %7642 = vmatmul.msk.f32.gmra.mxu2 %vm475_vm1, %v5312_v30  ;;  %v5751_v23 = vpop.f32.mrf.mxu3  ;;  %v7676_v36 = vld [vmem:[%s9252_s6 + $0x9c] sm:$0xff]   ;;  %v6409_v49 = vrot.slane %v6333_v12, 2  ;;  %v6067_v24 = vrot.slane %v5949_v54, 1 }
 0x438   : > { %7790 = vmatmul.msk.f32.gmra.mxu0 %vm475_vm1, %v6063_v17  ;;  %v6410_v17 = vrot.slane %v5949_v54, 2  ;;  %v5950_v21 = vunpack.c.l.bf16 %v7755_v28 }
 0x439   : > { %6752 = vst.msk [vmem:[%s10641_s21 + $0x8] sm:$0xf] %vm6749_vm4, %v6719_v62  ;;  %v6620_v11 = vadd.f32 %v6530_v3, %v6277_v45  ;;  %v5948_v3 = vunpack.c.l.bf16 %v7753_v20  ;;  %v5610_v62 = vunpack.c.l.bf16 %v7676_v36  ;;  %v11101_v20 = vld [vmem:[#allocation13_spill] sm:$0xff] }
 0x43a   : > { %v6536_v26 = vpop.f32.mrf.mxu1  ;;  %v5439_v6 = vpop.f32.mrf.mxu2  ;;  %v6411_v34 = vsel %vm885_vm3, %v6409_v49, %v6410_v17  ;;  %v6069_v49 = vrot.slane %v5950_v21, 1 }
 0x43b   : > { %v6656_v57 = vadd.f32 %v10625_v31, %v6620_v11  ;;  %v5527_v37 = vadd.f32 %v5439_v6, %v11100_v56  ;;  %v6412_v56 = vrot.slane %v5950_v21, 2 }
 0x43c   : > { %7709 = vmatmul.msk.f32.gmra.mxu3 %vm475_vm1, %v8166_v63  ;;  %v5315_v63 = vrot.slane %v5239_v9, 2 }
 0x43d   : > { %7841 = vmatmul.msk.f32.gmra.mxu1 %vm475_vm1, %v6408_v14  ;;  %v6688_v18 = vmax.f32 %v6656_v57, 0.0  ;;  %v5839_v61 = vadd.f32 %v5751_v23, %v5527_v37  ;;  %v6193_v30 = vpop.f32.mrf.mxu0  ;;  %v6066_v23 = vrot.slane %v5948_v3, 1  ;;  %v7814_v37 = vld [vmem:[%s9252_s6 + $0xa8] sm:$0xe] }
 0x43e   : > { %v5317_v14 = vsel %vm885_vm3, %v5315_v63, %v10208_v59  ;;  %v6413_v63 = vsel %vm885_vm3, %v6410_v17, %v6412_v56 }
 0x43f   : > { %v6720_v40 = vpack.c.bf16 %v6688_v18, %v6688_v18  ;;  %v6278_v19 = vadd.f32 %v6190_v35, %v5839_v61  ;;  %7643 = vmatmul.msk.f32.gmra.mxu2 %vm475_vm1, %v5314_v55  ;;  %v5754_v53 = vpop.f32.mrf.mxu3  ;;  %v6068_v57 = vsel %vm391_vm2, %v6066_v23, %v6067_v24  ;;  %v5611_v61 = vunpack.c.h.bf16 %v7676_v36 }
 0x440   : > { %7791 = vmatmul.msk.f32.gmra.mxu0 %vm475_vm1, %v6065_v42  ;;  %v11102_v42 = vld [vmem:[#allocation11_spill] sm:$0xff] }
 0x441   : > { %6753 = vst.msk [vmem:[%s10641_s21 + $0xc] sm:$0xf] %vm6749_vm4, %v6720_v40  ;;  %v6621_v45 = vadd.f32 %v6533_v16, %v6278_v19  ;;  %v11103_v3 = vunpack.c.l.bf16 %v11102_v42  ;;  %v7616_v19 = vld [vmem:[%s9252_s6 + $0x9c] sm:$0xe] }
 0x442   : > { %v6539_v2 = vpop.f32.mrf.mxu1  ;;  %v5442_v1 = vpop.f32.mrf.mxu2 }
 0x443   : > { %v6657_v35 = vadd.f32 %v10625_v31, %v6621_v45  ;;  %v5528_v11 = vadd.f32 %v5442_v1, %v11101_v20  ;;  %v5318_v18 = vrot.slane %v11103_v3, 2  ;;  %v5240_v1 = vunpack.c.l.bf16 %v7616_v19 }
 0x444   : > { %7710 = vmatmul.msk.f32.gmra.mxu3 %vm475_vm1, %v5610_v62  ;;  %v6334_v62 = vunpack.c.l.bf16 %v7814_v37 }
 0x445   : > { %7842 = vmatmul.msk.f32.gmra.mxu1 %vm475_vm1, %v6411_v34  ;;  %v6689_v16 = vmax.f32 %v6657_v35, 0.0  ;;  %v5840_v12 = vadd.f32 %v5754_v53, %v5528_v11  ;;  %v6196_v6 = vpop.f32.mrf.mxu0  ;;  %v5319_v36 = vsel %vm885_vm3, %v10208_v59, %v5318_v18 }
 0x446   : > { %v6414_v11 = vrot.slane %v6334_v62, 2  ;;  %v7815_v62 = vld [vmem:[%s9252_s6 + $0xb4] sm:$0xe] }
 0x447   : > { %v6721_v54 = vpack.c.bf16 %v6689_v16, %v6689_v16  ;;  %v6279_v55 = vadd.f32 %v6193_v30, %v5840_v12  ;;  %7644 = vmatmul.msk.f32.gmra.mxu2 %vm475_vm1, %v5317_v14  ;;  %v5757_v9 = vpop.f32.mrf.mxu3  ;;  %v8282_v30 = vld [vmem:[%s9252_s6 + $0xa8] sm:$0xff]   ;;  %v5320_v12 = vrot.slane %v5240_v1, 2 }
 0x448   : > { %7792 = vmatmul.msk.f32.gmra.mxu0 %vm475_vm1, %v6068_v57  ;;  %v8170_v34 = vunpack.c.h.bf16 %v8282_v30  ;;  %v8169_v59 = vunpack.c.l.bf16 %v8282_v30  ;;  %v11104_v57 = vunpack.c.h.bf16 %v10189_v33 }
 0x449   : > { %6754 = vst.msk [vmem:[%s10641_s21 + $0x10] sm:$0xf] %vm6749_vm4, %v6721_v54  ;;  %v6622_v40 = vadd.f32 %v6536_v26, %v6279_v55  ;;  %v6070_v26 = vsel %vm391_vm2, %v6067_v24, %v6069_v49  ;;  %v7758_v24 = vld [vmem:[%s9252_s6 + $0xb0] sm:$0x1] }
 0x44a   : > { %v6542_v53 = vpop.f32.mrf.mxu1  ;;  %v5445_v28 = vpop.f32.mrf.mxu2  ;;  %v6415_v21 = vrot.slane %v8170_v34, 2  ;;  %v5321_v56 = vrot.slane %v11104_v57, 2  ;;  %v6071_v55 = vrot.slane %v8169_v59, 1 }
 0x44b   : > { %v6658_v45 = vadd.f32 %v10625_v31, %v6622_v40  ;;  %v5529_v23 = vadd.f32 %v5445_v28, %v10219_v32 }
 0x44c   : > { %7711 = vmatmul.msk.f32.gmra.mxu3 %vm475_vm1, %v5611_v61  ;;  %v5953_v61 = vunpack.c.l.bf16 %v7758_v24  ;;  %v5322_v33 = vsel %vm885_vm3, %v5320_v12, %v5321_v56 }
 0x44d   : > { %7843 = vmatmul.msk.f32.gmra.mxu1 %vm475_vm1, %v6413_v63  ;;  %v6690_v17 = vmax.f32 %v6658_v45, 0.0  ;;  %v5841_v35 = vadd.f32 %v5757_v9, %v5529_v23  ;;  %v6199_v20 = vpop.f32.mrf.mxu0  ;;  %v6072_v9 = vrot.slane %v8170_v34, 1  ;;  %v11105_v45 = vld [vmem:[#allocation14_spill] sm:$0xff] }
 0x44e   : > { %v6417_v63 = vrot.slane %v5953_v61, 2  ;;  %v11106_v23 = vunpack.c.l.bf16 %v11105_v45  ;;  %v6074_v1 = vrot.slane %v5953_v61, 1  ;;  %v11108_v45 = vld [vmem:[#allocation20_spill] sm:$0xff] }
 0x44f   : > { %v6722_v14 = vpack.c.bf16 %v6690_v17, %v6690_v17  ;;  %v6280_v32 = vadd.f32 %v6196_v6, %v5841_v35  ;;  %7645 = vmatmul.msk.f32.gmra.mxu2 %vm475_vm1, %v5319_v36  ;;  %v5760_v16 = vpop.f32.mrf.mxu3  ;;  %v6416_v6 = vsel %vm885_vm3, %v6414_v11, %v6415_v21  ;;  %v6073_v19 = vsel %vm391_vm2, %v6071_v55, %v6072_v9  ;;  %v7617_v35 = vld [vmem:[%s9252_s6 + $0xa8] sm:$0xe] }
 0x450   : > { %7793 = vmatmul.msk.f32.gmra.mxu0 %vm475_vm1, %v6070_v26  ;;  %v5323_v36 = vrot.slane %v11106_v23, 2  ;;  %v7759_v26 = vld [vmem:[%s9252_s6 + $0xb4] sm:$0xff]   ;;  %v6075_v55 = vsel %vm391_vm2, %v6072_v9, %v6074_v1  ;;  %v7761_v9 = vld [vmem:[%s9252_s6 + $0xbc] sm:$0x1] }
 0x451   : > { %6755 = vst.msk [vmem:[%s10641_s21 + $0x14] sm:$0xf] %vm6749_vm4, %v6722_v14  ;;  %v6623_v37 = vadd.f32 %v6539_v2, %v6280_v32  ;;  %v6418_v14 = vsel %vm885_vm3, %v6415_v21, %v6417_v63  ;;  %v6335_v32 = vunpack.c.l.bf16 %v7815_v62  ;;  %v5955_v57 = vunpack.c.h.bf16 %v7759_v26 }
 0x452   : > { %v6545_v54 = vpop.f32.mrf.mxu1  ;;  %v5448_v42 = vpop.f32.mrf.mxu2  ;;  %v5324_v24 = vsel %vm885_vm3, %v5321_v56, %v5323_v36  ;;  %v5956_v36 = vunpack.c.l.bf16 %v7761_v9 }
 0x453   : > { %v6659_v3 = vadd.f32 %v10625_v31, %v6623_v37  ;;  %v5530_v18 = vadd.f32 %v5448_v42, %v10237_v29  ;;  %v5241_v37 = vunpack.c.l.bf16 %v7617_v35  ;;  %v6420_v61 = vrot.slane %v5955_v57, 2 }
 0x454   : > { %7712 = vmatmul.msk.f32.gmra.mxu3 %vm475_vm1, %v8169_v59  ;;  %v11107_v59 = vld [vmem:[#allocation17_spill] sm:$0xff] }
 0x455   : > { %7844 = vmatmul.msk.f32.gmra.mxu1 %vm475_vm1, %v6416_v6  ;;  %v6691_v2 = vmax.f32 %v6659_v3, 0.0  ;;  %v5842_v49 = vadd.f32 %v5760_v16, %v5530_v18  ;;  %v6202_v40 = vpop.f32.mrf.mxu0  ;;  %v7680_v3 = vld [vmem:[%s9252_s6 + $0xb4] sm:$0xff]   ;;  %v6419_v18 = vrot.slane %v6335_v32, 2  ;;  %v7816_v32 = vld [vmem:[%s9252_s6 + $0xc0] sm:$0xe] }
 0x457   : > { %v6723_v28 = vpack.c.bf16 %v6691_v2, %v6691_v2  ;;  %v6281_v30 = vadd.f32 %v6199_v20, %v5842_v49  ;;  %7646 = vmatmul.msk.f32.gmra.mxu2 %vm475_vm1, %v5322_v33  ;;  %v5763_v29 = vpop.f32.mrf.mxu3  ;;  %v5614_v49 = vunpack.c.l.bf16 %v7680_v3 }
 0x458   : > { %7794 = vmatmul.msk.f32.gmra.mxu0 %vm475_vm1, %v6073_v19 }
 0x459   : > { %6756 = vst.msk [vmem:[%s10641_s21 + $0x18] sm:$0xf] %vm6749_vm4, %v6723_v28  ;;  %v6624_v17 = vadd.f32 %v6542_v53, %v6281_v30  ;;  %v5954_v53 = vunpack.c.l.bf16 %v7759_v26  ;;  %v6077_v28 = vrot.slane %v5955_v57, 1  ;;  %v6421_v30 = vsel %vm885_vm3, %v6419_v18, %v6420_v61 }
 0x45a   : > { %v6548_v11 = vpop.f32.mrf.mxu1  ;;  %v5451_v20 = vpop.f32.mrf.mxu2 }
 0x45b   : > { %v6660_v16 = vadd.f32 %v10625_v31, %v6624_v17  ;;  %v5531_v12 = vadd.f32 %v5451_v20, %v11107_v59  ;;  %v6076_v62 = vrot.slane %v5954_v53, 1 }
 0x45c   : > { %7713 = vmatmul.msk.f32.gmra.mxu3 %vm475_vm1, %v8170_v34  ;;  %v5325_v34 = vrot.slane %v5241_v37, 2  ;;  %v5615_v37 = vunpack.c.h.bf16 %v7680_v3 }
 0x45d   : > { %7845 = vmatmul.msk.f32.gmra.mxu1 %vm475_vm1, %v6418_v14  ;;  %v6692_v21 = vmax.f32 %v6660_v16, 0.0  ;;  %v5843_v6 = vadd.f32 %v5763_v29, %v5531_v12  ;;  %v6205_v42 = vpop.f32.mrf.mxu0  ;;  %v6078_v35 = vsel %vm391_vm2, %v6076_v62, %v6077_v28  ;;  %v6422_v14 = vrot.slane %v5956_v36, 2  ;;  %v11109_v12 = vld [vmem:[#allocation15_spill] sm:$0xff] }
 0x45e   : > { %v5327_v1 = vsel %vm885_vm3, %v5325_v34, %v10291_v46  ;;  %v11110_v57 = vunpack.c.l.bf16 %v11109_v12 }
 0x45f   : > { %v6724_v33 = vpack.c.bf16 %v6692_v21, %v6692_v21  ;;  %v6282_v2 = vadd.f32 %v6202_v40, %v5843_v6  ;;  %7647 = vmatmul.msk.f32.gmra.mxu2 %vm475_vm1, %v5324_v24  ;;  %v5766_v56 = vpop.f32.mrf.mxu3  ;;  %v7618_v21 = vld [vmem:[%s9252_s6 + $0xb4] sm:$0xe]  ;;  %v6423_v18 = vsel %vm885_vm3, %v6420_v61, %v6422_v14 }
 0x460   : > { %7795 = vmatmul.msk.f32.gmra.mxu0 %vm475_vm1, %v6075_v55  ;;  %v5328_v24 = vrot.slane %v11110_v57, 2  ;;  %v6079_v55 = vrot.slane %v5956_v36, 1  ;;  %v5242_v9 = vunpack.c.l.bf16 %v7618_v21  ;;  %v11111_v36 = vunpack.c.h.bf16 %v10272_v60 }
 0x461   : > { %6757 = vst.msk [vmem:[%s10641_s21 + $0x1c] sm:$0xf] %vm6749_vm4, %v6724_v33  ;;  %v6625_v19 = vadd.f32 %v6545_v54, %v6282_v2  ;;  %v6336_v33 = vunpack.c.l.bf16 %v7816_v32 }
 0x462   : > { %v6551_v63 = vpop.f32.mrf.mxu1  ;;  %v5454_v29 = vpop.f32.mrf.mxu2  ;;  %v5329_v3 = vsel %vm885_vm3, %v10291_v46, %v5328_v24 }
 0x463   : > { %v6661_v40 = vadd.f32 %v10625_v31, %v6625_v19  ;;  %v5532_v23 = vadd.f32 %v5454_v29, %v11108_v45 }
 0x464   : > { %7714 = vmatmul.msk.f32.gmra.mxu3 %vm475_vm1, %v5614_v49 }
 0x465   : > { %7846 = vmatmul.msk.f32.gmra.mxu1 %vm475_vm1, %v6421_v30  ;;  %v6693_v54 = vmax.f32 %v6661_v40, 0.0  ;;  %v5844_v26 = vadd.f32 %v5766_v56, %v5532_v23  ;;  %v6208_v17 = vpop.f32.mrf.mxu0  ;;  %v6424_v30 = vrot.slane %v6336_v33, 2  ;;  %v5330_v23 = vrot.slane %v5242_v9, 2 }
 0x467   : > { %v6725_v20 = vpack.c.bf16 %v6693_v54, %v6693_v54  ;;  %v6283_v16 = vadd.f32 %v6205_v42, %v5844_v26  ;;  %7648 = vmatmul.msk.f32.gmra.mxu2 %vm475_vm1, %v5327_v1  ;;  %v5769_v59 = vpop.f32.mrf.mxu3  ;;  %v8283_v42 = vld [vmem:[%s9252_s6 + $0xc0] sm:$0xff]   ;;  %v5331_v1 = vrot.slane %v11111_v36, 2 }
 0x468   : > { %7796 = vmatmul.msk.f32.gmra.mxu0 %vm475_vm1, %v6078_v35  ;;  %v8174_v49 = vunpack.c.h.bf16 %v8283_v42  ;;  %v8173_v46 = vunpack.c.l.bf16 %v8283_v42 }
 0x469   : > { %6758 = vst.msk [vmem:[%s10641_s21 + $0x20] sm:$0xf] %vm6749_vm4, %v6725_v20  ;;  %v6626_v53 = vadd.f32 %v6548_v11, %v6283_v16  ;;  %v6080_v11 = vsel %vm391_vm2, %v6077_v28, %v6079_v55  ;;  %v7764_v28 = vld [vmem:[%s9252_s6 + $0xc8] sm:$0x1]  ;;  %v11112_v16 = vld [vmem:[#allocation25_spill] sm:$0xff]  ;;  %v5332_v60 = vsel %vm885_vm3, %v5330_v23, %v5331_v1 }
 0x46a   : > { %v6554_v6 = vpop.f32.mrf.mxu1  ;;  %v5457_v2 = vpop.f32.mrf.mxu2  ;;  %v6425_v29 = vrot.slane %v8174_v49, 2  ;;  %v6081_v35 = vrot.slane %v8173_v46, 1  ;;  %v6082_v14 = vrot.slane %v8174_v49, 1  ;;  %v5959_v12 = vunpack.c.l.bf16 %v7764_v28 }
 0x46b   : > { %v6662_v56 = vadd.f32 %v10625_v31, %v6626_v53  ;;  %v5533_v34 = vadd.f32 %v5457_v2, %v10302_v44  ;;  %v7817_v53 = vld [vmem:[%s9252_s6 + $0xcc] sm:$0xe] }
 0x46c   : > { %7715 = vmatmul.msk.f32.gmra.mxu3 %vm475_vm1, %v5615_v37  ;;  %v6083_v37 = vsel %vm391_vm2, %v6081_v35, %v6082_v14  ;;  %v6427_v55 = vrot.slane %v5959_v12, 2  ;;  %v11113_v2 = vld [vmem:[#allocation23_spill] sm:$0xff] }
 0x46d   : > { %7847 = vmatmul.msk.f32.gmra.mxu1 %vm475_vm1, %v6423_v18  ;;  %v6694_v61 = vmax.f32 %v6662_v56, 0.0  ;;  %v5845_v19 = vadd.f32 %v5769_v59, %v5533_v34  ;;  %v6211_v62 = vpop.f32.mrf.mxu0  ;;  %v11114_v42 = vunpack.c.l.bf16 %v11113_v2  ;;  %v6084_v34 = vrot.slane %v5959_v12, 1  ;;  %v7684_v35 = vld [vmem:[%s9252_s6 + $0xcc] sm:$0xff]  }
 0x46f   : > { %v6726_v40 = vpack.c.bf16 %v6694_v61, %v6694_v61  ;;  %v6284_v44 = vadd.f32 %v6208_v17, %v5845_v19  ;;  %7649 = vmatmul.msk.f32.gmra.mxu2 %vm475_vm1, %v5329_v3  ;;  %v5772_v45 = vpop.f32.mrf.mxu3  ;;  %v6426_v17 = vsel %vm885_vm3, %v6424_v30, %v6425_v29  ;;  %v5333_v56 = vrot.slane %v11114_v42, 2  ;;  %v7765_v3 = vld [vmem:[%s9252_s6 + $0xcc] sm:$0xff]  }
 0x470   : > { %7797 = vmatmul.msk.f32.gmra.mxu0 %vm475_vm1, %v6080_v11  ;;  %v7619_v11 = vld [vmem:[%s9252_s6 + $0xc0] sm:$0xe]  ;;  %v6428_v19 = vsel %vm885_vm3, %v6425_v29, %v6427_v55  ;;  %v6337_v30 = vunpack.c.l.bf16 %v7817_v53  ;;  %v6085_v36 = vsel %vm391_vm2, %v6082_v14, %v6084_v34  ;;  %v5618_v14 = vunpack.c.l.bf16 %v7684_v35 }
 0x471   : > { %6759 = vst.msk [vmem:[%s10641_s21 + $0x24] sm:$0xf] %vm6749_vm4, %v6726_v40  ;;  %v6627_v54 = vadd.f32 %v6551_v63, %v6284_v44  ;;  %v5243_v23 = vunpack.c.l.bf16 %v7619_v11 }
 0x472   : > { %v6557_v26 = vpop.f32.mrf.mxu1  ;;  %v5460_v32 = vpop.f32.mrf.mxu2 }
 0x473   : > { %v6663_v20 = vadd.f32 %v10625_v31, %v6627_v54  ;;  %v5534_v59 = vadd.f32 %v5460_v32, %v11112_v16  ;;  %v5336_v16 = vrot.slane %v10324_v39, 2 }
 0x474   : > { %7716 = vmatmul.msk.f32.gmra.mxu3 %vm475_vm1, %v8173_v46  ;;  %v5334_v46 = vsel %vm885_vm3, %v5331_v1, %v5333_v56 }
 0x475   : > { %7848 = vmatmul.msk.f32.gmra.mxu1 %vm475_vm1, %v6426_v17  ;;  %v6695_v63 = vmax.f32 %v6663_v20, 0.0  ;;  %v5846_v57 = vadd.f32 %v5772_v45, %v5534_v59  ;;  %v6214_v24 = vpop.f32.mrf.mxu0  ;;  %v5961_v45 = vunpack.c.h.bf16 %v7765_v3  ;;  %v6429_v17 = vrot.slane %v6337_v30, 2  ;;  %v7767_v59 = vld [vmem:[%s9252_s6 + $0xd4] sm:$0x1] }
 0x477   : > { %v6727_v21 = vpack.c.bf16 %v6695_v63, %v6695_v63  ;;  %v6285_v18 = vadd.f32 %v6211_v62, %v5846_v57  ;;  %7650 = vmatmul.msk.f32.gmra.mxu2 %vm475_vm1, %v5332_v60  ;;  %v5775_v33 = vpop.f32.mrf.mxu3  ;;  %v6430_v32 = vrot.slane %v5961_v45, 2  ;;  %v6087_v57 = vrot.slane %v5961_v45, 1 }
 0x478   : > { %7798 = vmatmul.msk.f32.gmra.mxu0 %vm475_vm1, %v6083_v37 }
 0x479   : > { %6760 = vst.msk [vmem:[%s10641_s21 + $0x28] sm:$0xf] %vm6749_vm4, %v6727_v21  ;;  %v6628_v9 = vadd.f32 %v6554_v6, %v6285_v18  ;;  %v5960_v6 = vunpack.c.l.bf16 %v7765_v3  ;;  %v6431_v37 = vsel %vm885_vm3, %v6429_v17, %v6430_v32  ;;  %v5962_v21 = vunpack.c.l.bf16 %v7767_v59 }
 0x47a   : > { %v6560_v61 = vpop.f32.mrf.mxu1  ;;  %v5463_v62 = vpop.f32.mrf.mxu2 }
 0x47b   : > { %v6664_v40 = vadd.f32 %v10625_v31, %v6628_v9  ;;  %v5535_v44 = vadd.f32 %v5463_v62, %v10339_v13  ;;  %v6086_v63 = vrot.slane %v5960_v6, 1  ;;  %v6432_v42 = vrot.slane %v5962_v21, 2 }
 0x47c   : > { %7717 = vmatmul.msk.f32.gmra.mxu3 %vm475_vm1, %v8174_v49  ;;  %v5335_v49 = vrot.slane %v5243_v23, 2 }
 0x47d   : > { %7849 = vmatmul.msk.f32.gmra.mxu1 %vm475_vm1, %v6428_v19  ;;  %v6696_v29 = vmax.f32 %v6664_v40, 0.0  ;;  %v5847_v28 = vadd.f32 %v5775_v33, %v5535_v44  ;;  %v6217_v54 = vpop.f32.mrf.mxu0  ;;  %v6088_v2 = vsel %vm391_vm2, %v6086_v63, %v6087_v57  ;;  %v5619_v19 = vunpack.c.h.bf16 %v7684_v35 }
 0x47e   : > { %v5337_v39 = vsel %vm885_vm3, %v5335_v49, %v5336_v16  ;;  %v6089_v40 = vrot.slane %v5962_v21, 1  ;;  %v6433_v44 = vsel %vm885_vm3, %v6430_v32, %v6432_v42 }
 0x47f   : > { %v6728_v13 = vpack.c.bf16 %v6696_v29, %v6696_v29  ;;  %v6286_v20 = vadd.f32 %v6214_v24, %v5847_v28  ;;  %7651 = vmatmul.msk.f32.gmra.mxu2 %vm475_vm1, %v5334_v46  ;;  %v5778_v1 = vpop.f32.mrf.mxu3 }
 0x480   : > { %7799 = vmatmul.msk.f32.gmra.mxu0 %vm475_vm1, %v6085_v36 }
 0x481   : > { %6761 = vst.msk [vmem:[%s10641_s21 + $0x2c] sm:$0xf] %vm6749_vm4, %v6728_v13  ;;  %v6629_v12 = vadd.f32 %v6557_v26, %v6286_v20 }
 0x482   : > { %v6563_v60 = vpop.f32.mrf.mxu1  ;;  %v5466_v55 = vpop.f32.mrf.mxu2 }
 0x483   : > { %v6665_v24 = vadd.f32 %v10625_v31, %v6629_v12  ;;  %v5536_v53 = vadd.f32 %v5466_v55, %v10353_v15  ;;  %v11115_v15 = vld [vmem:[#allocation26_spill] sm:$0xff] }
 0x484   : > { %7718 = vmatmul.msk.f32.gmra.mxu3 %vm475_vm1, %v5618_v14  ;;  %v11116_v9 = vunpack.c.l.bf16 %v11115_v15 }
 0x485   : > { %7850 = vmatmul.msk.f32.gmra.mxu1 %vm475_vm1, %v6431_v37  ;;  %v6697_v18 = vmax.f32 %v6665_v24, 0.0  ;;  %v5848_v26 = vadd.f32 %v5778_v1, %v5536_v53  ;;  %v6220_v33 = vpop.f32.mrf.mxu0 }
 0x486   : > { %v5338_v11 = vrot.slane %v11116_v9, 2 }
 0x487   : > { %v6729_v56 = vpack.c.bf16 %v6697_v18, %v6697_v18  ;;  %v6287_v34 = vadd.f32 %v6217_v54, %v5848_v26  ;;  %7652 = vmatmul.msk.f32.gmra.mxu2 %vm475_vm1, %v5337_v39  ;;  %v5781_v3 = vpop.f32.mrf.mxu3 }
 0x488   : > { %7800 = vmatmul.msk.f32.gmra.mxu0 %vm475_vm1, %v6088_v2  ;;  %v5339_v36 = vsel %vm885_vm3, %v5336_v16, %v5338_v11 }
 0x489   : > { %6762 = vst.msk [vmem:[%s10641_s21 + $0x30] sm:$0xf] %vm6749_vm4, %v6729_v56  ;;  %v6630_v30 = vadd.f32 %v6560_v61, %v6287_v34  ;;  %v6090_v61 = vsel %vm391_vm2, %v6087_v57, %v6089_v40 }
 0x48a   : > { %v6566_v62 = vpop.f32.mrf.mxu1  ;;  %v5469_v45 = vpop.f32.mrf.mxu2 }
 0x48b   : > { %v6666_v46 = vadd.f32 %v10625_v31, %v6630_v30  ;;  %v5537_v23 = vadd.f32 %v5469_v45, %v10369_v10 }
 0x48c   : > { %7719 = vmatmul.msk.f32.gmra.mxu3 %vm475_vm1, %v5619_v19 }
 0x48d   : > { %7851 = vmatmul.msk.f32.gmra.mxu1 %vm475_vm1, %v6433_v44  ;;  %v6698_v6 = vmax.f32 %v6666_v46, 0.0  ;;  %v5849_v29 = vadd.f32 %v5781_v3, %v5537_v23  ;;  %v6223_v28 = vpop.f32.mrf.mxu0 }
 0x48f   : > { %v6730_v54 = vpack.c.bf16 %v6698_v6, %v6698_v6  ;;  %v6288_v35 = vadd.f32 %v6220_v33, %v5849_v29  ;;  %7653 = vmatmul.msk.f32.gmra.mxu2 %vm475_vm1, %v5339_v36  ;;  %v5784_v17 = vpop.f32.mrf.mxu3 }
 0x490   : > { %7801 = vmatmul.msk.f32.gmra.mxu0 %vm475_vm1, %v6090_v61 }
 0x491   : > { %6763 = vst.msk [vmem:[%s10641_s21 + $0x34] sm:$0xf] %vm6749_vm4, %v6730_v54  ;;  %v6631_v10 = vadd.f32 %v6563_v60, %v6288_v35 }
 0x492   : > { %v6569_v32 = vpop.f32.mrf.mxu1  ;;  %v5472_v13 = vpop.f32.mrf.mxu2 }
 0x493   : > { %v6667_v20 = vadd.f32 %v10625_v31, %v6631_v10  ;;  %v5538_v1 = vadd.f32 %v5472_v13, %v10383_v47 }
 0x495   : > { %v6699_v49 = vmax.f32 %v6667_v20, 0.0  ;;  %v5850_v16 = vadd.f32 %v5784_v17, %v5538_v1  ;;  %v6226_v14 = vpop.f32.mrf.mxu0 }
 0x497   : > { %v6731_v59 = vpack.c.bf16 %v6699_v49, %v6699_v49  ;;  %v6289_v12 = vadd.f32 %v6223_v28, %v5850_v16  ;;  %v5787_v63 = vpop.f32.mrf.mxu3 }
 0x499   : > { %6764 = vst.msk [vmem:[%s10641_s21 + $0x38] sm:$0xf] %vm6749_vm4, %v6731_v59  ;;  %v6632_v57 = vadd.f32 %v6566_v62, %v6289_v12 }
 0x49a   : > { %v6572_v37 = vpop.f32.mrf.mxu1  ;;  %v5475_v55 = vpop.f32.mrf.mxu2 }
 0x49b   : > { %v6668_v60 = vadd.f32 %v10625_v31, %v6632_v57  ;;  %v5539_v24 = vadd.f32 %v5475_v55, %v10396_v52 }
 0x49d   : > { %v6700_v53 = vmax.f32 %v6668_v60, 0.0  ;;  %v5851_v21 = vadd.f32 %v5787_v63, %v5539_v24  ;;  %v6229_v39 = vpop.f32.mrf.mxu0 }
 0x49f   : > { %v6732_v47 = vpack.c.bf16 %v6700_v53, %v6700_v53  ;;  %v6290_v18 = vadd.f32 %v6226_v14, %v5851_v21  ;;  %v5790_v26 = vpop.f32.mrf.mxu3 }
 0x4a1   : > { %6765 = vst.msk [vmem:[%s10641_s21 + $0x3c] sm:$0xf] %vm6749_vm4, %v6732_v47  ;;  %v6633_v33 = vadd.f32 %v6569_v32, %v6290_v18 }
 0x4a2   : > { %v6575_v2 = vpop.f32.mrf.mxu1  ;;  %v5478_v42 = vpop.f32.mrf.mxu2 }
 0x4a3   : > { %v6669_v56 = vadd.f32 %v10625_v31, %v6633_v33  ;;  %v5540_v34 = vadd.f32 %v5478_v42, %v10410_v48 }
 0x4a5   : > { %v6701_v3 = vmax.f32 %v6669_v56, 0.0  ;;  %v5852_v15 = vadd.f32 %v5790_v26, %v5540_v34  ;;  %v6232_v9 = vpop.f32.mrf.mxu0 }
 0x4a7   : > { %v6733_v52 = vpack.c.bf16 %v6701_v3, %v6701_v3  ;;  %v6291_v11 = vadd.f32 %v6229_v39, %v5852_v15  ;;  %v5793_v19 = vpop.f32.mrf.mxu3 }
 0x4a9   : > { %6766 = vst.msk [vmem:[%s10641_s21 + $0x40] sm:$0xf] %vm6749_vm4, %v6733_v52  ;;  %v6634_v30 = vadd.f32 %v6572_v37, %v6291_v11 }
 0x4aa   : > { %v6578_v62 = vpop.f32.mrf.mxu1  ;;  %v5481_v40 = vpop.f32.mrf.mxu2 }
 0x4ab   : > { %v6670_v44 = vadd.f32 %v10625_v31, %v6634_v30  ;;  %v5541_v45 = vadd.f32 %v5481_v40, %v10426_v27 }
 0x4ad   : > { %v6702_v46 = vmax.f32 %v6670_v44, 0.0  ;;  %v5853_v23 = vadd.f32 %v5793_v19, %v5541_v45  ;;  %v6235_v36 = vpop.f32.mrf.mxu0 }
 0x4af   : > { %v6734_v48 = vpack.c.bf16 %v6702_v46, %v6702_v46  ;;  %v6292_v6 = vadd.f32 %v6232_v9, %v5853_v23  ;;  %v5796_v29 = vpop.f32.mrf.mxu3 }
 0x4b1   : > { %6767 = vst.msk [vmem:[%s10641_s21 + $0x44] sm:$0xf] %vm6749_vm4, %v6734_v48  ;;  %v6635_v28 = vadd.f32 %v6575_v2, %v6292_v6 }
 0x4b2   : > { %v6581_v61 = vpop.f32.mrf.mxu1  ;;  %v5484_v54 = vpop.f32.mrf.mxu2 }
 0x4b3   : > { %v6671_v35 = vadd.f32 %v10625_v31, %v6635_v28  ;;  %v5542_v17 = vadd.f32 %v5484_v54, %v10440_v8 }
 0x4b5   : > { %v6703_v10 = vmax.f32 %v6671_v35, 0.0  ;;  %v5854_v32 = vadd.f32 %v5796_v29, %v5542_v17  ;;  %v6238_v13 = vpop.f32.mrf.mxu0 }
 0x4b7   : > { %v6735_v27 = vpack.c.bf16 %v6703_v10, %v6703_v10  ;;  %v6293_v20 = vadd.f32 %v6235_v36, %v5854_v32  ;;  %v5799_v1 = vpop.f32.mrf.mxu3 }
 0x4b9   : > { %6768 = vst.msk [vmem:[%s10641_s21 + $0x48] sm:$0xf] %vm6749_vm4, %v6735_v27  ;;  %v6636_v49 = vadd.f32 %v6578_v62, %v6293_v20 }
 0x4ba   : > { %v6584_v16 = vpop.f32.mrf.mxu1  ;;  %v5487_v14 = vpop.f32.mrf.mxu2 }
 0x4bb   : > { %v6672_v59 = vadd.f32 %v10625_v31, %v6636_v49  ;;  %v5543_v12 = vadd.f32 %v5487_v14, %v10453_v38  ;;  %v10886_v14 = vld [vmem:[%s10926_s4] ss:$0 sm:$0xff] }
 0x4bd   : > { %v6704_v63 = vmax.f32 %v6672_v59, 0.0  ;;  %v5855_v57 = vadd.f32 %v5799_v1, %v5543_v12  ;;  %v6241_v37 = vpop.f32.mrf.mxu0 }
 0x4bf   : > { %v6736_v8 = vpack.c.bf16 %v6704_v63, %v6704_v63  ;;  %v6294_v55 = vadd.f32 %v6238_v13, %v5855_v57  ;;  %v5802_v60 = vpop.f32.mrf.mxu3 }
 0x4c1   : > { %6769 = vst.msk [vmem:[%s10641_s21 + $0x4c] sm:$0xf] %vm6749_vm4, %v6736_v8  ;;  %v6637_v24 = vadd.f32 %v6581_v61, %v6294_v55 }
 0x4c2   : > { %v6587_v53 = vpop.f32.mrf.mxu1  ;;  %v5490_v21 = vpop.f32.mrf.mxu2 }
 0x4c3   : > { %v6673_v39 = vadd.f32 %v10625_v31, %v6637_v24  ;;  %v5544_v47 = vadd.f32 %v5490_v21, %v10467_v22 }
 0x4c5   : > { %v6705_v18 = vmax.f32 %v6673_v39, 0.0  ;;  %v5856_v26 = vadd.f32 %v5802_v60, %v5544_v47  ;;  %v6244_v33 = vpop.f32.mrf.mxu0 }
 0x4c7   : > { %v6737_v38 = vpack.c.bf16 %v6705_v18, %v6705_v18  ;;  %v6295_v2 = vadd.f32 %v6241_v37, %v5856_v26  ;;  %v5805_v42 = vpop.f32.mrf.mxu3 }
 0x4c9   : > { %6770 = vst.msk [vmem:[%s10641_s21 + $0x50] sm:$0xf] %vm6749_vm4, %v6737_v38  ;;  %v6638_v56 = vadd.f32 %v6584_v16, %v6295_v2 }
 0x4ca   : > { %v6590_v34 = vpop.f32.mrf.mxu1  ;;  %v5493_v3 = vpop.f32.mrf.mxu2 }
 0x4cb   : > { %v6674_v15 = vadd.f32 %v10625_v31, %v6638_v56  ;;  %v5545_v9 = vadd.f32 %v5493_v3, %v10483_v5 }
 0x4cd   : > { %v6706_v52 = vmax.f32 %v6674_v15, 0.0  ;;  %v5857_v11 = vadd.f32 %v5805_v42, %v5545_v9  ;;  %v6247_v19 = vpop.f32.mrf.mxu0 }
 0x4cf   : > { %v6738_v22 = vpack.c.bf16 %v6706_v52, %v6706_v52  ;;  %v6296_v30 = vadd.f32 %v6244_v33, %v5857_v11  ;;  %v5808_v62 = vpop.f32.mrf.mxu3 }
 0x4d1   : > { %6771 = vst.msk [vmem:[%s10641_s21 + $0x54] sm:$0xf] %vm6749_vm4, %v6738_v22  ;;  %v6639_v40 = vadd.f32 %v6587_v53, %v6296_v30 }
 0x4d2   : > { %v6593_v44 = vpop.f32.mrf.mxu1  ;;  %v5496_v45 = vpop.f32.mrf.mxu2 }
 0x4d3   : > { %v6675_v46 = vadd.f32 %v10625_v31, %v6639_v40  ;;  %v5546_v23 = vadd.f32 %v5496_v45, %v10497_v41 }
 0x4d5   : > { %v6707_v36 = vmax.f32 %v6675_v46, 0.0  ;;  %v5858_v48 = vadd.f32 %v5808_v62, %v5546_v23  ;;  %v6250_v6 = vpop.f32.mrf.mxu0 }
 0x4d7   : > { %v6739_v5 = vpack.c.bf16 %v6707_v36, %v6707_v36  ;;  %v6297_v29 = vadd.f32 %v6247_v19, %v5858_v48  ;;  %v5811_v28 = vpop.f32.mrf.mxu3 }
 0x4d9   : > { %6772 = vst.msk [vmem:[%s10641_s21 + $0x58] sm:$0xf] %vm6749_vm4, %v6739_v5  ;;  %v6640_v61 = vadd.f32 %v6590_v34, %v6297_v29 }
 0x4da   : > { %v5499_v54 = vpop.f32.mrf.mxu2  ;;  %v6596_v35 = vpop.f32.mrf.mxu1 }
 0x4db   : > { %v6676_v17 = vadd.f32 %v10625_v31, %v6640_v61  ;;  %v5547_v10 = vadd.f32 %v5499_v54, %v10510_v4 }
 0x4dd   : > { %v6708_v32 = vmax.f32 %v6676_v17, 0.0  ;;  %v5859_v13 = vadd.f32 %v5811_v28, %v5547_v10  ;;  %v6253_v27 = vpop.f32.mrf.mxu0 }
 0x4df   : > { %v6740_v41 = vpack.c.bf16 %v6708_v32, %v6708_v32  ;;  %v6298_v20 = vadd.f32 %v6250_v6, %v5859_v13  ;;  %v5814_v1 = vpop.f32.mrf.mxu3 }
 0x4e1   : > { %6773 = vst.msk [vmem:[%s10641_s21 + $0x5c] sm:$0xf] %vm6749_vm4, %v6740_v41  ;;  %v6641_v49 = vadd.f32 %v6593_v44, %v6298_v20 }
 0x4e2   : > { %v5502_v16 = vpop.f32.mrf.mxu2  ;;  %v6599_v59 = vpop.f32.mrf.mxu1 }
 0x4e3   : > { %v6677_v31 = vadd.f32 %v10886_v14, %v6641_v49  ;;  %v5548_v4 = vadd.f32 %v5502_v16, %v10524_v7 }
 0x4e5   : > { %v6709_v12 = vmax.f32 %v6677_v31, 0.0  ;;  %v5860_v63 = vadd.f32 %v5814_v1, %v5548_v4  ;;  %v6256_v57 = vpop.f32.mrf.mxu0 }
 0x4e7   : > { %v6741_v37 = vpack.c.bf16 %v6709_v12, %v6709_v12  ;;  %v6299_v8 = vadd.f32 %v6253_v27, %v5860_v63  ;;  %v5817_v55 = vpop.f32.mrf.mxu3 }
 0x4e9   : > { %6774 = vst.msk [vmem:[%s10641_s21 + $0x60] sm:$0xf] %vm6749_vm4, %v6741_v37  ;;  %v6642_v60 = vadd.f32 %v6596_v35, %v6299_v8 }
 0x4ea   : > { %v5505_v24 = vpop.f32.mrf.mxu2  ;;  %v6602_v7 = vpop.f32.mrf.mxu1 }
 0x4eb   : > { %v6678_v53 = vadd.f32 %v10886_v14, %v6642_v60  ;;  %v5549_v21 = vadd.f32 %v5505_v24, %v10540_v50 }
 0x4ed   : > { %v6710_v39 = vmax.f32 %v6678_v53, 0.0  ;;  %v5861_v47 = vadd.f32 %v5817_v55, %v5549_v21  ;;  %v6259_v18 = vpop.f32.mrf.mxu0 }
 0x4ef   : > { %v6742_v26 = vpack.c.bf16 %v6710_v39, %v6710_v39  ;;  %v6300_v33 = vadd.f32 %v6256_v57, %v5861_v47  ;;  %v5820_v38 = vpop.f32.mrf.mxu3 }
 0x4f1   : > { %6775 = vst.msk [vmem:[%s10641_s21 + $0x64] sm:$0xf] %vm6749_vm4, %v6742_v26  ;;  %v6643_v2 = vadd.f32 %v6599_v59, %v6300_v33 }
 0x4f2   : > { %v5508_v42 = vpop.f32.mrf.mxu2  ;;  %v6605_v19 = vpop.f32.mrf.mxu1 }
 0x4f3   : > { %v6679_v56 = vadd.f32 %v10886_v14, %v6643_v2  ;;  %v5550_v34 = vadd.f32 %v5508_v42, %v10554_v43 }
 0x4f5   : > { %v6711_v3 = vmax.f32 %v6679_v56, 0.0  ;;  %v5862_v15 = vadd.f32 %v5820_v38, %v5550_v34  ;;  %v6262_v9 = vpop.f32.mrf.mxu0 }
 0x4f7   : > { %v6743_v50 = vpack.c.bf16 %v6711_v3, %v6711_v3  ;;  %v6301_v52 = vadd.f32 %v6259_v18, %v5862_v15  ;;  %v5823_v11 = vpop.f32.mrf.mxu3 }
 0x4f9   : > { %6776 = vst.msk [vmem:[%s10641_s21 + $0x68] sm:$0xf] %vm6749_vm4, %v6743_v50  ;;  %v6644_v22 = vadd.f32 %v6602_v7, %v6301_v52 }
 0x4fa   : > { %v5511_v30 = vpop.f32.mrf.mxu2  ;;  %v6608_v5 = vpop.f32.mrf.mxu1 }
 0x4fb   : > { %v6680_v62 = vadd.f32 %v10886_v14, %v6644_v22  ;;  %v5551_v40 = vadd.f32 %v5511_v30, %v10567_v25 }
 0x4fd   : > { %v6712_v44 = vmax.f32 %v6680_v62, 0.0  ;;  %v5863_v45 = vadd.f32 %v5823_v11, %v5551_v40  ;;  %v6265_v36 = vpop.f32.mrf.mxu0 }
 0x4ff   : > { %v6744_v43 = vpack.c.bf16 %v6712_v44, %v6712_v44  ;;  %v6302_v46 = vadd.f32 %v6262_v9, %v5863_v45  ;;  %v5826_v23 = vpop.f32.mrf.mxu3 }
 0x501   : > { %6777 = vst.msk [vmem:[%s10641_s21 + $0x6c] sm:$0xf] %vm6749_vm4, %v6744_v43  ;;  %v6645_v48 = vadd.f32 %v6605_v19, %v6302_v46 }
 0x502   : > { %v5514_v6 = vpop.f32.mrf.mxu2  ;;  %v6611_v20 = vpop.f32.mrf.mxu1 }
 0x503   : > { %v6681_v29 = vadd.f32 %v10886_v14, %v6645_v48  ;;  %v5552_v28 = vadd.f32 %v5514_v6, %v10581_v0 }
 0x505   : > { %v6713_v61 = vmax.f32 %v6681_v29, 0.0  ;;  %v5864_v54 = vadd.f32 %v5826_v23, %v5552_v28  ;;  %v6268_v13 = vpop.f32.mrf.mxu0 }
 0x507   : > { %v6745_v25 = vpack.c.bf16 %v6713_v61, %v6713_v61  ;;  %v6303_v35 = vadd.f32 %v6265_v36, %v5864_v54  ;;  %v5829_v17 = vpop.f32.mrf.mxu3 }
 0x509   : > { %6778 = vst.msk [vmem:[%s10641_s21 + $0x70] sm:$0xf] %vm6749_vm4, %v6745_v25  ;;  %v6646_v10 = vadd.f32 %v6608_v5, %v6303_v35 }
 0x50a   : > { %v5517_v32 = vpop.f32.mrf.mxu2 }
 0x50b   : > { %v6682_v27 = vadd.f32 %v10886_v14, %v6646_v10  ;;  %v5553_v41 = vadd.f32 %v5517_v32, %v10597_v51  ;;  %v6614_v51 = vpop.f32.mrf.mxu1 }
 0x50d   : > { %v6714_v1 = vmax.f32 %v6682_v27, 0.0  ;;  %v5865_v49 = vadd.f32 %v5829_v17, %v5553_v41  ;;  %v6271_v57 = vpop.f32.mrf.mxu0 }
 0x50f   : > { %v6746_v0 = vpack.c.bf16 %v6714_v1, %v6714_v1  ;;  %v6304_v16 = vadd.f32 %v6268_v13, %v5865_v49  ;;  %v5832_v59 = vpop.f32.mrf.mxu3 }
 0x511   : > { %6779 = vst.msk [vmem:[%s10641_s21 + $0x74] sm:$0xf] %vm6749_vm4, %v6746_v0  ;;  %v6647_v31 = vadd.f32 %v6611_v20, %v6304_v16 }
 0x512   : > { %v5520_v4 = vpop.f32.mrf.mxu2 }
 0x513   : > { %v6683_v12 = vadd.f32 %v10886_v14, %v6647_v31  ;;  %v5554_v63 = vadd.f32 %v5520_v4, %v10611_v58 }
 0x515   : > { %v6715_v37 = vmax.f32 %v6683_v12, 0.0  ;;  %v5866_v8 = vadd.f32 %v5832_v59, %v5554_v63 }
 0x517   : > { %v6747_v55 = vpack.c.bf16 %v6715_v37, %v6715_v37  ;;  %v6305_v60 = vadd.f32 %v6271_v57, %v5866_v8 }
 0x519   : > { %6780 = vst.msk [vmem:[%s10641_s21 + $0x78] sm:$0xf] %vm6749_vm4, %v6747_v55  ;;  %v6648_v24 = vadd.f32 %v6614_v51, %v6305_v60 }
 0x51b   : > { %v6684_v53 = vadd.f32 %v10886_v14, %v6648_v24 }
 0x51d   : > { %v6716_v21 = vmax.f32 %v6684_v53, 0.0 }
 0x51f   : > { %v6748_v39 = vpack.c.bf16 %v6716_v21, %v6716_v21 }
 0x521   : > { %6781 = vst.msk [vmem:[%s10641_s21 + $0x7c] sm:$0xf] %vm6749_vm4, %v6748_v39 }
 0x522 PF: > { %s15_s18 = sadd.s32 1, %s8311_s18  }
 0x523   : > { %p12_p4 = scmp.ge.s32.totalorder %s15_s18, 4  }
 0x525   :  { %14 = sbr.rel (!%p12_p4) target bundleno = 1 (0x1), region = 93 }

</bundles_post_ra>
